<compile_context>
chip_gen: v7x
topology: tpu7x:2x2x1
jax: 0.10.0
libtpu: 0.0.40
codegen_flags: <defaults>
</compile_context>

<pallas_src>
import functools

import jax
import jax.numpy as jnp
from jax.experimental import pallas as pl
from jax.experimental.pallas import tpu as pltpu


# ---------------------------------------------------------------------------
# Tunables
# ---------------------------------------------------------------------------
# Scoped VMEM budget for the conv kernels.  Full-frame blocks at the sizes
# exercised here use well under 1 MiB; raise this for large images
# (v5e/v6e: 128 MiB physical VMEM, v7x: 64 MiB).
_VMEM_LIMIT_BYTES = 32 * 1024 * 1024

# Guard band (in flattened-frame columns) is rounded up to a lane multiple so
# the interior of every frame starts lane-aligned.
_GUARD_ALIGN = 128


def _round_up(x, m):
    return ((x + m - 1) // m) * m


# ---------------------------------------------------------------------------
# Fused conv-chain Pallas kernel (Conv2d + bias + LeakyReLU(0.2), 1..L layers)
#
# Frame layout: frame[:, G + r*Wf + c] holds pixel (r, c) of the (Hf, Wf)
# padded image; all other columns (zero-padding ring + guard bands) are zero.
# A conv tap (dr, dc) is then a contiguous slice at offset G + dr*Wf + dc.
# ---------------------------------------------------------------------------
def _make_chain_kernel(layer_dims, shifts, guard, frame, total):
    """layer_dims: [(cin, cout), ...]; shifts: static flat tap offsets."""
    n_layers = len(layer_dims)

    def kernel(*refs):
        x_ref = refs[0]                                  # (1, Cin0, T) bf16
        mask_ref = refs[1]                               # (1, F) f32, resident
        wb_refs = refs[2:2 + 2 * n_layers]               # (Cout, K) / (Cout, 1)
        o_ref = refs[2 + 2 * n_layers]                   # (1, CoutL, T)
        scratch_refs = refs[3 + 2 * n_layers:]           # (Cout_l, T) bf16

        src = x_ref
        src_is_input = True
        for li, (cin, cout) in enumerate(layer_dims):
            w_ref = wb_refs[2 * li]
            b_ref = wb_refs[2 * li + 1]

            acc = jnp.zeros((cout, frame), jnp.float32)
            for t, s in enumerate(shifts):
                lo = guard + s                            # static, >= 0
                if src_is_input:
                    xs = src[0, :, lo:lo + frame]         # (cin, F) bf16
                else:
                    xs = src[:, lo:lo + frame]
                wt = w_ref[:, t * cin:(t + 1) * cin]      # (cout, cin) bf16
                acc = acc + jnp.dot(wt, xs,
                                    preferred_element_type=jnp.float32)

            z = acc + b_ref[...]                          # f32 bias epilogue
            z = jnp.maximum(z, 0.2 * z)                   # LeakyReLU(0.2)
            z = z * mask_ref[...]                         # keep pad ring at 0

            if li == n_layers - 1:
                o_ref[0, :, 0:guard] = jnp.zeros((cout, guard), o_ref.dtype)
                o_ref[0, :, guard + frame:total] = jnp.zeros(
                    (cout, guard), o_ref.dtype)
                o_ref[0, :, guard:guard + frame] = z.astype(o_ref.dtype)
            else:
                s_ref = scratch_refs[li]                  # intermediate in VMEM
                s_ref[:, 0:guard] = jnp.zeros((cout, guard), s_ref.dtype)
                s_ref[:, guard + frame:total] = jnp.zeros(
                    (cout, guard), s_ref.dtype)
                s_ref[:, guard:guard + frame] = z.astype(s_ref.dtype)
                src = s_ref
                src_is_input = False

    return kernel


def _conv_chain_frames(xf, mask, layers, shifts, guard, frame, total,
                       out_dtype):
    """Run a chain of ConvBlocks on frames xf (N, Cin0, T) -> (N, CoutL, T)."""
    n, c0, t = xf.shape
    assert t == total
    layer_dims = []
    prev_c = c0
    for layer in layers:
        cin, cout = layer["cin"], layer["cout"]
        assert cin == prev_c, (cin, prev_c)
        assert layer["w"].shape == (cout, len(shifts) * cin)
        layer_dims.append((cin, cout))
        prev_c = cout
    cout_last = layer_dims[-1][1]

    kernel = _make_chain_kernel(layer_dims, shifts, guard, frame, total)

    in_specs = [
        pl.BlockSpec((1, c0, total), lambda i: (i, 0, 0)),   # streamed per n
        pl.BlockSpec((1, frame), lambda i: (0, 0)),          # resident mask
    ]
    operands = [xf, mask]
    for layer in layers:
        k = layer["w"].shape[1]
        in_specs.append(pl.BlockSpec((layer["cout"], k), lambda i: (0, 0)))
        in_specs.append(pl.BlockSpec((layer["cout"], 1), lambda i: (0, 0)))
        operands.append(layer["w"])
        operands.append(layer["b"])

    scratch_shapes = [
        pltpu.VMEM((cout, total), jnp.bfloat16)
        for (_, cout) in layer_dims[:-1]
    ]

    out = pl.pallas_call(
        kernel,
        out_shape=jax.ShapeDtypeStruct((n, cout_last, total), out_dtype),
        grid=(n,),
        in_specs=in_specs,
        out_specs=pl.BlockSpec((1, cout_last, total), lambda i: (i, 0, 0)),
        scratch_shapes=scratch_shapes,
        compiler_params=pltpu.CompilerParams(
            dimension_semantics=("parallel",),       # batch over v7x's 2 TCs
            vmem_limit_bytes=_VMEM_LIMIT_BYTES),
    )(*operands)
    return out


# ---------------------------------------------------------------------------
# ConvBlock wrappers (frame embed / extract done with cheap XLA copies)
# ---------------------------------------------------------------------------
def conv_block_chain(x, layers, out_dtype=jnp.bfloat16):
    """Chain of stride-1, ksize-3, pad-1 ConvBlocks on (N, C, H, W)."""
    n, c, h, w = x.shape
    hf, wf = h + 2, w + 2
    frame = hf * wf
    guard = _round_up(wf + 1, _GUARD_ALIGN)
    total = frame + 2 * guard

    xf = jnp.pad(x, ((0, 0), (0, 0), (1, 1), (1, 1))).reshape(n, c, frame)
    xf = jnp.pad(xf, ((0, 0), (0, 0), (guard, guard)))

    idx = jnp.arange(frame, dtype=jnp.int32)
    rr, cc = idx // wf, idx % wf
    mask = ((rr >= 1) & (rr <= h) & (cc >= 1) & (cc <= w))
    mask = mask.astype(jnp.float32).reshape(1, frame)

    shifts = [(dr - 1) * wf + (dc - 1) for dr in range(3) for dc in range(3)]

    out = _conv_chain_frames(xf, mask, layers, shifts, guard, frame, total,
                             out_dtype)
    cout = layers[-1]["cout"]
    out = out[:, :, guard:guard + frame].reshape(n, cout, hf, wf)
    return out[:, :, 1:h + 1, 1:w + 1]


def encoder_block(x, layer):
    """Stride-2, ksize-4, pad-1 ConvBlock via space-to-depth + 2x2-tap conv."""
    n, c, h, w = x.shape
    assert h % 2 == 0 and w % 2 == 0
    hh, wh = h // 2 + 1, w // 2 + 1
    ho, wo = h // 2, w // 2

    # pad by 1, then fold the 2x2 stride phases onto channels (space-to-depth).
    xp = jnp.pad(x, ((0, 0), (0, 0), (1, 1), (1, 1)))
    xp = xp.reshape(n, c, hh, 2, wh, 2)
    xs2d = jnp.transpose(xp, (0, 3, 5, 1, 2, 4)).reshape(n, 4 * c, hh, wh)

    frame = hh * wh
    guard = _round_up(wh + 1, _GUARD_ALIGN)
    total = frame + 2 * guard
    xf = jnp.pad(xs2d.reshape(n, 4 * c, frame),
                 ((0, 0), (0, 0), (guard, guard)))

    idx = jnp.arange(frame, dtype=jnp.int32)
    rr, cc = idx // wh, idx % wh
    mask = ((rr < ho) & (cc < wo)).astype(jnp.float32).reshape(1, frame)

    shifts = [qi * wh + qj for qi in range(2) for qj in range(2)]

    out = _conv_chain_frames(xf, mask, [layer], shifts, guard, frame, total,
                             jnp.bfloat16)
    cout = layer["cout"]
    out = out[:, :, guard:guard + frame].reshape(n, cout, hh, wh)
    return out[:, :, :ho, :wo]


def upsample_nearest_2x(x):
    """nn.Upsample(scale_factor=2, mode='nearest') on NCHW (one copy)."""
    n, c, h, w = x.shape
    y = jnp.broadcast_to(x[:, :, :, None, :, None], (n, c, h, 2, w, 2))
    return y.reshape(n, c, 2 * h, 2 * w)


# ---------------------------------------------------------------------------
# UNetCore parameters (dim=2, enc_nf=[16,32,32,32], dec_nf=[32,32,32,32,32,16,16],
# full_size=True -> vm2=True)
# ---------------------------------------------------------------------------
ENC_NF = [16, 32, 32, 32]
DEC_NF = [32, 32, 32, 32, 32, 16, 16]

# (name, in_channels, out_channels, stride)
LAYER_DEFS = [
    ("enc0", 2, ENC_NF[0], 2),
    ("enc1", ENC_NF[0], ENC_NF[1], 2),
    ("enc2", ENC_NF[1], ENC_NF[2], 2),
    ("enc3", ENC_NF[2], ENC_NF[3], 2),
    ("dec0", ENC_NF[3], DEC_NF[0], 1),
    ("dec1", DEC_NF[0] * 2, DEC_NF[1], 1),
    ("dec2", DEC_NF[1] * 2, DEC_NF[2], 1),
    ("dec3", DEC_NF[2] + ENC_NF[0], DEC_NF[3], 1),
    ("dec4", DEC_NF[3], DEC_NF[4], 1),
    ("dec5", DEC_NF[4] + 2, DEC_NF[5], 1),       # full_size branch
    ("vm2", DEC_NF[5], DEC_NF[6], 1),            # vm2 branch
]


def init_params(seed=0):
    key = jax.random.PRNGKey(seed)
    params = {}
    for name, cin, cout, stride in LAYER_DEFS:
        ksize = 3 if stride == 1 else 4
        key, kw_key, kb_key = jax.random.split(key, 3)
        w = 0.1 * jax.random.normal(kw_key, (cout, cin, ksize, ksize),
                                    dtype=jnp.float32)
        b = 0.01 * jax.random.normal(kb_key, (cout,), dtype=jnp.float32)
        if stride == 2:
            # Fold the stride-2 ksize-4 kernel into the space-to-depth basis:
            # kernel index di = 2*qi + pi, dj = 2*qj + pj; GEMM K order is
            # (tap=(qi,qj), phase=(pi,pj), channel ci).
            w6 = w.reshape(cout, cin, 2, 2, 2, 2)            # co,ci,qi,pi,qj,pj
            wmat = jnp.transpose(w6, (0, 2, 4, 3, 5, 1))     # co,qi,qj,pi,pj,ci
            wmat = wmat.reshape(cout, 16 * cin)
            cin_eff = 4 * cin
        else:
            # GEMM K order is (tap=(dr,dc), channel ci).
            wmat = jnp.transpose(w, (0, 2, 3, 1)).reshape(cout, 9 * cin)
            cin_eff = cin
        params[name] = {
            "w": wmat.astype(jnp.bfloat16),    # (Cout, K) GEMM weights
            "b": b.reshape(cout, 1).astype(jnp.float32),
            "w_raw": w,                        # f32, used only by the reference
            "b_raw": b,
            "cin": cin_eff,
            "cout": cout,
            "stride": stride,
        }
    return params


# ---------------------------------------------------------------------------
# UNetCore forward (matches the PyTorch module; NCHW in / NCHW out)
# ---------------------------------------------------------------------------
def unet_core_forward(params, x_nchw):
    """x_nchw: (N, 2, H, W) concatenated moving + fixed images -> (N, 16, H, W)."""
    x = x_nchw.astype(jnp.bfloat16)
    x_enc = [x]
    for i in range(4):
        x_enc.append(encoder_block(x_enc[-1], params["enc{}".format(i)]))

    y = x_enc[-1]
    for idx in range(3):
        y = conv_block_chain(y, [params["dec{}".format(idx)]])
        y = upsample_nearest_2x(y)
        y = jnp.concatenate([y, x_enc[-(idx + 2)]], axis=1)

    # dec3 + dec4 fused into one pallas_call (intermediate stays in VMEM).
    y = conv_block_chain(y, [params["dec3"], params["dec4"]])

    # full_size branch
    y = upsample_nearest_2x(y)
    y = jnp.concatenate([y, x_enc[0]], axis=1)

    # dec5 + vm2 fused; final (flow-field) layer emitted in f32.
    y = conv_block_chain(y, [params["dec5"], params["vm2"]],
                         out_dtype=jnp.float32)
    return y


# ---------------------------------------------------------------------------
# Pure-XLA f32 reference (mirrors the PyTorch module) for validation.
# ---------------------------------------------------------------------------
def _conv_block_ref(x, p):
    out = jax.lax.conv_general_dilated(
        x, p["w_raw"], window_strides=(p["stride"], p["stride"]),
        padding=((1, 1), (1, 1)),
        dimension_numbers=("NCHW", "OIHW", "NCHW"))
    out = out + p["b_raw"].reshape(1, -1, 1, 1)
    return jnp.maximum(out, 0.2 * out)


def unet_core_reference(params, x):
    x_enc = [x]
    for i in range(4):
        x_enc.append(_conv_block_ref(x_enc[-1], params["enc{}".format(i)]))
    y = x_enc[-1]
    for idx in range(3):
        y = _conv_block_ref(y, params["dec{}".format(idx)])
        y = upsample_nearest_2x(y)
        y = jnp.concatenate([y, x_enc[-(idx + 2)]], axis=1)
    y = _conv_block_ref(y, params["dec3"])
    y = _conv_block_ref(y, params["dec4"])
    y = upsample_nearest_2x(y)
    y = jnp.concatenate([y, x_enc[0]], axis=1)
    y = _conv_block_ref(y, params["dec5"])
    y = _conv_block_ref(y, params["vm2"])
    return y


if __name__ == "__main__":
    N, C, H, W = 2, 2, 16, 16
    key = jax.random.PRNGKey(0)
    x = jax.random.normal(key, (N, C, H, W), dtype=jnp.float32)

    params = init_params(seed=0)
    fwd = jax.jit(functools.partial(unet_core_forward, params))

    out = fwd(x)
    jax.block_until_ready(out)

    assert out.shape == (N, DEC_NF[6], H, W), out.shape
    assert out.dtype == jnp.float32, out.dtype
    assert bool(jnp.all(jnp.isfinite(out)))

    # Validate against the f32 XLA reference (bf16 kernel path -> loose tol).
    ref = jax.jit(functools.partial(unet_core_reference, params))(x)
    jax.block_until_ready(ref)
    rel_rms = float(jnp.linalg.norm((out - ref).ravel()) /
                    (jnp.linalg.norm(ref.ravel()) + 1e-6))
    assert rel_rms < 0.1, rel_rms

    print("KERNEL_OK")
</pallas_src>

<mosaic_0001>
module attributes {stable_mosaic.version = 11 : i64} {
  func.func @kernel(%arg0: i32, %arg1: memref<1x8x337xbf16, #tpu.memory_space<vmem>>, %arg2: memref<1x81xf32, #tpu.memory_space<vmem>>, %arg3: memref<16x32xbf16, #tpu.memory_space<vmem>>, %arg4: memref<16x1xf32, #tpu.memory_space<vmem>>, %arg5: memref<1x16x337xbf16, #tpu.memory_space<vmem>>) attributes {dimension_semantics = [#tpu.dimension_semantics<parallel>], iteration_bounds = array<i64: 2>, scalar_prefetch = 0 : i64, scratch_operands = 0 : i64, tpu.core_type = #tpu.core_type<tc>, window_params = [{transform_indices = @transform_0, window_bounds = array<i64: 1, 8, 337>}, {pipeline_mode = #tpu.pipeline_mode<synchronous>, transform_indices = @transform_1, window_bounds = array<i64: 1, 81>}, {pipeline_mode = #tpu.pipeline_mode<synchronous>, transform_indices = @transform_2, window_bounds = array<i64: 16, 32>}, {pipeline_mode = #tpu.pipeline_mode<synchronous>, transform_indices = @transform_3, window_bounds = array<i64: 16, 1>}, {transform_indices = @transform_4, window_bounds = array<i64: 1, 16, 337>}]} {
    %cst = arith.constant 0.000000e+00 : f32
    %0 = vector.broadcast %cst : f32 to vector<16x81xf32>
    %c0 = arith.constant 0 : index
    %c0_0 = arith.constant 0 : index
    %c128 = arith.constant 128 : index
    %1 = vector.load %arg1[%c0, %c0_0, %c128] : memref<1x8x337xbf16, #tpu.memory_space<vmem>>, vector<1x8x81xbf16>
    %2 = vector.shape_cast %1 : vector<1x8x81xbf16> to vector<8x81xbf16>
    %c0_1 = arith.constant 0 : index
    %c0_2 = arith.constant 0 : index
    %3 = vector.load %arg3[%c0_1, %c0_2] : memref<16x32xbf16, #tpu.memory_space<vmem>>, vector<16x8xbf16>
    %cst_3 = arith.constant dense<0.000000e+00> : vector<16x81xf32>
    %4 = tpu.matmul %3, %2, %cst_3 {dimension_numbers = #tpu.dot_dimension_numbers<[1], [0], [0], [1], [0, 0, 1, 1], [], []>} : vector<16x8xbf16>, vector<8x81xbf16>, vector<16x81xf32> -> vector<16x81xf32>
    %5 = arith.addf %0, %4 : vector<16x81xf32>
    %c0_4 = arith.constant 0 : index
    %c0_5 = arith.constant 0 : index
    %c129 = arith.constant 129 : index
    %6 = vector.load %arg1[%c0_4, %c0_5, %c129] : memref<1x8x337xbf16, #tpu.memory_space<vmem>>, vector<1x8x81xbf16>
    %7 = vector.shape_cast %6 : vector<1x8x81xbf16> to vector<8x81xbf16>
    %c0_6 = arith.constant 0 : index
    %c8 = arith.constant 8 : index
    %8 = vector.load %arg3[%c0_6, %c8] : memref<16x32xbf16, #tpu.memory_space<vmem>>, vector<16x8xbf16>
    %cst_7 = arith.constant dense<0.000000e+00> : vector<16x81xf32>
    %9 = tpu.matmul %8, %7, %cst_7 {dimension_numbers = #tpu.dot_dimension_numbers<[1], [0], [0], [1], [0, 0, 1, 1], [], []>} : vector<16x8xbf16>, vector<8x81xbf16>, vector<16x81xf32> -> vector<16x81xf32>
    %10 = arith.addf %5, %9 : vector<16x81xf32>
    %c0_8 = arith.constant 0 : index
    %c0_9 = arith.constant 0 : index
    %c137 = arith.constant 137 : index
    %11 = vector.load %arg1[%c0_8, %c0_9, %c137] : memref<1x8x337xbf16, #tpu.memory_space<vmem>>, vector<1x8x81xbf16>
    %12 = vector.shape_cast %11 : vector<1x8x81xbf16> to vector<8x81xbf16>
    %c0_10 = arith.constant 0 : index
    %c16 = arith.constant 16 : index
    %13 = vector.load %arg3[%c0_10, %c16] : memref<16x32xbf16, #tpu.memory_space<vmem>>, vector<16x8xbf16>
    %cst_11 = arith.constant dense<0.000000e+00> : vector<16x81xf32>
    %14 = tpu.matmul %13, %12, %cst_11 {dimension_numbers = #tpu.dot_dimension_numbers<[1], [0], [0], [1], [0, 0, 1, 1], [], []>} : vector<16x8xbf16>, vector<8x81xbf16>, vector<16x81xf32> -> vector<16x81xf32>
    %15 = arith.addf %10, %14 : vector<16x81xf32>
    %c0_12 = arith.constant 0 : index
    %c0_13 = arith.constant 0 : index
    %c138 = arith.constant 138 : index
    %16 = vector.load %arg1[%c0_12, %c0_13, %c138] : memref<1x8x337xbf16, #tpu.memory_space<vmem>>, vector<1x8x81xbf16>
    %17 = vector.shape_cast %16 : vector<1x8x81xbf16> to vector<8x81xbf16>
    %c0_14 = arith.constant 0 : index
    %c24 = arith.constant 24 : index
    %18 = vector.load %arg3[%c0_14, %c24] : memref<16x32xbf16, #tpu.memory_space<vmem>>, vector<16x8xbf16>
    %cst_15 = arith.constant dense<0.000000e+00> : vector<16x81xf32>
    %19 = tpu.matmul %18, %17, %cst_15 {dimension_numbers = #tpu.dot_dimension_numbers<[1], [0], [0], [1], [0, 0, 1, 1], [], []>} : vector<16x8xbf16>, vector<8x81xbf16>, vector<16x81xf32> -> vector<16x81xf32>
    %20 = arith.addf %15, %19 : vector<16x81xf32>
    %c0_16 = arith.constant 0 : index
    %c0_17 = arith.constant 0 : index
    %21 = vector.load %arg4[%c0_16, %c0_17] : memref<16x1xf32, #tpu.memory_space<vmem>>, vector<16x1xf32>
    %22 = vector.broadcast %21 : vector<16x1xf32> to vector<16x81xf32>
    %23 = arith.addf %20, %22 : vector<16x81xf32>
    %cst_18 = arith.constant 2.000000e-01 : f32
    %24 = vector.broadcast %cst_18 : f32 to vector<16x81xf32>
    %25 = arith.mulf %24, %23 : vector<16x81xf32>
    %26 = arith.maximumf %23, %25 : vector<16x81xf32>
    %c0_19 = arith.constant 0 : index
    %c0_20 = arith.constant 0 : index
    %27 = vector.load %arg2[%c0_19, %c0_20] : memref<1x81xf32, #tpu.memory_space<vmem>>, vector<1x81xf32>
    %28 = vector.broadcast %27 : vector<1x81xf32> to vector<16x81xf32>
    %29 = arith.mulf %26, %28 : vector<16x81xf32>
    %cst_21 = arith.constant 0.000000e+00 : bf16
    %30 = vector.broadcast %cst_21 : bf16 to vector<16x128xbf16>
    %c0_22 = arith.constant 0 : index
    %c0_23 = arith.constant 0 : index
    %c0_24 = arith.constant 0 : index
    %31 = vector.load %arg5[%c0_22, %c0_23, %c0_24] : memref<1x16x337xbf16, #tpu.memory_space<vmem>>, vector<1x16x128xbf16>
    %32 = vector.shape_cast %31 : vector<1x16x128xbf16> to vector<16x128xbf16>
    %33 = vector.shape_cast %30 : vector<16x128xbf16> to vector<1x16x128xbf16>
    tpu.vector_store %arg5[%c0_22, %c0_23, %c0_24], %33 {strides = array<i32>} : memref<1x16x337xbf16, #tpu.memory_space<vmem>>, vector<1x16x128xbf16>,
    %cst_25 = arith.constant 0.000000e+00 : bf16
    %34 = vector.broadcast %cst_25 : bf16 to vector<16x128xbf16>
    %c0_26 = arith.constant 0 : index
    %c0_27 = arith.constant 0 : index
    %c209 = arith.constant 209 : index
    %35 = vector.load %arg5[%c0_26, %c0_27, %c209] : memref<1x16x337xbf16, #tpu.memory_space<vmem>>, vector<1x16x128xbf16>
    %36 = vector.shape_cast %35 : vector<1x16x128xbf16> to vector<16x128xbf16>
    %37 = vector.shape_cast %34 : vector<16x128xbf16> to vector<1x16x128xbf16>
    tpu.vector_store %arg5[%c0_26, %c0_27, %c209], %37 {strides = array<i32>} : memref<1x16x337xbf16, #tpu.memory_space<vmem>>, vector<1x16x128xbf16>,
    %38 = arith.truncf %29 : vector<16x81xf32> to vector<16x81xbf16>
    %c0_28 = arith.constant 0 : index
    %c0_29 = arith.constant 0 : index
    %c128_30 = arith.constant 128 : index
    %39 = vector.load %arg5[%c0_28, %c0_29, %c128_30] : memref<1x16x337xbf16, #tpu.memory_space<vmem>>, vector<1x16x81xbf16>
    %40 = vector.shape_cast %39 : vector<1x16x81xbf16> to vector<16x81xbf16>
    %41 = vector.shape_cast %38 : vector<16x81xbf16> to vector<1x16x81xbf16>
    tpu.vector_store %arg5[%c0_28, %c0_29, %c128_30], %41 {strides = array<i32>} : memref<1x16x337xbf16, #tpu.memory_space<vmem>>, vector<1x16x81xbf16>,
    return
  }
  func.func @transform_0(%arg0: i32) -> (i32, i32, i32) {
    %c0_i32 = arith.constant 0 : i32
    %c0_i32_0 = arith.constant 0 : i32
    %c0_i32_1 = arith.constant 0 : i32
    return %arg0, %c0_i32, %c0_i32_0 : i32, i32, i32
  }
  func.func @transform_1(%arg0: i32) -> (i32, i32) {
    %c0_i32 = arith.constant 0 : i32
    %c0_i32_0 = arith.constant 0 : i32
    %c0_i32_1 = arith.constant 0 : i32
    return %c0_i32, %c0_i32_0 : i32, i32
  }
  func.func @transform_2(%arg0: i32) -> (i32, i32) {
    %c0_i32 = arith.constant 0 : i32
    %c0_i32_0 = arith.constant 0 : i32
    %c0_i32_1 = arith.constant 0 : i32
    return %c0_i32, %c0_i32_0 : i32, i32
  }
  func.func @transform_3(%arg0: i32) -> (i32, i32) {
    %c0_i32 = arith.constant 0 : i32
    %c0_i32_0 = arith.constant 0 : i32
    %c0_i32_1 = arith.constant 0 : i32
    return %c0_i32, %c0_i32_0 : i32, i32
  }
  func.func @transform_4(%arg0: i32) -> (i32, i32, i32) {
    %c0_i32 = arith.constant 0 : i32
    %c0_i32_0 = arith.constant 0 : i32
    %c0_i32_1 = arith.constant 0 : i32
    return %arg0, %c0_i32, %c0_i32_0 : i32, i32, i32
  }
}

module attributes {stable_mosaic.version = 11 : i64} {
  func.func @kernel(%arg0: i32, %arg1: memref<1x64x281xbf16, #tpu.memory_space<vmem>>, %arg2: memref<1x25xf32, #tpu.memory_space<vmem>>, %arg3: memref<32x256xbf16, #tpu.memory_space<vmem>>, %arg4: memref<32x1xf32, #tpu.memory_space<vmem>>, %arg5: memref<1x32x281xbf16, #tpu.memory_space<vmem>>) attributes {dimension_semantics = [#tpu.dimension_semantics<parallel>], iteration_bounds = array<i64: 2>, scalar_prefetch = 0 : i64, scratch_operands = 0 : i64, tpu.core_type = #tpu.core_type<tc>, window_params = [{transform_indices = @transform_0, window_bounds = array<i64: 1, 64, 281>}, {pipeline_mode = #tpu.pipeline_mode<synchronous>, transform_indices = @transform_1, window_bounds = array<i64: 1, 25>}, {pipeline_mode = #tpu.pipeline_mode<synchronous>, transform_indices = @transform_2, window_bounds = array<i64: 32, 256>}, {pipeline_mode = #tpu.pipeline_mode<synchronous>, transform_indices = @transform_3, window_bounds = array<i64: 32, 1>}, {transform_indices = @transform_4, window_bounds = array<i64: 1, 32, 281>}]} {
    %cst = arith.constant 0.000000e+00 : f32
    %0 = vector.broadcast %cst : f32 to vector<32x25xf32>
    %c0 = arith.constant 0 : index
    %c0_0 = arith.constant 0 : index
    %c128 = arith.constant 128 : index
    %1 = vector.load %arg1[%c0, %c0_0, %c128] : memref<1x64x281xbf16, #tpu.memory_space<vmem>>, vector<1x64x25xbf16>
    %2 = vector.shape_cast %1 : vector<1x64x25xbf16> to vector<64x25xbf16>
    %c0_1 = arith.constant 0 : index
    %c0_2 = arith.constant 0 : index
    %3 = vector.load %arg3[%c0_1, %c0_2] : memref<32x256xbf16, #tpu.memory_space<vmem>>, vector<32x64xbf16>
    %cst_3 = arith.constant dense<0.000000e+00> : vector<32x25xf32>
    %4 = tpu.matmul %3, %2, %cst_3 {dimension_numbers = #tpu.dot_dimension_numbers<[1], [0], [0], [1], [0, 0, 1, 1], [], []>} : vector<32x64xbf16>, vector<64x25xbf16>, vector<32x25xf32> -> vector<32x25xf32>
    %5 = arith.addf %0, %4 : vector<32x25xf32>
    %c0_4 = arith.constant 0 : index
    %c0_5 = arith.constant 0 : index
    %c129 = arith.constant 129 : index
    %6 = vector.load %arg1[%c0_4, %c0_5, %c129] : memref<1x64x281xbf16, #tpu.memory_space<vmem>>, vector<1x64x25xbf16>
    %7 = vector.shape_cast %6 : vector<1x64x25xbf16> to vector<64x25xbf16>
    %c0_6 = arith.constant 0 : index
    %c64 = arith.constant 64 : index
    %8 = vector.load %arg3[%c0_6, %c64] : memref<32x256xbf16, #tpu.memory_space<vmem>>, vector<32x64xbf16>
    %cst_7 = arith.constant dense<0.000000e+00> : vector<32x25xf32>
    %9 = tpu.matmul %8, %7, %cst_7 {dimension_numbers = #tpu.dot_dimension_numbers<[1], [0], [0], [1], [0, 0, 1, 1], [], []>} : vector<32x64xbf16>, vector<64x25xbf16>, vector<32x25xf32> -> vector<32x25xf32>
    %10 = arith.addf %5, %9 : vector<32x25xf32>
    %c0_8 = arith.constant 0 : index
    %c0_9 = arith.constant 0 : index
    %c133 = arith.constant 133 : index
    %11 = vector.load %arg1[%c0_8, %c0_9, %c133] : memref<1x64x281xbf16, #tpu.memory_space<vmem>>, vector<1x64x25xbf16>
    %12 = vector.shape_cast %11 : vector<1x64x25xbf16> to vector<64x25xbf16>
    %c0_10 = arith.constant 0 : index
    %c128_11 = arith.constant 128 : index
    %13 = vector.load %arg3[%c0_10, %c128_11] : memref<32x256xbf16, #tpu.memory_space<vmem>>, vector<32x64xbf16>
    %cst_12 = arith.constant dense<0.000000e+00> : vector<32x25xf32>
    %14 = tpu.matmul %13, %12, %cst_12 {dimension_numbers = #tpu.dot_dimension_numbers<[1], [0], [0], [1], [0, 0, 1, 1], [], []>} : vector<32x64xbf16>, vector<64x25xbf16>, vector<32x25xf32> -> vector<32x25xf32>
    %15 = arith.addf %10, %14 : vector<32x25xf32>
    %c0_13 = arith.constant 0 : index
    %c0_14 = arith.constant 0 : index
    %c134 = arith.constant 134 : index
    %16 = vector.load %arg1[%c0_13, %c0_14, %c134] : memref<1x64x281xbf16, #tpu.memory_space<vmem>>, vector<1x64x25xbf16>
    %17 = vector.shape_cast %16 : vector<1x64x25xbf16> to vector<64x25xbf16>
    %c0_15 = arith.constant 0 : index
    %c192 = arith.constant 192 : index
    %18 = vector.load %arg3[%c0_15, %c192] : memref<32x256xbf16, #tpu.memory_space<vmem>>, vector<32x64xbf16>
    %cst_16 = arith.constant dense<0.000000e+00> : vector<32x25xf32>
    %19 = tpu.matmul %18, %17, %cst_16 {dimension_numbers = #tpu.dot_dimension_numbers<[1], [0], [0], [1], [0, 0, 1, 1], [], []>} : vector<32x64xbf16>, vector<64x25xbf16>, vector<32x25xf32> -> vector<32x25xf32>
    %20 = arith.addf %15, %19 : vector<32x25xf32>
    %c0_17 = arith.constant 0 : index
    %c0_18 = arith.constant 0 : index
    %21 = vector.load %arg4[%c0_17, %c0_18] : memref<32x1xf32, #tpu.memory_space<vmem>>, vector<32x1xf32>
    %22 = vector.broadcast %21 : vector<32x1xf32> to vector<32x25xf32>
    %23 = arith.addf %20, %22 : vector<32x25xf32>
    %cst_19 = arith.constant 2.000000e-01 : f32
    %24 = vector.broadcast %cst_19 : f32 to vector<32x25xf32>
    %25 = arith.mulf %24, %23 : vector<32x25xf32>
    %26 = arith.maximumf %23, %25 : vector<32x25xf32>
    %c0_20 = arith.constant 0 : index
    %c0_21 = arith.constant 0 : index
    %27 = vector.load %arg2[%c0_20, %c0_21] : memref<1x25xf32, #tpu.memory_space<vmem>>, vector<1x25xf32>
    %28 = vector.broadcast %27 : vector<1x25xf32> to vector<32x25xf32>
    %29 = arith.mulf %26, %28 : vector<32x25xf32>
    %cst_22 = arith.constant 0.000000e+00 : bf16
    %30 = vector.broadcast %cst_22 : bf16 to vector<32x128xbf16>
    %c0_23 = arith.constant 0 : index
    %c0_24 = arith.constant 0 : index
    %c0_25 = arith.constant 0 : index
    %31 = vector.load %arg5[%c0_23, %c0_24, %c0_25] : memref<1x32x281xbf16, #tpu.memory_space<vmem>>, vector<1x32x128xbf16>
    %32 = vector.shape_cast %31 : vector<1x32x128xbf16> to vector<32x128xbf16>
    %33 = vector.shape_cast %30 : vector<32x128xbf16> to vector<1x32x128xbf16>
    tpu.vector_store %arg5[%c0_23, %c0_24, %c0_25], %33 {strides = array<i32>} : memref<1x32x281xbf16, #tpu.memory_space<vmem>>, vector<1x32x128xbf16>,
    %cst_26 = arith.constant 0.000000e+00 : bf16
    %34 = vector.broadcast %cst_26 : bf16 to vector<32x128xbf16>
    %c0_27 = arith.constant 0 : index
    %c0_28 = arith.constant 0 : index
    %c153 = arith.constant 153 : index
    %35 = vector.load %arg5[%c0_27, %c0_28, %c153] : memref<1x32x281xbf16, #tpu.memory_space<vmem>>, vector<1x32x128xbf16>
    %36 = vector.shape_cast %35 : vector<1x32x128xbf16> to vector<32x128xbf16>
    %37 = vector.shape_cast %34 : vector<32x128xbf16> to vector<1x32x128xbf16>
    tpu.vector_store %arg5[%c0_27, %c0_28, %c153], %37 {strides = array<i32>} : memref<1x32x281xbf16, #tpu.memory_space<vmem>>, vector<1x32x128xbf16>,
    %38 = arith.truncf %29 : vector<32x25xf32> to vector<32x25xbf16>
    %c0_29 = arith.constant 0 : index
    %c0_30 = arith.constant 0 : index
    %c128_31 = arith.constant 128 : index
    %39 = vector.load %arg5[%c0_29, %c0_30, %c128_31] : memref<1x32x281xbf16, #tpu.memory_space<vmem>>, vector<1x32x25xbf16>
    %40 = vector.shape_cast %39 : vector<1x32x25xbf16> to vector<32x25xbf16>
    %41 = vector.shape_cast %38 : vector<32x25xbf16> to vector<1x32x25xbf16>
    tpu.vector_store %arg5[%c0_29, %c0_30, %c128_31], %41 {strides = array<i32>} : memref<1x32x281xbf16, #tpu.memory_space<vmem>>, vector<1x32x25xbf16>,
    return
  }
  func.func @transform_0(%arg0: i32) -> (i32, i32, i32) {
    %c0_i32 = arith.constant 0 : i32
    %c0_i32_0 = arith.constant 0 : i32
    %c0_i32_1 = arith.constant 0 : i32
    return %arg0, %c0_i32, %c0_i32_0 : i32, i32, i32
  }
  func.func @transform_1(%arg0: i32) -> (i32, i32) {
    %c0_i32 = arith.constant 0 : i32
    %c0_i32_0 = arith.constant 0 : i32
    %c0_i32_1 = arith.constant 0 : i32
    return %c0_i32, %c0_i32_0 : i32, i32
  }
  func.func @transform_2(%arg0: i32) -> (i32, i32) {
    %c0_i32 = arith.constant 0 : i32
    %c0_i32_0 = arith.constant 0 : i32
    %c0_i32_1 = arith.constant 0 : i32
    return %c0_i32, %c0_i32_0 : i32, i32
  }
  func.func @transform_3(%arg0: i32) -> (i32, i32) {
    %c0_i32 = arith.constant 0 : i32
    %c0_i32_0 = arith.constant 0 : i32
    %c0_i32_1 = arith.constant 0 : i32
    return %c0_i32, %c0_i32_0 : i32, i32
  }
  func.func @transform_4(%arg0: i32) -> (i32, i32, i32) {
    %c0_i32 = arith.constant 0 : i32
    %c0_i32_0 = arith.constant 0 : i32
    %c0_i32_1 = arith.constant 0 : i32
    return %arg0, %c0_i32, %c0_i32_0 : i32, i32, i32
  }
}

module attributes {stable_mosaic.version = 11 : i64} {
  func.func @kernel(%arg0: i32, %arg1: memref<1x128x265xbf16, #tpu.memory_space<vmem>>, %arg2: memref<1x9xf32, #tpu.memory_space<vmem>>, %arg3: memref<32x512xbf16, #tpu.memory_space<vmem>>, %arg4: memref<32x1xf32, #tpu.memory_space<vmem>>, %arg5: memref<1x32x265xbf16, #tpu.memory_space<vmem>>) attributes {dimension_semantics = [#tpu.dimension_semantics<parallel>], iteration_bounds = array<i64: 2>, scalar_prefetch = 0 : i64, scratch_operands = 0 : i64, tpu.core_type = #tpu.core_type<tc>, window_params = [{transform_indices = @transform_0, window_bounds = array<i64: 1, 128, 265>}, {pipeline_mode = #tpu.pipeline_mode<synchronous>, transform_indices = @transform_1, window_bounds = array<i64: 1, 9>}, {pipeline_mode = #tpu.pipeline_mode<synchronous>, transform_indices = @transform_2, window_bounds = array<i64: 32, 512>}, {pipeline_mode = #tpu.pipeline_mode<synchronous>, transform_indices = @transform_3, window_bounds = array<i64: 32, 1>}, {transform_indices = @transform_4, window_bounds = array<i64: 1, 32, 265>}]} {
    %cst = arith.constant 0.000000e+00 : f32
    %0 = vector.broadcast %cst : f32 to vector<32x9xf32>
    %c0 = arith.constant 0 : index
    %c0_0 = arith.constant 0 : index
    %c128 = arith.constant 128 : index
    %1 = vector.load %arg1[%c0, %c0_0, %c128] : memref<1x128x265xbf16, #tpu.memory_space<vmem>>, vector<1x128x9xbf16>
    %2 = vector.shape_cast %1 : vector<1x128x9xbf16> to vector<128x9xbf16>
    %c0_1 = arith.constant 0 : index
    %c0_2 = arith.constant 0 : index
    %3 = vector.load %arg3[%c0_1, %c0_2] : memref<32x512xbf16, #tpu.memory_space<vmem>>, vector<32x128xbf16>
    %cst_3 = arith.constant dense<0.000000e+00> : vector<32x9xf32>
    %4 = tpu.matmul %3, %2, %cst_3 {dimension_numbers = #tpu.dot_dimension_numbers<[1], [0], [0], [1], [0, 0, 1, 1], [], []>} : vector<32x128xbf16>, vector<128x9xbf16>, vector<32x9xf32> -> vector<32x9xf32>
    %5 = arith.addf %0, %4 : vector<32x9xf32>
    %c0_4 = arith.constant 0 : index
    %c0_5 = arith.constant 0 : index
    %c129 = arith.constant 129 : index
    %6 = vector.load %arg1[%c0_4, %c0_5, %c129] : memref<1x128x265xbf16, #tpu.memory_space<vmem>>, vector<1x128x9xbf16>
    %7 = vector.shape_cast %6 : vector<1x128x9xbf16> to vector<128x9xbf16>
    %c0_6 = arith.constant 0 : index
    %c128_7 = arith.constant 128 : index
    %8 = vector.load %arg3[%c0_6, %c128_7] : memref<32x512xbf16, #tpu.memory_space<vmem>>, vector<32x128xbf16>
    %cst_8 = arith.constant dense<0.000000e+00> : vector<32x9xf32>
    %9 = tpu.matmul %8, %7, %cst_8 {dimension_numbers = #tpu.dot_dimension_numbers<[1], [0], [0], [1], [0, 0, 1, 1], [], []>} : vector<32x128xbf16>, vector<128x9xbf16>, vector<32x9xf32> -> vector<32x9xf32>
    %10 = arith.addf %5, %9 : vector<32x9xf32>
    %c0_9 = arith.constant 0 : index
    %c0_10 = arith.constant 0 : index
    %c131 = arith.constant 131 : index
    %11 = vector.load %arg1[%c0_9, %c0_10, %c131] : memref<1x128x265xbf16, #tpu.memory_space<vmem>>, vector<1x128x9xbf16>
    %12 = vector.shape_cast %11 : vector<1x128x9xbf16> to vector<128x9xbf16>
    %c0_11 = arith.constant 0 : index
    %c256 = arith.constant 256 : index
    %13 = vector.load %arg3[%c0_11, %c256] : memref<32x512xbf16, #tpu.memory_space<vmem>>, vector<32x128xbf16>
    %cst_12 = arith.constant dense<0.000000e+00> : vector<32x9xf32>
    %14 = tpu.matmul %13, %12, %cst_12 {dimension_numbers = #tpu.dot_dimension_numbers<[1], [0], [0], [1], [0, 0, 1, 1], [], []>} : vector<32x128xbf16>, vector<128x9xbf16>, vector<32x9xf32> -> vector<32x9xf32>
    %15 = arith.addf %10, %14 : vector<32x9xf32>
    %c0_13 = arith.constant 0 : index
    %c0_14 = arith.constant 0 : index
    %c132 = arith.constant 132 : index
    %16 = vector.load %arg1[%c0_13, %c0_14, %c132] : memref<1x128x265xbf16, #tpu.memory_space<vmem>>, vector<1x128x9xbf16>
    %17 = vector.shape_cast %16 : vector<1x128x9xbf16> to vector<128x9xbf16>
    %c0_15 = arith.constant 0 : index
    %c384 = arith.constant 384 : index
    %18 = vector.load %arg3[%c0_15, %c384] : memref<32x512xbf16, #tpu.memory_space<vmem>>, vector<32x128xbf16>
    %cst_16 = arith.constant dense<0.000000e+00> : vector<32x9xf32>
    %19 = tpu.matmul %18, %17, %cst_16 {dimension_numbers = #tpu.dot_dimension_numbers<[1], [0], [0], [1], [0, 0, 1, 1], [], []>} : vector<32x128xbf16>, vector<128x9xbf16>, vector<32x9xf32> -> vector<32x9xf32>
    %20 = arith.addf %15, %19 : vector<32x9xf32>
    %c0_17 = arith.constant 0 : index
    %c0_18 = arith.constant 0 : index
    %21 = vector.load %arg4[%c0_17, %c0_18] : memref<32x1xf32, #tpu.memory_space<vmem>>, vector<32x1xf32>
    %22 = vector.broadcast %21 : vector<32x1xf32> to vector<32x9xf32>
    %23 = arith.addf %20, %22 : vector<32x9xf32>
    %cst_19 = arith.constant 2.000000e-01 : f32
    %24 = vector.broadcast %cst_19 : f32 to vector<32x9xf32>
    %25 = arith.mulf %24, %23 : vector<32x9xf32>
    %26 = arith.maximumf %23, %25 : vector<32x9xf32>
    %c0_20 = arith.constant 0 : index
    %c0_21 = arith.constant 0 : index
    %27 = vector.load %arg2[%c0_20, %c0_21] : memref<1x9xf32, #tpu.memory_space<vmem>>, vector<1x9xf32>
    %28 = vector.broadcast %27 : vector<1x9xf32> to vector<32x9xf32>
    %29 = arith.mulf %26, %28 : vector<32x9xf32>
    %cst_22 = arith.constant 0.000000e+00 : bf16
    %30 = vector.broadcast %cst_22 : bf16 to vector<32x128xbf16>
    %c0_23 = arith.constant 0 : index
    %c0_24 = arith.constant 0 : index
    %c0_25 = arith.constant 0 : index
    %31 = vector.load %arg5[%c0_23, %c0_24, %c0_25] : memref<1x32x265xbf16, #tpu.memory_space<vmem>>, vector<1x32x128xbf16>
    %32 = vector.shape_cast %31 : vector<1x32x128xbf16> to vector<32x128xbf16>
    %33 = vector.shape_cast %30 : vector<32x128xbf16> to vector<1x32x128xbf16>
    tpu.vector_store %arg5[%c0_23, %c0_24, %c0_25], %33 {strides = array<i32>} : memref<1x32x265xbf16, #tpu.memory_space<vmem>>, vector<1x32x128xbf16>,
    %cst_26 = arith.constant 0.000000e+00 : bf16
    %34 = vector.broadcast %cst_26 : bf16 to vector<32x128xbf16>
    %c0_27 = arith.constant 0 : index
    %c0_28 = arith.constant 0 : index
    %c137 = arith.constant 137 : index
    %35 = vector.load %arg5[%c0_27, %c0_28, %c137] : memref<1x32x265xbf16, #tpu.memory_space<vmem>>, vector<1x32x128xbf16>
    %36 = vector.shape_cast %35 : vector<1x32x128xbf16> to vector<32x128xbf16>
    %37 = vector.shape_cast %34 : vector<32x128xbf16> to vector<1x32x128xbf16>
    tpu.vector_store %arg5[%c0_27, %c0_28, %c137], %37 {strides = array<i32>} : memref<1x32x265xbf16, #tpu.memory_space<vmem>>, vector<1x32x128xbf16>,
    %38 = arith.truncf %29 : vector<32x9xf32> to vector<32x9xbf16>
    %c0_29 = arith.constant 0 : index
    %c0_30 = arith.constant 0 : index
    %c128_31 = arith.constant 128 : index
    %39 = vector.load %arg5[%c0_29, %c0_30, %c128_31] : memref<1x32x265xbf16, #tpu.memory_space<vmem>>, vector<1x32x9xbf16>
    %40 = vector.shape_cast %39 : vector<1x32x9xbf16> to vector<32x9xbf16>
    %41 = vector.shape_cast %38 : vector<32x9xbf16> to vector<1x32x9xbf16>
    tpu.vector_store %arg5[%c0_29, %c0_30, %c128_31], %41 {strides = array<i32>} : memref<1x32x265xbf16, #tpu.memory_space<vmem>>, vector<1x32x9xbf16>,
    return
  }
  func.func @transform_0(%arg0: i32) -> (i32, i32, i32) {
    %c0_i32 = arith.constant 0 : i32
    %c0_i32_0 = arith.constant 0 : i32
    %c0_i32_1 = arith.constant 0 : i32
    return %arg0, %c0_i32, %c0_i32_0 : i32, i32, i32
  }
  func.func @transform_1(%arg0: i32) -> (i32, i32) {
    %c0_i32 = arith.constant 0 : i32
    %c0_i32_0 = arith.constant 0 : i32
    %c0_i32_1 = arith.constant 0 : i32
    return %c0_i32, %c0_i32_0 : i32, i32
  }
  func.func @transform_2(%arg0: i32) -> (i32, i32) {
    %c0_i32 = arith.constant 0 : i32
    %c0_i32_0 = arith.constant 0 : i32
    %c0_i32_1 = arith.constant 0 : i32
    return %c0_i32, %c0_i32_0 : i32, i32
  }
  func.func @transform_3(%arg0: i32) -> (i32, i32) {
    %c0_i32 = arith.constant 0 : i32
    %c0_i32_0 = arith.constant 0 : i32
    %c0_i32_1 = arith.constant 0 : i32
    return %c0_i32, %c0_i32_0 : i32, i32
  }
  func.func @transform_4(%arg0: i32) -> (i32, i32, i32) {
    %c0_i32 = arith.constant 0 : i32
    %c0_i32_0 = arith.constant 0 : i32
    %c0_i32_1 = arith.constant 0 : i32
    return %arg0, %c0_i32, %c0_i32_0 : i32, i32, i32
  }
}

module attributes {stable_mosaic.version = 11 : i64} {
  func.func @kernel(%arg0: i32, %arg1: memref<1x128x260xbf16, #tpu.memory_space<vmem>>, %arg2: memref<1x4xf32, #tpu.memory_space<vmem>>, %arg3: memref<32x512xbf16, #tpu.memory_space<vmem>>, %arg4: memref<32x1xf32, #tpu.memory_space<vmem>>, %arg5: memref<1x32x260xbf16, #tpu.memory_space<vmem>>) attributes {dimension_semantics = [#tpu.dimension_semantics<parallel>], iteration_bounds = array<i64: 2>, scalar_prefetch = 0 : i64, scratch_operands = 0 : i64, tpu.core_type = #tpu.core_type<tc>, window_params = [{transform_indices = @transform_0, window_bounds = array<i64: 1, 128, 260>}, {pipeline_mode = #tpu.pipeline_mode<synchronous>, transform_indices = @transform_1, window_bounds = array<i64: 1, 4>}, {pipeline_mode = #tpu.pipeline_mode<synchronous>, transform_indices = @transform_2, window_bounds = array<i64: 32, 512>}, {pipeline_mode = #tpu.pipeline_mode<synchronous>, transform_indices = @transform_3, window_bounds = array<i64: 32, 1>}, {transform_indices = @transform_4, window_bounds = array<i64: 1, 32, 260>}]} {
    %cst = arith.constant 0.000000e+00 : f32
    %0 = vector.broadcast %cst : f32 to vector<32x4xf32>
    %c0 = arith.constant 0 : index
    %c0_0 = arith.constant 0 : index
    %c128 = arith.constant 128 : index
    %1 = vector.load %arg1[%c0, %c0_0, %c128] : memref<1x128x260xbf16, #tpu.memory_space<vmem>>, vector<1x128x4xbf16>
    %2 = vector.shape_cast %1 : vector<1x128x4xbf16> to vector<128x4xbf16>
    %c0_1 = arith.constant 0 : index
    %c0_2 = arith.constant 0 : index
    %3 = vector.load %arg3[%c0_1, %c0_2] : memref<32x512xbf16, #tpu.memory_space<vmem>>, vector<32x128xbf16>
    %cst_3 = arith.constant dense<0.000000e+00> : vector<32x4xf32>
    %4 = tpu.matmul %3, %2, %cst_3 {dimension_numbers = #tpu.dot_dimension_numbers<[1], [0], [0], [1], [0, 0, 1, 1], [], []>} : vector<32x128xbf16>, vector<128x4xbf16>, vector<32x4xf32> -> vector<32x4xf32>
    %5 = arith.addf %0, %4 : vector<32x4xf32>
    %c0_4 = arith.constant 0 : index
    %c0_5 = arith.constant 0 : index
    %c129 = arith.constant 129 : index
    %6 = vector.load %arg1[%c0_4, %c0_5, %c129] : memref<1x128x260xbf16, #tpu.memory_space<vmem>>, vector<1x128x4xbf16>
    %7 = vector.shape_cast %6 : vector<1x128x4xbf16> to vector<128x4xbf16>
    %c0_6 = arith.constant 0 : index
    %c128_7 = arith.constant 128 : index
    %8 = vector.load %arg3[%c0_6, %c128_7] : memref<32x512xbf16, #tpu.memory_space<vmem>>, vector<32x128xbf16>
    %cst_8 = arith.constant dense<0.000000e+00> : vector<32x4xf32>
    %9 = tpu.matmul %8, %7, %cst_8 {dimension_numbers = #tpu.dot_dimension_numbers<[1], [0], [0], [1], [0, 0, 1, 1], [], []>} : vector<32x128xbf16>, vector<128x4xbf16>, vector<32x4xf32> -> vector<32x4xf32>
    %10 = arith.addf %5, %9 : vector<32x4xf32>
    %c0_9 = arith.constant 0 : index
    %c0_10 = arith.constant 0 : index
    %c130 = arith.constant 130 : index
    %11 = vector.load %arg1[%c0_9, %c0_10, %c130] : memref<1x128x260xbf16, #tpu.memory_space<vmem>>, vector<1x128x4xbf16>
    %12 = vector.shape_cast %11 : vector<1x128x4xbf16> to vector<128x4xbf16>
    %c0_11 = arith.constant 0 : index
    %c256 = arith.constant 256 : index
    %13 = vector.load %arg3[%c0_11, %c256] : memref<32x512xbf16, #tpu.memory_space<vmem>>, vector<32x128xbf16>
    %cst_12 = arith.constant dense<0.000000e+00> : vector<32x4xf32>
    %14 = tpu.matmul %13, %12, %cst_12 {dimension_numbers = #tpu.dot_dimension_numbers<[1], [0], [0], [1], [0, 0, 1, 1], [], []>} : vector<32x128xbf16>, vector<128x4xbf16>, vector<32x4xf32> -> vector<32x4xf32>
    %15 = arith.addf %10, %14 : vector<32x4xf32>
    %c0_13 = arith.constant 0 : index
    %c0_14 = arith.constant 0 : index
    %c131 = arith.constant 131 : index
    %16 = vector.load %arg1[%c0_13, %c0_14, %c131] : memref<1x128x260xbf16, #tpu.memory_space<vmem>>, vector<1x128x4xbf16>
    %17 = vector.shape_cast %16 : vector<1x128x4xbf16> to vector<128x4xbf16>
    %c0_15 = arith.constant 0 : index
    %c384 = arith.constant 384 : index
    %18 = vector.load %arg3[%c0_15, %c384] : memref<32x512xbf16, #tpu.memory_space<vmem>>, vector<32x128xbf16>
    %cst_16 = arith.constant dense<0.000000e+00> : vector<32x4xf32>
    %19 = tpu.matmul %18, %17, %cst_16 {dimension_numbers = #tpu.dot_dimension_numbers<[1], [0], [0], [1], [0, 0, 1, 1], [], []>} : vector<32x128xbf16>, vector<128x4xbf16>, vector<32x4xf32> -> vector<32x4xf32>
    %20 = arith.addf %15, %19 : vector<32x4xf32>
    %c0_17 = arith.constant 0 : index
    %c0_18 = arith.constant 0 : index
    %21 = vector.load %arg4[%c0_17, %c0_18] : memref<32x1xf32, #tpu.memory_space<vmem>>, vector<32x1xf32>
    %22 = vector.broadcast %21 : vector<32x1xf32> to vector<32x4xf32>
    %23 = arith.addf %20, %22 : vector<32x4xf32>
    %cst_19 = arith.constant 2.000000e-01 : f32
    %24 = vector.broadcast %cst_19 : f32 to vector<32x4xf32>
    %25 = arith.mulf %24, %23 : vector<32x4xf32>
    %26 = arith.maximumf %23, %25 : vector<32x4xf32>
    %c0_20 = arith.constant 0 : index
    %c0_21 = arith.constant 0 : index
    %27 = vector.load %arg2[%c0_20, %c0_21] : memref<1x4xf32, #tpu.memory_space<vmem>>, vector<1x4xf32>
    %28 = vector.broadcast %27 : vector<1x4xf32> to vector<32x4xf32>
    %29 = arith.mulf %26, %28 : vector<32x4xf32>
    %cst_22 = arith.constant 0.000000e+00 : bf16
    %30 = vector.broadcast %cst_22 : bf16 to vector<32x128xbf16>
    %c0_23 = arith.constant 0 : index
    %c0_24 = arith.constant 0 : index
    %c0_25 = arith.constant 0 : index
    %31 = vector.load %arg5[%c0_23, %c0_24, %c0_25] : memref<1x32x260xbf16, #tpu.memory_space<vmem>>, vector<1x32x128xbf16>
    %32 = vector.shape_cast %31 : vector<1x32x128xbf16> to vector<32x128xbf16>
    %33 = vector.shape_cast %30 : vector<32x128xbf16> to vector<1x32x128xbf16>
    tpu.vector_store %arg5[%c0_23, %c0_24, %c0_25], %33 {strides = array<i32>} : memref<1x32x260xbf16, #tpu.memory_space<vmem>>, vector<1x32x128xbf16>,
    %cst_26 = arith.constant 0.000000e+00 : bf16
    %34 = vector.broadcast %cst_26 : bf16 to vector<32x128xbf16>
    %c0_27 = arith.constant 0 : index
    %c0_28 = arith.constant 0 : index
    %c132 = arith.constant 132 : index
    %35 = vector.load %arg5[%c0_27, %c0_28, %c132] : memref<1x32x260xbf16, #tpu.memory_space<vmem>>, vector<1x32x128xbf16>
    %36 = vector.shape_cast %35 : vector<1x32x128xbf16> to vector<32x128xbf16>
    %37 = vector.shape_cast %34 : vector<32x128xbf16> to vector<1x32x128xbf16>
    tpu.vector_store %arg5[%c0_27, %c0_28, %c132], %37 {strides = array<i32>} : memref<1x32x260xbf16, #tpu.memory_space<vmem>>, vector<1x32x128xbf16>,
    %38 = arith.truncf %29 : vector<32x4xf32> to vector<32x4xbf16>
    %c0_29 = arith.constant 0 : index
    %c0_30 = arith.constant 0 : index
    %c128_31 = arith.constant 128 : index
    %39 = vector.load %arg5[%c0_29, %c0_30, %c128_31] : memref<1x32x260xbf16, #tpu.memory_space<vmem>>, vector<1x32x4xbf16>
    %40 = vector.shape_cast %39 : vector<1x32x4xbf16> to vector<32x4xbf16>
    %41 = vector.shape_cast %38 : vector<32x4xbf16> to vector<1x32x4xbf16>
    tpu.vector_store %arg5[%c0_29, %c0_30, %c128_31], %41 {strides = array<i32>} : memref<1x32x260xbf16, #tpu.memory_space<vmem>>, vector<1x32x4xbf16>,
    return
  }
  func.func @transform_0(%arg0: i32) -> (i32, i32, i32) {
    %c0_i32 = arith.constant 0 : i32
    %c0_i32_0 = arith.constant 0 : i32
    %c0_i32_1 = arith.constant 0 : i32
    return %arg0, %c0_i32, %c0_i32_0 : i32, i32, i32
  }
  func.func @transform_1(%arg0: i32) -> (i32, i32) {
    %c0_i32 = arith.constant 0 : i32
    %c0_i32_0 = arith.constant 0 : i32
    %c0_i32_1 = arith.constant 0 : i32
    return %c0_i32, %c0_i32_0 : i32, i32
  }
  func.func @transform_2(%arg0: i32) -> (i32, i32) {
    %c0_i32 = arith.constant 0 : i32
    %c0_i32_0 = arith.constant 0 : i32
    %c0_i32_1 = arith.constant 0 : i32
    return %c0_i32, %c0_i32_0 : i32, i32
  }
  func.func @transform_3(%arg0: i32) -> (i32, i32) {
    %c0_i32 = arith.constant 0 : i32
    %c0_i32_0 = arith.constant 0 : i32
    %c0_i32_1 = arith.constant 0 : i32
    return %c0_i32, %c0_i32_0 : i32, i32
  }
  func.func @transform_4(%arg0: i32) -> (i32, i32, i32) {
    %c0_i32 = arith.constant 0 : i32
    %c0_i32_0 = arith.constant 0 : i32
    %c0_i32_1 = arith.constant 0 : i32
    return %arg0, %c0_i32, %c0_i32_0 : i32, i32, i32
  }
}

module attributes {stable_mosaic.version = 11 : i64} {
  func.func @kernel(%arg0: i32, %arg1: memref<1x32x265xbf16, #tpu.memory_space<vmem>>, %arg2: memref<1x9xf32, #tpu.memory_space<vmem>>, %arg3: memref<32x288xbf16, #tpu.memory_space<vmem>>, %arg4: memref<32x1xf32, #tpu.memory_space<vmem>>, %arg5: memref<1x32x265xbf16, #tpu.memory_space<vmem>>) attributes {dimension_semantics = [#tpu.dimension_semantics<parallel>], iteration_bounds = array<i64: 2>, scalar_prefetch = 0 : i64, scratch_operands = 0 : i64, tpu.core_type = #tpu.core_type<tc>, window_params = [{transform_indices = @transform_0, window_bounds = array<i64: 1, 32, 265>}, {pipeline_mode = #tpu.pipeline_mode<synchronous>, transform_indices = @transform_1, window_bounds = array<i64: 1, 9>}, {pipeline_mode = #tpu.pipeline_mode<synchronous>, transform_indices = @transform_2, window_bounds = array<i64: 32, 288>}, {pipeline_mode = #tpu.pipeline_mode<synchronous>, transform_indices = @transform_3, window_bounds = array<i64: 32, 1>}, {transform_indices = @transform_4, window_bounds = array<i64: 1, 32, 265>}]} {
    %cst = arith.constant 0.000000e+00 : f32
    %0 = vector.broadcast %cst : f32 to vector<32x9xf32>
    %c0 = arith.constant 0 : index
    %c0_0 = arith.constant 0 : index
    %c124 = arith.constant 124 : index
    %1 = vector.load %arg1[%c0, %c0_0, %c124] : memref<1x32x265xbf16, #tpu.memory_space<vmem>>, vector<1x32x9xbf16>
    %2 = vector.shape_cast %1 : vector<1x32x9xbf16> to vector<32x9xbf16>
    %c0_1 = arith.constant 0 : index
    %c0_2 = arith.constant 0 : index
    %3 = vector.load %arg3[%c0_1, %c0_2] : memref<32x288xbf16, #tpu.memory_space<vmem>>, vector<32x32xbf16>
    %cst_3 = arith.constant dense<0.000000e+00> : vector<32x9xf32>
    %4 = tpu.matmul %3, %2, %cst_3 {dimension_numbers = #tpu.dot_dimension_numbers<[1], [0], [0], [1], [0, 0, 1, 1], [], []>} : vector<32x32xbf16>, vector<32x9xbf16>, vector<32x9xf32> -> vector<32x9xf32>
    %5 = arith.addf %0, %4 : vector<32x9xf32>
    %c0_4 = arith.constant 0 : index
    %c0_5 = arith.constant 0 : index
    %c125 = arith.constant 125 : index
    %6 = vector.load %arg1[%c0_4, %c0_5, %c125] : memref<1x32x265xbf16, #tpu.memory_space<vmem>>, vector<1x32x9xbf16>
    %7 = vector.shape_cast %6 : vector<1x32x9xbf16> to vector<32x9xbf16>
    %c0_6 = arith.constant 0 : index
    %c32 = arith.constant 32 : index
    %8 = vector.load %arg3[%c0_6, %c32] : memref<32x288xbf16, #tpu.memory_space<vmem>>, vector<32x32xbf16>
    %cst_7 = arith.constant dense<0.000000e+00> : vector<32x9xf32>
    %9 = tpu.matmul %8, %7, %cst_7 {dimension_numbers = #tpu.dot_dimension_numbers<[1], [0], [0], [1], [0, 0, 1, 1], [], []>} : vector<32x32xbf16>, vector<32x9xbf16>, vector<32x9xf32> -> vector<32x9xf32>
    %10 = arith.addf %5, %9 : vector<32x9xf32>
    %c0_8 = arith.constant 0 : index
    %c0_9 = arith.constant 0 : index
    %c126 = arith.constant 126 : index
    %11 = vector.load %arg1[%c0_8, %c0_9, %c126] : memref<1x32x265xbf16, #tpu.memory_space<vmem>>, vector<1x32x9xbf16>
    %12 = vector.shape_cast %11 : vector<1x32x9xbf16> to vector<32x9xbf16>
    %c0_10 = arith.constant 0 : index
    %c64 = arith.constant 64 : index
    %13 = vector.load %arg3[%c0_10, %c64] : memref<32x288xbf16, #tpu.memory_space<vmem>>, vector<32x32xbf16>
    %cst_11 = arith.constant dense<0.000000e+00> : vector<32x9xf32>
    %14 = tpu.matmul %13, %12, %cst_11 {dimension_numbers = #tpu.dot_dimension_numbers<[1], [0], [0], [1], [0, 0, 1, 1], [], []>} : vector<32x32xbf16>, vector<32x9xbf16>, vector<32x9xf32> -> vector<32x9xf32>
    %15 = arith.addf %10, %14 : vector<32x9xf32>
    %c0_12 = arith.constant 0 : index
    %c0_13 = arith.constant 0 : index
    %c127 = arith.constant 127 : index
    %16 = vector.load %arg1[%c0_12, %c0_13, %c127] : memref<1x32x265xbf16, #tpu.memory_space<vmem>>, vector<1x32x9xbf16>
    %17 = vector.shape_cast %16 : vector<1x32x9xbf16> to vector<32x9xbf16>
    %c0_14 = arith.constant 0 : index
    %c96 = arith.constant 96 : index
    %18 = vector.load %arg3[%c0_14, %c96] : memref<32x288xbf16, #tpu.memory_space<vmem>>, vector<32x32xbf16>
    %cst_15 = arith.constant dense<0.000000e+00> : vector<32x9xf32>
    %19 = tpu.matmul %18, %17, %cst_15 {dimension_numbers = #tpu.dot_dimension_numbers<[1], [0], [0], [1], [0, 0, 1, 1], [], []>} : vector<32x32xbf16>, vector<32x9xbf16>, vector<32x9xf32> -> vector<32x9xf32>
    %20 = arith.addf %15, %19 : vector<32x9xf32>
    %c0_16 = arith.constant 0 : index
    %c0_17 = arith.constant 0 : index
    %c128 = arith.constant 128 : index
    %21 = vector.load %arg1[%c0_16, %c0_17, %c128] : memref<1x32x265xbf16, #tpu.memory_space<vmem>>, vector<1x32x9xbf16>
    %22 = vector.shape_cast %21 : vector<1x32x9xbf16> to vector<32x9xbf16>
    %c0_18 = arith.constant 0 : index
    %c128_19 = arith.constant 128 : index
    %23 = vector.load %arg3[%c0_18, %c128_19] : memref<32x288xbf16, #tpu.memory_space<vmem>>, vector<32x32xbf16>
    %cst_20 = arith.constant dense<0.000000e+00> : vector<32x9xf32>
    %24 = tpu.matmul %23, %22, %cst_20 {dimension_numbers = #tpu.dot_dimension_numbers<[1], [0], [0], [1], [0, 0, 1, 1], [], []>} : vector<32x32xbf16>, vector<32x9xbf16>, vector<32x9xf32> -> vector<32x9xf32>
    %25 = arith.addf %20, %24 : vector<32x9xf32>
    %c0_21 = arith.constant 0 : index
    %c0_22 = arith.constant 0 : index
    %c129 = arith.constant 129 : index
    %26 = vector.load %arg1[%c0_21, %c0_22, %c129] : memref<1x32x265xbf16, #tpu.memory_space<vmem>>, vector<1x32x9xbf16>
    %27 = vector.shape_cast %26 : vector<1x32x9xbf16> to vector<32x9xbf16>
    %c0_23 = arith.constant 0 : index
    %c160 = arith.constant 160 : index
    %28 = vector.load %arg3[%c0_23, %c160] : memref<32x288xbf16, #tpu.memory_space<vmem>>, vector<32x32xbf16>
    %cst_24 = arith.constant dense<0.000000e+00> : vector<32x9xf32>
    %29 = tpu.matmul %28, %27, %cst_24 {dimension_numbers = #tpu.dot_dimension_numbers<[1], [0], [0], [1], [0, 0, 1, 1], [], []>} : vector<32x32xbf16>, vector<32x9xbf16>, vector<32x9xf32> -> vector<32x9xf32>
    %30 = arith.addf %25, %29 : vector<32x9xf32>
    %c0_25 = arith.constant 0 : index
    %c0_26 = arith.constant 0 : index
    %c130 = arith.constant 130 : index
    %31 = vector.load %arg1[%c0_25, %c0_26, %c130] : memref<1x32x265xbf16, #tpu.memory_space<vmem>>, vector<1x32x9xbf16>
    %32 = vector.shape_cast %31 : vector<1x32x9xbf16> to vector<32x9xbf16>
    %c0_27 = arith.constant 0 : index
    %c192 = arith.constant 192 : index
    %33 = vector.load %arg3[%c0_27, %c192] : memref<32x288xbf16, #tpu.memory_space<vmem>>, vector<32x32xbf16>
    %cst_28 = arith.constant dense<0.000000e+00> : vector<32x9xf32>
    %34 = tpu.matmul %33, %32, %cst_28 {dimension_numbers = #tpu.dot_dimension_numbers<[1], [0], [0], [1], [0, 0, 1, 1], [], []>} : vector<32x32xbf16>, vector<32x9xbf16>, vector<32x9xf32> -> vector<32x9xf32>
    %35 = arith.addf %30, %34 : vector<32x9xf32>
    %c0_29 = arith.constant 0 : index
    %c0_30 = arith.constant 0 : index
    %c131 = arith.constant 131 : index
    %36 = vector.load %arg1[%c0_29, %c0_30, %c131] : memref<1x32x265xbf16, #tpu.memory_space<vmem>>, vector<1x32x9xbf16>
    %37 = vector.shape_cast %36 : vector<1x32x9xbf16> to vector<32x9xbf16>
    %c0_31 = arith.constant 0 : index
    %c224 = arith.constant 224 : index
    %38 = vector.load %arg3[%c0_31, %c224] : memref<32x288xbf16, #tpu.memory_space<vmem>>, vector<32x32xbf16>
    %cst_32 = arith.constant dense<0.000000e+00> : vector<32x9xf32>
    %39 = tpu.matmul %38, %37, %cst_32 {dimension_numbers = #tpu.dot_dimension_numbers<[1], [0], [0], [1], [0, 0, 1, 1], [], []>} : vector<32x32xbf16>, vector<32x9xbf16>, vector<32x9xf32> -> vector<32x9xf32>
    %40 = arith.addf %35, %39 : vector<32x9xf32>
    %c0_33 = arith.constant 0 : index
    %c0_34 = arith.constant 0 : index
    %c132 = arith.constant 132 : index
    %41 = vector.load %arg1[%c0_33, %c0_34, %c132] : memref<1x32x265xbf16, #tpu.memory_space<vmem>>, vector<1x32x9xbf16>
    %42 = vector.shape_cast %41 : vector<1x32x9xbf16> to vector<32x9xbf16>
    %c0_35 = arith.constant 0 : index
    %c256 = arith.constant 256 : index
    %43 = vector.load %arg3[%c0_35, %c256] : memref<32x288xbf16, #tpu.memory_space<vmem>>, vector<32x32xbf16>
    %cst_36 = arith.constant dense<0.000000e+00> : vector<32x9xf32>
    %44 = tpu.matmul %43, %42, %cst_36 {dimension_numbers = #tpu.dot_dimension_numbers<[1], [0], [0], [1], [0, 0, 1, 1], [], []>} : vector<32x32xbf16>, vector<32x9xbf16>, vector<32x9xf32> -> vector<32x9xf32>
    %45 = arith.addf %40, %44 : vector<32x9xf32>
    %c0_37 = arith.constant 0 : index
    %c0_38 = arith.constant 0 : index
    %46 = vector.load %arg4[%c0_37, %c0_38] : memref<32x1xf32, #tpu.memory_space<vmem>>, vector<32x1xf32>
    %47 = vector.broadcast %46 : vector<32x1xf32> to vector<32x9xf32>
    %48 = arith.addf %45, %47 : vector<32x9xf32>
    %cst_39 = arith.constant 2.000000e-01 : f32
    %49 = vector.broadcast %cst_39 : f32 to vector<32x9xf32>
    %50 = arith.mulf %49, %48 : vector<32x9xf32>
    %51 = arith.maximumf %48, %50 : vector<32x9xf32>
    %c0_40 = arith.constant 0 : index
    %c0_41 = arith.constant 0 : index
    %52 = vector.load %arg2[%c0_40, %c0_41] : memref<1x9xf32, #tpu.memory_space<vmem>>, vector<1x9xf32>
    %53 = vector.broadcast %52 : vector<1x9xf32> to vector<32x9xf32>
    %54 = arith.mulf %51, %53 : vector<32x9xf32>
    %cst_42 = arith.constant 0.000000e+00 : bf16
    %55 = vector.broadcast %cst_42 : bf16 to vector<32x128xbf16>
    %c0_43 = arith.constant 0 : index
    %c0_44 = arith.constant 0 : index
    %c0_45 = arith.constant 0 : index
    %56 = vector.load %arg5[%c0_43, %c0_44, %c0_45] : memref<1x32x265xbf16, #tpu.memory_space<vmem>>, vector<1x32x128xbf16>
    %57 = vector.shape_cast %56 : vector<1x32x128xbf16> to vector<32x128xbf16>
    %58 = vector.shape_cast %55 : vector<32x128xbf16> to vector<1x32x128xbf16>
    tpu.vector_store %arg5[%c0_43, %c0_44, %c0_45], %58 {strides = array<i32>} : memref<1x32x265xbf16, #tpu.memory_space<vmem>>, vector<1x32x128xbf16>,
    %cst_46 = arith.constant 0.000000e+00 : bf16
    %59 = vector.broadcast %cst_46 : bf16 to vector<32x128xbf16>
    %c0_47 = arith.constant 0 : index
    %c0_48 = arith.constant 0 : index
    %c137 = arith.constant 137 : index
    %60 = vector.load %arg5[%c0_47, %c0_48, %c137] : memref<1x32x265xbf16, #tpu.memory_space<vmem>>, vector<1x32x128xbf16>
    %61 = vector.shape_cast %60 : vector<1x32x128xbf16> to vector<32x128xbf16>
    %62 = vector.shape_cast %59 : vector<32x128xbf16> to vector<1x32x128xbf16>
    tpu.vector_store %arg5[%c0_47, %c0_48, %c137], %62 {strides = array<i32>} : memref<1x32x265xbf16, #tpu.memory_space<vmem>>, vector<1x32x128xbf16>,
    %63 = arith.truncf %54 : vector<32x9xf32> to vector<32x9xbf16>
    %c0_49 = arith.constant 0 : index
    %c0_50 = arith.constant 0 : index
    %c128_51 = arith.constant 128 : index
    %64 = vector.load %arg5[%c0_49, %c0_50, %c128_51] : memref<1x32x265xbf16, #tpu.memory_space<vmem>>, vector<1x32x9xbf16>
    %65 = vector.shape_cast %64 : vector<1x32x9xbf16> to vector<32x9xbf16>
    %66 = vector.shape_cast %63 : vector<32x9xbf16> to vector<1x32x9xbf16>
    tpu.vector_store %arg5[%c0_49, %c0_50, %c128_51], %66 {strides = array<i32>} : memref<1x32x265xbf16, #tpu.memory_space<vmem>>, vector<1x32x9xbf16>,
    return
  }
  func.func @transform_0(%arg0: i32) -> (i32, i32, i32) {
    %c0_i32 = arith.constant 0 : i32
    %c0_i32_0 = arith.constant 0 : i32
    %c0_i32_1 = arith.constant 0 : i32
    return %arg0, %c0_i32, %c0_i32_0 : i32, i32, i32
  }
  func.func @transform_1(%arg0: i32) -> (i32, i32) {
    %c0_i32 = arith.constant 0 : i32
    %c0_i32_0 = arith.constant 0 : i32
    %c0_i32_1 = arith.constant 0 : i32
    return %c0_i32, %c0_i32_0 : i32, i32
  }
  func.func @transform_2(%arg0: i32) -> (i32, i32) {
    %c0_i32 = arith.constant 0 : i32
    %c0_i32_0 = arith.constant 0 : i32
    %c0_i32_1 = arith.constant 0 : i32
    return %c0_i32, %c0_i32_0 : i32, i32
  }
  func.func @transform_3(%arg0: i32) -> (i32, i32) {
    %c0_i32 = arith.constant 0 : i32
    %c0_i32_0 = arith.constant 0 : i32
    %c0_i32_1 = arith.constant 0 : i32
    return %c0_i32, %c0_i32_0 : i32, i32
  }
  func.func @transform_4(%arg0: i32) -> (i32, i32, i32) {
    %c0_i32 = arith.constant 0 : i32
    %c0_i32_0 = arith.constant 0 : i32
    %c0_i32_1 = arith.constant 0 : i32
    return %arg0, %c0_i32, %c0_i32_0 : i32, i32, i32
  }
}

module attributes {stable_mosaic.version = 11 : i64} {
  func.func @kernel(%arg0: i32, %arg1: memref<1x64x272xbf16, #tpu.memory_space<vmem>>, %arg2: memref<1x16xf32, #tpu.memory_space<vmem>>, %arg3: memref<32x576xbf16, #tpu.memory_space<vmem>>, %arg4: memref<32x1xf32, #tpu.memory_space<vmem>>, %arg5: memref<1x32x272xbf16, #tpu.memory_space<vmem>>) attributes {dimension_semantics = [#tpu.dimension_semantics<parallel>], iteration_bounds = array<i64: 2>, scalar_prefetch = 0 : i64, scratch_operands = 0 : i64, tpu.core_type = #tpu.core_type<tc>, window_params = [{transform_indices = @transform_0, window_bounds = array<i64: 1, 64, 272>}, {pipeline_mode = #tpu.pipeline_mode<synchronous>, transform_indices = @transform_1, window_bounds = array<i64: 1, 16>}, {pipeline_mode = #tpu.pipeline_mode<synchronous>, transform_indices = @transform_2, window_bounds = array<i64: 32, 576>}, {pipeline_mode = #tpu.pipeline_mode<synchronous>, transform_indices = @transform_3, window_bounds = array<i64: 32, 1>}, {transform_indices = @transform_4, window_bounds = array<i64: 1, 32, 272>}]} {
    %cst = arith.constant 0.000000e+00 : f32
    %0 = vector.broadcast %cst : f32 to vector<32x16xf32>
    %c0 = arith.constant 0 : index
    %c0_0 = arith.constant 0 : index
    %c123 = arith.constant 123 : index
    %1 = vector.load %arg1[%c0, %c0_0, %c123] : memref<1x64x272xbf16, #tpu.memory_space<vmem>>, vector<1x64x16xbf16>
    %2 = vector.shape_cast %1 : vector<1x64x16xbf16> to vector<64x16xbf16>
    %c0_1 = arith.constant 0 : index
    %c0_2 = arith.constant 0 : index
    %3 = vector.load %arg3[%c0_1, %c0_2] : memref<32x576xbf16, #tpu.memory_space<vmem>>, vector<32x64xbf16>
    %cst_3 = arith.constant dense<0.000000e+00> : vector<32x16xf32>
    %4 = tpu.matmul %3, %2, %cst_3 {dimension_numbers = #tpu.dot_dimension_numbers<[1], [0], [0], [1], [0, 0, 1, 1], [], []>} : vector<32x64xbf16>, vector<64x16xbf16>, vector<32x16xf32> -> vector<32x16xf32>
    %5 = arith.addf %0, %4 : vector<32x16xf32>
    %c0_4 = arith.constant 0 : index
    %c0_5 = arith.constant 0 : index
    %c124 = arith.constant 124 : index
    %6 = vector.load %arg1[%c0_4, %c0_5, %c124] : memref<1x64x272xbf16, #tpu.memory_space<vmem>>, vector<1x64x16xbf16>
    %7 = vector.shape_cast %6 : vector<1x64x16xbf16> to vector<64x16xbf16>
    %c0_6 = arith.constant 0 : index
    %c64 = arith.constant 64 : index
    %8 = vector.load %arg3[%c0_6, %c64] : memref<32x576xbf16, #tpu.memory_space<vmem>>, vector<32x64xbf16>
    %cst_7 = arith.constant dense<0.000000e+00> : vector<32x16xf32>
    %9 = tpu.matmul %8, %7, %cst_7 {dimension_numbers = #tpu.dot_dimension_numbers<[1], [0], [0], [1], [0, 0, 1, 1], [], []>} : vector<32x64xbf16>, vector<64x16xbf16>, vector<32x16xf32> -> vector<32x16xf32>
    %10 = arith.addf %5, %9 : vector<32x16xf32>
    %c0_8 = arith.constant 0 : index
    %c0_9 = arith.constant 0 : index
    %c125 = arith.constant 125 : index
    %11 = vector.load %arg1[%c0_8, %c0_9, %c125] : memref<1x64x272xbf16, #tpu.memory_space<vmem>>, vector<1x64x16xbf16>
    %12 = vector.shape_cast %11 : vector<1x64x16xbf16> to vector<64x16xbf16>
    %c0_10 = arith.constant 0 : index
    %c128 = arith.constant 128 : index
    %13 = vector.load %arg3[%c0_10, %c128] : memref<32x576xbf16, #tpu.memory_space<vmem>>, vector<32x64xbf16>
    %cst_11 = arith.constant dense<0.000000e+00> : vector<32x16xf32>
    %14 = tpu.matmul %13, %12, %cst_11 {dimension_numbers = #tpu.dot_dimension_numbers<[1], [0], [0], [1], [0, 0, 1, 1], [], []>} : vector<32x64xbf16>, vector<64x16xbf16>, vector<32x16xf32> -> vector<32x16xf32>
    %15 = arith.addf %10, %14 : vector<32x16xf32>
    %c0_12 = arith.constant 0 : index
    %c0_13 = arith.constant 0 : index
    %c127 = arith.constant 127 : index
    %16 = vector.load %arg1[%c0_12, %c0_13, %c127] : memref<1x64x272xbf16, #tpu.memory_space<vmem>>, vector<1x64x16xbf16>
    %17 = vector.shape_cast %16 : vector<1x64x16xbf16> to vector<64x16xbf16>
    %c0_14 = arith.constant 0 : index
    %c192 = arith.constant 192 : index
    %18 = vector.load %arg3[%c0_14, %c192] : memref<32x576xbf16, #tpu.memory_space<vmem>>, vector<32x64xbf16>
    %cst_15 = arith.constant dense<0.000000e+00> : vector<32x16xf32>
    %19 = tpu.matmul %18, %17, %cst_15 {dimension_numbers = #tpu.dot_dimension_numbers<[1], [0], [0], [1], [0, 0, 1, 1], [], []>} : vector<32x64xbf16>, vector<64x16xbf16>, vector<32x16xf32> -> vector<32x16xf32>
    %20 = arith.addf %15, %19 : vector<32x16xf32>
    %c0_16 = arith.constant 0 : index
    %c0_17 = arith.constant 0 : index
    %c128_18 = arith.constant 128 : index
    %21 = vector.load %arg1[%c0_16, %c0_17, %c128_18] : memref<1x64x272xbf16, #tpu.memory_space<vmem>>, vector<1x64x16xbf16>
    %22 = vector.shape_cast %21 : vector<1x64x16xbf16> to vector<64x16xbf16>
    %c0_19 = arith.constant 0 : index
    %c256 = arith.constant 256 : index
    %23 = vector.load %arg3[%c0_19, %c256] : memref<32x576xbf16, #tpu.memory_space<vmem>>, vector<32x64xbf16>
    %cst_20 = arith.constant dense<0.000000e+00> : vector<32x16xf32>
    %24 = tpu.matmul %23, %22, %cst_20 {dimension_numbers = #tpu.dot_dimension_numbers<[1], [0], [0], [1], [0, 0, 1, 1], [], []>} : vector<32x64xbf16>, vector<64x16xbf16>, vector<32x16xf32> -> vector<32x16xf32>
    %25 = arith.addf %20, %24 : vector<32x16xf32>
    %c0_21 = arith.constant 0 : index
    %c0_22 = arith.constant 0 : index
    %c129 = arith.constant 129 : index
    %26 = vector.load %arg1[%c0_21, %c0_22, %c129] : memref<1x64x272xbf16, #tpu.memory_space<vmem>>, vector<1x64x16xbf16>
    %27 = vector.shape_cast %26 : vector<1x64x16xbf16> to vector<64x16xbf16>
    %c0_23 = arith.constant 0 : index
    %c320 = arith.constant 320 : index
    %28 = vector.load %arg3[%c0_23, %c320] : memref<32x576xbf16, #tpu.memory_space<vmem>>, vector<32x64xbf16>
    %cst_24 = arith.constant dense<0.000000e+00> : vector<32x16xf32>
    %29 = tpu.matmul %28, %27, %cst_24 {dimension_numbers = #tpu.dot_dimension_numbers<[1], [0], [0], [1], [0, 0, 1, 1], [], []>} : vector<32x64xbf16>, vector<64x16xbf16>, vector<32x16xf32> -> vector<32x16xf32>
    %30 = arith.addf %25, %29 : vector<32x16xf32>
    %c0_25 = arith.constant 0 : index
    %c0_26 = arith.constant 0 : index
    %c131 = arith.constant 131 : index
    %31 = vector.load %arg1[%c0_25, %c0_26, %c131] : memref<1x64x272xbf16, #tpu.memory_space<vmem>>, vector<1x64x16xbf16>
    %32 = vector.shape_cast %31 : vector<1x64x16xbf16> to vector<64x16xbf16>
    %c0_27 = arith.constant 0 : index
    %c384 = arith.constant 384 : index
    %33 = vector.load %arg3[%c0_27, %c384] : memref<32x576xbf16, #tpu.memory_space<vmem>>, vector<32x64xbf16>
    %cst_28 = arith.constant dense<0.000000e+00> : vector<32x16xf32>
    %34 = tpu.matmul %33, %32, %cst_28 {dimension_numbers = #tpu.dot_dimension_numbers<[1], [0], [0], [1], [0, 0, 1, 1], [], []>} : vector<32x64xbf16>, vector<64x16xbf16>, vector<32x16xf32> -> vector<32x16xf32>
    %35 = arith.addf %30, %34 : vector<32x16xf32>
    %c0_29 = arith.constant 0 : index
    %c0_30 = arith.constant 0 : index
    %c132 = arith.constant 132 : index
    %36 = vector.load %arg1[%c0_29, %c0_30, %c132] : memref<1x64x272xbf16, #tpu.memory_space<vmem>>, vector<1x64x16xbf16>
    %37 = vector.shape_cast %36 : vector<1x64x16xbf16> to vector<64x16xbf16>
    %c0_31 = arith.constant 0 : index
    %c448 = arith.constant 448 : index
    %38 = vector.load %arg3[%c0_31, %c448] : memref<32x576xbf16, #tpu.memory_space<vmem>>, vector<32x64xbf16>
    %cst_32 = arith.constant dense<0.000000e+00> : vector<32x16xf32>
    %39 = tpu.matmul %38, %37, %cst_32 {dimension_numbers = #tpu.dot_dimension_numbers<[1], [0], [0], [1], [0, 0, 1, 1], [], []>} : vector<32x64xbf16>, vector<64x16xbf16>, vector<32x16xf32> -> vector<32x16xf32>
    %40 = arith.addf %35, %39 : vector<32x16xf32>
    %c0_33 = arith.constant 0 : index
    %c0_34 = arith.constant 0 : index
    %c133 = arith.constant 133 : index
    %41 = vector.load %arg1[%c0_33, %c0_34, %c133] : memref<1x64x272xbf16, #tpu.memory_space<vmem>>, vector<1x64x16xbf16>
    %42 = vector.shape_cast %41 : vector<1x64x16xbf16> to vector<64x16xbf16>
    %c0_35 = arith.constant 0 : index
    %c512 = arith.constant 512 : index
    %43 = vector.load %arg3[%c0_35, %c512] : memref<32x576xbf16, #tpu.memory_space<vmem>>, vector<32x64xbf16>
    %cst_36 = arith.constant dense<0.000000e+00> : vector<32x16xf32>
    %44 = tpu.matmul %43, %42, %cst_36 {dimension_numbers = #tpu.dot_dimension_numbers<[1], [0], [0], [1], [0, 0, 1, 1], [], []>} : vector<32x64xbf16>, vector<64x16xbf16>, vector<32x16xf32> -> vector<32x16xf32>
    %45 = arith.addf %40, %44 : vector<32x16xf32>
    %c0_37 = arith.constant 0 : index
    %c0_38 = arith.constant 0 : index
    %46 = vector.load %arg4[%c0_37, %c0_38] : memref<32x1xf32, #tpu.memory_space<vmem>>, vector<32x1xf32>
    %47 = vector.broadcast %46 : vector<32x1xf32> to vector<32x16xf32>
    %48 = arith.addf %45, %47 : vector<32x16xf32>
    %cst_39 = arith.constant 2.000000e-01 : f32
    %49 = vector.broadcast %cst_39 : f32 to vector<32x16xf32>
    %50 = arith.mulf %49, %48 : vector<32x16xf32>
    %51 = arith.maximumf %48, %50 : vector<32x16xf32>
    %c0_40 = arith.constant 0 : index
    %c0_41 = arith.constant 0 : index
    %52 = vector.load %arg2[%c0_40, %c0_41] : memref<1x16xf32, #tpu.memory_space<vmem>>, vector<1x16xf32>
    %53 = vector.broadcast %52 : vector<1x16xf32> to vector<32x16xf32>
    %54 = arith.mulf %51, %53 : vector<32x16xf32>
    %cst_42 = arith.constant 0.000000e+00 : bf16
    %55 = vector.broadcast %cst_42 : bf16 to vector<32x128xbf16>
    %c0_43 = arith.constant 0 : index
    %c0_44 = arith.constant 0 : index
    %c0_45 = arith.constant 0 : index
    %56 = vector.load %arg5[%c0_43, %c0_44, %c0_45] : memref<1x32x272xbf16, #tpu.memory_space<vmem>>, vector<1x32x128xbf16>
    %57 = vector.shape_cast %56 : vector<1x32x128xbf16> to vector<32x128xbf16>
    %58 = vector.shape_cast %55 : vector<32x128xbf16> to vector<1x32x128xbf16>
    tpu.vector_store %arg5[%c0_43, %c0_44, %c0_45], %58 {strides = array<i32>} : memref<1x32x272xbf16, #tpu.memory_space<vmem>>, vector<1x32x128xbf16>,
    %cst_46 = arith.constant 0.000000e+00 : bf16
    %59 = vector.broadcast %cst_46 : bf16 to vector<32x128xbf16>
    %c0_47 = arith.constant 0 : index
    %c0_48 = arith.constant 0 : index
    %c144 = arith.constant 144 : index
    %60 = vector.load %arg5[%c0_47, %c0_48, %c144] : memref<1x32x272xbf16, #tpu.memory_space<vmem>>, vector<1x32x128xbf16>
    %61 = vector.shape_cast %60 : vector<1x32x128xbf16> to vector<32x128xbf16>
    %62 = vector.shape_cast %59 : vector<32x128xbf16> to vector<1x32x128xbf16>
    tpu.vector_store %arg5[%c0_47, %c0_48, %c144], %62 {strides = array<i32>} : memref<1x32x272xbf16, #tpu.memory_space<vmem>>, vector<1x32x128xbf16>,
    %63 = arith.truncf %54 : vector<32x16xf32> to vector<32x16xbf16>
    %c0_49 = arith.constant 0 : index
    %c0_50 = arith.constant 0 : index
    %c128_51 = arith.constant 128 : index
    %64 = vector.load %arg5[%c0_49, %c0_50, %c128_51] : memref<1x32x272xbf16, #tpu.memory_space<vmem>>, vector<1x32x16xbf16>
    %65 = vector.shape_cast %64 : vector<1x32x16xbf16> to vector<32x16xbf16>
    %66 = vector.shape_cast %63 : vector<32x16xbf16> to vector<1x32x16xbf16>
    tpu.vector_store %arg5[%c0_49, %c0_50, %c128_51], %66 {strides = array<i32>} : memref<1x32x272xbf16, #tpu.memory_space<vmem>>, vector<1x32x16xbf16>,
    return
  }
  func.func @transform_0(%arg0: i32) -> (i32, i32, i32) {
    %c0_i32 = arith.constant 0 : i32
    %c0_i32_0 = arith.constant 0 : i32
    %c0_i32_1 = arith.constant 0 : i32
    return %arg0, %c0_i32, %c0_i32_0 : i32, i32, i32
  }
  func.func @transform_1(%arg0: i32) -> (i32, i32) {
    %c0_i32 = arith.constant 0 : i32
    %c0_i32_0 = arith.constant 0 : i32
    %c0_i32_1 = arith.constant 0 : i32
    return %c0_i32, %c0_i32_0 : i32, i32
  }
  func.func @transform_2(%arg0: i32) -> (i32, i32) {
    %c0_i32 = arith.constant 0 : i32
    %c0_i32_0 = arith.constant 0 : i32
    %c0_i32_1 = arith.constant 0 : i32
    return %c0_i32, %c0_i32_0 : i32, i32
  }
  func.func @transform_3(%arg0: i32) -> (i32, i32) {
    %c0_i32 = arith.constant 0 : i32
    %c0_i32_0 = arith.constant 0 : i32
    %c0_i32_1 = arith.constant 0 : i32
    return %c0_i32, %c0_i32_0 : i32, i32
  }
  func.func @transform_4(%arg0: i32) -> (i32, i32, i32) {
    %c0_i32 = arith.constant 0 : i32
    %c0_i32_0 = arith.constant 0 : i32
    %c0_i32_1 = arith.constant 0 : i32
    return %arg0, %c0_i32, %c0_i32_0 : i32, i32, i32
  }
}

module attributes {stable_mosaic.version = 11 : i64} {
  func.func @kernel(%arg0: i32, %arg1: memref<1x64x292xbf16, #tpu.memory_space<vmem>>, %arg2: memref<1x36xf32, #tpu.memory_space<vmem>>, %arg3: memref<32x576xbf16, #tpu.memory_space<vmem>>, %arg4: memref<32x1xf32, #tpu.memory_space<vmem>>, %arg5: memref<1x32x292xbf16, #tpu.memory_space<vmem>>) attributes {dimension_semantics = [#tpu.dimension_semantics<parallel>], iteration_bounds = array<i64: 2>, scalar_prefetch = 0 : i64, scratch_operands = 0 : i64, tpu.core_type = #tpu.core_type<tc>, window_params = [{transform_indices = @transform_0, window_bounds = array<i64: 1, 64, 292>}, {pipeline_mode = #tpu.pipeline_mode<synchronous>, transform_indices = @transform_1, window_bounds = array<i64: 1, 36>}, {pipeline_mode = #tpu.pipeline_mode<synchronous>, transform_indices = @transform_2, window_bounds = array<i64: 32, 576>}, {pipeline_mode = #tpu.pipeline_mode<synchronous>, transform_indices = @transform_3, window_bounds = array<i64: 32, 1>}, {transform_indices = @transform_4, window_bounds = array<i64: 1, 32, 292>}]} {
    %cst = arith.constant 0.000000e+00 : f32
    %0 = vector.broadcast %cst : f32 to vector<32x36xf32>
    %c0 = arith.constant 0 : index
    %c0_0 = arith.constant 0 : index
    %c121 = arith.constant 121 : index
    %1 = vector.load %arg1[%c0, %c0_0, %c121] : memref<1x64x292xbf16, #tpu.memory_space<vmem>>, vector<1x64x36xbf16>
    %2 = vector.shape_cast %1 : vector<1x64x36xbf16> to vector<64x36xbf16>
    %c0_1 = arith.constant 0 : index
    %c0_2 = arith.constant 0 : index
    %3 = vector.load %arg3[%c0_1, %c0_2] : memref<32x576xbf16, #tpu.memory_space<vmem>>, vector<32x64xbf16>
    %cst_3 = arith.constant dense<0.000000e+00> : vector<32x36xf32>
    %4 = tpu.matmul %3, %2, %cst_3 {dimension_numbers = #tpu.dot_dimension_numbers<[1], [0], [0], [1], [0, 0, 1, 1], [], []>} : vector<32x64xbf16>, vector<64x36xbf16>, vector<32x36xf32> -> vector<32x36xf32>
    %5 = arith.addf %0, %4 : vector<32x36xf32>
    %c0_4 = arith.constant 0 : index
    %c0_5 = arith.constant 0 : index
    %c122 = arith.constant 122 : index
    %6 = vector.load %arg1[%c0_4, %c0_5, %c122] : memref<1x64x292xbf16, #tpu.memory_space<vmem>>, vector<1x64x36xbf16>
    %7 = vector.shape_cast %6 : vector<1x64x36xbf16> to vector<64x36xbf16>
    %c0_6 = arith.constant 0 : index
    %c64 = arith.constant 64 : index
    %8 = vector.load %arg3[%c0_6, %c64] : memref<32x576xbf16, #tpu.memory_space<vmem>>, vector<32x64xbf16>
    %cst_7 = arith.constant dense<0.000000e+00> : vector<32x36xf32>
    %9 = tpu.matmul %8, %7, %cst_7 {dimension_numbers = #tpu.dot_dimension_numbers<[1], [0], [0], [1], [0, 0, 1, 1], [], []>} : vector<32x64xbf16>, vector<64x36xbf16>, vector<32x36xf32> -> vector<32x36xf32>
    %10 = arith.addf %5, %9 : vector<32x36xf32>
    %c0_8 = arith.constant 0 : index
    %c0_9 = arith.constant 0 : index
    %c123 = arith.constant 123 : index
    %11 = vector.load %arg1[%c0_8, %c0_9, %c123] : memref<1x64x292xbf16, #tpu.memory_space<vmem>>, vector<1x64x36xbf16>
    %12 = vector.shape_cast %11 : vector<1x64x36xbf16> to vector<64x36xbf16>
    %c0_10 = arith.constant 0 : index
    %c128 = arith.constant 128 : index
    %13 = vector.load %arg3[%c0_10, %c128] : memref<32x576xbf16, #tpu.memory_space<vmem>>, vector<32x64xbf16>
    %cst_11 = arith.constant dense<0.000000e+00> : vector<32x36xf32>
    %14 = tpu.matmul %13, %12, %cst_11 {dimension_numbers = #tpu.dot_dimension_numbers<[1], [0], [0], [1], [0, 0, 1, 1], [], []>} : vector<32x64xbf16>, vector<64x36xbf16>, vector<32x36xf32> -> vector<32x36xf32>
    %15 = arith.addf %10, %14 : vector<32x36xf32>
    %c0_12 = arith.constant 0 : index
    %c0_13 = arith.constant 0 : index
    %c127 = arith.constant 127 : index
    %16 = vector.load %arg1[%c0_12, %c0_13, %c127] : memref<1x64x292xbf16, #tpu.memory_space<vmem>>, vector<1x64x36xbf16>
    %17 = vector.shape_cast %16 : vector<1x64x36xbf16> to vector<64x36xbf16>
    %c0_14 = arith.constant 0 : index
    %c192 = arith.constant 192 : index
    %18 = vector.load %arg3[%c0_14, %c192] : memref<32x576xbf16, #tpu.memory_space<vmem>>, vector<32x64xbf16>
    %cst_15 = arith.constant dense<0.000000e+00> : vector<32x36xf32>
    %19 = tpu.matmul %18, %17, %cst_15 {dimension_numbers = #tpu.dot_dimension_numbers<[1], [0], [0], [1], [0, 0, 1, 1], [], []>} : vector<32x64xbf16>, vector<64x36xbf16>, vector<32x36xf32> -> vector<32x36xf32>
    %20 = arith.addf %15, %19 : vector<32x36xf32>
    %c0_16 = arith.constant 0 : index
    %c0_17 = arith.constant 0 : index
    %c128_18 = arith.constant 128 : index
    %21 = vector.load %arg1[%c0_16, %c0_17, %c128_18] : memref<1x64x292xbf16, #tpu.memory_space<vmem>>, vector<1x64x36xbf16>
    %22 = vector.shape_cast %21 : vector<1x64x36xbf16> to vector<64x36xbf16>
    %c0_19 = arith.constant 0 : index
    %c256 = arith.constant 256 : index
    %23 = vector.load %arg3[%c0_19, %c256] : memref<32x576xbf16, #tpu.memory_space<vmem>>, vector<32x64xbf16>
    %cst_20 = arith.constant dense<0.000000e+00> : vector<32x36xf32>
    %24 = tpu.matmul %23, %22, %cst_20 {dimension_numbers = #tpu.dot_dimension_numbers<[1], [0], [0], [1], [0, 0, 1, 1], [], []>} : vector<32x64xbf16>, vector<64x36xbf16>, vector<32x36xf32> -> vector<32x36xf32>
    %25 = arith.addf %20, %24 : vector<32x36xf32>
    %c0_21 = arith.constant 0 : index
    %c0_22 = arith.constant 0 : index
    %c129 = arith.constant 129 : index
    %26 = vector.load %arg1[%c0_21, %c0_22, %c129] : memref<1x64x292xbf16, #tpu.memory_space<vmem>>, vector<1x64x36xbf16>
    %27 = vector.shape_cast %26 : vector<1x64x36xbf16> to vector<64x36xbf16>
    %c0_23 = arith.constant 0 : index
    %c320 = arith.constant 320 : index
    %28 = vector.load %arg3[%c0_23, %c320] : memref<32x576xbf16, #tpu.memory_space<vmem>>, vector<32x64xbf16>
    %cst_24 = arith.constant dense<0.000000e+00> : vector<32x36xf32>
    %29 = tpu.matmul %28, %27, %cst_24 {dimension_numbers = #tpu.dot_dimension_numbers<[1], [0], [0], [1], [0, 0, 1, 1], [], []>} : vector<32x64xbf16>, vector<64x36xbf16>, vector<32x36xf32> -> vector<32x36xf32>
    %30 = arith.addf %25, %29 : vector<32x36xf32>
    %c0_25 = arith.constant 0 : index
    %c0_26 = arith.constant 0 : index
    %c133 = arith.constant 133 : index
    %31 = vector.load %arg1[%c0_25, %c0_26, %c133] : memref<1x64x292xbf16, #tpu.memory_space<vmem>>, vector<1x64x36xbf16>
    %32 = vector.shape_cast %31 : vector<1x64x36xbf16> to vector<64x36xbf16>
    %c0_27 = arith.constant 0 : index
    %c384 = arith.constant 384 : index
    %33 = vector.load %arg3[%c0_27, %c384] : memref<32x576xbf16, #tpu.memory_space<vmem>>, vector<32x64xbf16>
    %cst_28 = arith.constant dense<0.000000e+00> : vector<32x36xf32>
    %34 = tpu.matmul %33, %32, %cst_28 {dimension_numbers = #tpu.dot_dimension_numbers<[1], [0], [0], [1], [0, 0, 1, 1], [], []>} : vector<32x64xbf16>, vector<64x36xbf16>, vector<32x36xf32> -> vector<32x36xf32>
    %35 = arith.addf %30, %34 : vector<32x36xf32>
    %c0_29 = arith.constant 0 : index
    %c0_30 = arith.constant 0 : index
    %c134 = arith.constant 134 : index
    %36 = vector.load %arg1[%c0_29, %c0_30, %c134] : memref<1x64x292xbf16, #tpu.memory_space<vmem>>, vector<1x64x36xbf16>
    %37 = vector.shape_cast %36 : vector<1x64x36xbf16> to vector<64x36xbf16>
    %c0_31 = arith.constant 0 : index
    %c448 = arith.constant 448 : index
    %38 = vector.load %arg3[%c0_31, %c448] : memref<32x576xbf16, #tpu.memory_space<vmem>>, vector<32x64xbf16>
    %cst_32 = arith.constant dense<0.000000e+00> : vector<32x36xf32>
    %39 = tpu.matmul %38, %37, %cst_32 {dimension_numbers = #tpu.dot_dimension_numbers<[1], [0], [0], [1], [0, 0, 1, 1], [], []>} : vector<32x64xbf16>, vector<64x36xbf16>, vector<32x36xf32> -> vector<32x36xf32>
    %40 = arith.addf %35, %39 : vector<32x36xf32>
    %c0_33 = arith.constant 0 : index
    %c0_34 = arith.constant 0 : index
    %c135 = arith.constant 135 : index
    %41 = vector.load %arg1[%c0_33, %c0_34, %c135] : memref<1x64x292xbf16, #tpu.memory_space<vmem>>, vector<1x64x36xbf16>
    %42 = vector.shape_cast %41 : vector<1x64x36xbf16> to vector<64x36xbf16>
    %c0_35 = arith.constant 0 : index
    %c512 = arith.constant 512 : index
    %43 = vector.load %arg3[%c0_35, %c512] : memref<32x576xbf16, #tpu.memory_space<vmem>>, vector<32x64xbf16>
    %cst_36 = arith.constant dense<0.000000e+00> : vector<32x36xf32>
    %44 = tpu.matmul %43, %42, %cst_36 {dimension_numbers = #tpu.dot_dimension_numbers<[1], [0], [0], [1], [0, 0, 1, 1], [], []>} : vector<32x64xbf16>, vector<64x36xbf16>, vector<32x36xf32> -> vector<32x36xf32>
    %45 = arith.addf %40, %44 : vector<32x36xf32>
    %c0_37 = arith.constant 0 : index
    %c0_38 = arith.constant 0 : index
    %46 = vector.load %arg4[%c0_37, %c0_38] : memref<32x1xf32, #tpu.memory_space<vmem>>, vector<32x1xf32>
    %47 = vector.broadcast %46 : vector<32x1xf32> to vector<32x36xf32>
    %48 = arith.addf %45, %47 : vector<32x36xf32>
    %cst_39 = arith.constant 2.000000e-01 : f32
    %49 = vector.broadcast %cst_39 : f32 to vector<32x36xf32>
    %50 = arith.mulf %49, %48 : vector<32x36xf32>
    %51 = arith.maximumf %48, %50 : vector<32x36xf32>
    %c0_40 = arith.constant 0 : index
    %c0_41 = arith.constant 0 : index
    %52 = vector.load %arg2[%c0_40, %c0_41] : memref<1x36xf32, #tpu.memory_space<vmem>>, vector<1x36xf32>
    %53 = vector.broadcast %52 : vector<1x36xf32> to vector<32x36xf32>
    %54 = arith.mulf %51, %53 : vector<32x36xf32>
    %cst_42 = arith.constant 0.000000e+00 : bf16
    %55 = vector.broadcast %cst_42 : bf16 to vector<32x128xbf16>
    %c0_43 = arith.constant 0 : index
    %c0_44 = arith.constant 0 : index
    %c0_45 = arith.constant 0 : index
    %56 = vector.load %arg5[%c0_43, %c0_44, %c0_45] : memref<1x32x292xbf16, #tpu.memory_space<vmem>>, vector<1x32x128xbf16>
    %57 = vector.shape_cast %56 : vector<1x32x128xbf16> to vector<32x128xbf16>
    %58 = vector.shape_cast %55 : vector<32x128xbf16> to vector<1x32x128xbf16>
    tpu.vector_store %arg5[%c0_43, %c0_44, %c0_45], %58 {strides = array<i32>} : memref<1x32x292xbf16, #tpu.memory_space<vmem>>, vector<1x32x128xbf16>,
    %cst_46 = arith.constant 0.000000e+00 : bf16
    %59 = vector.broadcast %cst_46 : bf16 to vector<32x128xbf16>
    %c0_47 = arith.constant 0 : index
    %c0_48 = arith.constant 0 : index
    %c164 = arith.constant 164 : index
    %60 = vector.load %arg5[%c0_47, %c0_48, %c164] : memref<1x32x292xbf16, #tpu.memory_space<vmem>>, vector<1x32x128xbf16>
    %61 = vector.shape_cast %60 : vector<1x32x128xbf16> to vector<32x128xbf16>
    %62 = vector.shape_cast %59 : vector<32x128xbf16> to vector<1x32x128xbf16>
    tpu.vector_store %arg5[%c0_47, %c0_48, %c164], %62 {strides = array<i32>} : memref<1x32x292xbf16, #tpu.memory_space<vmem>>, vector<1x32x128xbf16>,
    %63 = arith.truncf %54 : vector<32x36xf32> to vector<32x36xbf16>
    %c0_49 = arith.constant 0 : index
    %c0_50 = arith.constant 0 : index
    %c128_51 = arith.constant 128 : index
    %64 = vector.load %arg5[%c0_49, %c0_50, %c128_51] : memref<1x32x292xbf16, #tpu.memory_space<vmem>>, vector<1x32x36xbf16>
    %65 = vector.shape_cast %64 : vector<1x32x36xbf16> to vector<32x36xbf16>
    %66 = vector.shape_cast %63 : vector<32x36xbf16> to vector<1x32x36xbf16>
    tpu.vector_store %arg5[%c0_49, %c0_50, %c128_51], %66 {strides = array<i32>} : memref<1x32x292xbf16, #tpu.memory_space<vmem>>, vector<1x32x36xbf16>,
    return
  }
  func.func @transform_0(%arg0: i32) -> (i32, i32, i32) {
    %c0_i32 = arith.constant 0 : i32
    %c0_i32_0 = arith.constant 0 : i32
    %c0_i32_1 = arith.constant 0 : i32
    return %arg0, %c0_i32, %c0_i32_0 : i32, i32, i32
  }
  func.func @transform_1(%arg0: i32) -> (i32, i32) {
    %c0_i32 = arith.constant 0 : i32
    %c0_i32_0 = arith.constant 0 : i32
    %c0_i32_1 = arith.constant 0 : i32
    return %c0_i32, %c0_i32_0 : i32, i32
  }
  func.func @transform_2(%arg0: i32) -> (i32, i32) {
    %c0_i32 = arith.constant 0 : i32
    %c0_i32_0 = arith.constant 0 : i32
    %c0_i32_1 = arith.constant 0 : i32
    return %c0_i32, %c0_i32_0 : i32, i32
  }
  func.func @transform_3(%arg0: i32) -> (i32, i32) {
    %c0_i32 = arith.constant 0 : i32
    %c0_i32_0 = arith.constant 0 : i32
    %c0_i32_1 = arith.constant 0 : i32
    return %c0_i32, %c0_i32_0 : i32, i32
  }
  func.func @transform_4(%arg0: i32) -> (i32, i32, i32) {
    %c0_i32 = arith.constant 0 : i32
    %c0_i32_0 = arith.constant 0 : i32
    %c0_i32_1 = arith.constant 0 : i32
    return %arg0, %c0_i32, %c0_i32_0 : i32, i32, i32
  }
}

module attributes {stable_mosaic.version = 11 : i64} {
  func.func @kernel(%arg0: i32, %arg1: memref<1x48x356xbf16, #tpu.memory_space<vmem>>, %arg2: memref<1x100xf32, #tpu.memory_space<vmem>>, %arg3: memref<32x432xbf16, #tpu.memory_space<vmem>>, %arg4: memref<32x1xf32, #tpu.memory_space<vmem>>, %arg5: memref<32x288xbf16, #tpu.memory_space<vmem>>, %arg6: memref<32x1xf32, #tpu.memory_space<vmem>>, %arg7: memref<1x32x356xbf16, #tpu.memory_space<vmem>>, %arg8: memref<32x356xbf16, #tpu.memory_space<vmem>>) attributes {dimension_semantics = [#tpu.dimension_semantics<parallel>], iteration_bounds = array<i64: 2>, scalar_prefetch = 0 : i64, scratch_operands = 1 : i64, tpu.core_type = #tpu.core_type<tc>, window_params = [{transform_indices = @transform_0, window_bounds = array<i64: 1, 48, 356>}, {pipeline_mode = #tpu.pipeline_mode<synchronous>, transform_indices = @transform_1, window_bounds = array<i64: 1, 100>}, {pipeline_mode = #tpu.pipeline_mode<synchronous>, transform_indices = @transform_2, window_bounds = array<i64: 32, 432>}, {pipeline_mode = #tpu.pipeline_mode<synchronous>, transform_indices = @transform_3, window_bounds = array<i64: 32, 1>}, {pipeline_mode = #tpu.pipeline_mode<synchronous>, transform_indices = @transform_4, window_bounds = array<i64: 32, 288>}, {pipeline_mode = #tpu.pipeline_mode<synchronous>, transform_indices = @transform_5, window_bounds = array<i64: 32, 1>}, {transform_indices = @transform_6, window_bounds = array<i64: 1, 32, 356>}]} {
    %cst = arith.constant 0.000000e+00 : f32
    %0 = vector.broadcast %cst : f32 to vector<32x100xf32>
    %c0 = arith.constant 0 : index
    %c0_0 = arith.constant 0 : index
    %c117 = arith.constant 117 : index
    %1 = vector.load %arg1[%c0, %c0_0, %c117] : memref<1x48x356xbf16, #tpu.memory_space<vmem>>, vector<1x48x100xbf16>
    %2 = vector.shape_cast %1 : vector<1x48x100xbf16> to vector<48x100xbf16>
    %c0_1 = arith.constant 0 : index
    %c0_2 = arith.constant 0 : index
    %3 = vector.load %arg3[%c0_1, %c0_2] : memref<32x432xbf16, #tpu.memory_space<vmem>>, vector<32x48xbf16>
    %cst_3 = arith.constant dense<0.000000e+00> : vector<32x100xf32>
    %4 = tpu.matmul %3, %2, %cst_3 {dimension_numbers = #tpu.dot_dimension_numbers<[1], [0], [0], [1], [0, 0, 1, 1], [], []>} : vector<32x48xbf16>, vector<48x100xbf16>, vector<32x100xf32> -> vector<32x100xf32>
    %5 = arith.addf %0, %4 : vector<32x100xf32>
    %c0_4 = arith.constant 0 : index
    %c0_5 = arith.constant 0 : index
    %c118 = arith.constant 118 : index
    %6 = vector.load %arg1[%c0_4, %c0_5, %c118] : memref<1x48x356xbf16, #tpu.memory_space<vmem>>, vector<1x48x100xbf16>
    %7 = vector.shape_cast %6 : vector<1x48x100xbf16> to vector<48x100xbf16>
    %c0_6 = arith.constant 0 : index
    %c48 = arith.constant 48 : index
    %8 = vector.load %arg3[%c0_6, %c48] : memref<32x432xbf16, #tpu.memory_space<vmem>>, vector<32x48xbf16>
    %cst_7 = arith.constant dense<0.000000e+00> : vector<32x100xf32>
    %9 = tpu.matmul %8, %7, %cst_7 {dimension_numbers = #tpu.dot_dimension_numbers<[1], [0], [0], [1], [0, 0, 1, 1], [], []>} : vector<32x48xbf16>, vector<48x100xbf16>, vector<32x100xf32> -> vector<32x100xf32>
    %10 = arith.addf %5, %9 : vector<32x100xf32>
    %c0_8 = arith.constant 0 : index
    %c0_9 = arith.constant 0 : index
    %c119 = arith.constant 119 : index
    %11 = vector.load %arg1[%c0_8, %c0_9, %c119] : memref<1x48x356xbf16, #tpu.memory_space<vmem>>, vector<1x48x100xbf16>
    %12 = vector.shape_cast %11 : vector<1x48x100xbf16> to vector<48x100xbf16>
    %c0_10 = arith.constant 0 : index
    %c96 = arith.constant 96 : index
    %13 = vector.load %arg3[%c0_10, %c96] : memref<32x432xbf16, #tpu.memory_space<vmem>>, vector<32x48xbf16>
    %cst_11 = arith.constant dense<0.000000e+00> : vector<32x100xf32>
    %14 = tpu.matmul %13, %12, %cst_11 {dimension_numbers = #tpu.dot_dimension_numbers<[1], [0], [0], [1], [0, 0, 1, 1], [], []>} : vector<32x48xbf16>, vector<48x100xbf16>, vector<32x100xf32> -> vector<32x100xf32>
    %15 = arith.addf %10, %14 : vector<32x100xf32>
    %c0_12 = arith.constant 0 : index
    %c0_13 = arith.constant 0 : index
    %c127 = arith.constant 127 : index
    %16 = vector.load %arg1[%c0_12, %c0_13, %c127] : memref<1x48x356xbf16, #tpu.memory_space<vmem>>, vector<1x48x100xbf16>
    %17 = vector.shape_cast %16 : vector<1x48x100xbf16> to vector<48x100xbf16>
    %c0_14 = arith.constant 0 : index
    %c144 = arith.constant 144 : index
    %18 = vector.load %arg3[%c0_14, %c144] : memref<32x432xbf16, #tpu.memory_space<vmem>>, vector<32x48xbf16>
    %cst_15 = arith.constant dense<0.000000e+00> : vector<32x100xf32>
    %19 = tpu.matmul %18, %17, %cst_15 {dimension_numbers = #tpu.dot_dimension_numbers<[1], [0], [0], [1], [0, 0, 1, 1], [], []>} : vector<32x48xbf16>, vector<48x100xbf16>, vector<32x100xf32> -> vector<32x100xf32>
    %20 = arith.addf %15, %19 : vector<32x100xf32>
    %c0_16 = arith.constant 0 : index
    %c0_17 = arith.constant 0 : index
    %c128 = arith.constant 128 : index
    %21 = vector.load %arg1[%c0_16, %c0_17, %c128] : memref<1x48x356xbf16, #tpu.memory_space<vmem>>, vector<1x48x100xbf16>
    %22 = vector.shape_cast %21 : vector<1x48x100xbf16> to vector<48x100xbf16>
    %c0_18 = arith.constant 0 : index
    %c192 = arith.constant 192 : index
    %23 = vector.load %arg3[%c0_18, %c192] : memref<32x432xbf16, #tpu.memory_space<vmem>>, vector<32x48xbf16>
    %cst_19 = arith.constant dense<0.000000e+00> : vector<32x100xf32>
    %24 = tpu.matmul %23, %22, %cst_19 {dimension_numbers = #tpu.dot_dimension_numbers<[1], [0], [0], [1], [0, 0, 1, 1], [], []>} : vector<32x48xbf16>, vector<48x100xbf16>, vector<32x100xf32> -> vector<32x100xf32>
    %25 = arith.addf %20, %24 : vector<32x100xf32>
    %c0_20 = arith.constant 0 : index
    %c0_21 = arith.constant 0 : index
    %c129 = arith.constant 129 : index
    %26 = vector.load %arg1[%c0_20, %c0_21, %c129] : memref<1x48x356xbf16, #tpu.memory_space<vmem>>, vector<1x48x100xbf16>
    %27 = vector.shape_cast %26 : vector<1x48x100xbf16> to vector<48x100xbf16>
    %c0_22 = arith.constant 0 : index
    %c240 = arith.constant 240 : index
    %28 = vector.load %arg3[%c0_22, %c240] : memref<32x432xbf16, #tpu.memory_space<vmem>>, vector<32x48xbf16>
    %cst_23 = arith.constant dense<0.000000e+00> : vector<32x100xf32>
    %29 = tpu.matmul %28, %27, %cst_23 {dimension_numbers = #tpu.dot_dimension_numbers<[1], [0], [0], [1], [0, 0, 1, 1], [], []>} : vector<32x48xbf16>, vector<48x100xbf16>, vector<32x100xf32> -> vector<32x100xf32>
    %30 = arith.addf %25, %29 : vector<32x100xf32>
    %c0_24 = arith.constant 0 : index
    %c0_25 = arith.constant 0 : index
    %c137 = arith.constant 137 : index
    %31 = vector.load %arg1[%c0_24, %c0_25, %c137] : memref<1x48x356xbf16, #tpu.memory_space<vmem>>, vector<1x48x100xbf16>
    %32 = vector.shape_cast %31 : vector<1x48x100xbf16> to vector<48x100xbf16>
    %c0_26 = arith.constant 0 : index
    %c288 = arith.constant 288 : index
    %33 = vector.load %arg3[%c0_26, %c288] : memref<32x432xbf16, #tpu.memory_space<vmem>>, vector<32x48xbf16>
    %cst_27 = arith.constant dense<0.000000e+00> : vector<32x100xf32>
    %34 = tpu.matmul %33, %32, %cst_27 {dimension_numbers = #tpu.dot_dimension_numbers<[1], [0], [0], [1], [0, 0, 1, 1], [], []>} : vector<32x48xbf16>, vector<48x100xbf16>, vector<32x100xf32> -> vector<32x100xf32>
    %35 = arith.addf %30, %34 : vector<32x100xf32>
    %c0_28 = arith.constant 0 : index
    %c0_29 = arith.constant 0 : index
    %c138 = arith.constant 138 : index
    %36 = vector.load %arg1[%c0_28, %c0_29, %c138] : memref<1x48x356xbf16, #tpu.memory_space<vmem>>, vector<1x48x100xbf16>
    %37 = vector.shape_cast %36 : vector<1x48x100xbf16> to vector<48x100xbf16>
    %c0_30 = arith.constant 0 : index
    %c336 = arith.constant 336 : index
    %38 = vector.load %arg3[%c0_30, %c336] : memref<32x432xbf16, #tpu.memory_space<vmem>>, vector<32x48xbf16>
    %cst_31 = arith.constant dense<0.000000e+00> : vector<32x100xf32>
    %39 = tpu.matmul %38, %37, %cst_31 {dimension_numbers = #tpu.dot_dimension_numbers<[1], [0], [0], [1], [0, 0, 1, 1], [], []>} : vector<32x48xbf16>, vector<48x100xbf16>, vector<32x100xf32> -> vector<32x100xf32>
    %40 = arith.addf %35, %39 : vector<32x100xf32>
    %c0_32 = arith.constant 0 : index
    %c0_33 = arith.constant 0 : index
    %c139 = arith.constant 139 : index
    %41 = vector.load %arg1[%c0_32, %c0_33, %c139] : memref<1x48x356xbf16, #tpu.memory_space<vmem>>, vector<1x48x100xbf16>
    %42 = vector.shape_cast %41 : vector<1x48x100xbf16> to vector<48x100xbf16>
    %c0_34 = arith.constant 0 : index
    %c384 = arith.constant 384 : index
    %43 = vector.load %arg3[%c0_34, %c384] : memref<32x432xbf16, #tpu.memory_space<vmem>>, vector<32x48xbf16>
    %cst_35 = arith.constant dense<0.000000e+00> : vector<32x100xf32>
    %44 = tpu.matmul %43, %42, %cst_35 {dimension_numbers = #tpu.dot_dimension_numbers<[1], [0], [0], [1], [0, 0, 1, 1], [], []>} : vector<32x48xbf16>, vector<48x100xbf16>, vector<32x100xf32> -> vector<32x100xf32>
    %45 = arith.addf %40, %44 : vector<32x100xf32>
    %c0_36 = arith.constant 0 : index
    %c0_37 = arith.constant 0 : index
    %46 = vector.load %arg4[%c0_36, %c0_37] : memref<32x1xf32, #tpu.memory_space<vmem>>, vector<32x1xf32>
    %47 = vector.broadcast %46 : vector<32x1xf32> to vector<32x100xf32>
    %48 = arith.addf %45, %47 : vector<32x100xf32>
    %cst_38 = arith.constant 2.000000e-01 : f32
    %49 = vector.broadcast %cst_38 : f32 to vector<32x100xf32>
    %50 = arith.mulf %49, %48 : vector<32x100xf32>
    %51 = arith.maximumf %48, %50 : vector<32x100xf32>
    %c0_39 = arith.constant 0 : index
    %c0_40 = arith.constant 0 : index
    %52 = vector.load %arg2[%c0_39, %c0_40] : memref<1x100xf32, #tpu.memory_space<vmem>>, vector<1x100xf32>
    %53 = vector.broadcast %52 : vector<1x100xf32> to vector<32x100xf32>
    %54 = arith.mulf %51, %53 : vector<32x100xf32>
    %cst_41 = arith.constant 0.000000e+00 : bf16
    %55 = vector.broadcast %cst_41 : bf16 to vector<32x128xbf16>
    %c0_42 = arith.constant 0 : index
    %c0_43 = arith.constant 0 : index
    %56 = vector.load %arg8[%c0_42, %c0_43] : memref<32x356xbf16, #tpu.memory_space<vmem>>, vector<32x128xbf16>
    tpu.vector_store %arg8[%c0_42, %c0_43], %55 {strides = array<i32>} : memref<32x356xbf16, #tpu.memory_space<vmem>>, vector<32x128xbf16>,
    %cst_44 = arith.constant 0.000000e+00 : bf16
    %57 = vector.broadcast %cst_44 : bf16 to vector<32x128xbf16>
    %c0_45 = arith.constant 0 : index
    %c228 = arith.constant 228 : index
    %58 = vector.load %arg8[%c0_45, %c228] : memref<32x356xbf16, #tpu.memory_space<vmem>>, vector<32x128xbf16>
    tpu.vector_store %arg8[%c0_45, %c228], %57 {strides = array<i32>} : memref<32x356xbf16, #tpu.memory_space<vmem>>, vector<32x128xbf16>,
    %59 = arith.truncf %54 : vector<32x100xf32> to vector<32x100xbf16>
    %c0_46 = arith.constant 0 : index
    %c128_47 = arith.constant 128 : index
    %60 = vector.load %arg8[%c0_46, %c128_47] : memref<32x356xbf16, #tpu.memory_space<vmem>>, vector<32x100xbf16>
    tpu.vector_store %arg8[%c0_46, %c128_47], %59 {strides = array<i32>} : memref<32x356xbf16, #tpu.memory_space<vmem>>, vector<32x100xbf16>,
    %cst_48 = arith.constant 0.000000e+00 : f32
    %61 = vector.broadcast %cst_48 : f32 to vector<32x100xf32>
    %c0_49 = arith.constant 0 : index
    %c117_50 = arith.constant 117 : index
    %62 = vector.load %arg8[%c0_49, %c117_50] : memref<32x356xbf16, #tpu.memory_space<vmem>>, vector<32x100xbf16>
    %c0_51 = arith.constant 0 : index
    %c0_52 = arith.constant 0 : index
    %63 = vector.load %arg5[%c0_51, %c0_52] : memref<32x288xbf16, #tpu.memory_space<vmem>>, vector<32x32xbf16>
    %cst_53 = arith.constant dense<0.000000e+00> : vector<32x100xf32>
    %64 = tpu.matmul %63, %62, %cst_53 {dimension_numbers = #tpu.dot_dimension_numbers<[1], [0], [0], [1], [0, 0, 1, 1], [], []>} : vector<32x32xbf16>, vector<32x100xbf16>, vector<32x100xf32> -> vector<32x100xf32>
    %65 = arith.addf %61, %64 : vector<32x100xf32>
    %c0_54 = arith.constant 0 : index
    %c118_55 = arith.constant 118 : index
    %66 = vector.load %arg8[%c0_54, %c118_55] : memref<32x356xbf16, #tpu.memory_space<vmem>>, vector<32x100xbf16>
    %c0_56 = arith.constant 0 : index
    %c32 = arith.constant 32 : index
    %67 = vector.load %arg5[%c0_56, %c32] : memref<32x288xbf16, #tpu.memory_space<vmem>>, vector<32x32xbf16>
    %cst_57 = arith.constant dense<0.000000e+00> : vector<32x100xf32>
    %68 = tpu.matmul %67, %66, %cst_57 {dimension_numbers = #tpu.dot_dimension_numbers<[1], [0], [0], [1], [0, 0, 1, 1], [], []>} : vector<32x32xbf16>, vector<32x100xbf16>, vector<32x100xf32> -> vector<32x100xf32>
    %69 = arith.addf %65, %68 : vector<32x100xf32>
    %c0_58 = arith.constant 0 : index
    %c119_59 = arith.constant 119 : index
    %70 = vector.load %arg8[%c0_58, %c119_59] : memref<32x356xbf16, #tpu.memory_space<vmem>>, vector<32x100xbf16>
    %c0_60 = arith.constant 0 : index
    %c64 = arith.constant 64 : index
    %71 = vector.load %arg5[%c0_60, %c64] : memref<32x288xbf16, #tpu.memory_space<vmem>>, vector<32x32xbf16>
    %cst_61 = arith.constant dense<0.000000e+00> : vector<32x100xf32>
    %72 = tpu.matmul %71, %70, %cst_61 {dimension_numbers = #tpu.dot_dimension_numbers<[1], [0], [0], [1], [0, 0, 1, 1], [], []>} : vector<32x32xbf16>, vector<32x100xbf16>, vector<32x100xf32> -> vector<32x100xf32>
    %73 = arith.addf %69, %72 : vector<32x100xf32>
    %c0_62 = arith.constant 0 : index
    %c127_63 = arith.constant 127 : index
    %74 = vector.load %arg8[%c0_62, %c127_63] : memref<32x356xbf16, #tpu.memory_space<vmem>>, vector<32x100xbf16>
    %c0_64 = arith.constant 0 : index
    %c96_65 = arith.constant 96 : index
    %75 = vector.load %arg5[%c0_64, %c96_65] : memref<32x288xbf16, #tpu.memory_space<vmem>>, vector<32x32xbf16>
    %cst_66 = arith.constant dense<0.000000e+00> : vector<32x100xf32>
    %76 = tpu.matmul %75, %74, %cst_66 {dimension_numbers = #tpu.dot_dimension_numbers<[1], [0], [0], [1], [0, 0, 1, 1], [], []>} : vector<32x32xbf16>, vector<32x100xbf16>, vector<32x100xf32> -> vector<32x100xf32>
    %77 = arith.addf %73, %76 : vector<32x100xf32>
    %c0_67 = arith.constant 0 : index
    %c128_68 = arith.constant 128 : index
    %78 = vector.load %arg8[%c0_67, %c128_68] : memref<32x356xbf16, #tpu.memory_space<vmem>>, vector<32x100xbf16>
    %c0_69 = arith.constant 0 : index
    %c128_70 = arith.constant 128 : index
    %79 = vector.load %arg5[%c0_69, %c128_70] : memref<32x288xbf16, #tpu.memory_space<vmem>>, vector<32x32xbf16>
    %cst_71 = arith.constant dense<0.000000e+00> : vector<32x100xf32>
    %80 = tpu.matmul %79, %78, %cst_71 {dimension_numbers = #tpu.dot_dimension_numbers<[1], [0], [0], [1], [0, 0, 1, 1], [], []>} : vector<32x32xbf16>, vector<32x100xbf16>, vector<32x100xf32> -> vector<32x100xf32>
    %81 = arith.addf %77, %80 : vector<32x100xf32>
    %c0_72 = arith.constant 0 : index
    %c129_73 = arith.constant 129 : index
    %82 = vector.load %arg8[%c0_72, %c129_73] : memref<32x356xbf16, #tpu.memory_space<vmem>>, vector<32x100xbf16>
    %c0_74 = arith.constant 0 : index
    %c160 = arith.constant 160 : index
    %83 = vector.load %arg5[%c0_74, %c160] : memref<32x288xbf16, #tpu.memory_space<vmem>>, vector<32x32xbf16>
    %cst_75 = arith.constant dense<0.000000e+00> : vector<32x100xf32>
    %84 = tpu.matmul %83, %82, %cst_75 {dimension_numbers = #tpu.dot_dimension_numbers<[1], [0], [0], [1], [0, 0, 1, 1], [], []>} : vector<32x32xbf16>, vector<32x100xbf16>, vector<32x100xf32> -> vector<32x100xf32>
    %85 = arith.addf %81, %84 : vector<32x100xf32>
    %c0_76 = arith.constant 0 : index
    %c137_77 = arith.constant 137 : index
    %86 = vector.load %arg8[%c0_76, %c137_77] : memref<32x356xbf16, #tpu.memory_space<vmem>>, vector<32x100xbf16>
    %c0_78 = arith.constant 0 : index
    %c192_79 = arith.constant 192 : index
    %87 = vector.load %arg5[%c0_78, %c192_79] : memref<32x288xbf16, #tpu.memory_space<vmem>>, vector<32x32xbf16>
    %cst_80 = arith.constant dense<0.000000e+00> : vector<32x100xf32>
    %88 = tpu.matmul %87, %86, %cst_80 {dimension_numbers = #tpu.dot_dimension_numbers<[1], [0], [0], [1], [0, 0, 1, 1], [], []>} : vector<32x32xbf16>, vector<32x100xbf16>, vector<32x100xf32> -> vector<32x100xf32>
    %89 = arith.addf %85, %88 : vector<32x100xf32>
    %c0_81 = arith.constant 0 : index
    %c138_82 = arith.constant 138 : index
    %90 = vector.load %arg8[%c0_81, %c138_82] : memref<32x356xbf16, #tpu.memory_space<vmem>>, vector<32x100xbf16>
    %c0_83 = arith.constant 0 : index
    %c224 = arith.constant 224 : index
    %91 = vector.load %arg5[%c0_83, %c224] : memref<32x288xbf16, #tpu.memory_space<vmem>>, vector<32x32xbf16>
    %cst_84 = arith.constant dense<0.000000e+00> : vector<32x100xf32>
    %92 = tpu.matmul %91, %90, %cst_84 {dimension_numbers = #tpu.dot_dimension_numbers<[1], [0], [0], [1], [0, 0, 1, 1], [], []>} : vector<32x32xbf16>, vector<32x100xbf16>, vector<32x100xf32> -> vector<32x100xf32>
    %93 = arith.addf %89, %92 : vector<32x100xf32>
    %c0_85 = arith.constant 0 : index
    %c139_86 = arith.constant 139 : index
    %94 = vector.load %arg8[%c0_85, %c139_86] : memref<32x356xbf16, #tpu.memory_space<vmem>>, vector<32x100xbf16>
    %c0_87 = arith.constant 0 : index
    %c256 = arith.constant 256 : index
    %95 = vector.load %arg5[%c0_87, %c256] : memref<32x288xbf16, #tpu.memory_space<vmem>>, vector<32x32xbf16>
    %cst_88 = arith.constant dense<0.000000e+00> : vector<32x100xf32>
    %96 = tpu.matmul %95, %94, %cst_88 {dimension_numbers = #tpu.dot_dimension_numbers<[1], [0], [0], [1], [0, 0, 1, 1], [], []>} : vector<32x32xbf16>, vector<32x100xbf16>, vector<32x100xf32> -> vector<32x100xf32>
    %97 = arith.addf %93, %96 : vector<32x100xf32>
    %c0_89 = arith.constant 0 : index
    %c0_90 = arith.constant 0 : index
    %98 = vector.load %arg6[%c0_89, %c0_90] : memref<32x1xf32, #tpu.memory_space<vmem>>, vector<32x1xf32>
    %99 = vector.broadcast %98 : vector<32x1xf32> to vector<32x100xf32>
    %100 = arith.addf %97, %99 : vector<32x100xf32>
    %cst_91 = arith.constant 2.000000e-01 : f32
    %101 = vector.broadcast %cst_91 : f32 to vector<32x100xf32>
    %102 = arith.mulf %101, %100 : vector<32x100xf32>
    %103 = arith.maximumf %100, %102 : vector<32x100xf32>
    %c0_92 = arith.constant 0 : index
    %c0_93 = arith.constant 0 : index
    %104 = vector.load %arg2[%c0_92, %c0_93] : memref<1x100xf32, #tpu.memory_space<vmem>>, vector<1x100xf32>
    %105 = vector.broadcast %104 : vector<1x100xf32> to vector<32x100xf32>
    %106 = arith.mulf %103, %105 : vector<32x100xf32>
    %cst_94 = arith.constant 0.000000e+00 : bf16
    %107 = vector.broadcast %cst_94 : bf16 to vector<32x128xbf16>
    %c0_95 = arith.constant 0 : index
    %c0_96 = arith.constant 0 : index
    %c0_97 = arith.constant 0 : index
    %108 = vector.load %arg7[%c0_95, %c0_96, %c0_97] : memref<1x32x356xbf16, #tpu.memory_space<vmem>>, vector<1x32x128xbf16>
    %109 = vector.shape_cast %108 : vector<1x32x128xbf16> to vector<32x128xbf16>
    %110 = vector.shape_cast %107 : vector<32x128xbf16> to vector<1x32x128xbf16>
    tpu.vector_store %arg7[%c0_95, %c0_96, %c0_97], %110 {strides = array<i32>} : memref<1x32x356xbf16, #tpu.memory_space<vmem>>, vector<1x32x128xbf16>,
    %cst_98 = arith.constant 0.000000e+00 : bf16
    %111 = vector.broadcast %cst_98 : bf16 to vector<32x128xbf16>
    %c0_99 = arith.constant 0 : index
    %c0_100 = arith.constant 0 : index
    %c228_101 = arith.constant 228 : index
    %112 = vector.load %arg7[%c0_99, %c0_100, %c228_101] : memref<1x32x356xbf16, #tpu.memory_space<vmem>>, vector<1x32x128xbf16>
    %113 = vector.shape_cast %112 : vector<1x32x128xbf16> to vector<32x128xbf16>
    %114 = vector.shape_cast %111 : vector<32x128xbf16> to vector<1x32x128xbf16>
    tpu.vector_store %arg7[%c0_99, %c0_100, %c228_101], %114 {strides = array<i32>} : memref<1x32x356xbf16, #tpu.memory_space<vmem>>, vector<1x32x128xbf16>,
    %115 = arith.truncf %106 : vector<32x100xf32> to vector<32x100xbf16>
    %c0_102 = arith.constant 0 : index
    %c0_103 = arith.constant 0 : index
    %c128_104 = arith.constant 128 : index
    %116 = vector.load %arg7[%c0_102, %c0_103, %c128_104] : memref<1x32x356xbf16, #tpu.memory_space<vmem>>, vector<1x32x100xbf16>
    %117 = vector.shape_cast %116 : vector<1x32x100xbf16> to vector<32x100xbf16>
    %118 = vector.shape_cast %115 : vector<32x100xbf16> to vector<1x32x100xbf16>
    tpu.vector_store %arg7[%c0_102, %c0_103, %c128_104], %118 {strides = array<i32>} : memref<1x32x356xbf16, #tpu.memory_space<vmem>>, vector<1x32x100xbf16>,
    return
  }
  func.func @transform_0(%arg0: i32) -> (i32, i32, i32) {
    %c0_i32 = arith.constant 0 : i32
    %c0_i32_0 = arith.constant 0 : i32
    %c0_i32_1 = arith.constant 0 : i32
    return %arg0, %c0_i32, %c0_i32_0 : i32, i32, i32
  }
  func.func @transform_1(%arg0: i32) -> (i32, i32) {
    %c0_i32 = arith.constant 0 : i32
    %c0_i32_0 = arith.constant 0 : i32
    %c0_i32_1 = arith.constant 0 : i32
    return %c0_i32, %c0_i32_0 : i32, i32
  }
  func.func @transform_2(%arg0: i32) -> (i32, i32) {
    %c0_i32 = arith.constant 0 : i32
    %c0_i32_0 = arith.constant 0 : i32
    %c0_i32_1 = arith.constant 0 : i32
    return %c0_i32, %c0_i32_0 : i32, i32
  }
  func.func @transform_3(%arg0: i32) -> (i32, i32) {
    %c0_i32 = arith.constant 0 : i32
    %c0_i32_0 = arith.constant 0 : i32
    %c0_i32_1 = arith.constant 0 : i32
    return %c0_i32, %c0_i32_0 : i32, i32
  }
  func.func @transform_4(%arg0: i32) -> (i32, i32) {
    %c0_i32 = arith.constant 0 : i32
    %c0_i32_0 = arith.constant 0 : i32
    %c0_i32_1 = arith.constant 0 : i32
    return %c0_i32, %c0_i32_0 : i32, i32
  }
  func.func @transform_5(%arg0: i32) -> (i32, i32) {
    %c0_i32 = arith.constant 0 : i32
    %c0_i32_0 = arith.constant 0 : i32
    %c0_i32_1 = arith.constant 0 : i32
    return %c0_i32, %c0_i32_0 : i32, i32
  }
  func.func @transform_6(%arg0: i32) -> (i32, i32, i32) {
    %c0_i32 = arith.constant 0 : i32
    %c0_i32_0 = arith.constant 0 : i32
    %c0_i32_1 = arith.constant 0 : i32
    return %arg0, %c0_i32, %c0_i32_0 : i32, i32, i32
  }
}

module attributes {stable_mosaic.version = 11 : i64} {
  func.func @kernel(%arg0: i32, %arg1: memref<1x34x580xbf16, #tpu.memory_space<vmem>>, %arg2: memref<1x324xf32, #tpu.memory_space<vmem>>, %arg3: memref<16x306xbf16, #tpu.memory_space<vmem>>, %arg4: memref<16x1xf32, #tpu.memory_space<vmem>>, %arg5: memref<16x144xbf16, #tpu.memory_space<vmem>>, %arg6: memref<16x1xf32, #tpu.memory_space<vmem>>, %arg7: memref<1x16x580xf32, #tpu.memory_space<vmem>>, %arg8: memref<16x580xbf16, #tpu.memory_space<vmem>>) attributes {dimension_semantics = [#tpu.dimension_semantics<parallel>], iteration_bounds = array<i64: 2>, scalar_prefetch = 0 : i64, scratch_operands = 1 : i64, tpu.core_type = #tpu.core_type<tc>, window_params = [{transform_indices = @transform_0, window_bounds = array<i64: 1, 34, 580>}, {pipeline_mode = #tpu.pipeline_mode<synchronous>, transform_indices = @transform_1, window_bounds = array<i64: 1, 324>}, {pipeline_mode = #tpu.pipeline_mode<synchronous>, transform_indices = @transform_2, window_bounds = array<i64: 16, 306>}, {pipeline_mode = #tpu.pipeline_mode<synchronous>, transform_indices = @transform_3, window_bounds = array<i64: 16, 1>}, {pipeline_mode = #tpu.pipeline_mode<synchronous>, transform_indices = @transform_4, window_bounds = array<i64: 16, 144>}, {pipeline_mode = #tpu.pipeline_mode<synchronous>, transform_indices = @transform_5, window_bounds = array<i64: 16, 1>}, {transform_indices = @transform_6, window_bounds = array<i64: 1, 16, 580>}]} {
    %cst = arith.constant 0.000000e+00 : f32
    %0 = vector.broadcast %cst : f32 to vector<16x324xf32>
    %c0 = arith.constant 0 : index
    %c0_0 = arith.constant 0 : index
    %c109 = arith.constant 109 : index
    %1 = vector.load %arg1[%c0, %c0_0, %c109] : memref<1x34x580xbf16, #tpu.memory_space<vmem>>, vector<1x34x324xbf16>
    %2 = vector.shape_cast %1 : vector<1x34x324xbf16> to vector<34x324xbf16>
    %c0_1 = arith.constant 0 : index
    %c0_2 = arith.constant 0 : index
    %3 = vector.load %arg3[%c0_1, %c0_2] : memref<16x306xbf16, #tpu.memory_space<vmem>>, vector<16x34xbf16>
    %cst_3 = arith.constant dense<0.000000e+00> : vector<16x324xf32>
    %4 = tpu.matmul %3, %2, %cst_3 {dimension_numbers = #tpu.dot_dimension_numbers<[1], [0], [0], [1], [0, 0, 1, 1], [], []>} : vector<16x34xbf16>, vector<34x324xbf16>, vector<16x324xf32> -> vector<16x324xf32>
    %5 = arith.addf %0, %4 : vector<16x324xf32>
    %c0_4 = arith.constant 0 : index
    %c0_5 = arith.constant 0 : index
    %c110 = arith.constant 110 : index
    %6 = vector.load %arg1[%c0_4, %c0_5, %c110] : memref<1x34x580xbf16, #tpu.memory_space<vmem>>, vector<1x34x324xbf16>
    %7 = vector.shape_cast %6 : vector<1x34x324xbf16> to vector<34x324xbf16>
    %c0_6 = arith.constant 0 : index
    %c34 = arith.constant 34 : index
    %8 = vector.load %arg3[%c0_6, %c34] : memref<16x306xbf16, #tpu.memory_space<vmem>>, vector<16x34xbf16>
    %cst_7 = arith.constant dense<0.000000e+00> : vector<16x324xf32>
    %9 = tpu.matmul %8, %7, %cst_7 {dimension_numbers = #tpu.dot_dimension_numbers<[1], [0], [0], [1], [0, 0, 1, 1], [], []>} : vector<16x34xbf16>, vector<34x324xbf16>, vector<16x324xf32> -> vector<16x324xf32>
    %10 = arith.addf %5, %9 : vector<16x324xf32>
    %c0_8 = arith.constant 0 : index
    %c0_9 = arith.constant 0 : index
    %c111 = arith.constant 111 : index
    %11 = vector.load %arg1[%c0_8, %c0_9, %c111] : memref<1x34x580xbf16, #tpu.memory_space<vmem>>, vector<1x34x324xbf16>
    %12 = vector.shape_cast %11 : vector<1x34x324xbf16> to vector<34x324xbf16>
    %c0_10 = arith.constant 0 : index
    %c68 = arith.constant 68 : index
    %13 = vector.load %arg3[%c0_10, %c68] : memref<16x306xbf16, #tpu.memory_space<vmem>>, vector<16x34xbf16>
    %cst_11 = arith.constant dense<0.000000e+00> : vector<16x324xf32>
    %14 = tpu.matmul %13, %12, %cst_11 {dimension_numbers = #tpu.dot_dimension_numbers<[1], [0], [0], [1], [0, 0, 1, 1], [], []>} : vector<16x34xbf16>, vector<34x324xbf16>, vector<16x324xf32> -> vector<16x324xf32>
    %15 = arith.addf %10, %14 : vector<16x324xf32>
    %c0_12 = arith.constant 0 : index
    %c0_13 = arith.constant 0 : index
    %c127 = arith.constant 127 : index
    %16 = vector.load %arg1[%c0_12, %c0_13, %c127] : memref<1x34x580xbf16, #tpu.memory_space<vmem>>, vector<1x34x324xbf16>
    %17 = vector.shape_cast %16 : vector<1x34x324xbf16> to vector<34x324xbf16>
    %c0_14 = arith.constant 0 : index
    %c102 = arith.constant 102 : index
    %18 = vector.load %arg3[%c0_14, %c102] : memref<16x306xbf16, #tpu.memory_space<vmem>>, vector<16x34xbf16>
    %cst_15 = arith.constant dense<0.000000e+00> : vector<16x324xf32>
    %19 = tpu.matmul %18, %17, %cst_15 {dimension_numbers = #tpu.dot_dimension_numbers<[1], [0], [0], [1], [0, 0, 1, 1], [], []>} : vector<16x34xbf16>, vector<34x324xbf16>, vector<16x324xf32> -> vector<16x324xf32>
    %20 = arith.addf %15, %19 : vector<16x324xf32>
    %c0_16 = arith.constant 0 : index
    %c0_17 = arith.constant 0 : index
    %c128 = arith.constant 128 : index
    %21 = vector.load %arg1[%c0_16, %c0_17, %c128] : memref<1x34x580xbf16, #tpu.memory_space<vmem>>, vector<1x34x324xbf16>
    %22 = vector.shape_cast %21 : vector<1x34x324xbf16> to vector<34x324xbf16>
    %c0_18 = arith.constant 0 : index
    %c136 = arith.constant 136 : index
    %23 = vector.load %arg3[%c0_18, %c136] : memref<16x306xbf16, #tpu.memory_space<vmem>>, vector<16x34xbf16>
    %cst_19 = arith.constant dense<0.000000e+00> : vector<16x324xf32>
    %24 = tpu.matmul %23, %22, %cst_19 {dimension_numbers = #tpu.dot_dimension_numbers<[1], [0], [0], [1], [0, 0, 1, 1], [], []>} : vector<16x34xbf16>, vector<34x324xbf16>, vector<16x324xf32> -> vector<16x324xf32>
    %25 = arith.addf %20, %24 : vector<16x324xf32>
    %c0_20 = arith.constant 0 : index
    %c0_21 = arith.constant 0 : index
    %c129 = arith.constant 129 : index
    %26 = vector.load %arg1[%c0_20, %c0_21, %c129] : memref<1x34x580xbf16, #tpu.memory_space<vmem>>, vector<1x34x324xbf16>
    %27 = vector.shape_cast %26 : vector<1x34x324xbf16> to vector<34x324xbf16>
    %c0_22 = arith.constant 0 : index
    %c170 = arith.constant 170 : index
    %28 = vector.load %arg3[%c0_22, %c170] : memref<16x306xbf16, #tpu.memory_space<vmem>>, vector<16x34xbf16>
    %cst_23 = arith.constant dense<0.000000e+00> : vector<16x324xf32>
    %29 = tpu.matmul %28, %27, %cst_23 {dimension_numbers = #tpu.dot_dimension_numbers<[1], [0], [0], [1], [0, 0, 1, 1], [], []>} : vector<16x34xbf16>, vector<34x324xbf16>, vector<16x324xf32> -> vector<16x324xf32>
    %30 = arith.addf %25, %29 : vector<16x324xf32>
    %c0_24 = arith.constant 0 : index
    %c0_25 = arith.constant 0 : index
    %c145 = arith.constant 145 : index
    %31 = vector.load %arg1[%c0_24, %c0_25, %c145] : memref<1x34x580xbf16, #tpu.memory_space<vmem>>, vector<1x34x324xbf16>
    %32 = vector.shape_cast %31 : vector<1x34x324xbf16> to vector<34x324xbf16>
    %c0_26 = arith.constant 0 : index
    %c204 = arith.constant 204 : index
    %33 = vector.load %arg3[%c0_26, %c204] : memref<16x306xbf16, #tpu.memory_space<vmem>>, vector<16x34xbf16>
    %cst_27 = arith.constant dense<0.000000e+00> : vector<16x324xf32>
    %34 = tpu.matmul %33, %32, %cst_27 {dimension_numbers = #tpu.dot_dimension_numbers<[1], [0], [0], [1], [0, 0, 1, 1], [], []>} : vector<16x34xbf16>, vector<34x324xbf16>, vector<16x324xf32> -> vector<16x324xf32>
    %35 = arith.addf %30, %34 : vector<16x324xf32>
    %c0_28 = arith.constant 0 : index
    %c0_29 = arith.constant 0 : index
    %c146 = arith.constant 146 : index
    %36 = vector.load %arg1[%c0_28, %c0_29, %c146] : memref<1x34x580xbf16, #tpu.memory_space<vmem>>, vector<1x34x324xbf16>
    %37 = vector.shape_cast %36 : vector<1x34x324xbf16> to vector<34x324xbf16>
    %c0_30 = arith.constant 0 : index
    %c238 = arith.constant 238 : index
    %38 = vector.load %arg3[%c0_30, %c238] : memref<16x306xbf16, #tpu.memory_space<vmem>>, vector<16x34xbf16>
    %cst_31 = arith.constant dense<0.000000e+00> : vector<16x324xf32>
    %39 = tpu.matmul %38, %37, %cst_31 {dimension_numbers = #tpu.dot_dimension_numbers<[1], [0], [0], [1], [0, 0, 1, 1], [], []>} : vector<16x34xbf16>, vector<34x324xbf16>, vector<16x324xf32> -> vector<16x324xf32>
    %40 = arith.addf %35, %39 : vector<16x324xf32>
    %c0_32 = arith.constant 0 : index
    %c0_33 = arith.constant 0 : index
    %c147 = arith.constant 147 : index
    %41 = vector.load %arg1[%c0_32, %c0_33, %c147] : memref<1x34x580xbf16, #tpu.memory_space<vmem>>, vector<1x34x324xbf16>
    %42 = vector.shape_cast %41 : vector<1x34x324xbf16> to vector<34x324xbf16>
    %c0_34 = arith.constant 0 : index
    %c272 = arith.constant 272 : index
    %43 = vector.load %arg3[%c0_34, %c272] : memref<16x306xbf16, #tpu.memory_space<vmem>>, vector<16x34xbf16>
    %cst_35 = arith.constant dense<0.000000e+00> : vector<16x324xf32>
    %44 = tpu.matmul %43, %42, %cst_35 {dimension_numbers = #tpu.dot_dimension_numbers<[1], [0], [0], [1], [0, 0, 1, 1], [], []>} : vector<16x34xbf16>, vector<34x324xbf16>, vector<16x324xf32> -> vector<16x324xf32>
    %45 = arith.addf %40, %44 : vector<16x324xf32>
    %c0_36 = arith.constant 0 : index
    %c0_37 = arith.constant 0 : index
    %46 = vector.load %arg4[%c0_36, %c0_37] : memref<16x1xf32, #tpu.memory_space<vmem>>, vector<16x1xf32>
    %47 = vector.broadcast %46 : vector<16x1xf32> to vector<16x324xf32>
    %48 = arith.addf %45, %47 : vector<16x324xf32>
    %cst_38 = arith.constant 2.000000e-01 : f32
    %49 = vector.broadcast %cst_38 : f32 to vector<16x324xf32>
    %50 = arith.mulf %49, %48 : vector<16x324xf32>
    %51 = arith.maximumf %48, %50 : vector<16x324xf32>
    %c0_39 = arith.constant 0 : index
    %c0_40 = arith.constant 0 : index
    %52 = vector.load %arg2[%c0_39, %c0_40] : memref<1x324xf32, #tpu.memory_space<vmem>>, vector<1x324xf32>
    %53 = vector.broadcast %52 : vector<1x324xf32> to vector<16x324xf32>
    %54 = arith.mulf %51, %53 : vector<16x324xf32>
    %cst_41 = arith.constant 0.000000e+00 : bf16
    %55 = vector.broadcast %cst_41 : bf16 to vector<16x128xbf16>
    %c0_42 = arith.constant 0 : index
    %c0_43 = arith.constant 0 : index
    %56 = vector.load %arg8[%c0_42, %c0_43] : memref<16x580xbf16, #tpu.memory_space<vmem>>, vector<16x128xbf16>
    tpu.vector_store %arg8[%c0_42, %c0_43], %55 {strides = array<i32>} : memref<16x580xbf16, #tpu.memory_space<vmem>>, vector<16x128xbf16>,
    %cst_44 = arith.constant 0.000000e+00 : bf16
    %57 = vector.broadcast %cst_44 : bf16 to vector<16x128xbf16>
    %c0_45 = arith.constant 0 : index
    %c452 = arith.constant 452 : index
    %58 = vector.load %arg8[%c0_45, %c452] : memref<16x580xbf16, #tpu.memory_space<vmem>>, vector<16x128xbf16>
    tpu.vector_store %arg8[%c0_45, %c452], %57 {strides = array<i32>} : memref<16x580xbf16, #tpu.memory_space<vmem>>, vector<16x128xbf16>,
    %59 = arith.truncf %54 : vector<16x324xf32> to vector<16x324xbf16>
    %c0_46 = arith.constant 0 : index
    %c128_47 = arith.constant 128 : index
    %60 = vector.load %arg8[%c0_46, %c128_47] : memref<16x580xbf16, #tpu.memory_space<vmem>>, vector<16x324xbf16>
    tpu.vector_store %arg8[%c0_46, %c128_47], %59 {strides = array<i32>} : memref<16x580xbf16, #tpu.memory_space<vmem>>, vector<16x324xbf16>,
    %cst_48 = arith.constant 0.000000e+00 : f32
    %61 = vector.broadcast %cst_48 : f32 to vector<16x324xf32>
    %c0_49 = arith.constant 0 : index
    %c109_50 = arith.constant 109 : index
    %62 = vector.load %arg8[%c0_49, %c109_50] : memref<16x580xbf16, #tpu.memory_space<vmem>>, vector<16x324xbf16>
    %c0_51 = arith.constant 0 : index
    %c0_52 = arith.constant 0 : index
    %63 = vector.load %arg5[%c0_51, %c0_52] : memref<16x144xbf16, #tpu.memory_space<vmem>>, vector<16x16xbf16>
    %cst_53 = arith.constant dense<0.000000e+00> : vector<16x324xf32>
    %64 = tpu.matmul %63, %62, %cst_53 {dimension_numbers = #tpu.dot_dimension_numbers<[1], [0], [0], [1], [0, 0, 1, 1], [], []>} : vector<16x16xbf16>, vector<16x324xbf16>, vector<16x324xf32> -> vector<16x324xf32>
    %65 = arith.addf %61, %64 : vector<16x324xf32>
    %c0_54 = arith.constant 0 : index
    %c110_55 = arith.constant 110 : index
    %66 = vector.load %arg8[%c0_54, %c110_55] : memref<16x580xbf16, #tpu.memory_space<vmem>>, vector<16x324xbf16>
    %c0_56 = arith.constant 0 : index
    %c16 = arith.constant 16 : index
    %67 = vector.load %arg5[%c0_56, %c16] : memref<16x144xbf16, #tpu.memory_space<vmem>>, vector<16x16xbf16>
    %cst_57 = arith.constant dense<0.000000e+00> : vector<16x324xf32>
    %68 = tpu.matmul %67, %66, %cst_57 {dimension_numbers = #tpu.dot_dimension_numbers<[1], [0], [0], [1], [0, 0, 1, 1], [], []>} : vector<16x16xbf16>, vector<16x324xbf16>, vector<16x324xf32> -> vector<16x324xf32>
    %69 = arith.addf %65, %68 : vector<16x324xf32>
    %c0_58 = arith.constant 0 : index
    %c111_59 = arith.constant 111 : index
    %70 = vector.load %arg8[%c0_58, %c111_59] : memref<16x580xbf16, #tpu.memory_space<vmem>>, vector<16x324xbf16>
    %c0_60 = arith.constant 0 : index
    %c32 = arith.constant 32 : index
    %71 = vector.load %arg5[%c0_60, %c32] : memref<16x144xbf16, #tpu.memory_space<vmem>>, vector<16x16xbf16>
    %cst_61 = arith.constant dense<0.000000e+00> : vector<16x324xf32>
    %72 = tpu.matmul %71, %70, %cst_61 {dimension_numbers = #tpu.dot_dimension_numbers<[1], [0], [0], [1], [0, 0, 1, 1], [], []>} : vector<16x16xbf16>, vector<16x324xbf16>, vector<16x324xf32> -> vector<16x324xf32>
    %73 = arith.addf %69, %72 : vector<16x324xf32>
    %c0_62 = arith.constant 0 : index
    %c127_63 = arith.constant 127 : index
    %74 = vector.load %arg8[%c0_62, %c127_63] : memref<16x580xbf16, #tpu.memory_space<vmem>>, vector<16x324xbf16>
    %c0_64 = arith.constant 0 : index
    %c48 = arith.constant 48 : index
    %75 = vector.load %arg5[%c0_64, %c48] : memref<16x144xbf16, #tpu.memory_space<vmem>>, vector<16x16xbf16>
    %cst_65 = arith.constant dense<0.000000e+00> : vector<16x324xf32>
    %76 = tpu.matmul %75, %74, %cst_65 {dimension_numbers = #tpu.dot_dimension_numbers<[1], [0], [0], [1], [0, 0, 1, 1], [], []>} : vector<16x16xbf16>, vector<16x324xbf16>, vector<16x324xf32> -> vector<16x324xf32>
    %77 = arith.addf %73, %76 : vector<16x324xf32>
    %c0_66 = arith.constant 0 : index
    %c128_67 = arith.constant 128 : index
    %78 = vector.load %arg8[%c0_66, %c128_67] : memref<16x580xbf16, #tpu.memory_space<vmem>>, vector<16x324xbf16>
    %c0_68 = arith.constant 0 : index
    %c64 = arith.constant 64 : index
    %79 = vector.load %arg5[%c0_68, %c64] : memref<16x144xbf16, #tpu.memory_space<vmem>>, vector<16x16xbf16>
    %cst_69 = arith.constant dense<0.000000e+00> : vector<16x324xf32>
    %80 = tpu.matmul %79, %78, %cst_69 {dimension_numbers = #tpu.dot_dimension_numbers<[1], [0], [0], [1], [0, 0, 1, 1], [], []>} : vector<16x16xbf16>, vector<16x324xbf16>, vector<16x324xf32> -> vector<16x324xf32>
    %81 = arith.addf %77, %80 : vector<16x324xf32>
    %c0_70 = arith.constant 0 : index
    %c129_71 = arith.constant 129 : index
    %82 = vector.load %arg8[%c0_70, %c129_71] : memref<16x580xbf16, #tpu.memory_space<vmem>>, vector<16x324xbf16>
    %c0_72 = arith.constant 0 : index
    %c80 = arith.constant 80 : index
    %83 = vector.load %arg5[%c0_72, %c80] : memref<16x144xbf16, #tpu.memory_space<vmem>>, vector<16x16xbf16>
    %cst_73 = arith.constant dense<0.000000e+00> : vector<16x324xf32>
    %84 = tpu.matmul %83, %82, %cst_73 {dimension_numbers = #tpu.dot_dimension_numbers<[1], [0], [0], [1], [0, 0, 1, 1], [], []>} : vector<16x16xbf16>, vector<16x324xbf16>, vector<16x324xf32> -> vector<16x324xf32>
    %85 = arith.addf %81, %84 : vector<16x324xf32>
    %c0_74 = arith.constant 0 : index
    %c145_75 = arith.constant 145 : index
    %86 = vector.load %arg8[%c0_74, %c145_75] : memref<16x580xbf16, #tpu.memory_space<vmem>>, vector<16x324xbf16>
    %c0_76 = arith.constant 0 : index
    %c96 = arith.constant 96 : index
    %87 = vector.load %arg5[%c0_76, %c96] : memref<16x144xbf16, #tpu.memory_space<vmem>>, vector<16x16xbf16>
    %cst_77 = arith.constant dense<0.000000e+00> : vector<16x324xf32>
    %88 = tpu.matmul %87, %86, %cst_77 {dimension_numbers = #tpu.dot_dimension_numbers<[1], [0], [0], [1], [0, 0, 1, 1], [], []>} : vector<16x16xbf16>, vector<16x324xbf16>, vector<16x324xf32> -> vector<16x324xf32>
    %89 = arith.addf %85, %88 : vector<16x324xf32>
    %c0_78 = arith.constant 0 : index
    %c146_79 = arith.constant 146 : index
    %90 = vector.load %arg8[%c0_78, %c146_79] : memref<16x580xbf16, #tpu.memory_space<vmem>>, vector<16x324xbf16>
    %c0_80 = arith.constant 0 : index
    %c112 = arith.constant 112 : index
    %91 = vector.load %arg5[%c0_80, %c112] : memref<16x144xbf16, #tpu.memory_space<vmem>>, vector<16x16xbf16>
    %cst_81 = arith.constant dense<0.000000e+00> : vector<16x324xf32>
    %92 = tpu.matmul %91, %90, %cst_81 {dimension_numbers = #tpu.dot_dimension_numbers<[1], [0], [0], [1], [0, 0, 1, 1], [], []>} : vector<16x16xbf16>, vector<16x324xbf16>, vector<16x324xf32> -> vector<16x324xf32>
    %93 = arith.addf %89, %92 : vector<16x324xf32>
    %c0_82 = arith.constant 0 : index
    %c147_83 = arith.constant 147 : index
    %94 = vector.load %arg8[%c0_82, %c147_83] : memref<16x580xbf16, #tpu.memory_space<vmem>>, vector<16x324xbf16>
    %c0_84 = arith.constant 0 : index
    %c128_85 = arith.constant 128 : index
    %95 = vector.load %arg5[%c0_84, %c128_85] : memref<16x144xbf16, #tpu.memory_space<vmem>>, vector<16x16xbf16>
    %cst_86 = arith.constant dense<0.000000e+00> : vector<16x324xf32>
    %96 = tpu.matmul %95, %94, %cst_86 {dimension_numbers = #tpu.dot_dimension_numbers<[1], [0], [0], [1], [0, 0, 1, 1], [], []>} : vector<16x16xbf16>, vector<16x324xbf16>, vector<16x324xf32> -> vector<16x324xf32>
    %97 = arith.addf %93, %96 : vector<16x324xf32>
    %c0_87 = arith.constant 0 : index
    %c0_88 = arith.constant 0 : index
    %98 = vector.load %arg6[%c0_87, %c0_88] : memref<16x1xf32, #tpu.memory_space<vmem>>, vector<16x1xf32>
    %99 = vector.broadcast %98 : vector<16x1xf32> to vector<16x324xf32>
    %100 = arith.addf %97, %99 : vector<16x324xf32>
    %cst_89 = arith.constant 2.000000e-01 : f32
    %101 = vector.broadcast %cst_89 : f32 to vector<16x324xf32>
    %102 = arith.mulf %101, %100 : vector<16x324xf32>
    %103 = arith.maximumf %100, %102 : vector<16x324xf32>
    %c0_90 = arith.constant 0 : index
    %c0_91 = arith.constant 0 : index
    %104 = vector.load %arg2[%c0_90, %c0_91] : memref<1x324xf32, #tpu.memory_space<vmem>>, vector<1x324xf32>
    %105 = vector.broadcast %104 : vector<1x324xf32> to vector<16x324xf32>
    %106 = arith.mulf %103, %105 : vector<16x324xf32>
    %cst_92 = arith.constant 0.000000e+00 : f32
    %107 = vector.broadcast %cst_92 : f32 to vector<16x128xf32>
    %c0_93 = arith.constant 0 : index
    %c0_94 = arith.constant 0 : index
    %c0_95 = arith.constant 0 : index
    %108 = vector.load %arg7[%c0_93, %c0_94, %c0_95] : memref<1x16x580xf32, #tpu.memory_space<vmem>>, vector<1x16x128xf32>
    %109 = vector.shape_cast %108 : vector<1x16x128xf32> to vector<16x128xf32>
    %110 = vector.shape_cast %107 : vector<16x128xf32> to vector<1x16x128xf32>
    tpu.vector_store %arg7[%c0_93, %c0_94, %c0_95], %110 {strides = array<i32>} : memref<1x16x580xf32, #tpu.memory_space<vmem>>, vector<1x16x128xf32>,
    %cst_96 = arith.constant 0.000000e+00 : f32
    %111 = vector.broadcast %cst_96 : f32 to vector<16x128xf32>
    %c0_97 = arith.constant 0 : index
    %c0_98 = arith.constant 0 : index
    %c452_99 = arith.constant 452 : index
    %112 = vector.load %arg7[%c0_97, %c0_98, %c452_99] : memref<1x16x580xf32, #tpu.memory_space<vmem>>, vector<1x16x128xf32>
    %113 = vector.shape_cast %112 : vector<1x16x128xf32> to vector<16x128xf32>
    %114 = vector.shape_cast %111 : vector<16x128xf32> to vector<1x16x128xf32>
    tpu.vector_store %arg7[%c0_97, %c0_98, %c452_99], %114 {strides = array<i32>} : memref<1x16x580xf32, #tpu.memory_space<vmem>>, vector<1x16x128xf32>,
    %c0_100 = arith.constant 0 : index
    %c0_101 = arith.constant 0 : index
    %c128_102 = arith.constant 128 : index
    %115 = vector.load %arg7[%c0_100, %c0_101, %c128_102] : memref<1x16x580xf32, #tpu.memory_space<vmem>>, vector<1x16x324xf32>
    %116 = vector.shape_cast %115 : vector<1x16x324xf32> to vector<16x324xf32>
    %117 = vector.shape_cast %106 : vector<16x324xf32> to vector<1x16x324xf32>
    tpu.vector_store %arg7[%c0_100, %c0_101, %c128_102], %117 {strides = array<i32>} : memref<1x16x580xf32, #tpu.memory_space<vmem>>, vector<1x16x324xf32>,
    return
  }
  func.func @transform_0(%arg0: i32) -> (i32, i32, i32) {
    %c0_i32 = arith.constant 0 : i32
    %c0_i32_0 = arith.constant 0 : i32
    %c0_i32_1 = arith.constant 0 : i32
    return %arg0, %c0_i32, %c0_i32_0 : i32, i32, i32
  }
  func.func @transform_1(%arg0: i32) -> (i32, i32) {
    %c0_i32 = arith.constant 0 : i32
    %c0_i32_0 = arith.constant 0 : i32
    %c0_i32_1 = arith.constant 0 : i32
    return %c0_i32, %c0_i32_0 : i32, i32
  }
  func.func @transform_2(%arg0: i32) -> (i32, i32) {
    %c0_i32 = arith.constant 0 : i32
    %c0_i32_0 = arith.constant 0 : i32
    %c0_i32_1 = arith.constant 0 : i32
    return %c0_i32, %c0_i32_0 : i32, i32
  }
  func.func @transform_3(%arg0: i32) -> (i32, i32) {
    %c0_i32 = arith.constant 0 : i32
    %c0_i32_0 = arith.constant 0 : i32
    %c0_i32_1 = arith.constant 0 : i32
    return %c0_i32, %c0_i32_0 : i32, i32
  }
  func.func @transform_4(%arg0: i32) -> (i32, i32) {
    %c0_i32 = arith.constant 0 : i32
    %c0_i32_0 = arith.constant 0 : i32
    %c0_i32_1 = arith.constant 0 : i32
    return %c0_i32, %c0_i32_0 : i32, i32
  }
  func.func @transform_5(%arg0: i32) -> (i32, i32) {
    %c0_i32 = arith.constant 0 : i32
    %c0_i32_0 = arith.constant 0 : i32
    %c0_i32_1 = arith.constant 0 : i32
    return %c0_i32, %c0_i32_0 : i32, i32
  }
  func.func @transform_6(%arg0: i32) -> (i32, i32, i32) {
    %c0_i32 = arith.constant 0 : i32
    %c0_i32_0 = arith.constant 0 : i32
    %c0_i32_1 = arith.constant 0 : i32
    return %arg0, %c0_i32, %c0_i32_0 : i32, i32, i32
  }
}

</mosaic_0001>

<bundles_post_ra>
// kernel: unet_core_forward.9
= control target key start
LH: loop header
LB: loop body
LE: loop exit
PB: predicated region body
PF: predicated region fallthrough
CT: control target
= control target key end

     0   :  { %s633_s15 = smov 0   ;;  %s682_s0 = inlined_call_operand.vmem [shape: bf16[2,8,337], index: 0, kind: input, shape index: {}]   ;;  %s683_s1 = inlined_call_operand.vmem [shape: f32[1,81], index: 1, kind: input, shape index: {}]   ;;  %s684_s2 = inlined_call_operand.vmem [shape: bf16[16,32], index: 2, kind: input, shape index: {}]   ;;  %s685_s3 = inlined_call_operand.vmem [shape: f32[16,1], index: 3, kind: input, shape index: {}]   ;;  %s686_s4 = inlined_call_operand.vmem [shape: bf16[2,16,337], index: 4, kind: output, shape index: {}]  }
   0x1 LB: > { %s516_s16 = sadd.s32 4294967295, %s597_s15   ;;  %p520_p0 = scmp.ge.s32.totalorder %s597_s15, 1  ;;  %s597_s15 = sphi %s633_s15, %s14_s15  }
   0x2   : > { %p162_p1 = scmp.lt.s32.totalorder %s597_s15, 3 }
   0x4   : > { %p163_p2 = pnand %p520_p0, %p162_p1 }
   0x5   : > { %p188_p3 = scmp.lt.s32.totalorder (!%p163_p2), %s516_s16, 1  ;;  %v599_v0 = vmov (!%p163_p2), 0.0   ;;  %vm600_vm0 = vmmov (!%p163_p2), 0   ;;  %vm218_vm1 = vcmask (!%p163_p2), 1043456   ;;  %vm214_vm2 = vcmask (!%p163_p2), 64512   ;;  %s601_s25 = smov (!%p163_p2), 127  }
   0x6   : > { %166 = sbr.rel (%p163_p2) target bundleno = 376 (0x178), region = 36  ;;  %544 = vmatprep.subr.bf16.mxu0 (!%p163_p2), %v599_v0  ;;  %550 = vmatprep.subr.bf16.mxu1 (!%p163_p2), %v599_v0  ;;  %s602_s26 = smov (!%p163_p2), 119   ;;  %v590_v4 = vld [vmem:[%s684_s2] sm:$0xff] (!%p163_p2)   ;;  %v603_v5 = vmov (!%p163_p2), 0   ;;  %v417_v7 = vld [vmem:[%s685_s3 + $0x8] sm:$0xff] (!%p163_p2)  ;;  %vm445_vm3 = vcmask (!%p163_p2), 1044104  }
   0x7   : > { %546 = vmatprep.mubr.msk.bf16.mxu0 (!%p163_p2), %vm600_vm0, %v599_v0  ;;  %552 = vmatprep.mubr.msk.bf16.mxu1 (!%p163_p2), %vm600_vm0, %v599_v0  ;;  %s604_s29 = smov (!%p163_p2), 120   ;;  %s605_s30 = smov (!%p163_p2), 118   ;;  %v416_v6 = vld [vmem:[%s685_s3] sm:$0xff] (!%p163_p2)  ;;  %vm446_vm4 = vcmask (!%p163_p2), 662532   ;;  %vm458_vm6 = vcmask (!%p163_p2), 658432  }
   0x8   : > { %587 = vset.pattern.permute.xlu0 (!%p163_p2), %v603_v5  ;;  %588 = vset.pattern.permute.xlu1 (!%p163_p2), %v603_v5  ;;  %s606_s5 = smov (!%p163_p2), 104   ;;  %s607_s6 = smov (!%p163_p2), 112   ;;  %vm447_vm5 = vmor (!%p163_p2), %vm446_vm4, %vm445_vm3  ;;  %v529_v44 = vld [vmem:[%s683_s1] ss:$0 sm:$0xff] (!%p163_p2) }
   0xd   : > { %s688_s16 = smov (!%p188_p3, %s516_s16), 1 }
   0xe   : > { %s568_s17 = smul.u32 12, %s688_s16 }
   0xf   : > { %s569_s18 = smul.u32 24, %s688_s16 }
  0x10   : > { %s192_s21 = scalar_lea.vmem %s682_s0, %s568_s17 }
  0x11   : > { %v199_v1 = vld [vmem:[%s192_s21 + $0x4] sm:$0xf]  ;;  %s650_s24 = scalar_lea.vmem %s686_s4, %s569_s18 }
  0x12   : > { %v524_v2 = vcombine.low %v199_v1, %v199_v1  ;;  %v267_v3 = vsel %vm218_vm1, %v199_v1, 0  ;;  %443 = vst [vmem:[%s650_s24] sm:$0xf] %v603_v5  ;;  %444 = vst [vmem:[%s650_s24 + $0xc] sm:$0xf] %v603_v5 }
  0x13   : > { %551 = vmatpush3.bf16.msra.mxu1 %v267_v3  ;;  %448 = vst.msk [vmem:[%s650_s24 + $0x4] sm:$0xff] %vm447_vm5, %v603_v5  ;;  %449 = vst.msk [vmem:[%s650_s24 + $0x10] sm:$0xff] %vm447_vm5, %v603_v5 }
  0x14   : > { %212 = vrot.lane.b32.xlu0 %v524_v2, %s601_s25  ;;  %312 = vrot.lane.b32.xlu1 %v524_v2, %s602_s26 }
  0x15   : > { %562 = vmatprep.subr.bf16.mxu1 %v599_v0 }
  0x16   : > { %553 = vmatmul.mubr.msk.bf16.vlgmr.msra.gmra.mrb[0].mxu1 %vm214_vm2, %v590_v4 }
  0x17   : > { %564 = vmatprep.mubr.msk.bf16.mxu1 %vm600_vm0, %v599_v0 }
  0x18   : > { %207 = vrot.lane.b32.xlu0 %v590_v4, %s604_s29  ;;  %365 = vrot.lane.b32.xlu1 %v524_v2, %s605_s30 }
  0x1c   : > { %363 = vrot.lane.b32.xlu1 %v590_v4, %s606_s5  ;;  %310 = vrot.lane.b32.xlu0 %v590_v4, %s607_s6 }
  0x20   : > { %420 = vperm.xlu0 %587, %v416_v6   ;;  %425 = vperm.xlu1 %588, %v417_v7  }
  0x86   : > { %v213_v8 = vpop.permute.xlu0 %212  ;;  %v313_v9 = vpop.permute.xlu1 %312 }
  0x87   : > { %v220_v10 = vsel %vm218_vm1, %v213_v8, 0  ;;  %v318_v11 = vsel %vm218_vm1, %v313_v9, 0 }
  0x88   : > { %545 = vmatpush3.bf16.msra.mxu0 %v220_v10 }
  0x89   : > { %556 = vmatprep.subr.bf16.mxu0 %v599_v0 }
  0x8a   : > { %v208_v12 = vpop.permute.xlu0 %207  ;;  %v366_v13 = vpop.permute.xlu1 %365 }
  0x8b   : > { %547 = vmatmul.mubr.msk.bf16.vlgmr.msra.gmra.mrb[0].mxu0 %vm214_vm2, %v208_v12  ;;  %v371_v14 = vsel %vm218_vm1, %v366_v13, 0 }
  0x8c   : > { %557 = vmatpush3.bf16.msra.mxu0 %v318_v11  ;;  %563 = vmatpush3.bf16.msra.mxu1 %v371_v14 }
  0x8d   : > { %558 = vmatprep.mubr.msk.bf16.mxu0 %vm600_vm0, %v599_v0 }
  0x8e   : > { %v364_v15 = vpop.permute.xlu1 %363  ;;  %v311_v16 = vpop.permute.xlu0 %310 }
  0x8f   : > { %565 = vmatmul.mubr.msk.bf16.vlgmr.msra.gmra.mrb[4].mxu1 %vm214_vm2, %v364_v15 }
  0x93   : > { %559 = vmatmul.mubr.msk.bf16.vlgmr.msra.gmra.mrb[4].mxu0 %vm214_vm2, %v311_v16 }
  0x9f   : > { %v421_v35 = vpop.permute.xlu0 %420  ;;  %v426_v39 = vpop.permute.xlu1 %425 }
  0xe9   : > { %v303_v17 = vpop.f32.mrb[0].mxu1 }
  0xea   : > { %v554_v18 = vpop.f32.mrb[1].mxu1 }
  0xeb   : > { %v306_v19 = vpop.f32.mrb[2].mxu1 }
  0xec   : > { %v555_v20 = vpop.f32.mrb[3].mxu1 }
 0x15e   : > { %v256_v21 = vpop.f32.mrb[0].mxu0 }
 0x15f   : > { %v304_v22 = vadd.f32 %v303_v17, %v256_v21  ;;  %v548_v23 = vpop.f32.mrb[1].mxu0 }
 0x160   : > { %v259_v24 = vpop.f32.mrb[2].mxu0 }
 0x161   : > { %v307_v25 = vadd.f32 %v306_v19, %v259_v24  ;;  %v549_v26 = vpop.f32.mrb[3].mxu0 }
 0x162   : > { %v407_v27 = vpop.f32.mrb[4].mxu1 }
 0x163   : > { %v566_v28 = vpop.f32.mrb[5].mxu1 }
 0x164   : > { %v410_v29 = vpop.f32.mrb[6].mxu1 }
 0x165   : > { %v567_v30 = vpop.f32.mrb[7].mxu1 }
 0x166   : > { %v354_v31 = vpop.f32.mrb[4].mxu0 }
 0x167   : > { %v361_v32 = vadd.f32 %v354_v31, %v304_v22  ;;  %v560_v33 = vpop.f32.mrb[5].mxu0 }
 0x168   : > { %v357_v34 = vpop.f32.mrb[6].mxu0 }
 0x169   : > { %v414_v36 = vadd.f32 %v407_v27, %v361_v32  ;;  %v362_v37 = vadd.f32 %v357_v34, %v307_v25  ;;  %v561_v38 = vpop.f32.mrb[7].mxu0 }
 0x16b   : > { %v415_v40 = vadd.f32 %v410_v29, %v362_v37  ;;  %v428_v41 = vadd.f32 %v421_v35, %v414_v36 }
 0x16d   : > { %v430_v42 = vmul.f32 0.2, %v428_v41  ;;  %v429_v43 = vadd.f32 %v426_v39, %v415_v40 }
 0x16f   : > { %v432_v45 = vmax.f32 %v428_v41, %v430_v42  ;;  %v431_v46 = vmul.f32 0.2, %v429_v43 }
 0x171   : > { %v441_v47 = vmul.f32 %v529_v44, %v432_v45  ;;  %v433_v48 = vmax.f32 %v429_v43, %v431_v46 }
 0x173   : > { %v534_v49 = vpack.c.bf16 %v441_v47, %v441_v47  ;;  %v442_v50 = vmul.f32 %v529_v44, %v433_v48 }
 0x175   : > { %459 = vst.msk [vmem:[%s650_s24 + $0x4] sm:$0xf] %vm458_vm6, %v534_v49  ;;  %v535_v51 = vpack.c.bf16 %v442_v50, %v442_v50 }
 0x177   : > { %460 = vst.msk [vmem:[%s650_s24 + $0x10] sm:$0xf] %vm458_vm6, %v535_v51 }
 0x178 PF: > { %s14_s15 = sadd.s32 1, %s597_s15  }
 0x179   : > { %p11_p4 = scmp.ge.s32.totalorder %s14_s15, 4  }
 0x17b   :  { %13 = sbr.rel (!%p11_p4) target bundleno = 1 (0x1), region = 66 }

// kernel: unet_core_forward.10
= control target key start
LH: loop header
LB: loop body
LE: loop exit
PB: predicated region body
PF: predicated region fallthrough
CT: control target
= control target key end

     0   :  { %s847_s15 = smov 0   ;;  %s963_s0 = inlined_call_operand.vmem [shape: bf16[2,64,281], index: 0, kind: input, shape index: {}]   ;;  %s964_s1 = inlined_call_operand.vmem [shape: f32[1,25], index: 1, kind: input, shape index: {}]   ;;  %s965_s2 = inlined_call_operand.vmem [shape: bf16[32,256], index: 2, kind: input, shape index: {}]   ;;  %s966_s3 = inlined_call_operand.vmem [shape: f32[32,1], index: 3, kind: input, shape index: {}]   ;;  %s967_s4 = inlined_call_operand.vmem [shape: bf16[2,32,281], index: 4, kind: output, shape index: {}]  }
   0x1 LB: > { %s666_s16 = sadd.s32 4294967295, %s815_s15   ;;  %p670_p0 = scmp.ge.s32.totalorder %s815_s15, 1  ;;  %s815_s15 = sphi %s847_s15, %s14_s15  }
   0x2   : > { %p162_p1 = scmp.lt.s32.totalorder %s815_s15, 3 }
   0x4   : > { %p163_p2 = pnand %p670_p0, %p162_p1 }
   0x5   : > { %p188_p3 = scmp.lt.s32.totalorder (!%p163_p2), %s666_s16, 1  ;;  %s817_s21 = smov (!%p163_p2), 127   ;;  %v807_v2 = vld [vmem:[%s965_s2 + $0x4] ss:$8 sps:$4 sm:$0xff] (!%p163_p2)   ;;  %vm257_vm0 = vcmask (!%p163_p2), 523264   ;;  %v821_v7 = vmov (!%p163_p2), 0  }
   0x6   : > { %166 = sbr.rel (%p163_p2) target bundleno = 397 (0x18d), region = 36  ;;  %756 = vmatprep.mubr.msk.bf16.mxu0 (!%p163_p2), %vm257_vm0, %v807_v2  ;;  %s818_s24 = smov (!%p163_p2), 123   ;;  %v883_v5 = vld [vmem:[%s965_s2] ss:$8 sps:$4 sm:$0xff] (!%p163_p2)   ;;  %v890_v6 = vld [vmem:[%s965_s2 + $0x10] ss:$8 sps:$4 sm:$0xff] (!%p163_p2)   ;;  %800 = vset.pattern.permute.xlu1 (!%p163_p2), %v821_v7 }
   0x7   : > { %s819_s27 = smov (!%p163_p2), 64   ;;  %s820_s30 = smov (!%p163_p2), 122   ;;  %v808_v8 = vld [vmem:[%s965_s2 + $0x14] ss:$8 sps:$4 sm:$0xff] (!%p163_p2)   ;;  %799 = vset.pattern.permute.xlu0 (!%p163_p2), %v821_v7  ;;  %v532_v9 = vld [vmem:[%s966_s3] sm:$0xff] (!%p163_p2)  ;;  %v533_v10 = vld [vmem:[%s966_s3 + $0x8] sm:$0xff] (!%p163_p2) }
   0x8   : > { %v535_v11 = vld [vmem:[%s966_s3 + $0x18] sm:$0xff] (!%p163_p2)  ;;  %v534_v12 = vld [vmem:[%s966_s3 + $0x10] sm:$0xff] (!%p163_p2)  ;;  %vm583_vm1 = vcmask (!%p163_p2), 1043656   ;;  %vm584_vm2 = vcmask (!%p163_p2), 203780   ;;  %v689_v49 = vld [vmem:[%s964_s1] ss:$0 sm:$0xff] (!%p163_p2) }
   0x9   : > { %vm585_vm3 = vmor (!%p163_p2), %vm584_vm2, %vm583_vm1  ;;  %vm606_vm4 = vcmask (!%p163_p2), 199680  }
   0xd   : > { %s969_s16 = smov (!%p188_p3, %s666_s16), 1 }
   0xe   : > { %s784_s17 = smul.u32 96, %s969_s16 }
   0xf   : > { %s785_s5 = smul.u32 48, %s969_s16 }
  0x10   : > { %s192_s20 = scalar_lea.vmem %s963_s0, %s784_s17 }
  0x11   : > { %v861_v0 = vld [vmem:[%s192_s20 + $0x4] ss:$12 sps:$4 sm:$0xff]   ;;  %v863_v1 = vld [vmem:[%s192_s20 + $0x1c] ss:$12 sps:$4 sm:$0xff]   ;;  %v872_v3 = vld [vmem:[%s192_s20 + $0x34] ss:$12 sps:$4 sm:$0xff]   ;;  %s899_s8 = scalar_lea.vmem %s967_s4, %s785_s5 }
  0x12   : > { %245 = vrot.lane.b32.xlu0 %v861_v0, %s817_s21  ;;  %247 = vrot.lane.b32.xlu1 %v863_v1, %s817_s21  ;;  %v876_v4 = vld [vmem:[%s192_s20 + $0x4c] ss:$12 sps:$4 sm:$0xff]   ;;  %579 = vst [vmem:[%s899_s8] sm:$0xf] %v821_v7 }
  0x13   : > { %580 = vst [vmem:[%s899_s8 + $0xc] sm:$0xf] %v821_v7  ;;  %581 = vst [vmem:[%s899_s8 + $0x18] sm:$0xf] %v821_v7 }
  0x14   : > { %582 = vst [vmem:[%s899_s8 + $0x24] sm:$0xf] %v821_v7  ;;  %588 = vst.msk [vmem:[%s899_s8 + $0x1c] sm:$0xff] %vm585_vm3, %v821_v7 }
  0x15   : > { %586 = vst.msk [vmem:[%s899_s8 + $0x4] sm:$0xff] %vm585_vm3, %v821_v7  ;;  %587 = vst.msk [vmem:[%s899_s8 + $0x10] sm:$0xff] %vm585_vm3, %v821_v7 }
  0x16   : > { %386 = vrot.lane.b32.xlu0 %v861_v0, %s818_s24  ;;  %388 = vrot.lane.b32.xlu1 %v863_v1, %s818_s24  ;;  %589 = vst.msk [vmem:[%s899_s8 + $0x28] sm:$0xff] %vm585_vm3, %v821_v7 }
  0x1a   : > { %249 = vrot.lane.b32.xlu0 %v872_v3, %s817_s21  ;;  %390 = vrot.lane.b32.xlu1 %v872_v3, %s818_s24 }
  0x1e   : > { %251 = vrot.lane.b32.xlu0 %v876_v4, %s817_s21  ;;  %392 = vrot.lane.b32.xlu1 %v876_v4, %s818_s24 }
  0x22   : > { %221 = vrot.lane.b32.xlu0 %v883_v5, %s819_s27  ;;  %461 = vrot.lane.b32.xlu1 %v861_v0, %s820_s30 }
  0x26   : > { %223 = vrot.lane.b32.xlu0 %v890_v6, %s819_s27  ;;  %463 = vrot.lane.b32.xlu1 %v863_v1, %s820_s30 }
  0x2a   : > { %465 = vrot.lane.b32.xlu0 %v872_v3, %s820_s30  ;;  %467 = vrot.lane.b32.xlu1 %v876_v4, %s820_s30 }
  0x2e   : > { %457 = vrot.lane.b32.xlu0 %v807_v2, %s819_s27  ;;  %459 = vrot.lane.b32.xlu1 %v808_v8, %s819_s27 }
  0x32   : > { %538 = vperm.xlu0 %799, %v532_v9   ;;  %543 = vperm.xlu1 %800, %v533_v10  }
  0x36   : > { %553 = vperm.xlu0 %799, %v535_v11   ;;  %548 = vperm.xlu1 %800, %v534_v12  }
  0x84   : > { %v246_v13 = vpop.permute.xlu0 %245  ;;  %v248_v14 = vpop.permute.xlu1 %247 }
  0x85   : > { %724 = vmatprep.subr.bf16.mxu1 %v246_v13 }
  0x86   : > { %725 = vmatpush3.bf16.msra.mxu1 %v246_v13 }
  0x87   : > { %726 = vmatprep.subr.bf16.mxu1 %v248_v14 }
  0x88   : > { %v387_v15 = vpop.permute.xlu0 %386  ;;  %v389_v16 = vpop.permute.xlu1 %388 }
  0x89   : > { %748 = vmatprep.subr.bf16.mxu0 %v387_v15 }
  0x8a   : > { %727 = vmatpush3.bf16.msra.mxu1 %v248_v14  ;;  %749 = vmatpush3.bf16.msra.mxu0 %v387_v15 }
  0x8b   : > { %750 = vmatprep.subr.bf16.mxu0 %v389_v16 }
  0x8c   : > { %v250_v17 = vpop.permute.xlu0 %249  ;;  %v391_v18 = vpop.permute.xlu1 %390 }
  0x8d   : > { %728 = vmatprep.subr.bf16.mxu1 %v250_v17 }
  0x8e   : > { %729 = vmatpush3.bf16.msra.mxu1 %v250_v17  ;;  %751 = vmatpush3.bf16.msra.mxu0 %v389_v16 }
  0x8f   : > { %752 = vmatprep.subr.bf16.mxu0 %v391_v18 }
  0x90   : > { %v252_v19 = vpop.permute.xlu0 %251  ;;  %v393_v20 = vpop.permute.xlu1 %392 }
  0x91   : > { %730 = vmatprep.subr.bf16.mxu1 %v252_v19 }
  0x92   : > { %731 = vmatpush3.bf16.msra.mxu1 %v252_v19  ;;  %753 = vmatpush3.bf16.msra.mxu0 %v391_v18 }
  0x93   : > { %754 = vmatprep.subr.bf16.mxu0 %v393_v20  ;;  %736 = vmatprep.subr.bf16.mxu1 %v861_v0 }
  0x94   : > { %v222_v21 = vpop.permute.xlu0 %221  ;;  %v462_v22 = vpop.permute.xlu1 %461 }
  0x95   : > { %732 = vmatprep.mubr.msk.bf16.mxu1 %vm257_vm0, %v222_v21 }
  0x96   : > { %755 = vmatpush3.bf16.msra.mxu0 %v393_v20 }
  0x97   : > { %760 = vmatprep.subr.bf16.mxu0 %v462_v22 }
  0x98   : > { %v224_v23 = vpop.permute.xlu0 %223  ;;  %v464_v24 = vpop.permute.xlu1 %463 }
  0x99   : > { %733 = vmatmul.mubr.msk.bf16.vlgmr.msra.gmra.mrb[0].mxu1 %vm257_vm0, %v224_v23  ;;  %757 = vmatmul.mubr.msk.bf16.vlgmr.msra.gmra.mrb[0].mxu0 %vm257_vm0, %v808_v8 }
  0x9a   : > { %737 = vmatpush3.bf16.msra.mxu1 %v861_v0  ;;  %761 = vmatpush3.bf16.msra.mxu0 %v462_v22 }
  0x9b   : > { %738 = vmatprep.subr.bf16.mxu1 %v863_v1  ;;  %762 = vmatprep.subr.bf16.mxu0 %v464_v24 }
  0x9c   : > { %v466_v25 = vpop.permute.xlu0 %465  ;;  %744 = vmatprep.mubr.msk.bf16.mxu1 %vm257_vm0, %v883_v5  ;;  %v468_v26 = vpop.permute.xlu1 %467 }
  0x9e   : > { %739 = vmatpush3.bf16.msra.mxu1 %v863_v1  ;;  %763 = vmatpush3.bf16.msra.mxu0 %v464_v24 }
  0x9f   : > { %740 = vmatprep.subr.bf16.mxu1 %v872_v3  ;;  %764 = vmatprep.subr.bf16.mxu0 %v466_v25 }
  0xa0   : > { %v458_v27 = vpop.permute.xlu0 %457  ;;  %v460_v28 = vpop.permute.xlu1 %459 }
  0xa1   : > { %768 = vmatprep.mubr.msk.bf16.mxu0 %vm257_vm0, %v458_v27 }
  0xa2   : > { %741 = vmatpush3.bf16.msra.mxu1 %v872_v3  ;;  %765 = vmatpush3.bf16.msra.mxu0 %v466_v25 }
  0xa3   : > { %742 = vmatprep.subr.bf16.mxu1 %v876_v4  ;;  %766 = vmatprep.subr.bf16.mxu0 %v468_v26 }
  0xa6   : > { %743 = vmatpush3.bf16.msra.mxu1 %v876_v4  ;;  %767 = vmatpush3.bf16.msra.mxu0 %v468_v26 }
  0xa9   : > { %745 = vmatmul.mubr.msk.bf16.vlgmr.msra.gmra.mrb[0].mxu1 %vm257_vm0, %v890_v6  ;;  %769 = vmatmul.mubr.msk.bf16.vlgmr.msra.gmra.mrb[0].mxu0 %vm257_vm0, %v460_v28 }
  0xb1   : > { %v544_v29 = vpop.permute.xlu1 %543  ;;  %v539_v30 = vpop.permute.xlu0 %538 }
  0xb5   : > { %v549_v31 = vpop.permute.xlu1 %548  ;;  %v554_v45 = vpop.permute.xlu0 %553 }
 0x17c   : > { %v746_v32 = vpop.f32.mrb[0].mxu1  ;;  %v770_v33 = vpop.f32.mrb[0].mxu0 }
 0x17d   : > { %v357_v34 = vpop.f32.mrb[1].mxu1  ;;  %v772_v35 = vadd.f32 %v770_v33, %v746_v32  ;;  %v513_v36 = vpop.f32.mrb[1].mxu0 }
 0x17e   : > { %v747_v37 = vpop.f32.mrb[2].mxu1  ;;  %v773_v38 = vadd.f32 %v513_v36, %v357_v34  ;;  %v771_v39 = vpop.f32.mrb[2].mxu0 }
 0x17f   : > { %v558_v40 = vadd.f32 %v772_v35, %v549_v31  ;;  %v360_v41 = vpop.f32.mrb[3].mxu1  ;;  %v774_v42 = vadd.f32 %v771_v39, %v747_v37  ;;  %v516_v43 = vpop.f32.mrb[3].mxu0 }
 0x180   : > { %v556_v44 = vadd.f32 %v773_v38, %v539_v30  ;;  %v775_v46 = vadd.f32 %v516_v43, %v360_v41 }
 0x181   : > { %v562_v47 = vmul.f32 0.2, %v558_v40  ;;  %v559_v48 = vadd.f32 %v774_v42, %v554_v45 }
 0x182   : > { %v560_v50 = vmul.f32 0.2, %v556_v44  ;;  %v557_v51 = vadd.f32 %v775_v46, %v544_v29 }
 0x183   : > { %v566_v52 = vmax.f32 %v558_v40, %v562_v47  ;;  %v563_v53 = vmul.f32 0.2, %v559_v48 }
 0x184   : > { %v564_v54 = vmax.f32 %v556_v44, %v560_v50  ;;  %v561_v55 = vmul.f32 0.2, %v557_v51 }
 0x185   : > { %v577_v56 = vmul.f32 %v689_v49, %v566_v52  ;;  %v567_v57 = vmax.f32 %v559_v48, %v563_v53 }
 0x186   : > { %v575_v58 = vmul.f32 %v689_v49, %v564_v54  ;;  %v565_v59 = vmax.f32 %v557_v51, %v561_v55 }
 0x187   : > { %v698_v60 = vpack.c.bf16 %v577_v56, %v577_v56  ;;  %v578_v61 = vmul.f32 %v689_v49, %v567_v57 }
 0x188   : > { %v696_v62 = vpack.c.bf16 %v575_v58, %v575_v58  ;;  %v576_v63 = vmul.f32 %v689_v49, %v565_v59 }
 0x189   : > { %609 = vst.msk [vmem:[%s899_s8 + $0x1c] sm:$0xf] %vm606_vm4, %v698_v60  ;;  %v699_v0 = vpack.c.bf16 %v578_v61, %v578_v61 }
 0x18a   : > { %607 = vst.msk [vmem:[%s899_s8 + $0x4] sm:$0xf] %vm606_vm4, %v696_v62  ;;  %v697_v1 = vpack.c.bf16 %v576_v63, %v576_v63 }
 0x18b   : > { %610 = vst.msk [vmem:[%s899_s8 + $0x28] sm:$0xf] %vm606_vm4, %v699_v0 }
 0x18c   : > { %608 = vst.msk [vmem:[%s899_s8 + $0x10] sm:$0xf] %vm606_vm4, %v697_v1 }
 0x18d PF: > { %s14_s15 = sadd.s32 1, %s815_s15  }
 0x18e   : > { %p11_p4 = scmp.ge.s32.totalorder %s14_s15, 4  }
 0x190   :  { %13 = sbr.rel (!%p11_p4) target bundleno = 1 (0x1), region = 66 }

// kernel: unet_core_forward.11
= control target key start
LH: loop header
LB: loop body
LE: loop exit
PB: predicated region body
PF: predicated region fallthrough
CT: control target
= control target key end

     0   :  { %s972_s15 = smov 0   ;;  %s1112_s0 = inlined_call_operand.vmem [shape: bf16[2,128,265], index: 0, kind: input, shape index: {}]   ;;  %s1113_s1 = inlined_call_operand.vmem [shape: f32[1,9], index: 1, kind: input, shape index: {}]   ;;  %s1114_s2 = inlined_call_operand.vmem [shape: bf16[32,512], index: 2, kind: input, shape index: {}]   ;;  %s1115_s3 = inlined_call_operand.vmem [shape: f32[32,1], index: 3, kind: input, shape index: {}]   ;;  %s1116_s4 = inlined_call_operand.vmem [shape: bf16[2,32,265], index: 4, kind: output, shape index: {}]  }
   0x1 LB: > { %s737_s16 = sadd.s32 4294967295, %s941_s15   ;;  %p741_p0 = scmp.ge.s32.totalorder %s941_s15, 1  ;;  %s941_s15 = sphi %s972_s15, %s14_s15  }
   0x2   : > { %p162_p1 = scmp.lt.s32.totalorder %s941_s15, 3 }
   0x4   : > { %p163_p2 = pnand %p741_p0, %p162_p1 }
   0x5   : > { %p188_p3 = scmp.lt.s32.totalorder (!%p163_p2), %s737_s16, 1  ;;  %s943_s21 = smov (!%p163_p2), 127   ;;  %v927_v6 = vld [vmem:[%s1114_s2 + $0x4] ss:$16 sps:$4 sm:$0xff] (!%p163_p2)   ;;  %v929_v8 = vld [vmem:[%s1114_s2 + $0x8] ss:$16 sps:$4 sm:$0xff] (!%p163_p2)  }
   0x6   : > { %166 = sbr.rel (%p163_p2) target bundleno = 429 (0x1ad), region = 36  ;;  %s944_s22 = smov (!%p163_p2), 125   ;;  %827 = vmatprep.mubr.bf16.mxu1 (!%p163_p2), %v927_v6  ;;  %867 = vmatprep.mubr.bf16.mxu0 (!%p163_p2), %v929_v8  ;;  %v604_v10 = vld [vmem:[%s1115_s3 + $0x8] sm:$0xff] (!%p163_p2)  ;;  %v603_v11 = vld [vmem:[%s1115_s3] sm:$0xff] (!%p163_p2)  ;;  %v946_v12 = vmov (!%p163_p2), 0   ;;  %v605_v13 = vld [vmem:[%s1115_s3 + $0x10] sm:$0xff] (!%p163_p2) }
   0x7   : > { %s945_s27 = smov (!%p163_p2), 124   ;;  %918 = vset.pattern.permute.xlu1 (!%p163_p2), %v946_v12  ;;  %917 = vset.pattern.permute.xlu0 (!%p163_p2), %v946_v12  ;;  %v606_v14 = vld [vmem:[%s1115_s3 + $0x18] sm:$0xff] (!%p163_p2)  ;;  %v928_v31 = vld [vmem:[%s1114_s2 + $0x24] ss:$16 sps:$4 sm:$0xff] (!%p163_p2)   ;;  %v931_v33 = vld [vmem:[%s1114_s2] ss:$16 sps:$4 sm:$0xff] (!%p163_p2)  }
   0x8   : > { %v930_v34 = vld [vmem:[%s1114_s2 + $0x28] ss:$16 sps:$4 sm:$0xff] (!%p163_p2)   ;;  %v933_v36 = vld [vmem:[%s1114_s2 + $0xc] ss:$16 sps:$4 sm:$0xff] (!%p163_p2)   ;;  %v932_v43 = vld [vmem:[%s1114_s2 + $0x20] ss:$16 sps:$4 sm:$0xff] (!%p163_p2)  }
   0x9   : > { %v934_v44 = vld [vmem:[%s1114_s2 + $0x2c] ss:$16 sps:$4 sm:$0xff] (!%p163_p2)   ;;  %vm654_vm0 = vcmask (!%p163_p2), 1043528   ;;  %vm655_vm1 = vcmask (!%p163_p2), 72708   ;;  %vm677_vm3 = vcmask (!%p163_p2), 68608  }
   0xa   : > { %vm656_vm2 = vmor (!%p163_p2), %vm655_vm1, %vm654_vm0 }
   0xd   : > { %s1118_s16 = smov (!%p188_p3, %s737_s16), 1 }
   0xe   : > { %s903_s17 = smul.u32 192, %s1118_s16 }
   0xf   : > { %s904_s24 = smul.u32 48, %s1118_s16 }
  0x10   : > { %s192_s20 = scalar_lea.vmem %s1112_s0, %s903_s17 }
  0x11   : > { %v986_v0 = vld [vmem:[%s192_s20 + $0x4] ss:$12 sps:$4 sm:$0xff]   ;;  %v988_v1 = vld [vmem:[%s192_s20 + $0x1c] ss:$12 sps:$4 sm:$0xff]   ;;  %v993_v2 = vld [vmem:[%s192_s20 + $0x34] ss:$12 sps:$4 sm:$0xff]  }
  0x12   : > { %275 = vrot.lane.b32.xlu0 %v986_v0, %s943_s21  ;;  %277 = vrot.lane.b32.xlu1 %v988_v1, %s943_s21  ;;  %v997_v3 = vld [vmem:[%s192_s20 + $0x4c] ss:$12 sps:$4 sm:$0xff]   ;;  %v1001_v4 = vld [vmem:[%s192_s20 + $0x64] ss:$12 sps:$4 sm:$0xff]  }
  0x13   : > { %v1005_v5 = vld [vmem:[%s192_s20 + $0x7c] ss:$12 sps:$4 sm:$0xff]   ;;  %v1012_v7 = vld [vmem:[%s192_s20 + $0x94] ss:$12 sps:$4 sm:$0xff]   ;;  %v1019_v9 = vld [vmem:[%s192_s20 + $0xac] ss:$12 sps:$4 sm:$0xff]  }
  0x16   : > { %433 = vrot.lane.b32.xlu0 %v986_v0, %s944_s22  ;;  %435 = vrot.lane.b32.xlu1 %v988_v1, %s944_s22 }
  0x1a   : > { %279 = vrot.lane.b32.xlu0 %v993_v2, %s943_s21  ;;  %437 = vrot.lane.b32.xlu1 %v993_v2, %s944_s22 }
  0x1e   : > { %281 = vrot.lane.b32.xlu0 %v997_v3, %s943_s21  ;;  %439 = vrot.lane.b32.xlu1 %v997_v3, %s944_s22 }
  0x22   : > { %283 = vrot.lane.b32.xlu0 %v1001_v4, %s943_s21  ;;  %441 = vrot.lane.b32.xlu1 %v1001_v4, %s944_s22 }
  0x26   : > { %285 = vrot.lane.b32.xlu0 %v1005_v5, %s943_s21  ;;  %443 = vrot.lane.b32.xlu1 %v1005_v5, %s944_s22 }
  0x2a   : > { %287 = vrot.lane.b32.xlu0 %v1012_v7, %s943_s21  ;;  %445 = vrot.lane.b32.xlu1 %v1012_v7, %s944_s22 }
  0x2e   : > { %289 = vrot.lane.b32.xlu0 %v1019_v9, %s943_s21  ;;  %447 = vrot.lane.b32.xlu1 %v1019_v9, %s944_s22 }
  0x32   : > { %526 = vrot.lane.b32.xlu0 %v986_v0, %s945_s27  ;;  %528 = vrot.lane.b32.xlu1 %v988_v1, %s945_s27 }
  0x36   : > { %530 = vrot.lane.b32.xlu0 %v993_v2, %s945_s27  ;;  %532 = vrot.lane.b32.xlu1 %v997_v3, %s945_s27 }
  0x3a   : > { %534 = vrot.lane.b32.xlu0 %v1001_v4, %s945_s27  ;;  %536 = vrot.lane.b32.xlu1 %v1005_v5, %s945_s27 }
  0x3e   : > { %538 = vrot.lane.b32.xlu0 %v1012_v7, %s945_s27  ;;  %540 = vrot.lane.b32.xlu1 %v1019_v9, %s945_s27  ;;  %s1084_s27 = scalar_lea.vmem %s1116_s4, %s904_s24 }
  0x3f   : > { %650 = vst [vmem:[%s1084_s27] sm:$0xf] %v946_v12  ;;  %651 = vst [vmem:[%s1084_s27 + $0xc] sm:$0xf] %v946_v12 }
  0x40   : > { %652 = vst [vmem:[%s1084_s27 + $0x18] sm:$0xf] %v946_v12  ;;  %653 = vst [vmem:[%s1084_s27 + $0x24] sm:$0xf] %v946_v12 }
  0x41   : > { %659 = vst.msk [vmem:[%s1084_s27 + $0x1c] sm:$0xff] %vm656_vm2, %v946_v12  ;;  %657 = vst.msk [vmem:[%s1084_s27 + $0x4] sm:$0xff] %vm656_vm2, %v946_v12 }
  0x42   : > { %614 = vperm.xlu1 %918, %v604_v10   ;;  %609 = vperm.xlu0 %917, %v603_v11   ;;  %658 = vst.msk [vmem:[%s1084_s27 + $0x10] sm:$0xff] %vm656_vm2, %v946_v12  ;;  %660 = vst.msk [vmem:[%s1084_s27 + $0x28] sm:$0xff] %vm656_vm2, %v946_v12 }
  0x46   : > { %619 = vperm.xlu1 %918, %v605_v13   ;;  %624 = vperm.xlu0 %917, %v606_v14  }
  0x84   : > { %v276_v15 = vpop.permute.xlu0 %275  ;;  %v278_v16 = vpop.permute.xlu1 %277 }
  0x85   : > { %811 = vmatprep.subr.bf16.mxu1 %v276_v15 }
  0x86   : > { %812 = vmatpush3.bf16.msra.mxu1 %v276_v15 }
  0x87   : > { %813 = vmatprep.subr.bf16.mxu1 %v278_v16 }
  0x88   : > { %v434_v17 = vpop.permute.xlu0 %433  ;;  %v436_v18 = vpop.permute.xlu1 %435 }
  0x89   : > { %851 = vmatprep.subr.bf16.mxu0 %v434_v17 }
  0x8a   : > { %814 = vmatpush3.bf16.msra.mxu1 %v278_v16  ;;  %852 = vmatpush3.bf16.msra.mxu0 %v434_v17 }
  0x8b   : > { %853 = vmatprep.subr.bf16.mxu0 %v436_v18 }
  0x8c   : > { %v280_v19 = vpop.permute.xlu0 %279  ;;  %v438_v20 = vpop.permute.xlu1 %437 }
  0x8d   : > { %815 = vmatprep.subr.bf16.mxu1 %v280_v19 }
  0x8e   : > { %816 = vmatpush3.bf16.msra.mxu1 %v280_v19  ;;  %854 = vmatpush3.bf16.msra.mxu0 %v436_v18 }
  0x8f   : > { %855 = vmatprep.subr.bf16.mxu0 %v438_v20 }
  0x90   : > { %v282_v21 = vpop.permute.xlu0 %281  ;;  %v440_v22 = vpop.permute.xlu1 %439 }
  0x91   : > { %817 = vmatprep.subr.bf16.mxu1 %v282_v21 }
  0x92   : > { %818 = vmatpush3.bf16.msra.mxu1 %v282_v21  ;;  %856 = vmatpush3.bf16.msra.mxu0 %v438_v20 }
  0x93   : > { %857 = vmatprep.subr.bf16.mxu0 %v440_v22 }
  0x94   : > { %v284_v23 = vpop.permute.xlu0 %283  ;;  %v442_v24 = vpop.permute.xlu1 %441 }
  0x95   : > { %819 = vmatprep.subr.bf16.mxu1 %v284_v23 }
  0x96   : > { %820 = vmatpush3.bf16.msra.mxu1 %v284_v23  ;;  %858 = vmatpush3.bf16.msra.mxu0 %v440_v22 }
  0x97   : > { %859 = vmatprep.subr.bf16.mxu0 %v442_v24 }
  0x98   : > { %v286_v25 = vpop.permute.xlu0 %285  ;;  %v444_v26 = vpop.permute.xlu1 %443 }
  0x99   : > { %821 = vmatprep.subr.bf16.mxu1 %v286_v25 }
  0x9a   : > { %822 = vmatpush3.bf16.msra.mxu1 %v286_v25  ;;  %860 = vmatpush3.bf16.msra.mxu0 %v442_v24 }
  0x9b   : > { %861 = vmatprep.subr.bf16.mxu0 %v444_v26 }
  0x9c   : > { %v288_v27 = vpop.permute.xlu0 %287  ;;  %v446_v28 = vpop.permute.xlu1 %445 }
  0x9d   : > { %823 = vmatprep.subr.bf16.mxu1 %v288_v27 }
  0x9e   : > { %824 = vmatpush3.bf16.msra.mxu1 %v288_v27  ;;  %862 = vmatpush3.bf16.msra.mxu0 %v444_v26 }
  0x9f   : > { %863 = vmatprep.subr.bf16.mxu0 %v446_v28 }
  0xa0   : > { %v290_v29 = vpop.permute.xlu0 %289  ;;  %v448_v30 = vpop.permute.xlu1 %447 }
  0xa1   : > { %825 = vmatprep.subr.bf16.mxu1 %v290_v29 }
  0xa2   : > { %826 = vmatpush3.bf16.msra.mxu1 %v290_v29  ;;  %864 = vmatpush3.bf16.msra.mxu0 %v446_v28 }
  0xa3   : > { %831 = vmatprep.subr.bf16.mxu1 %v986_v0  ;;  %865 = vmatprep.subr.bf16.mxu0 %v448_v30 }
  0xa4   : > { %v527_v32 = vpop.permute.xlu0 %526  ;;  %v529_v35 = vpop.permute.xlu1 %528 }
  0xa5   : > { %828 = vmatmul.mubr.bf16.vlgmr.msra.gmra.mrb[0].mxu1 %v928_v31 }
  0xa6   : > { %832 = vmatpush3.bf16.msra.mxu1 %v986_v0  ;;  %866 = vmatpush3.bf16.msra.mxu0 %v448_v30 }
  0xa7   : > { %833 = vmatprep.subr.bf16.mxu1 %v988_v1  ;;  %871 = vmatprep.subr.bf16.mxu0 %v527_v32 }
  0xa8   : > { %847 = vmatprep.mubr.bf16.mxu1 %v931_v33  ;;  %v531_v37 = vpop.permute.xlu0 %530  ;;  %v533_v38 = vpop.permute.xlu1 %532 }
  0xa9   : > { %868 = vmatmul.mubr.bf16.vlgmr.msra.gmra.mrb[0].mxu0 %v930_v34 }
  0xaa   : > { %834 = vmatpush3.bf16.msra.mxu1 %v988_v1  ;;  %872 = vmatpush3.bf16.msra.mxu0 %v527_v32  ;;  %v760_v1 = vld [vmem:[%s1113_s1] ss:$0 sm:$0xff] }
  0xab   : > { %835 = vmatprep.subr.bf16.mxu1 %v993_v2  ;;  %873 = vmatprep.subr.bf16.mxu0 %v529_v35 }
  0xac   : > { %887 = vmatprep.mubr.bf16.mxu0 %v933_v36  ;;  %v535_v39 = vpop.permute.xlu0 %534  ;;  %v537_v40 = vpop.permute.xlu1 %536 }
  0xae   : > { %836 = vmatpush3.bf16.msra.mxu1 %v993_v2  ;;  %874 = vmatpush3.bf16.msra.mxu0 %v529_v35 }
  0xaf   : > { %837 = vmatprep.subr.bf16.mxu1 %v997_v3  ;;  %875 = vmatprep.subr.bf16.mxu0 %v531_v37 }
  0xb0   : > { %v539_v41 = vpop.permute.xlu0 %538  ;;  %v541_v42 = vpop.permute.xlu1 %540 }
  0xb2   : > { %838 = vmatpush3.bf16.msra.mxu1 %v997_v3  ;;  %876 = vmatpush3.bf16.msra.mxu0 %v531_v37 }
  0xb3   : > { %839 = vmatprep.subr.bf16.mxu1 %v1001_v4  ;;  %877 = vmatprep.subr.bf16.mxu0 %v533_v38 }
  0xb6   : > { %840 = vmatpush3.bf16.msra.mxu1 %v1001_v4  ;;  %878 = vmatpush3.bf16.msra.mxu0 %v533_v38 }
  0xb7   : > { %841 = vmatprep.subr.bf16.mxu1 %v1005_v5  ;;  %879 = vmatprep.subr.bf16.mxu0 %v535_v39 }
  0xba   : > { %842 = vmatpush3.bf16.msra.mxu1 %v1005_v5  ;;  %880 = vmatpush3.bf16.msra.mxu0 %v535_v39 }
  0xbb   : > { %843 = vmatprep.subr.bf16.mxu1 %v1012_v7  ;;  %881 = vmatprep.subr.bf16.mxu0 %v537_v40 }
  0xbe   : > { %844 = vmatpush3.bf16.msra.mxu1 %v1012_v7  ;;  %882 = vmatpush3.bf16.msra.mxu0 %v537_v40 }
  0xbf   : > { %845 = vmatprep.subr.bf16.mxu1 %v1019_v9  ;;  %883 = vmatprep.subr.bf16.mxu0 %v539_v41 }
  0xc1   : > { %v615_v45 = vpop.permute.xlu1 %614  ;;  %v610_v48 = vpop.permute.xlu0 %609 }
  0xc2   : > { %846 = vmatpush3.bf16.msra.mxu1 %v1019_v9  ;;  %884 = vmatpush3.bf16.msra.mxu0 %v539_v41 }
  0xc3   : > { %885 = vmatprep.subr.bf16.mxu0 %v541_v42 }
  0xc5   : > { %848 = vmatmul.mubr.bf16.vlgmr.msra.gmra.mrb[0].mxu1 %v932_v43  ;;  %v620_v52 = vpop.permute.xlu1 %619  ;;  %v625_v61 = vpop.permute.xlu0 %624 }
  0xc6   : > { %886 = vmatpush3.bf16.msra.mxu0 %v541_v42 }
  0xc9   : > { %888 = vmatmul.mubr.bf16.vlgmr.msra.gmra.mrb[0].mxu0 %v934_v44 }
 0x198   : > { %v849_v46 = vpop.f32.mrb[0].mxu1 }
 0x199   : > { %v402_v47 = vpop.f32.mrb[1].mxu1 }
 0x19a   : > { %v850_v49 = vpop.f32.mrb[2].mxu1 }
 0x19b   : > { %v405_v50 = vpop.f32.mrb[3].mxu1 }
 0x19c   : > { %v889_v51 = vpop.f32.mrb[0].mxu0 }
 0x19d   : > { %v891_v53 = vadd.f32 %v889_v51, %v849_v46  ;;  %v584_v54 = vpop.f32.mrb[1].mxu0 }
 0x19e   : > { %v892_v55 = vadd.f32 %v584_v54, %v402_v47  ;;  %v890_v56 = vpop.f32.mrb[2].mxu0 }
 0x19f   : > { %v629_v57 = vadd.f32 %v891_v53, %v620_v52  ;;  %v893_v58 = vadd.f32 %v890_v56, %v850_v49  ;;  %v587_v59 = vpop.f32.mrb[3].mxu0 }
 0x1a0   : > { %v627_v60 = vadd.f32 %v892_v55, %v610_v48  ;;  %v894_v62 = vadd.f32 %v587_v59, %v405_v50 }
 0x1a1   : > { %v633_v63 = vmul.f32 0.2, %v629_v57  ;;  %v630_v0 = vadd.f32 %v893_v58, %v625_v61 }
 0x1a2   : > { %v631_v2 = vmul.f32 0.2, %v627_v60  ;;  %v628_v3 = vadd.f32 %v894_v62, %v615_v45 }
 0x1a3   : > { %v637_v4 = vmax.f32 %v629_v57, %v633_v63  ;;  %v634_v5 = vmul.f32 0.2, %v630_v0 }
 0x1a4   : > { %v635_v6 = vmax.f32 %v627_v60, %v631_v2  ;;  %v632_v7 = vmul.f32 0.2, %v628_v3 }
 0x1a5   : > { %v648_v8 = vmul.f32 %v760_v1, %v637_v4  ;;  %v638_v9 = vmax.f32 %v630_v0, %v634_v5 }
 0x1a6   : > { %v646_v10 = vmul.f32 %v760_v1, %v635_v6  ;;  %v636_v11 = vmax.f32 %v628_v3, %v632_v7 }
 0x1a7   : > { %v769_v12 = vpack.c.bf16 %v648_v8, %v648_v8  ;;  %v649_v13 = vmul.f32 %v760_v1, %v638_v9 }
 0x1a8   : > { %v767_v14 = vpack.c.bf16 %v646_v10, %v646_v10  ;;  %v647_v15 = vmul.f32 %v760_v1, %v636_v11 }
 0x1a9   : > { %680 = vst.msk [vmem:[%s1084_s27 + $0x1c] sm:$0xf] %vm677_vm3, %v769_v12  ;;  %v770_v16 = vpack.c.bf16 %v649_v13, %v649_v13 }
 0x1aa   : > { %678 = vst.msk [vmem:[%s1084_s27 + $0x4] sm:$0xf] %vm677_vm3, %v767_v14  ;;  %v768_v17 = vpack.c.bf16 %v647_v15, %v647_v15 }
 0x1ab   : > { %681 = vst.msk [vmem:[%s1084_s27 + $0x28] sm:$0xf] %vm677_vm3, %v770_v16 }
 0x1ac   : > { %679 = vst.msk [vmem:[%s1084_s27 + $0x10] sm:$0xf] %vm677_vm3, %v768_v17 }
 0x1ad PF: > { %s14_s15 = sadd.s32 1, %s941_s15  }
 0x1ae   : > { %p11_p4 = scmp.ge.s32.totalorder %s14_s15, 4  }
 0x1b0   :  { %13 = sbr.rel (!%p11_p4) target bundleno = 1 (0x1), region = 66 }

// kernel: unet_core_forward.12
= control target key start
LH: loop header
LB: loop body
LE: loop exit
PB: predicated region body
PF: predicated region fallthrough
CT: control target
= control target key end

     0   :  { %s972_s15 = smov 0   ;;  %s1112_s0 = inlined_call_operand.vmem [shape: bf16[2,128,260], index: 0, kind: input, shape index: {}]   ;;  %s1113_s1 = inlined_call_operand.vmem [shape: f32[1,4], index: 1, kind: input, shape index: {}]   ;;  %s1114_s2 = inlined_call_operand.vmem [shape: bf16[32,512], index: 2, kind: input, shape index: {}]   ;;  %s1115_s3 = inlined_call_operand.vmem [shape: f32[32,1], index: 3, kind: input, shape index: {}]   ;;  %s1116_s4 = inlined_call_operand.vmem [shape: bf16[2,32,260], index: 4, kind: output, shape index: {}]  }
   0x1 LB: > { %s737_s16 = sadd.s32 4294967295, %s941_s15   ;;  %p741_p0 = scmp.ge.s32.totalorder %s941_s15, 1  ;;  %s941_s15 = sphi %s972_s15, %s14_s15  }
   0x2   : > { %p162_p1 = scmp.lt.s32.totalorder %s941_s15, 3 }
   0x4   : > { %p163_p2 = pnand %p741_p0, %p162_p1 }
   0x5   : > { %p188_p3 = scmp.lt.s32.totalorder (!%p163_p2), %s737_s16, 1  ;;  %s943_s21 = smov (!%p163_p2), 127   ;;  %v927_v6 = vld [vmem:[%s1114_s2 + $0x4] ss:$16 sps:$4 sm:$0xff] (!%p163_p2)   ;;  %v929_v8 = vld [vmem:[%s1114_s2 + $0x8] ss:$16 sps:$4 sm:$0xff] (!%p163_p2)  }
   0x6   : > { %166 = sbr.rel (%p163_p2) target bundleno = 429 (0x1ad), region = 36  ;;  %s944_s22 = smov (!%p163_p2), 126   ;;  %827 = vmatprep.mubr.bf16.mxu1 (!%p163_p2), %v927_v6  ;;  %867 = vmatprep.mubr.bf16.mxu0 (!%p163_p2), %v929_v8  ;;  %v604_v10 = vld [vmem:[%s1115_s3 + $0x8] sm:$0xff] (!%p163_p2)  ;;  %v603_v11 = vld [vmem:[%s1115_s3] sm:$0xff] (!%p163_p2)  ;;  %v946_v12 = vmov (!%p163_p2), 0   ;;  %v605_v13 = vld [vmem:[%s1115_s3 + $0x10] sm:$0xff] (!%p163_p2) }
   0x7   : > { %s945_s27 = smov (!%p163_p2), 125   ;;  %918 = vset.pattern.permute.xlu1 (!%p163_p2), %v946_v12  ;;  %917 = vset.pattern.permute.xlu0 (!%p163_p2), %v946_v12  ;;  %v606_v14 = vld [vmem:[%s1115_s3 + $0x18] sm:$0xff] (!%p163_p2)  ;;  %v928_v31 = vld [vmem:[%s1114_s2 + $0x24] ss:$16 sps:$4 sm:$0xff] (!%p163_p2)   ;;  %v931_v33 = vld [vmem:[%s1114_s2] ss:$16 sps:$4 sm:$0xff] (!%p163_p2)  }
   0x8   : > { %v930_v34 = vld [vmem:[%s1114_s2 + $0x28] ss:$16 sps:$4 sm:$0xff] (!%p163_p2)   ;;  %v933_v36 = vld [vmem:[%s1114_s2 + $0xc] ss:$16 sps:$4 sm:$0xff] (!%p163_p2)   ;;  %v932_v43 = vld [vmem:[%s1114_s2 + $0x20] ss:$16 sps:$4 sm:$0xff] (!%p163_p2)  }
   0x9   : > { %v934_v44 = vld [vmem:[%s1114_s2 + $0x2c] ss:$16 sps:$4 sm:$0xff] (!%p163_p2)   ;;  %vm654_vm0 = vcmask (!%p163_p2), 1043488   ;;  %vm655_vm1 = vcmask (!%p163_p2), 31748   ;;  %vm677_vm3 = vcmask (!%p163_p2), 27648  }
   0xa   : > { %vm656_vm2 = vmor (!%p163_p2), %vm655_vm1, %vm654_vm0 }
   0xd   : > { %s1118_s16 = smov (!%p188_p3, %s737_s16), 1 }
   0xe   : > { %s903_s17 = smul.u32 192, %s1118_s16 }
   0xf   : > { %s904_s24 = smul.u32 48, %s1118_s16 }
  0x10   : > { %s192_s20 = scalar_lea.vmem %s1112_s0, %s903_s17 }
  0x11   : > { %v986_v0 = vld [vmem:[%s192_s20 + $0x4] ss:$12 sps:$4 sm:$0xff]   ;;  %v988_v1 = vld [vmem:[%s192_s20 + $0x1c] ss:$12 sps:$4 sm:$0xff]   ;;  %v993_v2 = vld [vmem:[%s192_s20 + $0x34] ss:$12 sps:$4 sm:$0xff]  }
  0x12   : > { %275 = vrot.lane.b32.xlu0 %v986_v0, %s943_s21  ;;  %277 = vrot.lane.b32.xlu1 %v988_v1, %s943_s21  ;;  %v997_v3 = vld [vmem:[%s192_s20 + $0x4c] ss:$12 sps:$4 sm:$0xff]   ;;  %v1001_v4 = vld [vmem:[%s192_s20 + $0x64] ss:$12 sps:$4 sm:$0xff]  }
  0x13   : > { %v1005_v5 = vld [vmem:[%s192_s20 + $0x7c] ss:$12 sps:$4 sm:$0xff]   ;;  %v1012_v7 = vld [vmem:[%s192_s20 + $0x94] ss:$12 sps:$4 sm:$0xff]   ;;  %v1019_v9 = vld [vmem:[%s192_s20 + $0xac] ss:$12 sps:$4 sm:$0xff]  }
  0x16   : > { %433 = vrot.lane.b32.xlu0 %v986_v0, %s944_s22  ;;  %435 = vrot.lane.b32.xlu1 %v988_v1, %s944_s22 }
  0x1a   : > { %279 = vrot.lane.b32.xlu0 %v993_v2, %s943_s21  ;;  %437 = vrot.lane.b32.xlu1 %v993_v2, %s944_s22 }
  0x1e   : > { %281 = vrot.lane.b32.xlu0 %v997_v3, %s943_s21  ;;  %439 = vrot.lane.b32.xlu1 %v997_v3, %s944_s22 }
  0x22   : > { %283 = vrot.lane.b32.xlu0 %v1001_v4, %s943_s21  ;;  %441 = vrot.lane.b32.xlu1 %v1001_v4, %s944_s22 }
  0x26   : > { %285 = vrot.lane.b32.xlu0 %v1005_v5, %s943_s21  ;;  %443 = vrot.lane.b32.xlu1 %v1005_v5, %s944_s22 }
  0x2a   : > { %287 = vrot.lane.b32.xlu0 %v1012_v7, %s943_s21  ;;  %445 = vrot.lane.b32.xlu1 %v1012_v7, %s944_s22 }
  0x2e   : > { %289 = vrot.lane.b32.xlu0 %v1019_v9, %s943_s21  ;;  %447 = vrot.lane.b32.xlu1 %v1019_v9, %s944_s22 }
  0x32   : > { %526 = vrot.lane.b32.xlu0 %v986_v0, %s945_s27  ;;  %528 = vrot.lane.b32.xlu1 %v988_v1, %s945_s27 }
  0x36   : > { %530 = vrot.lane.b32.xlu0 %v993_v2, %s945_s27  ;;  %532 = vrot.lane.b32.xlu1 %v997_v3, %s945_s27 }
  0x3a   : > { %534 = vrot.lane.b32.xlu0 %v1001_v4, %s945_s27  ;;  %536 = vrot.lane.b32.xlu1 %v1005_v5, %s945_s27 }
  0x3e   : > { %538 = vrot.lane.b32.xlu0 %v1012_v7, %s945_s27  ;;  %540 = vrot.lane.b32.xlu1 %v1019_v9, %s945_s27  ;;  %s1084_s27 = scalar_lea.vmem %s1116_s4, %s904_s24 }
  0x3f   : > { %650 = vst [vmem:[%s1084_s27] sm:$0xf] %v946_v12  ;;  %651 = vst [vmem:[%s1084_s27 + $0xc] sm:$0xf] %v946_v12 }
  0x40   : > { %652 = vst [vmem:[%s1084_s27 + $0x18] sm:$0xf] %v946_v12  ;;  %653 = vst [vmem:[%s1084_s27 + $0x24] sm:$0xf] %v946_v12 }
  0x41   : > { %659 = vst.msk [vmem:[%s1084_s27 + $0x1c] sm:$0xff] %vm656_vm2, %v946_v12  ;;  %657 = vst.msk [vmem:[%s1084_s27 + $0x4] sm:$0xff] %vm656_vm2, %v946_v12 }
  0x42   : > { %614 = vperm.xlu1 %918, %v604_v10   ;;  %609 = vperm.xlu0 %917, %v603_v11   ;;  %658 = vst.msk [vmem:[%s1084_s27 + $0x10] sm:$0xff] %vm656_vm2, %v946_v12  ;;  %660 = vst.msk [vmem:[%s1084_s27 + $0x28] sm:$0xff] %vm656_vm2, %v946_v12 }
  0x46   : > { %619 = vperm.xlu1 %918, %v605_v13   ;;  %624 = vperm.xlu0 %917, %v606_v14  }
  0x84   : > { %v276_v15 = vpop.permute.xlu0 %275  ;;  %v278_v16 = vpop.permute.xlu1 %277 }
  0x85   : > { %811 = vmatprep.subr.bf16.mxu1 %v276_v15 }
  0x86   : > { %812 = vmatpush3.bf16.msra.mxu1 %v276_v15 }
  0x87   : > { %813 = vmatprep.subr.bf16.mxu1 %v278_v16 }
  0x88   : > { %v434_v17 = vpop.permute.xlu0 %433  ;;  %v436_v18 = vpop.permute.xlu1 %435 }
  0x89   : > { %851 = vmatprep.subr.bf16.mxu0 %v434_v17 }
  0x8a   : > { %814 = vmatpush3.bf16.msra.mxu1 %v278_v16  ;;  %852 = vmatpush3.bf16.msra.mxu0 %v434_v17 }
  0x8b   : > { %853 = vmatprep.subr.bf16.mxu0 %v436_v18 }
  0x8c   : > { %v280_v19 = vpop.permute.xlu0 %279  ;;  %v438_v20 = vpop.permute.xlu1 %437 }
  0x8d   : > { %815 = vmatprep.subr.bf16.mxu1 %v280_v19 }
  0x8e   : > { %816 = vmatpush3.bf16.msra.mxu1 %v280_v19  ;;  %854 = vmatpush3.bf16.msra.mxu0 %v436_v18 }
  0x8f   : > { %855 = vmatprep.subr.bf16.mxu0 %v438_v20 }
  0x90   : > { %v282_v21 = vpop.permute.xlu0 %281  ;;  %v440_v22 = vpop.permute.xlu1 %439 }
  0x91   : > { %817 = vmatprep.subr.bf16.mxu1 %v282_v21 }
  0x92   : > { %818 = vmatpush3.bf16.msra.mxu1 %v282_v21  ;;  %856 = vmatpush3.bf16.msra.mxu0 %v438_v20 }
  0x93   : > { %857 = vmatprep.subr.bf16.mxu0 %v440_v22 }
  0x94   : > { %v284_v23 = vpop.permute.xlu0 %283  ;;  %v442_v24 = vpop.permute.xlu1 %441 }
  0x95   : > { %819 = vmatprep.subr.bf16.mxu1 %v284_v23 }
  0x96   : > { %820 = vmatpush3.bf16.msra.mxu1 %v284_v23  ;;  %858 = vmatpush3.bf16.msra.mxu0 %v440_v22 }
  0x97   : > { %859 = vmatprep.subr.bf16.mxu0 %v442_v24 }
  0x98   : > { %v286_v25 = vpop.permute.xlu0 %285  ;;  %v444_v26 = vpop.permute.xlu1 %443 }
  0x99   : > { %821 = vmatprep.subr.bf16.mxu1 %v286_v25 }
  0x9a   : > { %822 = vmatpush3.bf16.msra.mxu1 %v286_v25  ;;  %860 = vmatpush3.bf16.msra.mxu0 %v442_v24 }
  0x9b   : > { %861 = vmatprep.subr.bf16.mxu0 %v444_v26 }
  0x9c   : > { %v288_v27 = vpop.permute.xlu0 %287  ;;  %v446_v28 = vpop.permute.xlu1 %445 }
  0x9d   : > { %823 = vmatprep.subr.bf16.mxu1 %v288_v27 }
  0x9e   : > { %824 = vmatpush3.bf16.msra.mxu1 %v288_v27  ;;  %862 = vmatpush3.bf16.msra.mxu0 %v444_v26 }
  0x9f   : > { %863 = vmatprep.subr.bf16.mxu0 %v446_v28 }
  0xa0   : > { %v290_v29 = vpop.permute.xlu0 %289  ;;  %v448_v30 = vpop.permute.xlu1 %447 }
  0xa1   : > { %825 = vmatprep.subr.bf16.mxu1 %v290_v29 }
  0xa2   : > { %826 = vmatpush3.bf16.msra.mxu1 %v290_v29  ;;  %864 = vmatpush3.bf16.msra.mxu0 %v446_v28 }
  0xa3   : > { %831 = vmatprep.subr.bf16.mxu1 %v986_v0  ;;  %865 = vmatprep.subr.bf16.mxu0 %v448_v30 }
  0xa4   : > { %v527_v32 = vpop.permute.xlu0 %526  ;;  %v529_v35 = vpop.permute.xlu1 %528 }
  0xa5   : > { %828 = vmatmul.mubr.bf16.vlgmr.msra.gmra.mrb[0].mxu1 %v928_v31 }
  0xa6   : > { %832 = vmatpush3.bf16.msra.mxu1 %v986_v0  ;;  %866 = vmatpush3.bf16.msra.mxu0 %v448_v30 }
  0xa7   : > { %833 = vmatprep.subr.bf16.mxu1 %v988_v1  ;;  %871 = vmatprep.subr.bf16.mxu0 %v527_v32 }
  0xa8   : > { %847 = vmatprep.mubr.bf16.mxu1 %v931_v33  ;;  %v531_v37 = vpop.permute.xlu0 %530  ;;  %v533_v38 = vpop.permute.xlu1 %532 }
  0xa9   : > { %868 = vmatmul.mubr.bf16.vlgmr.msra.gmra.mrb[0].mxu0 %v930_v34 }
  0xaa   : > { %834 = vmatpush3.bf16.msra.mxu1 %v988_v1  ;;  %872 = vmatpush3.bf16.msra.mxu0 %v527_v32  ;;  %v760_v1 = vld [vmem:[%s1113_s1] ss:$0 sm:$0xff] }
  0xab   : > { %835 = vmatprep.subr.bf16.mxu1 %v993_v2  ;;  %873 = vmatprep.subr.bf16.mxu0 %v529_v35 }
  0xac   : > { %887 = vmatprep.mubr.bf16.mxu0 %v933_v36  ;;  %v535_v39 = vpop.permute.xlu0 %534  ;;  %v537_v40 = vpop.permute.xlu1 %536 }
  0xae   : > { %836 = vmatpush3.bf16.msra.mxu1 %v993_v2  ;;  %874 = vmatpush3.bf16.msra.mxu0 %v529_v35 }
  0xaf   : > { %837 = vmatprep.subr.bf16.mxu1 %v997_v3  ;;  %875 = vmatprep.subr.bf16.mxu0 %v531_v37 }
  0xb0   : > { %v539_v41 = vpop.permute.xlu0 %538  ;;  %v541_v42 = vpop.permute.xlu1 %540 }
  0xb2   : > { %838 = vmatpush3.bf16.msra.mxu1 %v997_v3  ;;  %876 = vmatpush3.bf16.msra.mxu0 %v531_v37 }
  0xb3   : > { %839 = vmatprep.subr.bf16.mxu1 %v1001_v4  ;;  %877 = vmatprep.subr.bf16.mxu0 %v533_v38 }
  0xb6   : > { %840 = vmatpush3.bf16.msra.mxu1 %v1001_v4  ;;  %878 = vmatpush3.bf16.msra.mxu0 %v533_v38 }
  0xb7   : > { %841 = vmatprep.subr.bf16.mxu1 %v1005_v5  ;;  %879 = vmatprep.subr.bf16.mxu0 %v535_v39 }
  0xba   : > { %842 = vmatpush3.bf16.msra.mxu1 %v1005_v5  ;;  %880 = vmatpush3.bf16.msra.mxu0 %v535_v39 }
  0xbb   : > { %843 = vmatprep.subr.bf16.mxu1 %v1012_v7  ;;  %881 = vmatprep.subr.bf16.mxu0 %v537_v40 }
  0xbe   : > { %844 = vmatpush3.bf16.msra.mxu1 %v1012_v7  ;;  %882 = vmatpush3.bf16.msra.mxu0 %v537_v40 }
  0xbf   : > { %845 = vmatprep.subr.bf16.mxu1 %v1019_v9  ;;  %883 = vmatprep.subr.bf16.mxu0 %v539_v41 }
  0xc1   : > { %v615_v45 = vpop.permute.xlu1 %614  ;;  %v610_v48 = vpop.permute.xlu0 %609 }
  0xc2   : > { %846 = vmatpush3.bf16.msra.mxu1 %v1019_v9  ;;  %884 = vmatpush3.bf16.msra.mxu0 %v539_v41 }
  0xc3   : > { %885 = vmatprep.subr.bf16.mxu0 %v541_v42 }
  0xc5   : > { %848 = vmatmul.mubr.bf16.vlgmr.msra.gmra.mrb[0].mxu1 %v932_v43  ;;  %v620_v52 = vpop.permute.xlu1 %619  ;;  %v625_v61 = vpop.permute.xlu0 %624 }
  0xc6   : > { %886 = vmatpush3.bf16.msra.mxu0 %v541_v42 }
  0xc9   : > { %888 = vmatmul.mubr.bf16.vlgmr.msra.gmra.mrb[0].mxu0 %v934_v44 }
 0x198   : > { %v849_v46 = vpop.f32.mrb[0].mxu1 }
 0x199   : > { %v402_v47 = vpop.f32.mrb[1].mxu1 }
 0x19a   : > { %v850_v49 = vpop.f32.mrb[2].mxu1 }
 0x19b   : > { %v405_v50 = vpop.f32.mrb[3].mxu1 }
 0x19c   : > { %v889_v51 = vpop.f32.mrb[0].mxu0 }
 0x19d   : > { %v891_v53 = vadd.f32 %v889_v51, %v849_v46  ;;  %v584_v54 = vpop.f32.mrb[1].mxu0 }
 0x19e   : > { %v892_v55 = vadd.f32 %v584_v54, %v402_v47  ;;  %v890_v56 = vpop.f32.mrb[2].mxu0 }
 0x19f   : > { %v629_v57 = vadd.f32 %v891_v53, %v620_v52  ;;  %v893_v58 = vadd.f32 %v890_v56, %v850_v49  ;;  %v587_v59 = vpop.f32.mrb[3].mxu0 }
 0x1a0   : > { %v627_v60 = vadd.f32 %v892_v55, %v610_v48  ;;  %v894_v62 = vadd.f32 %v587_v59, %v405_v50 }
 0x1a1   : > { %v633_v63 = vmul.f32 0.2, %v629_v57  ;;  %v630_v0 = vadd.f32 %v893_v58, %v625_v61 }
 0x1a2   : > { %v631_v2 = vmul.f32 0.2, %v627_v60  ;;  %v628_v3 = vadd.f32 %v894_v62, %v615_v45 }
 0x1a3   : > { %v637_v4 = vmax.f32 %v629_v57, %v633_v63  ;;  %v634_v5 = vmul.f32 0.2, %v630_v0 }
 0x1a4   : > { %v635_v6 = vmax.f32 %v627_v60, %v631_v2  ;;  %v632_v7 = vmul.f32 0.2, %v628_v3 }
 0x1a5   : > { %v648_v8 = vmul.f32 %v760_v1, %v637_v4  ;;  %v638_v9 = vmax.f32 %v630_v0, %v634_v5 }
 0x1a6   : > { %v646_v10 = vmul.f32 %v760_v1, %v635_v6  ;;  %v636_v11 = vmax.f32 %v628_v3, %v632_v7 }
 0x1a7   : > { %v769_v12 = vpack.c.bf16 %v648_v8, %v648_v8  ;;  %v649_v13 = vmul.f32 %v760_v1, %v638_v9 }
 0x1a8   : > { %v767_v14 = vpack.c.bf16 %v646_v10, %v646_v10  ;;  %v647_v15 = vmul.f32 %v760_v1, %v636_v11 }
 0x1a9   : > { %680 = vst.msk [vmem:[%s1084_s27 + $0x1c] sm:$0xf] %vm677_vm3, %v769_v12  ;;  %v770_v16 = vpack.c.bf16 %v649_v13, %v649_v13 }
 0x1aa   : > { %678 = vst.msk [vmem:[%s1084_s27 + $0x4] sm:$0xf] %vm677_vm3, %v767_v14  ;;  %v768_v17 = vpack.c.bf16 %v647_v15, %v647_v15 }
 0x1ab   : > { %681 = vst.msk [vmem:[%s1084_s27 + $0x28] sm:$0xf] %vm677_vm3, %v770_v16 }
 0x1ac   : > { %679 = vst.msk [vmem:[%s1084_s27 + $0x10] sm:$0xf] %vm677_vm3, %v768_v17 }
 0x1ad PF: > { %s14_s15 = sadd.s32 1, %s941_s15  }
 0x1ae   : > { %p11_p4 = scmp.ge.s32.totalorder %s14_s15, 4  }
 0x1b0   :  { %13 = sbr.rel (!%p11_p4) target bundleno = 1 (0x1), region = 66 }

// kernel: unet_core_forward.13
= control target key start
LH: loop header
LB: loop body
LE: loop exit
PB: predicated region body
PF: predicated region fallthrough
CT: control target
= control target key end

     0   :  { %s1305_s15 = smov 0   ;;  %s1424_s0 = inlined_call_operand.vmem [shape: bf16[2,32,265], index: 0, kind: input, shape index: {}]   ;;  %s1425_s1 = inlined_call_operand.vmem [shape: f32[1,9], index: 1, kind: input, shape index: {}]   ;;  %s1426_s2 = inlined_call_operand.vmem [shape: bf16[32,288], index: 2, kind: input, shape index: {}]   ;;  %s1427_s3 = inlined_call_operand.vmem [shape: f32[32,1], index: 3, kind: input, shape index: {}]   ;;  %s1428_s4 = inlined_call_operand.vmem [shape: bf16[2,32,265], index: 4, kind: output, shape index: {}]  }
   0x1 LB: > { %s1035_s16 = sadd.s32 4294967295, %s1266_s15   ;;  %p1039_p0 = scmp.ge.s32.totalorder %s1266_s15, 1  ;;  %s1266_s15 = sphi %s1305_s15, %s14_s15  }
   0x2   : > { %p162_p1 = scmp.lt.s32.totalorder %s1266_s15, 3 }
   0x4   : > { %p163_p2 = pnand %p1039_p0, %p162_p1 }
   0x5   : > { %p188_p3 = scmp.lt.s32.totalorder (!%p163_p2), %s1035_s16, 1  ;;  %v1254_v0 = vld [vmem:[%s1426_s2 + $0x4] ss:$12 sps:$4 sm:$0xff] (!%p163_p2)   ;;  %vm250_vm0 = vcmask (!%p163_p2), 261120   ;;  %s1268_s23 = smov (!%p163_p2), 127   ;;  %v1278_v10 = vmov (!%p163_p2), 0  }
   0x6   : > { %166 = sbr.rel (%p163_p2) target bundleno = 431 (0x1af), region = 36  ;;  %1155 = vmatprep.mubr.msk.bf16.mxu0 (!%p163_p2), %vm250_vm0, %v1254_v0  ;;  %s1269_s24 = smov (!%p163_p2), 3   ;;  %v1256_v7 = vld [vmem:[%s1426_s2 + $0x1c] ss:$12 sps:$4 sm:$0xff] (!%p163_p2)   ;;  %v1337_v8 = vld [vmem:[%s1426_s2] ss:$12 sps:$4 sm:$0xff] (!%p163_p2)   ;;  %1245 = vset.pattern.permute.xlu1 (!%p163_p2), %v1278_v10 }
   0x7   : > { %s1270_s29 = smov (!%p163_p2), 96   ;;  %v1343_v9 = vld [vmem:[%s1426_s2 + $0x18] ss:$12 sps:$4 sm:$0xff] (!%p163_p2)   ;;  %s1271_s6 = smov (!%p163_p2), 4   ;;  %1244 = vset.pattern.permute.xlu0 (!%p163_p2), %v1278_v10  ;;  %v902_v11 = vld [vmem:[%s1427_s3 + $0x8] sm:$0xff] (!%p163_p2)  ;;  %v903_v13 = vld [vmem:[%s1427_s3 + $0x10] sm:$0xff] (!%p163_p2) }
   0x8   : > { %s1272_s7 = smov (!%p163_p2), 126   ;;  %s1273_s8 = smov (!%p163_p2), 64   ;;  %v901_v12 = vld [vmem:[%s1427_s3] sm:$0xff] (!%p163_p2)  ;;  %v904_v14 = vld [vmem:[%s1427_s3 + $0x18] sm:$0xff] (!%p163_p2)  ;;  %vm245_vm1 = vcmask (!%p163_p2), 23552   ;;  %vm314_vm2 = vcmask (!%p163_p2), 31744  }
   0x9   : > { %s1274_s9 = smov (!%p163_p2), 2   ;;  %s1275_s10 = smov (!%p163_p2), 125   ;;  %vm386_vm3 = vcmask (!%p163_p2), 15360   ;;  %v1258_v47 = vld [vmem:[%s1426_s2 + $0x8] ss:$12 sps:$4 sm:$0xff] (!%p163_p2)   ;;  %vm462_vm4 = vcmask (!%p163_p2), 7168  }
   0xa   : > { %s1276_s11 = smov (!%p163_p2), 32   ;;  %s1277_s12 = smov (!%p163_p2), 1   ;;  %v1259_v58 = vld [vmem:[%s1426_s2 + $0x20] ss:$12 sps:$4 sm:$0xff] (!%p163_p2)   ;;  %vm952_vm5 = vcmask (!%p163_p2), 1043528   ;;  %vm953_vm6 = vcmask (!%p163_p2), 72708  }
   0xb   : > { %vm954_vm7 = vmor (!%p163_p2), %vm953_vm6, %vm952_vm5  ;;  %vm975_vm8 = vcmask (!%p163_p2), 68608  }
   0xd   : > { %s1430_s16 = smov (!%p188_p3, %s1035_s16), 1 }
   0xe   : > { %s1223_s19 = smul.u32 48, %s1430_s16  ;;  %s1279_s16 = smov 124  }
  0x10   : > { %s192_s22 = scalar_lea.vmem %s1424_s0, %s1223_s19  ;;  %s1355_s17 = scalar_lea.vmem %s1428_s4, %s1223_s19 }
  0x11   : > { %v1325_v1 = vld [vmem:[%s192_s22 + $0x4] ss:$12 sps:$4 sm:$0xff]   ;;  %v1247_v2 = vld [vmem:[%s192_s22] ss:$12 sps:$4 sm:$0xff]   ;;  %v1252_v5 = vld [vmem:[%s192_s22 + $0x1c] ss:$12 sps:$4 sm:$0xff]  }
  0x12   : > { %619 = vrot.lane.b32.xlu1 %v1325_v1, %s1268_s23  ;;  %v1249_v3 = vld [vmem:[%s192_s22 + $0x18] ss:$12 sps:$4 sm:$0xff]   ;;  %1151 = vmatprep.subr.bf16.mxu0 %v1325_v1  ;;  %v1253_v6 = vld [vmem:[%s192_s22 + $0x1c] ss:$12 sps:$4 sm:$0xff]   ;;  %948 = vst [vmem:[%s1355_s17] sm:$0xf] %v1278_v10 }
  0x13   : > { %237 = vrot.lane.b32.xlu0 %v1247_v2, %s1269_s24  ;;  %v1251_v4 = vld [vmem:[%s192_s22 + $0x4] ss:$12 sps:$4 sm:$0xff]   ;;  %1152 = vmatpush3.bf16.msra.mxu0 %v1325_v1  ;;  %949 = vst [vmem:[%s1355_s17 + $0xc] sm:$0xf] %v1278_v10  ;;  %950 = vst [vmem:[%s1355_s17 + $0x18] sm:$0xf] %v1278_v10 }
  0x14   : > { %1153 = vmatprep.subr.bf16.mxu0 %v1252_v5  ;;  %951 = vst [vmem:[%s1355_s17 + $0x24] sm:$0xf] %v1278_v10  ;;  %955 = vst.msk [vmem:[%s1355_s17 + $0x4] sm:$0xff] %vm954_vm7, %v1278_v10 }
  0x15   : > { %956 = vst.msk [vmem:[%s1355_s17 + $0x10] sm:$0xff] %vm954_vm7, %v1278_v10  ;;  %957 = vst.msk [vmem:[%s1355_s17 + $0x1c] sm:$0xff] %vm954_vm7, %v1278_v10 }
  0x16   : > { %241 = vrot.lane.b32.xlu1 %v1249_v3, %s1269_s24  ;;  %958 = vst.msk [vmem:[%s1355_s17 + $0x28] sm:$0xff] %vm954_vm7, %v1278_v10 }
  0x17   : > { %239 = vrot.lane.b32.xlu0 %v1251_v4, %s1269_s24  ;;  %1154 = vmatpush3.bf16.msra.mxu0 %v1252_v5 }
  0x1a   : > { %621 = vrot.lane.b32.xlu1 %v1252_v5, %s1268_s23  ;;  %1156 = vmatmul.mubr.msk.bf16.vlgmr.msra.gmra.mrb[0].mxu0 %vm250_vm0, %v1256_v7 }
  0x1b   : > { %243 = vrot.lane.b32.xlu0 %v1253_v6, %s1269_s24 }
  0x1e   : > { %615 = vrot.lane.b32.xlu1 %v1254_v0, %s1270_s29 }
  0x1f   : > { %217 = vrot.lane.b32.xlu0 %v1337_v8, %s1270_s29 }
  0x22   : > { %617 = vrot.lane.b32.xlu1 %v1256_v7, %s1270_s29 }
  0x23   : > { %219 = vrot.lane.b32.xlu0 %v1343_v9, %s1270_s29 }
  0x26   : > { %308 = vrot.lane.b32.xlu1 %v1251_v4, %s1271_s6 }
  0x27   : > { %306 = vrot.lane.b32.xlu0 %v1247_v2, %s1271_s6 }
  0x2a   : > { %310 = vrot.lane.b32.xlu1 %v1249_v3, %s1271_s6 }
  0x2b   : > { %688 = vrot.lane.b32.xlu0 %v1325_v1, %s1272_s7 }
  0x2e   : > { %690 = vrot.lane.b32.xlu1 %v1252_v5, %s1272_s7 }
  0x2f   : > { %312 = vrot.lane.b32.xlu0 %v1253_v6, %s1271_s6 }
  0x32   : > { %686 = vrot.lane.b32.xlu1 %v1256_v7, %s1273_s8 }
  0x33   : > { %684 = vrot.lane.b32.xlu0 %v1254_v0, %s1273_s8 }
  0x36   : > { %380 = vrot.lane.b32.xlu1 %v1251_v4, %s1274_s9 }
  0x37   : > { %378 = vrot.lane.b32.xlu0 %v1247_v2, %s1274_s9 }
  0x3a   : > { %382 = vrot.lane.b32.xlu1 %v1249_v3, %s1274_s9 }
  0x3b   : > { %757 = vrot.lane.b32.xlu0 %v1325_v1, %s1275_s10 }
  0x3e   : > { %759 = vrot.lane.b32.xlu1 %v1252_v5, %s1275_s10 }
  0x3f   : > { %384 = vrot.lane.b32.xlu0 %v1253_v6, %s1274_s9 }
  0x42   : > { %753 = vrot.lane.b32.xlu1 %v1254_v0, %s1276_s11 }
  0x43   : > { %374 = vrot.lane.b32.xlu0 %v1337_v8, %s1273_s8 }
  0x46   : > { %755 = vrot.lane.b32.xlu1 %v1256_v7, %s1276_s11 }
  0x47   : > { %376 = vrot.lane.b32.xlu0 %v1343_v9, %s1273_s8 }
  0x4a   : > { %456 = vrot.lane.b32.xlu1 %v1251_v4, %s1277_s12 }
  0x4b   : > { %454 = vrot.lane.b32.xlu0 %v1247_v2, %s1277_s12 }
  0x4e   : > { %458 = vrot.lane.b32.xlu1 %v1249_v3, %s1277_s12 }
  0x4f   : > { %836 = vrot.lane.b32.xlu0 %v1325_v1, %s1279_s16 }
  0x52   : > { %838 = vrot.lane.b32.xlu1 %v1252_v5, %s1279_s16 }
  0x53   : > { %460 = vrot.lane.b32.xlu0 %v1253_v6, %s1277_s12 }
  0x56   : > { %452 = vrot.lane.b32.xlu1 %v1343_v9, %s1276_s11 }
  0x57   : > { %450 = vrot.lane.b32.xlu0 %v1337_v8, %s1276_s11 }
  0x5a   : > { %912 = vperm.xlu1 %1245, %v902_v11  }
  0x5b   : > { %907 = vperm.xlu0 %1244, %v901_v12  }
  0x5e   : > { %917 = vperm.xlu1 %1245, %v903_v13  }
  0x5f   : > { %922 = vperm.xlu0 %1244, %v904_v14  }
  0x84   : > { %v620_v15 = vpop.permute.xlu1 %619 }
  0x85   : > { %v238_v16 = vpop.permute.xlu0 %237  ;;  %1159 = vmatprep.subr.bf16.mxu0 %v620_v15 }
  0x86   : > { %1160 = vmatpush3.bf16.msra.mxu0 %v620_v15 }
  0x88   : > { %v242_v17 = vpop.permute.xlu1 %241 }
  0x89   : > { %v240_v18 = vpop.permute.xlu0 %239 }
  0x8a   : > { %v246_v19 = vsel %vm245_vm1, %v238_v16, %v240_v18  ;;  %v1072_v18 = vld [vmem:[%s1425_s1] ss:$0 sm:$0xff] }
  0x8b   : > { %1119 = vmatprep.subr.bf16.mxu1 %v246_v19 }
  0x8c   : > { %1120 = vmatpush3.bf16.msra.mxu1 %v246_v19  ;;  %v622_v20 = vpop.permute.xlu1 %621 }
  0x8d   : > { %v244_v21 = vpop.permute.xlu0 %243  ;;  %1161 = vmatprep.subr.bf16.mxu0 %v622_v20 }
  0x8e   : > { %v247_v22 = vsel %vm245_vm1, %v242_v17, %v244_v21  ;;  %1162 = vmatpush3.bf16.msra.mxu0 %v622_v20 }
  0x8f   : > { %1121 = vmatprep.subr.bf16.mxu1 %v247_v22 }
  0x90   : > { %1122 = vmatpush3.bf16.msra.mxu1 %v247_v22  ;;  %v616_v23 = vpop.permute.xlu1 %615 }
  0x91   : > { %v218_v24 = vpop.permute.xlu0 %217  ;;  %1163 = vmatprep.mubr.msk.bf16.mxu0 %vm250_vm0, %v616_v23 }
  0x92   : > { %1123 = vmatprep.mubr.msk.bf16.mxu1 %vm250_vm0, %v218_v24 }
  0x94   : > { %v618_v25 = vpop.permute.xlu1 %617 }
  0x95   : > { %v220_v26 = vpop.permute.xlu0 %219  ;;  %1164 = vmatmul.mubr.msk.bf16.vlgmr.msra.gmra.mrb[0].mxu0 %vm250_vm0, %v618_v25 }
  0x96   : > { %1124 = vmatmul.mubr.msk.bf16.vlgmr.msra.gmra.mrb[0].mxu1 %vm250_vm0, %v220_v26 }
  0x97   : > { %1131 = vmatprep.mubr.msk.bf16.mxu1 %vm250_vm0, %v1337_v8 }
  0x98   : > { %v309_v27 = vpop.permute.xlu1 %308 }
  0x99   : > { %v307_v28 = vpop.permute.xlu0 %306 }
  0x9a   : > { %v315_v29 = vsel %vm314_vm2, %v307_v28, %v309_v27 }
  0x9b   : > { %1127 = vmatprep.subr.bf16.mxu1 %v315_v29 }
  0x9c   : > { %1128 = vmatpush3.bf16.msra.mxu1 %v315_v29  ;;  %v311_v30 = vpop.permute.xlu1 %310 }
  0x9d   : > { %v689_v31 = vpop.permute.xlu0 %688 }
  0x9e   : > { %1167 = vmatprep.subr.bf16.mxu0 %v689_v31 }
  0x9f   : > { %1168 = vmatpush3.bf16.msra.mxu0 %v689_v31 }
  0xa0   : > { %v691_v32 = vpop.permute.xlu1 %690 }
  0xa1   : > { %v313_v33 = vpop.permute.xlu0 %312  ;;  %1169 = vmatprep.subr.bf16.mxu0 %v691_v32 }
  0xa2   : > { %v316_v34 = vsel %vm314_vm2, %v311_v30, %v313_v33 }
  0xa3   : > { %1129 = vmatprep.subr.bf16.mxu1 %v316_v34  ;;  %1170 = vmatpush3.bf16.msra.mxu0 %v691_v32 }
  0xa4   : > { %1130 = vmatpush3.bf16.msra.mxu1 %v316_v34  ;;  %v687_v35 = vpop.permute.xlu1 %686 }
  0xa5   : > { %v685_v36 = vpop.permute.xlu0 %684 }
  0xa6   : > { %1171 = vmatprep.mubr.msk.bf16.mxu0 %vm250_vm0, %v685_v36 }
  0xa7   : > { %1172 = vmatmul.mubr.msk.bf16.vlgmr.msra.gmra.mrb[0].mxu0 %vm250_vm0, %v687_v35  ;;  %1132 = vmatmul.mubr.msk.bf16.vlgmr.msra.gmra.mrb[0].mxu1 %vm250_vm0, %v1343_v9 }
  0xa8   : > { %v381_v37 = vpop.permute.xlu1 %380 }
  0xa9   : > { %v379_v38 = vpop.permute.xlu0 %378 }
  0xaa   : > { %v387_v39 = vsel %vm386_vm3, %v379_v38, %v381_v37 }
  0xab   : > { %1135 = vmatprep.subr.bf16.mxu1 %v387_v39 }
  0xac   : > { %1136 = vmatpush3.bf16.msra.mxu1 %v387_v39  ;;  %v383_v40 = vpop.permute.xlu1 %382 }
  0xad   : > { %v758_v41 = vpop.permute.xlu0 %757 }
  0xae   : > { %1175 = vmatprep.subr.bf16.mxu0 %v758_v41 }
  0xaf   : > { %1176 = vmatpush3.bf16.msra.mxu0 %v758_v41 }
  0xb0   : > { %v760_v42 = vpop.permute.xlu1 %759 }
  0xb1   : > { %v385_v43 = vpop.permute.xlu0 %384  ;;  %1177 = vmatprep.subr.bf16.mxu0 %v760_v42 }
  0xb2   : > { %v388_v44 = vsel %vm386_vm3, %v383_v40, %v385_v43 }
  0xb3   : > { %1137 = vmatprep.subr.bf16.mxu1 %v388_v44  ;;  %1178 = vmatpush3.bf16.msra.mxu0 %v760_v42 }
  0xb4   : > { %1138 = vmatpush3.bf16.msra.mxu1 %v388_v44  ;;  %v754_v45 = vpop.permute.xlu1 %753 }
  0xb5   : > { %v375_v46 = vpop.permute.xlu0 %374  ;;  %1179 = vmatprep.mubr.msk.bf16.mxu0 %vm250_vm0, %v754_v45 }
  0xb6   : > { %1139 = vmatprep.mubr.msk.bf16.mxu1 %vm250_vm0, %v375_v46 }
  0xb8   : > { %v756_v48 = vpop.permute.xlu1 %755 }
  0xb9   : > { %v377_v49 = vpop.permute.xlu0 %376  ;;  %1180 = vmatmul.mubr.msk.bf16.vlgmr.msra.gmra.mrb[0].mxu0 %vm250_vm0, %v756_v48 }
  0xba   : > { %1140 = vmatmul.mubr.msk.bf16.vlgmr.msra.gmra.mrb[0].mxu1 %vm250_vm0, %v377_v49  ;;  %1187 = vmatprep.mubr.msk.bf16.mxu0 %vm250_vm0, %v1258_v47 }
  0xbc   : > { %v457_v50 = vpop.permute.xlu1 %456 }
  0xbd   : > { %v455_v51 = vpop.permute.xlu0 %454 }
  0xbe   : > { %v463_v52 = vsel %vm462_vm4, %v455_v51, %v457_v50 }
  0xbf   : > { %1143 = vmatprep.subr.bf16.mxu1 %v463_v52 }
  0xc0   : > { %1144 = vmatpush3.bf16.msra.mxu1 %v463_v52  ;;  %v459_v53 = vpop.permute.xlu1 %458 }
  0xc1   : > { %v837_v54 = vpop.permute.xlu0 %836 }
  0xc2   : > { %1183 = vmatprep.subr.bf16.mxu0 %v837_v54 }
  0xc3   : > { %1184 = vmatpush3.bf16.msra.mxu0 %v837_v54 }
  0xc4   : > { %v839_v55 = vpop.permute.xlu1 %838 }
  0xc5   : > { %v461_v56 = vpop.permute.xlu0 %460  ;;  %1185 = vmatprep.subr.bf16.mxu0 %v839_v55 }
  0xc6   : > { %v464_v57 = vsel %vm462_vm4, %v459_v53, %v461_v56 }
  0xc7   : > { %1145 = vmatprep.subr.bf16.mxu1 %v464_v57  ;;  %1186 = vmatpush3.bf16.msra.mxu0 %v839_v55 }
  0xc8   : > { %1146 = vmatpush3.bf16.msra.mxu1 %v464_v57  ;;  %v453_v59 = vpop.permute.xlu1 %452 }
  0xc9   : > { %v451_v60 = vpop.permute.xlu0 %450 }
  0xca   : > { %1147 = vmatprep.mubr.msk.bf16.mxu1 %vm250_vm0, %v451_v60  ;;  %1188 = vmatmul.mubr.msk.bf16.vlgmr.msra.gmra.mrb[0].mxu0 %vm250_vm0, %v1259_v58 }
  0xcb   : > { %1148 = vmatmul.mubr.msk.bf16.vlgmr.msra.gmra.mrb[0].mxu1 %vm250_vm0, %v453_v59 }
  0xd9   : > { %v913_v61 = vpop.permute.xlu1 %912 }
  0xda   : > { %v908_v62 = vpop.permute.xlu0 %907 }
  0xdd   : > { %v918_v0 = vpop.permute.xlu1 %917 }
  0xde   : > { %v923_v15 = vpop.permute.xlu0 %922 }
 0x19d   : > { %v1189_v63 = vpop.f32.mrb[0].mxu0 }
 0x19e   : > { %v1149_v1 = vpop.f32.mrb[0].mxu1  ;;  %v882_v2 = vpop.f32.mrb[1].mxu0 }
 0x19f   : > { %v1191_v3 = vadd.f32 %v1189_v63, %v1149_v1  ;;  %v507_v4 = vpop.f32.mrb[1].mxu1  ;;  %v1190_v5 = vpop.f32.mrb[2].mxu0 }
 0x1a0   : > { %v1192_v6 = vadd.f32 %v882_v2, %v507_v4  ;;  %v1150_v7 = vpop.f32.mrb[2].mxu1  ;;  %v885_v8 = vpop.f32.mrb[3].mxu0 }
 0x1a1   : > { %v927_v9 = vadd.f32 %v1191_v3, %v918_v0  ;;  %v1193_v11 = vadd.f32 %v1190_v5, %v1150_v7  ;;  %v510_v12 = vpop.f32.mrb[3].mxu1 }
 0x1a2   : > { %v925_v13 = vadd.f32 %v1192_v6, %v908_v62  ;;  %v1194_v14 = vadd.f32 %v885_v8, %v510_v12 }
 0x1a3   : > { %v931_v16 = vmul.f32 0.2, %v927_v9  ;;  %v928_v10 = vadd.f32 %v1193_v11, %v923_v15 }
 0x1a4   : > { %v929_v17 = vmul.f32 0.2, %v925_v13  ;;  %v926_v19 = vadd.f32 %v1194_v14, %v913_v61 }
 0x1a5   : > { %v935_v20 = vmax.f32 %v927_v9, %v931_v16  ;;  %v932_v21 = vmul.f32 0.2, %v928_v10 }
 0x1a6   : > { %v933_v22 = vmax.f32 %v925_v13, %v929_v17  ;;  %v930_v23 = vmul.f32 0.2, %v926_v19 }
 0x1a7   : > { %v946_v24 = vmul.f32 %v1072_v18, %v935_v20  ;;  %v936_v25 = vmax.f32 %v928_v10, %v932_v21 }
 0x1a8   : > { %v944_v26 = vmul.f32 %v1072_v18, %v933_v22  ;;  %v934_v27 = vmax.f32 %v926_v19, %v930_v23 }
 0x1a9   : > { %v1081_v28 = vpack.c.bf16 %v946_v24, %v946_v24  ;;  %v947_v29 = vmul.f32 %v1072_v18, %v936_v25 }
 0x1aa   : > { %v1079_v30 = vpack.c.bf16 %v944_v26, %v944_v26  ;;  %v945_v31 = vmul.f32 %v1072_v18, %v934_v27 }
 0x1ab   : > { %978 = vst.msk [vmem:[%s1355_s17 + $0x1c] sm:$0xf] %vm975_vm8, %v1081_v28  ;;  %v1082_v32 = vpack.c.bf16 %v947_v29, %v947_v29 }
 0x1ac   : > { %976 = vst.msk [vmem:[%s1355_s17 + $0x4] sm:$0xf] %vm975_vm8, %v1079_v30  ;;  %v1080_v33 = vpack.c.bf16 %v945_v31, %v945_v31 }
 0x1ad   : > { %979 = vst.msk [vmem:[%s1355_s17 + $0x28] sm:$0xf] %vm975_vm8, %v1082_v32 }
 0x1ae   : > { %977 = vst.msk [vmem:[%s1355_s17 + $0x10] sm:$0xf] %vm975_vm8, %v1080_v33 }
 0x1af PF: > { %s14_s15 = sadd.s32 1, %s1266_s15  }
 0x1b0   : > { %p11_p4 = scmp.ge.s32.totalorder %s14_s15, 4  }
 0x1b2   :  { %13 = sbr.rel (!%p11_p4) target bundleno = 1 (0x1), region = 66 }

// kernel: unet_core_forward.14
= control target key start
LH: loop header
LB: loop body
LE: loop exit
PB: predicated region body
PF: predicated region fallthrough
CT: control target
= control target key end

     0   :  { %s1506_s15 = smov 0   ;;  %s1742_s0 = inlined_call_operand.vmem [shape: bf16[2,64,272], index: 0, kind: input, shape index: {}]   ;;  %s1743_s1 = inlined_call_operand.vmem [shape: f32[1,16], index: 1, kind: input, shape index: {}]   ;;  %s1744_s2 = inlined_call_operand.vmem [shape: bf16[32,576], index: 2, kind: input, shape index: {}]   ;;  %s1745_s3 = inlined_call_operand.vmem [shape: f32[32,1], index: 3, kind: input, shape index: {}]   ;;  %s1746_s4 = inlined_call_operand.vmem [shape: bf16[2,32,272], index: 4, kind: output, shape index: {}]  }
   0x1 LB: > { %s1163_s16 = sadd.s32 4294967295, %s1469_s15   ;;  %p1167_p0 = scmp.ge.s32.totalorder %s1469_s15, 1  ;;  %s1469_s15 = sphi %s1506_s15, %s14_s15  }
   0x2   : > { %p162_p1 = scmp.lt.s32.totalorder %s1469_s15, 3 }
   0x4   : > { %p163_p2 = pnand %p1167_p0, %p162_p1 }
   0x5   : > { %p188_p3 = scmp.lt.s32.totalorder (!%p163_p2), %s1163_s16, 1  ;;  %v1453_v0 = vld [vmem:[%s1744_s2 + $0x8] ss:$20 sps:$4 sm:$0xff] (!%p163_p2)   ;;  %vm282_vm0 = vcmask (!%p163_p2), 523264   ;;  %s1471_s23 = smov (!%p163_p2), 127   ;;  %v1480_v18 = vmov (!%p163_p2), 0  }
   0x6   : > { %166 = sbr.rel (%p163_p2) target bundleno = 471 (0x1d7), region = 36  ;;  %1331 = vmatprep.mubr.msk.bf16.mxu0 (!%p163_p2), %vm282_vm0, %v1453_v0  ;;  %s1472_s24 = smov (!%p163_p2), 4   ;;  %v1456_v12 = vld [vmem:[%s1744_s2 + $0x30] ss:$20 sps:$4 sm:$0xff] (!%p163_p2)   ;;  %v1586_v14 = vld [vmem:[%s1744_s2] ss:$20 sps:$4 sm:$0xff] (!%p163_p2)   ;;  %1436 = vset.pattern.permute.xlu1 (!%p163_p2), %v1480_v18 }
   0x7   : > { %s1473_s27 = smov (!%p163_p2), 5   ;;  %s1474_s30 = smov (!%p163_p2), 64   ;;  %v1592_v15 = vld [vmem:[%s1744_s2 + $0x28] ss:$20 sps:$4 sm:$0xff] (!%p163_p2)   ;;  %v1620_v16 = vld [vmem:[%s1744_s2 + $0xc] ss:$20 sps:$4 sm:$0xff] (!%p163_p2)   ;;  %1435 = vset.pattern.permute.xlu0 (!%p163_p2), %v1480_v18 }
   0x8   : > { %s1475_s7 = smov (!%p163_p2), 125   ;;  %s1476_s8 = smov (!%p163_p2), 3   ;;  %v1628_v17 = vld [vmem:[%s1744_s2 + $0x34] ss:$20 sps:$4 sm:$0xff] (!%p163_p2)   ;;  %v1643_v19 = vld [vmem:[%s1744_s2 + $0x2c] ss:$20 sps:$4 sm:$0xff] (!%p163_p2)  }
   0x9   : > { %s1477_s9 = smov (!%p163_p2), 124   ;;  %s1478_s10 = smov (!%p163_p2), 1   ;;  %v1648_v20 = vld [vmem:[%s1744_s2 + $0x4] ss:$20 sps:$4 sm:$0xff] (!%p163_p2)   ;;  %v1030_v21 = vld [vmem:[%s1745_s3 + $0x8] sm:$0xff] (!%p163_p2)  ;;  %v1031_v23 = vld [vmem:[%s1745_s3 + $0x10] sm:$0xff] (!%p163_p2) }
   0xa   : > { %s1479_s13 = smov (!%p163_p2), 123   ;;  %v1029_v22 = vld [vmem:[%s1745_s3] sm:$0xff] (!%p163_p2)  ;;  %v1032_v25 = vld [vmem:[%s1745_s3 + $0x18] sm:$0xff] (!%p163_p2)  ;;  %vm273_vm1 = vcmask (!%p163_p2), 31744   ;;  %vm354_vm2 = vcmask (!%p163_p2), 39936   ;;  %vm448_vm3 = vcmask (!%p163_p2), 23552  }
   0xb   : > { %vm536_vm4 = vcmask (!%p163_p2), 7168   ;;  %vm1080_vm5 = vcmask (!%p163_p2), 1043584   ;;  %vm1081_vm6 = vcmask (!%p163_p2), 130052   ;;  %vm1103_vm8 = vcmask (!%p163_p2), 125952  }
   0xc   : > { %vm1082_vm7 = vmor (!%p163_p2), %vm1081_vm6, %vm1080_vm5 }
   0xd   : > { %s1748_s16 = smov (!%p188_p3, %s1163_s16), 1 }
   0xe   : > { %s1415_s19 = smul.u32 96, %s1748_s16 }
  0x10   : > { %s1524_s22 = scalar_lea.vmem %s1742_s0, %s1415_s19 }
  0x11   : > { %v1527_v1 = vld [vmem:[%s1524_s22 + $0x4] ss:$12 sps:$4 sm:$0xff]   ;;  %v1530_v2 = vld [vmem:[%s1524_s22] ss:$12 sps:$4 sm:$0xff]   ;;  %v1544_v5 = vld [vmem:[%s1524_s22 + $0x1c] ss:$12 sps:$4 sm:$0xff]  }
  0x12   : > { %713 = vrot.lane.b32.xlu1 %v1527_v1, %s1471_s23  ;;  %v1535_v3 = vld [vmem:[%s1524_s22 + $0x18] ss:$12 sps:$4 sm:$0xff]   ;;  %1323 = vmatprep.subr.bf16.mxu0 %v1527_v1  ;;  %v1548_v6 = vld [vmem:[%s1524_s22 + $0x1c] ss:$12 sps:$4 sm:$0xff]   ;;  %v1553_v7 = vld [vmem:[%s1524_s22 + $0x34] ss:$12 sps:$4 sm:$0xff]  }
  0x13   : > { %257 = vrot.lane.b32.xlu0 %v1530_v2, %s1472_s24  ;;  %v1540_v4 = vld [vmem:[%s1524_s22 + $0x4] ss:$12 sps:$4 sm:$0xff]   ;;  %1324 = vmatpush3.bf16.msra.mxu0 %v1527_v1  ;;  %v1557_v8 = vld [vmem:[%s1524_s22 + $0x34] ss:$12 sps:$4 sm:$0xff]   ;;  %v1563_v9 = vld [vmem:[%s1524_s22 + $0x4c] ss:$12 sps:$4 sm:$0xff]  }
  0x14   : > { %1325 = vmatprep.subr.bf16.mxu0 %v1544_v5  ;;  %v1447_v10 = vld [vmem:[%s1524_s22 + $0x30] ss:$12 sps:$4 sm:$0xff]   ;;  %v1448_v11 = vld [vmem:[%s1524_s22 + $0x48] ss:$12 sps:$4 sm:$0xff]   ;;  %v1452_v13 = vld [vmem:[%s1524_s22 + $0x4c] ss:$12 sps:$4 sm:$0xff]  }
  0x16   : > { %261 = vrot.lane.b32.xlu1 %v1535_v3, %s1472_s24 }
  0x17   : > { %259 = vrot.lane.b32.xlu0 %v1540_v4, %s1472_s24  ;;  %1326 = vmatpush3.bf16.msra.mxu0 %v1544_v5 }
  0x18   : > { %1327 = vmatprep.subr.bf16.mxu0 %v1553_v7 }
  0x1a   : > { %715 = vrot.lane.b32.xlu1 %v1544_v5, %s1471_s23 }
  0x1b   : > { %263 = vrot.lane.b32.xlu0 %v1548_v6, %s1472_s24  ;;  %1328 = vmatpush3.bf16.msra.mxu0 %v1553_v7 }
  0x1c   : > { %1329 = vmatprep.subr.bf16.mxu0 %v1563_v9 }
  0x1e   : > { %267 = vrot.lane.b32.xlu1 %v1557_v8, %s1472_s24 }
  0x1f   : > { %265 = vrot.lane.b32.xlu0 %v1447_v10, %s1472_s24  ;;  %1330 = vmatpush3.bf16.msra.mxu0 %v1563_v9 }
  0x22   : > { %269 = vrot.lane.b32.xlu1 %v1448_v11, %s1472_s24  ;;  %1332 = vmatmul.mubr.msk.bf16.vlgmr.msra.gmra.mrb[0].mxu0 %vm282_vm0, %v1456_v12 }
  0x23   : > { %717 = vrot.lane.b32.xlu0 %v1553_v7, %s1471_s23 }
  0x26   : > { %719 = vrot.lane.b32.xlu1 %v1563_v9, %s1471_s23 }
  0x27   : > { %271 = vrot.lane.b32.xlu0 %v1452_v13, %s1472_s24 }
  0x2a   : > { %340 = vrot.lane.b32.xlu1 %v1540_v4, %s1473_s27 }
  0x2b   : > { %338 = vrot.lane.b32.xlu0 %v1530_v2, %s1473_s27 }
  0x2e   : > { %709 = vrot.lane.b32.xlu1 %v1453_v0, %s1474_s30 }
  0x2f   : > { %221 = vrot.lane.b32.xlu0 %v1586_v14, %s1474_s30 }
  0x32   : > { %223 = vrot.lane.b32.xlu1 %v1592_v15, %s1474_s30 }
  0x33   : > { %798 = vrot.lane.b32.xlu0 %v1527_v1, %s1475_s7 }
  0x36   : > { %342 = vrot.lane.b32.xlu1 %v1535_v3, %s1473_s27 }
  0x37   : > { %711 = vrot.lane.b32.xlu0 %v1456_v12, %s1474_s30 }
  0x3a   : > { %800 = vrot.lane.b32.xlu1 %v1544_v5, %s1475_s7 }
  0x3b   : > { %344 = vrot.lane.b32.xlu0 %v1548_v6, %s1473_s27 }
  0x3e   : > { %348 = vrot.lane.b32.xlu1 %v1557_v8, %s1473_s27 }
  0x3f   : > { %346 = vrot.lane.b32.xlu0 %v1447_v10, %s1473_s27 }
  0x42   : > { %350 = vrot.lane.b32.xlu1 %v1448_v11, %s1473_s27 }
  0x43   : > { %802 = vrot.lane.b32.xlu0 %v1553_v7, %s1475_s7 }
  0x46   : > { %804 = vrot.lane.b32.xlu1 %v1563_v9, %s1475_s7 }
  0x47   : > { %352 = vrot.lane.b32.xlu0 %v1452_v13, %s1473_s27 }
  0x4a   : > { %434 = vrot.lane.b32.xlu1 %v1540_v4, %s1476_s8 }
  0x4b   : > { %432 = vrot.lane.b32.xlu0 %v1530_v2, %s1476_s8 }
  0x4e   : > { %436 = vrot.lane.b32.xlu1 %v1535_v3, %s1476_s8 }
  0x4f   : > { %873 = vrot.lane.b32.xlu0 %v1527_v1, %s1477_s9 }
  0x52   : > { %875 = vrot.lane.b32.xlu1 %v1544_v5, %s1477_s9 }
  0x53   : > { %438 = vrot.lane.b32.xlu0 %v1548_v6, %s1476_s8 }
  0x56   : > { %442 = vrot.lane.b32.xlu1 %v1557_v8, %s1476_s8 }
  0x57   : > { %440 = vrot.lane.b32.xlu0 %v1447_v10, %s1476_s8 }
  0x5a   : > { %444 = vrot.lane.b32.xlu1 %v1448_v11, %s1476_s8 }
  0x5b   : > { %877 = vrot.lane.b32.xlu0 %v1553_v7, %s1477_s9 }
  0x5e   : > { %879 = vrot.lane.b32.xlu1 %v1563_v9, %s1477_s9 }
  0x5f   : > { %446 = vrot.lane.b32.xlu0 %v1452_v13, %s1476_s8  ;;  %s1416_s8 = smul.u32 48, %s1748_s16 }
  0x61   : > { %s1714_s11 = scalar_lea.vmem %s1746_s4, %s1416_s8 }
  0x62   : > { %522 = vrot.lane.b32.xlu1 %v1540_v4, %s1478_s10  ;;  %1076 = vst [vmem:[%s1714_s11] sm:$0xf] %v1480_v18  ;;  %1077 = vst [vmem:[%s1714_s11 + $0xc] sm:$0xf] %v1480_v18 }
  0x63   : > { %520 = vrot.lane.b32.xlu0 %v1530_v2, %s1478_s10  ;;  %1078 = vst [vmem:[%s1714_s11 + $0x18] sm:$0xf] %v1480_v18  ;;  %1079 = vst [vmem:[%s1714_s11 + $0x24] sm:$0xf] %v1480_v18 }
  0x64   : > { %1085 = vst.msk [vmem:[%s1714_s11 + $0x1c] sm:$0xff] %vm1082_vm7, %v1480_v18  ;;  %1083 = vst.msk [vmem:[%s1714_s11 + $0x4] sm:$0xff] %vm1082_vm7, %v1480_v18 }
  0x65   : > { %1084 = vst.msk [vmem:[%s1714_s11 + $0x10] sm:$0xff] %vm1082_vm7, %v1480_v18  ;;  %1086 = vst.msk [vmem:[%s1714_s11 + $0x28] sm:$0xff] %vm1082_vm7, %v1480_v18 }
  0x66   : > { %958 = vrot.lane.b32.xlu1 %v1527_v1, %s1479_s13 }
  0x67   : > { %869 = vrot.lane.b32.xlu0 %v1620_v16, %s1474_s30 }
  0x6a   : > { %524 = vrot.lane.b32.xlu1 %v1535_v3, %s1478_s10 }
  0x6b   : > { %871 = vrot.lane.b32.xlu0 %v1628_v17, %s1474_s30 }
  0x6e   : > { %960 = vrot.lane.b32.xlu1 %v1544_v5, %s1479_s13 }
  0x6f   : > { %526 = vrot.lane.b32.xlu0 %v1548_v6, %s1478_s10 }
  0x72   : > { %530 = vrot.lane.b32.xlu1 %v1557_v8, %s1478_s10 }
  0x73   : > { %528 = vrot.lane.b32.xlu0 %v1447_v10, %s1478_s10 }
  0x76   : > { %532 = vrot.lane.b32.xlu1 %v1448_v11, %s1478_s10 }
  0x77   : > { %962 = vrot.lane.b32.xlu0 %v1553_v7, %s1479_s13 }
  0x7a   : > { %964 = vrot.lane.b32.xlu1 %v1563_v9, %s1479_s13 }
  0x7b   : > { %534 = vrot.lane.b32.xlu0 %v1452_v13, %s1478_s10 }
  0x7e   : > { %518 = vrot.lane.b32.xlu1 %v1643_v19, %s1474_s30 }
  0x7f   : > { %516 = vrot.lane.b32.xlu0 %v1648_v20, %s1474_s30 }
  0x82   : > { %1040 = vperm.xlu1 %1436, %v1030_v21  }
  0x83   : > { %1035 = vperm.xlu0 %1435, %v1029_v22  }
  0x84   : > { %v714_v24 = vpop.permute.xlu1 %713 }
  0x85   : > { %v258_v26 = vpop.permute.xlu0 %257  ;;  %1335 = vmatprep.subr.bf16.mxu0 %v714_v24 }
  0x86   : > { %1336 = vmatpush3.bf16.msra.mxu0 %v714_v24  ;;  %1045 = vperm.xlu1 %1436, %v1031_v23  }
  0x87   : > { %1050 = vperm.xlu0 %1435, %v1032_v25  }
  0x88   : > { %v262_v27 = vpop.permute.xlu1 %261 }
  0x89   : > { %v260_v28 = vpop.permute.xlu0 %259 }
  0x8a   : > { %v274_v29 = vsel %vm273_vm1, %v258_v26, %v260_v28 }
  0x8b   : > { %1275 = vmatprep.subr.bf16.mxu1 %v274_v29 }
  0x8c   : > { %1276 = vmatpush3.bf16.msra.mxu1 %v274_v29  ;;  %v716_v30 = vpop.permute.xlu1 %715 }
  0x8d   : > { %v264_v31 = vpop.permute.xlu0 %263  ;;  %1337 = vmatprep.subr.bf16.mxu0 %v716_v30 }
  0x8e   : > { %v275_v32 = vsel %vm273_vm1, %v262_v27, %v264_v31  ;;  %1338 = vmatpush3.bf16.msra.mxu0 %v716_v30 }
  0x8f   : > { %1277 = vmatprep.subr.bf16.mxu1 %v275_v32 }
  0x90   : > { %1278 = vmatpush3.bf16.msra.mxu1 %v275_v32  ;;  %v268_v33 = vpop.permute.xlu1 %267 }
  0x91   : > { %v266_v34 = vpop.permute.xlu0 %265 }
  0x92   : > { %v276_v35 = vsel %vm273_vm1, %v266_v34, %v268_v33  ;;  %v1462_v33 = vld [vmem:[%s1744_s2 + $0x38] ss:$20 sps:$4 sm:$0xff]  }
  0x93   : > { %1279 = vmatprep.subr.bf16.mxu1 %v276_v35 }
  0x94   : > { %1280 = vmatpush3.bf16.msra.mxu1 %v276_v35  ;;  %v270_v36 = vpop.permute.xlu1 %269 }
  0x95   : > { %v718_v37 = vpop.permute.xlu0 %717 }
  0x96   : > { %1339 = vmatprep.subr.bf16.mxu0 %v718_v37 }
  0x97   : > { %1340 = vmatpush3.bf16.msra.mxu0 %v718_v37 }
  0x98   : > { %v720_v38 = vpop.permute.xlu1 %719 }
  0x99   : > { %v272_v39 = vpop.permute.xlu0 %271  ;;  %1341 = vmatprep.subr.bf16.mxu0 %v720_v38 }
  0x9a   : > { %v277_v40 = vsel %vm273_vm1, %v270_v36, %v272_v39 }
  0x9b   : > { %1281 = vmatprep.subr.bf16.mxu1 %v277_v40  ;;  %1342 = vmatpush3.bf16.msra.mxu0 %v720_v38 }
  0x9c   : > { %1282 = vmatpush3.bf16.msra.mxu1 %v277_v40  ;;  %v341_v41 = vpop.permute.xlu1 %340 }
  0x9d   : > { %v339_v42 = vpop.permute.xlu0 %338 }
  0x9e   : > { %v355_v43 = vsel %vm354_vm2, %v339_v42, %v341_v41 }
  0x9f   : > { %1287 = vmatprep.subr.bf16.mxu1 %v355_v43 }
  0xa0   : > { %v710_v44 = vpop.permute.xlu1 %709 }
  0xa1   : > { %v222_v45 = vpop.permute.xlu0 %221  ;;  %1343 = vmatprep.mubr.msk.bf16.mxu0 %vm282_vm0, %v710_v44 }
  0xa2   : > { %1283 = vmatprep.mubr.msk.bf16.mxu1 %vm282_vm0, %v222_v45 }
  0xa4   : > { %v224_v46 = vpop.permute.xlu1 %223 }
  0xa5   : > { %v799_v47 = vpop.permute.xlu0 %798  ;;  %1284 = vmatmul.mubr.msk.bf16.vlgmr.msra.gmra.mrb[0].mxu1 %vm282_vm0, %v224_v46 }
  0xa6   : > { %1288 = vmatpush3.bf16.msra.mxu1 %v355_v43  ;;  %1347 = vmatprep.subr.bf16.mxu0 %v799_v47 }
  0xa7   : > { %1295 = vmatprep.mubr.msk.bf16.mxu1 %vm282_vm0, %v1586_v14 }
  0xa8   : > { %v343_v48 = vpop.permute.xlu1 %342 }
  0xa9   : > { %v712_v49 = vpop.permute.xlu0 %711 }
  0xaa   : > { %1344 = vmatmul.mubr.msk.bf16.vlgmr.msra.gmra.mrb[0].mxu0 %vm282_vm0, %v712_v49 }
  0xab   : > { %1348 = vmatpush3.bf16.msra.mxu0 %v799_v47  ;;  %1355 = vmatprep.mubr.msk.bf16.mxu0 %vm282_vm0, %v1620_v16 }
  0xac   : > { %v801_v50 = vpop.permute.xlu1 %800 }
  0xad   : > { %v345_v51 = vpop.permute.xlu0 %344  ;;  %1349 = vmatprep.subr.bf16.mxu0 %v801_v50 }
  0xae   : > { %v356_v52 = vsel %vm354_vm2, %v343_v48, %v345_v51 }
  0xaf   : > { %1289 = vmatprep.subr.bf16.mxu1 %v356_v52  ;;  %1350 = vmatpush3.bf16.msra.mxu0 %v801_v50 }
  0xb0   : > { %1290 = vmatpush3.bf16.msra.mxu1 %v356_v52  ;;  %v349_v53 = vpop.permute.xlu1 %348 }
  0xb1   : > { %v347_v54 = vpop.permute.xlu0 %346 }
  0xb2   : > { %v357_v55 = vsel %vm354_vm2, %v347_v54, %v349_v53 }
  0xb3   : > { %1291 = vmatprep.subr.bf16.mxu1 %v357_v55 }
  0xb4   : > { %1292 = vmatpush3.bf16.msra.mxu1 %v357_v55  ;;  %v351_v56 = vpop.permute.xlu1 %350  ;;  %v1210_v55 = vld [vmem:[%s1743_s1] ss:$0 sm:$0xff] }
  0xb5   : > { %v803_v57 = vpop.permute.xlu0 %802 }
  0xb6   : > { %1351 = vmatprep.subr.bf16.mxu0 %v803_v57 }
  0xb7   : > { %1352 = vmatpush3.bf16.msra.mxu0 %v803_v57 }
  0xb8   : > { %v805_v58 = vpop.permute.xlu1 %804 }
  0xb9   : > { %v353_v59 = vpop.permute.xlu0 %352  ;;  %1353 = vmatprep.subr.bf16.mxu0 %v805_v58 }
  0xba   : > { %v358_v60 = vsel %vm354_vm2, %v351_v56, %v353_v59 }
  0xbb   : > { %1293 = vmatprep.subr.bf16.mxu1 %v358_v60  ;;  %1354 = vmatpush3.bf16.msra.mxu0 %v805_v58 }
  0xbc   : > { %1294 = vmatpush3.bf16.msra.mxu1 %v358_v60  ;;  %v435_v61 = vpop.permute.xlu1 %434 }
  0xbd   : > { %v433_v62 = vpop.permute.xlu0 %432 }
  0xbe   : > { %v449_v63 = vsel %vm448_vm3, %v433_v62, %v435_v61  ;;  %1356 = vmatmul.mubr.msk.bf16.vlgmr.msra.gmra.mrb[0].mxu0 %vm282_vm0, %v1628_v17 }
  0xbf   : > { %1299 = vmatprep.subr.bf16.mxu1 %v449_v63  ;;  %1296 = vmatmul.mubr.msk.bf16.vlgmr.msra.gmra.mrb[0].mxu1 %vm282_vm0, %v1592_v15 }
  0xc0   : > { %1300 = vmatpush3.bf16.msra.mxu1 %v449_v63  ;;  %v437_v0 = vpop.permute.xlu1 %436  ;;  %1307 = vmatprep.mubr.msk.bf16.mxu1 %vm282_vm0, %v1648_v20  ;;  %v1461_v20 = vld [vmem:[%s1744_s2 + $0x10] ss:$20 sps:$4 sm:$0xff]  }
  0xc1   : > { %v874_v1 = vpop.permute.xlu0 %873 }
  0xc2   : > { %1359 = vmatprep.subr.bf16.mxu0 %v874_v1 }
  0xc3   : > { %1360 = vmatpush3.bf16.msra.mxu0 %v874_v1 }
  0xc4   : > { %v876_v2 = vpop.permute.xlu1 %875 }
  0xc5   : > { %v439_v3 = vpop.permute.xlu0 %438  ;;  %1361 = vmatprep.subr.bf16.mxu0 %v876_v2 }
  0xc6   : > { %v450_v4 = vsel %vm448_vm3, %v437_v0, %v439_v3 }
  0xc7   : > { %1301 = vmatprep.subr.bf16.mxu1 %v450_v4  ;;  %1362 = vmatpush3.bf16.msra.mxu0 %v876_v2 }
  0xc8   : > { %1302 = vmatpush3.bf16.msra.mxu1 %v450_v4  ;;  %v443_v5 = vpop.permute.xlu1 %442 }
  0xc9   : > { %v441_v6 = vpop.permute.xlu0 %440 }
  0xca   : > { %v451_v7 = vsel %vm448_vm3, %v441_v6, %v443_v5 }
  0xcb   : > { %1303 = vmatprep.subr.bf16.mxu1 %v451_v7 }
  0xcc   : > { %1304 = vmatpush3.bf16.msra.mxu1 %v451_v7  ;;  %v445_v8 = vpop.permute.xlu1 %444 }
  0xcd   : > { %v878_v9 = vpop.permute.xlu0 %877 }
  0xce   : > { %1363 = vmatprep.subr.bf16.mxu0 %v878_v9 }
  0xcf   : > { %1364 = vmatpush3.bf16.msra.mxu0 %v878_v9 }
  0xd0   : > { %v880_v10 = vpop.permute.xlu1 %879 }
  0xd1   : > { %v447_v11 = vpop.permute.xlu0 %446  ;;  %1365 = vmatprep.subr.bf16.mxu0 %v880_v10 }
  0xd2   : > { %v452_v12 = vsel %vm448_vm3, %v445_v8, %v447_v11 }
  0xd3   : > { %1305 = vmatprep.subr.bf16.mxu1 %v452_v12  ;;  %1366 = vmatpush3.bf16.msra.mxu0 %v880_v10 }
  0xd4   : > { %1306 = vmatpush3.bf16.msra.mxu1 %v452_v12  ;;  %v523_v13 = vpop.permute.xlu1 %522 }
  0xd5   : > { %v521_v14 = vpop.permute.xlu0 %520 }
  0xd6   : > { %v537_v15 = vsel %vm536_vm4, %v521_v14, %v523_v13 }
  0xd7   : > { %1311 = vmatprep.subr.bf16.mxu1 %v537_v15  ;;  %1308 = vmatmul.mubr.msk.bf16.vlgmr.msra.gmra.mrb[0].mxu1 %vm282_vm0, %v1643_v19 }
  0xd8   : > { %1312 = vmatpush3.bf16.msra.mxu1 %v537_v15  ;;  %v959_v16 = vpop.permute.xlu1 %958 }
  0xd9   : > { %v870_v17 = vpop.permute.xlu0 %869  ;;  %1371 = vmatprep.subr.bf16.mxu0 %v959_v16 }
  0xda   : > { %1367 = vmatprep.mubr.msk.bf16.mxu0 %vm282_vm0, %v870_v17 }
  0xdc   : > { %v525_v21 = vpop.permute.xlu1 %524 }
  0xdd   : > { %v872_v22 = vpop.permute.xlu0 %871 }
  0xde   : > { %1368 = vmatmul.mubr.msk.bf16.vlgmr.msra.gmra.mrb[0].mxu0 %vm282_vm0, %v872_v22 }
  0xdf   : > { %1372 = vmatpush3.bf16.msra.mxu0 %v959_v16  ;;  %1379 = vmatprep.mubr.msk.bf16.mxu0 %vm282_vm0, %v1461_v20 }
  0xe0   : > { %v961_v23 = vpop.permute.xlu1 %960 }
  0xe1   : > { %v527_v24 = vpop.permute.xlu0 %526  ;;  %1373 = vmatprep.subr.bf16.mxu0 %v961_v23 }
  0xe2   : > { %v538_v19 = vsel %vm536_vm4, %v525_v21, %v527_v24 }
  0xe3   : > { %1313 = vmatprep.subr.bf16.mxu1 %v538_v19  ;;  %1374 = vmatpush3.bf16.msra.mxu0 %v961_v23 }
  0xe4   : > { %1314 = vmatpush3.bf16.msra.mxu1 %v538_v19  ;;  %v531_v25 = vpop.permute.xlu1 %530 }
  0xe5   : > { %v529_v26 = vpop.permute.xlu0 %528 }
  0xe6   : > { %v539_v27 = vsel %vm536_vm4, %v529_v26, %v531_v25 }
  0xe7   : > { %1315 = vmatprep.subr.bf16.mxu1 %v539_v27 }
  0xe8   : > { %1316 = vmatpush3.bf16.msra.mxu1 %v539_v27  ;;  %v533_v28 = vpop.permute.xlu1 %532 }
  0xe9   : > { %v963_v29 = vpop.permute.xlu0 %962 }
  0xea   : > { %1375 = vmatprep.subr.bf16.mxu0 %v963_v29 }
  0xeb   : > { %1376 = vmatpush3.bf16.msra.mxu0 %v963_v29 }
  0xec   : > { %v965_v30 = vpop.permute.xlu1 %964 }
  0xed   : > { %v535_v31 = vpop.permute.xlu0 %534  ;;  %1377 = vmatprep.subr.bf16.mxu0 %v965_v30 }
  0xee   : > { %v540_v32 = vsel %vm536_vm4, %v533_v28, %v535_v31 }
  0xef   : > { %1317 = vmatprep.subr.bf16.mxu1 %v540_v32  ;;  %1378 = vmatpush3.bf16.msra.mxu0 %v965_v30 }
  0xf0   : > { %1318 = vmatpush3.bf16.msra.mxu1 %v540_v32  ;;  %v519_v34 = vpop.permute.xlu1 %518 }
  0xf1   : > { %v517_v35 = vpop.permute.xlu0 %516 }
  0xf2   : > { %1319 = vmatprep.mubr.msk.bf16.mxu1 %vm282_vm0, %v517_v35  ;;  %1380 = vmatmul.mubr.msk.bf16.vlgmr.msra.gmra.mrb[0].mxu0 %vm282_vm0, %v1462_v33 }
  0xf3   : > { %1320 = vmatmul.mubr.msk.bf16.vlgmr.msra.gmra.mrb[0].mxu1 %vm282_vm0, %v519_v34 }
 0x101   : > { %v1041_v36 = vpop.permute.xlu1 %1040 }
 0x102   : > { %v1036_v37 = vpop.permute.xlu0 %1035 }
 0x105   : > { %v1046_v39 = vpop.permute.xlu1 %1045 }
 0x106   : > { %v1051_v52 = vpop.permute.xlu0 %1050 }
 0x1c5   : > { %v1381_v38 = vpop.f32.mrb[0].mxu0 }
 0x1c6   : > { %v1321_v40 = vpop.f32.mrb[0].mxu1  ;;  %v1010_v41 = vpop.f32.mrb[1].mxu0 }
 0x1c7   : > { %v1383_v42 = vadd.f32 %v1381_v38, %v1321_v40  ;;  %v585_v43 = vpop.f32.mrb[1].mxu1  ;;  %v1382_v44 = vpop.f32.mrb[2].mxu0 }
 0x1c8   : > { %v1384_v45 = vadd.f32 %v1010_v41, %v585_v43  ;;  %v1322_v46 = vpop.f32.mrb[2].mxu1  ;;  %v1013_v47 = vpop.f32.mrb[3].mxu0 }
 0x1c9   : > { %v1055_v48 = vadd.f32 %v1383_v42, %v1046_v39  ;;  %v1385_v49 = vadd.f32 %v1382_v44, %v1322_v46  ;;  %v588_v50 = vpop.f32.mrb[3].mxu1 }
 0x1ca   : > { %v1053_v51 = vadd.f32 %v1384_v45, %v1036_v37  ;;  %v1386_v53 = vadd.f32 %v1013_v47, %v588_v50 }
 0x1cb   : > { %v1059_v54 = vmul.f32 0.2, %v1055_v48  ;;  %v1056_v18 = vadd.f32 %v1385_v49, %v1051_v52 }
 0x1cc   : > { %v1057_v56 = vmul.f32 0.2, %v1053_v51  ;;  %v1054_v57 = vadd.f32 %v1386_v53, %v1041_v36 }
 0x1cd   : > { %v1063_v58 = vmax.f32 %v1055_v48, %v1059_v54  ;;  %v1060_v59 = vmul.f32 0.2, %v1056_v18 }
 0x1ce   : > { %v1061_v60 = vmax.f32 %v1053_v51, %v1057_v56  ;;  %v1058_v61 = vmul.f32 0.2, %v1054_v57 }
 0x1cf   : > { %v1074_v62 = vmul.f32 %v1210_v55, %v1063_v58  ;;  %v1064_v63 = vmax.f32 %v1056_v18, %v1060_v59 }
 0x1d0   : > { %v1072_v0 = vmul.f32 %v1210_v55, %v1061_v60  ;;  %v1062_v1 = vmax.f32 %v1054_v57, %v1058_v61 }
 0x1d1   : > { %v1219_v2 = vpack.c.bf16 %v1074_v62, %v1074_v62  ;;  %v1075_v3 = vmul.f32 %v1210_v55, %v1064_v63 }
 0x1d2   : > { %v1217_v4 = vpack.c.bf16 %v1072_v0, %v1072_v0  ;;  %v1073_v5 = vmul.f32 %v1210_v55, %v1062_v1 }
 0x1d3   : > { %1106 = vst.msk [vmem:[%s1714_s11 + $0x1c] sm:$0xf] %vm1103_vm8, %v1219_v2  ;;  %v1220_v6 = vpack.c.bf16 %v1075_v3, %v1075_v3 }
 0x1d4   : > { %1104 = vst.msk [vmem:[%s1714_s11 + $0x4] sm:$0xf] %vm1103_vm8, %v1217_v4  ;;  %v1218_v7 = vpack.c.bf16 %v1073_v5, %v1073_v5 }
 0x1d5   : > { %1107 = vst.msk [vmem:[%s1714_s11 + $0x28] sm:$0xf] %vm1103_vm8, %v1220_v6 }
 0x1d6   : > { %1105 = vst.msk [vmem:[%s1714_s11 + $0x10] sm:$0xf] %vm1103_vm8, %v1218_v7 }
 0x1d7 PF: > { %s14_s15 = sadd.s32 1, %s1469_s15  }
 0x1d8   : > { %p11_p4 = scmp.ge.s32.totalorder %s14_s15, 4  }
 0x1da   :  { %13 = sbr.rel (!%p11_p4) target bundleno = 1 (0x1), region = 66 }

// kernel: unet_core_forward.15
= control target key start
LH: loop header
LB: loop body
LE: loop exit
PB: predicated region body
PF: predicated region fallthrough
CT: control target
= control target key end

     0   :  { %s1506_s15 = smov 0   ;;  %s1742_s0 = inlined_call_operand.vmem [shape: bf16[2,64,292], index: 0, kind: input, shape index: {}]   ;;  %s1743_s1 = inlined_call_operand.vmem [shape: f32[1,36], index: 1, kind: input, shape index: {}]   ;;  %s1744_s2 = inlined_call_operand.vmem [shape: bf16[32,576], index: 2, kind: input, shape index: {}]   ;;  %s1745_s3 = inlined_call_operand.vmem [shape: f32[32,1], index: 3, kind: input, shape index: {}]   ;;  %s1746_s4 = inlined_call_operand.vmem [shape: bf16[2,32,292], index: 4, kind: output, shape index: {}]  }
   0x1 LB: > { %s1163_s16 = sadd.s32 4294967295, %s1469_s15   ;;  %p1167_p0 = scmp.ge.s32.totalorder %s1469_s15, 1  ;;  %s1469_s15 = sphi %s1506_s15, %s14_s15  }
   0x2   : > { %p162_p1 = scmp.lt.s32.totalorder %s1469_s15, 3 }
   0x4   : > { %p163_p2 = pnand %p1167_p0, %p162_p1 }
   0x5   : > { %p188_p3 = scmp.lt.s32.totalorder (!%p163_p2), %s1163_s16, 1  ;;  %v1453_v0 = vld [vmem:[%s1744_s2 + $0x8] ss:$20 sps:$4 sm:$0xff] (!%p163_p2)   ;;  %vm282_vm0 = vcmask (!%p163_p2), 523264   ;;  %s1471_s23 = smov (!%p163_p2), 127   ;;  %v1480_v18 = vmov (!%p163_p2), 0  }
   0x6   : > { %166 = sbr.rel (%p163_p2) target bundleno = 471 (0x1d7), region = 36  ;;  %1331 = vmatprep.mubr.msk.bf16.mxu0 (!%p163_p2), %vm282_vm0, %v1453_v0  ;;  %s1472_s24 = smov (!%p163_p2), 6   ;;  %v1456_v12 = vld [vmem:[%s1744_s2 + $0x30] ss:$20 sps:$4 sm:$0xff] (!%p163_p2)   ;;  %v1586_v14 = vld [vmem:[%s1744_s2] ss:$20 sps:$4 sm:$0xff] (!%p163_p2)   ;;  %1436 = vset.pattern.permute.xlu1 (!%p163_p2), %v1480_v18 }
   0x7   : > { %s1473_s27 = smov (!%p163_p2), 7   ;;  %s1474_s30 = smov (!%p163_p2), 64   ;;  %v1592_v15 = vld [vmem:[%s1744_s2 + $0x28] ss:$20 sps:$4 sm:$0xff] (!%p163_p2)   ;;  %v1620_v16 = vld [vmem:[%s1744_s2 + $0xc] ss:$20 sps:$4 sm:$0xff] (!%p163_p2)   ;;  %1435 = vset.pattern.permute.xlu0 (!%p163_p2), %v1480_v18 }
   0x8   : > { %s1475_s7 = smov (!%p163_p2), 123   ;;  %s1476_s8 = smov (!%p163_p2), 5   ;;  %v1628_v17 = vld [vmem:[%s1744_s2 + $0x34] ss:$20 sps:$4 sm:$0xff] (!%p163_p2)   ;;  %v1643_v19 = vld [vmem:[%s1744_s2 + $0x2c] ss:$20 sps:$4 sm:$0xff] (!%p163_p2)  }
   0x9   : > { %s1477_s9 = smov (!%p163_p2), 122   ;;  %s1478_s10 = smov (!%p163_p2), 1   ;;  %v1648_v20 = vld [vmem:[%s1744_s2 + $0x4] ss:$20 sps:$4 sm:$0xff] (!%p163_p2)   ;;  %v1030_v21 = vld [vmem:[%s1745_s3 + $0x8] sm:$0xff] (!%p163_p2)  ;;  %v1031_v23 = vld [vmem:[%s1745_s3 + $0x10] sm:$0xff] (!%p163_p2) }
   0xa   : > { %s1479_s13 = smov (!%p163_p2), 121   ;;  %v1029_v22 = vld [vmem:[%s1745_s3] sm:$0xff] (!%p163_p2)  ;;  %v1032_v25 = vld [vmem:[%s1745_s3 + $0x18] sm:$0xff] (!%p163_p2)  ;;  %vm273_vm1 = vcmask (!%p163_p2), 48128   ;;  %vm354_vm2 = vcmask (!%p163_p2), 56320   ;;  %vm448_vm3 = vcmask (!%p163_p2), 39936  }
   0xb   : > { %vm536_vm4 = vcmask (!%p163_p2), 7168   ;;  %vm1080_vm5 = vcmask (!%p163_p2), 1043744   ;;  %vm1081_vm6 = vcmask (!%p163_p2), 293892   ;;  %vm1103_vm8 = vcmask (!%p163_p2), 289792  }
   0xc   : > { %vm1082_vm7 = vmor (!%p163_p2), %vm1081_vm6, %vm1080_vm5 }
   0xd   : > { %s1748_s16 = smov (!%p188_p3, %s1163_s16), 1 }
   0xe   : > { %s1415_s19 = smul.u32 96, %s1748_s16 }
  0x10   : > { %s1524_s22 = scalar_lea.vmem %s1742_s0, %s1415_s19 }
  0x11   : > { %v1527_v1 = vld [vmem:[%s1524_s22 + $0x4] ss:$12 sps:$4 sm:$0xff]   ;;  %v1530_v2 = vld [vmem:[%s1524_s22] ss:$12 sps:$4 sm:$0xff]   ;;  %v1544_v5 = vld [vmem:[%s1524_s22 + $0x1c] ss:$12 sps:$4 sm:$0xff]  }
  0x12   : > { %713 = vrot.lane.b32.xlu1 %v1527_v1, %s1471_s23  ;;  %v1535_v3 = vld [vmem:[%s1524_s22 + $0x18] ss:$12 sps:$4 sm:$0xff]   ;;  %1323 = vmatprep.subr.bf16.mxu0 %v1527_v1  ;;  %v1548_v6 = vld [vmem:[%s1524_s22 + $0x1c] ss:$12 sps:$4 sm:$0xff]   ;;  %v1553_v7 = vld [vmem:[%s1524_s22 + $0x34] ss:$12 sps:$4 sm:$0xff]  }
  0x13   : > { %257 = vrot.lane.b32.xlu0 %v1530_v2, %s1472_s24  ;;  %v1540_v4 = vld [vmem:[%s1524_s22 + $0x4] ss:$12 sps:$4 sm:$0xff]   ;;  %1324 = vmatpush3.bf16.msra.mxu0 %v1527_v1  ;;  %v1557_v8 = vld [vmem:[%s1524_s22 + $0x34] ss:$12 sps:$4 sm:$0xff]   ;;  %v1563_v9 = vld [vmem:[%s1524_s22 + $0x4c] ss:$12 sps:$4 sm:$0xff]  }
  0x14   : > { %1325 = vmatprep.subr.bf16.mxu0 %v1544_v5  ;;  %v1447_v10 = vld [vmem:[%s1524_s22 + $0x30] ss:$12 sps:$4 sm:$0xff]   ;;  %v1448_v11 = vld [vmem:[%s1524_s22 + $0x48] ss:$12 sps:$4 sm:$0xff]   ;;  %v1452_v13 = vld [vmem:[%s1524_s22 + $0x4c] ss:$12 sps:$4 sm:$0xff]  }
  0x16   : > { %261 = vrot.lane.b32.xlu1 %v1535_v3, %s1472_s24 }
  0x17   : > { %259 = vrot.lane.b32.xlu0 %v1540_v4, %s1472_s24  ;;  %1326 = vmatpush3.bf16.msra.mxu0 %v1544_v5 }
  0x18   : > { %1327 = vmatprep.subr.bf16.mxu0 %v1553_v7 }
  0x1a   : > { %715 = vrot.lane.b32.xlu1 %v1544_v5, %s1471_s23 }
  0x1b   : > { %263 = vrot.lane.b32.xlu0 %v1548_v6, %s1472_s24  ;;  %1328 = vmatpush3.bf16.msra.mxu0 %v1553_v7 }
  0x1c   : > { %1329 = vmatprep.subr.bf16.mxu0 %v1563_v9 }
  0x1e   : > { %267 = vrot.lane.b32.xlu1 %v1557_v8, %s1472_s24 }
  0x1f   : > { %265 = vrot.lane.b32.xlu0 %v1447_v10, %s1472_s24  ;;  %1330 = vmatpush3.bf16.msra.mxu0 %v1563_v9 }
  0x22   : > { %269 = vrot.lane.b32.xlu1 %v1448_v11, %s1472_s24  ;;  %1332 = vmatmul.mubr.msk.bf16.vlgmr.msra.gmra.mrb[0].mxu0 %vm282_vm0, %v1456_v12 }
  0x23   : > { %717 = vrot.lane.b32.xlu0 %v1553_v7, %s1471_s23 }
  0x26   : > { %719 = vrot.lane.b32.xlu1 %v1563_v9, %s1471_s23 }
  0x27   : > { %271 = vrot.lane.b32.xlu0 %v1452_v13, %s1472_s24 }
  0x2a   : > { %340 = vrot.lane.b32.xlu1 %v1540_v4, %s1473_s27 }
  0x2b   : > { %338 = vrot.lane.b32.xlu0 %v1530_v2, %s1473_s27 }
  0x2e   : > { %709 = vrot.lane.b32.xlu1 %v1453_v0, %s1474_s30 }
  0x2f   : > { %221 = vrot.lane.b32.xlu0 %v1586_v14, %s1474_s30 }
  0x32   : > { %223 = vrot.lane.b32.xlu1 %v1592_v15, %s1474_s30 }
  0x33   : > { %798 = vrot.lane.b32.xlu0 %v1527_v1, %s1475_s7 }
  0x36   : > { %342 = vrot.lane.b32.xlu1 %v1535_v3, %s1473_s27 }
  0x37   : > { %711 = vrot.lane.b32.xlu0 %v1456_v12, %s1474_s30 }
  0x3a   : > { %800 = vrot.lane.b32.xlu1 %v1544_v5, %s1475_s7 }
  0x3b   : > { %344 = vrot.lane.b32.xlu0 %v1548_v6, %s1473_s27 }
  0x3e   : > { %348 = vrot.lane.b32.xlu1 %v1557_v8, %s1473_s27 }
  0x3f   : > { %346 = vrot.lane.b32.xlu0 %v1447_v10, %s1473_s27 }
  0x42   : > { %350 = vrot.lane.b32.xlu1 %v1448_v11, %s1473_s27 }
  0x43   : > { %802 = vrot.lane.b32.xlu0 %v1553_v7, %s1475_s7 }
  0x46   : > { %804 = vrot.lane.b32.xlu1 %v1563_v9, %s1475_s7 }
  0x47   : > { %352 = vrot.lane.b32.xlu0 %v1452_v13, %s1473_s27 }
  0x4a   : > { %434 = vrot.lane.b32.xlu1 %v1540_v4, %s1476_s8 }
  0x4b   : > { %432 = vrot.lane.b32.xlu0 %v1530_v2, %s1476_s8 }
  0x4e   : > { %436 = vrot.lane.b32.xlu1 %v1535_v3, %s1476_s8 }
  0x4f   : > { %873 = vrot.lane.b32.xlu0 %v1527_v1, %s1477_s9 }
  0x52   : > { %875 = vrot.lane.b32.xlu1 %v1544_v5, %s1477_s9 }
  0x53   : > { %438 = vrot.lane.b32.xlu0 %v1548_v6, %s1476_s8 }
  0x56   : > { %442 = vrot.lane.b32.xlu1 %v1557_v8, %s1476_s8 }
  0x57   : > { %440 = vrot.lane.b32.xlu0 %v1447_v10, %s1476_s8 }
  0x5a   : > { %444 = vrot.lane.b32.xlu1 %v1448_v11, %s1476_s8 }
  0x5b   : > { %877 = vrot.lane.b32.xlu0 %v1553_v7, %s1477_s9 }
  0x5e   : > { %879 = vrot.lane.b32.xlu1 %v1563_v9, %s1477_s9 }
  0x5f   : > { %446 = vrot.lane.b32.xlu0 %v1452_v13, %s1476_s8  ;;  %s1416_s8 = smul.u32 48, %s1748_s16 }
  0x61   : > { %s1714_s11 = scalar_lea.vmem %s1746_s4, %s1416_s8 }
  0x62   : > { %522 = vrot.lane.b32.xlu1 %v1540_v4, %s1478_s10  ;;  %1076 = vst [vmem:[%s1714_s11] sm:$0xf] %v1480_v18  ;;  %1077 = vst [vmem:[%s1714_s11 + $0xc] sm:$0xf] %v1480_v18 }
  0x63   : > { %520 = vrot.lane.b32.xlu0 %v1530_v2, %s1478_s10  ;;  %1078 = vst [vmem:[%s1714_s11 + $0x18] sm:$0xf] %v1480_v18  ;;  %1079 = vst [vmem:[%s1714_s11 + $0x24] sm:$0xf] %v1480_v18 }
  0x64   : > { %1085 = vst.msk [vmem:[%s1714_s11 + $0x1c] sm:$0xff] %vm1082_vm7, %v1480_v18  ;;  %1083 = vst.msk [vmem:[%s1714_s11 + $0x4] sm:$0xff] %vm1082_vm7, %v1480_v18 }
  0x65   : > { %1084 = vst.msk [vmem:[%s1714_s11 + $0x10] sm:$0xff] %vm1082_vm7, %v1480_v18  ;;  %1086 = vst.msk [vmem:[%s1714_s11 + $0x28] sm:$0xff] %vm1082_vm7, %v1480_v18 }
  0x66   : > { %958 = vrot.lane.b32.xlu1 %v1527_v1, %s1479_s13 }
  0x67   : > { %869 = vrot.lane.b32.xlu0 %v1620_v16, %s1474_s30 }
  0x6a   : > { %524 = vrot.lane.b32.xlu1 %v1535_v3, %s1478_s10 }
  0x6b   : > { %871 = vrot.lane.b32.xlu0 %v1628_v17, %s1474_s30 }
  0x6e   : > { %960 = vrot.lane.b32.xlu1 %v1544_v5, %s1479_s13 }
  0x6f   : > { %526 = vrot.lane.b32.xlu0 %v1548_v6, %s1478_s10 }
  0x72   : > { %530 = vrot.lane.b32.xlu1 %v1557_v8, %s1478_s10 }
  0x73   : > { %528 = vrot.lane.b32.xlu0 %v1447_v10, %s1478_s10 }
  0x76   : > { %532 = vrot.lane.b32.xlu1 %v1448_v11, %s1478_s10 }
  0x77   : > { %962 = vrot.lane.b32.xlu0 %v1553_v7, %s1479_s13 }
  0x7a   : > { %964 = vrot.lane.b32.xlu1 %v1563_v9, %s1479_s13 }
  0x7b   : > { %534 = vrot.lane.b32.xlu0 %v1452_v13, %s1478_s10 }
  0x7e   : > { %518 = vrot.lane.b32.xlu1 %v1643_v19, %s1474_s30 }
  0x7f   : > { %516 = vrot.lane.b32.xlu0 %v1648_v20, %s1474_s30 }
  0x82   : > { %1040 = vperm.xlu1 %1436, %v1030_v21  }
  0x83   : > { %1035 = vperm.xlu0 %1435, %v1029_v22  }
  0x84   : > { %v714_v24 = vpop.permute.xlu1 %713 }
  0x85   : > { %v258_v26 = vpop.permute.xlu0 %257  ;;  %1335 = vmatprep.subr.bf16.mxu0 %v714_v24 }
  0x86   : > { %1336 = vmatpush3.bf16.msra.mxu0 %v714_v24  ;;  %1045 = vperm.xlu1 %1436, %v1031_v23  }
  0x87   : > { %1050 = vperm.xlu0 %1435, %v1032_v25  }
  0x88   : > { %v262_v27 = vpop.permute.xlu1 %261 }
  0x89   : > { %v260_v28 = vpop.permute.xlu0 %259 }
  0x8a   : > { %v274_v29 = vsel %vm273_vm1, %v258_v26, %v260_v28 }
  0x8b   : > { %1275 = vmatprep.subr.bf16.mxu1 %v274_v29 }
  0x8c   : > { %1276 = vmatpush3.bf16.msra.mxu1 %v274_v29  ;;  %v716_v30 = vpop.permute.xlu1 %715 }
  0x8d   : > { %v264_v31 = vpop.permute.xlu0 %263  ;;  %1337 = vmatprep.subr.bf16.mxu0 %v716_v30 }
  0x8e   : > { %v275_v32 = vsel %vm273_vm1, %v262_v27, %v264_v31  ;;  %1338 = vmatpush3.bf16.msra.mxu0 %v716_v30 }
  0x8f   : > { %1277 = vmatprep.subr.bf16.mxu1 %v275_v32 }
  0x90   : > { %1278 = vmatpush3.bf16.msra.mxu1 %v275_v32  ;;  %v268_v33 = vpop.permute.xlu1 %267 }
  0x91   : > { %v266_v34 = vpop.permute.xlu0 %265 }
  0x92   : > { %v276_v35 = vsel %vm273_vm1, %v266_v34, %v268_v33  ;;  %v1462_v33 = vld [vmem:[%s1744_s2 + $0x38] ss:$20 sps:$4 sm:$0xff]  }
  0x93   : > { %1279 = vmatprep.subr.bf16.mxu1 %v276_v35 }
  0x94   : > { %1280 = vmatpush3.bf16.msra.mxu1 %v276_v35  ;;  %v270_v36 = vpop.permute.xlu1 %269 }
  0x95   : > { %v718_v37 = vpop.permute.xlu0 %717 }
  0x96   : > { %1339 = vmatprep.subr.bf16.mxu0 %v718_v37 }
  0x97   : > { %1340 = vmatpush3.bf16.msra.mxu0 %v718_v37 }
  0x98   : > { %v720_v38 = vpop.permute.xlu1 %719 }
  0x99   : > { %v272_v39 = vpop.permute.xlu0 %271  ;;  %1341 = vmatprep.subr.bf16.mxu0 %v720_v38 }
  0x9a   : > { %v277_v40 = vsel %vm273_vm1, %v270_v36, %v272_v39 }
  0x9b   : > { %1281 = vmatprep.subr.bf16.mxu1 %v277_v40  ;;  %1342 = vmatpush3.bf16.msra.mxu0 %v720_v38 }
  0x9c   : > { %1282 = vmatpush3.bf16.msra.mxu1 %v277_v40  ;;  %v341_v41 = vpop.permute.xlu1 %340 }
  0x9d   : > { %v339_v42 = vpop.permute.xlu0 %338 }
  0x9e   : > { %v355_v43 = vsel %vm354_vm2, %v339_v42, %v341_v41 }
  0x9f   : > { %1287 = vmatprep.subr.bf16.mxu1 %v355_v43 }
  0xa0   : > { %v710_v44 = vpop.permute.xlu1 %709 }
  0xa1   : > { %v222_v45 = vpop.permute.xlu0 %221  ;;  %1343 = vmatprep.mubr.msk.bf16.mxu0 %vm282_vm0, %v710_v44 }
  0xa2   : > { %1283 = vmatprep.mubr.msk.bf16.mxu1 %vm282_vm0, %v222_v45 }
  0xa4   : > { %v224_v46 = vpop.permute.xlu1 %223 }
  0xa5   : > { %v799_v47 = vpop.permute.xlu0 %798  ;;  %1284 = vmatmul.mubr.msk.bf16.vlgmr.msra.gmra.mrb[0].mxu1 %vm282_vm0, %v224_v46 }
  0xa6   : > { %1288 = vmatpush3.bf16.msra.mxu1 %v355_v43  ;;  %1347 = vmatprep.subr.bf16.mxu0 %v799_v47 }
  0xa7   : > { %1295 = vmatprep.mubr.msk.bf16.mxu1 %vm282_vm0, %v1586_v14 }
  0xa8   : > { %v343_v48 = vpop.permute.xlu1 %342 }
  0xa9   : > { %v712_v49 = vpop.permute.xlu0 %711 }
  0xaa   : > { %1344 = vmatmul.mubr.msk.bf16.vlgmr.msra.gmra.mrb[0].mxu0 %vm282_vm0, %v712_v49 }
  0xab   : > { %1348 = vmatpush3.bf16.msra.mxu0 %v799_v47  ;;  %1355 = vmatprep.mubr.msk.bf16.mxu0 %vm282_vm0, %v1620_v16 }
  0xac   : > { %v801_v50 = vpop.permute.xlu1 %800 }
  0xad   : > { %v345_v51 = vpop.permute.xlu0 %344  ;;  %1349 = vmatprep.subr.bf16.mxu0 %v801_v50 }
  0xae   : > { %v356_v52 = vsel %vm354_vm2, %v343_v48, %v345_v51 }
  0xaf   : > { %1289 = vmatprep.subr.bf16.mxu1 %v356_v52  ;;  %1350 = vmatpush3.bf16.msra.mxu0 %v801_v50 }
  0xb0   : > { %1290 = vmatpush3.bf16.msra.mxu1 %v356_v52  ;;  %v349_v53 = vpop.permute.xlu1 %348 }
  0xb1   : > { %v347_v54 = vpop.permute.xlu0 %346 }
  0xb2   : > { %v357_v55 = vsel %vm354_vm2, %v347_v54, %v349_v53 }
  0xb3   : > { %1291 = vmatprep.subr.bf16.mxu1 %v357_v55 }
  0xb4   : > { %1292 = vmatpush3.bf16.msra.mxu1 %v357_v55  ;;  %v351_v56 = vpop.permute.xlu1 %350  ;;  %v1210_v55 = vld [vmem:[%s1743_s1] ss:$0 sm:$0xff] }
  0xb5   : > { %v803_v57 = vpop.permute.xlu0 %802 }
  0xb6   : > { %1351 = vmatprep.subr.bf16.mxu0 %v803_v57 }
  0xb7   : > { %1352 = vmatpush3.bf16.msra.mxu0 %v803_v57 }
  0xb8   : > { %v805_v58 = vpop.permute.xlu1 %804 }
  0xb9   : > { %v353_v59 = vpop.permute.xlu0 %352  ;;  %1353 = vmatprep.subr.bf16.mxu0 %v805_v58 }
  0xba   : > { %v358_v60 = vsel %vm354_vm2, %v351_v56, %v353_v59 }
  0xbb   : > { %1293 = vmatprep.subr.bf16.mxu1 %v358_v60  ;;  %1354 = vmatpush3.bf16.msra.mxu0 %v805_v58 }
  0xbc   : > { %1294 = vmatpush3.bf16.msra.mxu1 %v358_v60  ;;  %v435_v61 = vpop.permute.xlu1 %434 }
  0xbd   : > { %v433_v62 = vpop.permute.xlu0 %432 }
  0xbe   : > { %v449_v63 = vsel %vm448_vm3, %v433_v62, %v435_v61  ;;  %1356 = vmatmul.mubr.msk.bf16.vlgmr.msra.gmra.mrb[0].mxu0 %vm282_vm0, %v1628_v17 }
  0xbf   : > { %1299 = vmatprep.subr.bf16.mxu1 %v449_v63  ;;  %1296 = vmatmul.mubr.msk.bf16.vlgmr.msra.gmra.mrb[0].mxu1 %vm282_vm0, %v1592_v15 }
  0xc0   : > { %1300 = vmatpush3.bf16.msra.mxu1 %v449_v63  ;;  %v437_v0 = vpop.permute.xlu1 %436  ;;  %1307 = vmatprep.mubr.msk.bf16.mxu1 %vm282_vm0, %v1648_v20  ;;  %v1461_v20 = vld [vmem:[%s1744_s2 + $0x10] ss:$20 sps:$4 sm:$0xff]  }
  0xc1   : > { %v874_v1 = vpop.permute.xlu0 %873 }
  0xc2   : > { %1359 = vmatprep.subr.bf16.mxu0 %v874_v1 }
  0xc3   : > { %1360 = vmatpush3.bf16.msra.mxu0 %v874_v1 }
  0xc4   : > { %v876_v2 = vpop.permute.xlu1 %875 }
  0xc5   : > { %v439_v3 = vpop.permute.xlu0 %438  ;;  %1361 = vmatprep.subr.bf16.mxu0 %v876_v2 }
  0xc6   : > { %v450_v4 = vsel %vm448_vm3, %v437_v0, %v439_v3 }
  0xc7   : > { %1301 = vmatprep.subr.bf16.mxu1 %v450_v4  ;;  %1362 = vmatpush3.bf16.msra.mxu0 %v876_v2 }
  0xc8   : > { %1302 = vmatpush3.bf16.msra.mxu1 %v450_v4  ;;  %v443_v5 = vpop.permute.xlu1 %442 }
  0xc9   : > { %v441_v6 = vpop.permute.xlu0 %440 }
  0xca   : > { %v451_v7 = vsel %vm448_vm3, %v441_v6, %v443_v5 }
  0xcb   : > { %1303 = vmatprep.subr.bf16.mxu1 %v451_v7 }
  0xcc   : > { %1304 = vmatpush3.bf16.msra.mxu1 %v451_v7  ;;  %v445_v8 = vpop.permute.xlu1 %444 }
  0xcd   : > { %v878_v9 = vpop.permute.xlu0 %877 }
  0xce   : > { %1363 = vmatprep.subr.bf16.mxu0 %v878_v9 }
  0xcf   : > { %1364 = vmatpush3.bf16.msra.mxu0 %v878_v9 }
  0xd0   : > { %v880_v10 = vpop.permute.xlu1 %879 }
  0xd1   : > { %v447_v11 = vpop.permute.xlu0 %446  ;;  %1365 = vmatprep.subr.bf16.mxu0 %v880_v10 }
  0xd2   : > { %v452_v12 = vsel %vm448_vm3, %v445_v8, %v447_v11 }
  0xd3   : > { %1305 = vmatprep.subr.bf16.mxu1 %v452_v12  ;;  %1366 = vmatpush3.bf16.msra.mxu0 %v880_v10 }
  0xd4   : > { %1306 = vmatpush3.bf16.msra.mxu1 %v452_v12  ;;  %v523_v13 = vpop.permute.xlu1 %522 }
  0xd5   : > { %v521_v14 = vpop.permute.xlu0 %520 }
  0xd6   : > { %v537_v15 = vsel %vm536_vm4, %v521_v14, %v523_v13 }
  0xd7   : > { %1311 = vmatprep.subr.bf16.mxu1 %v537_v15  ;;  %1308 = vmatmul.mubr.msk.bf16.vlgmr.msra.gmra.mrb[0].mxu1 %vm282_vm0, %v1643_v19 }
  0xd8   : > { %1312 = vmatpush3.bf16.msra.mxu1 %v537_v15  ;;  %v959_v16 = vpop.permute.xlu1 %958 }
  0xd9   : > { %v870_v17 = vpop.permute.xlu0 %869  ;;  %1371 = vmatprep.subr.bf16.mxu0 %v959_v16 }
  0xda   : > { %1367 = vmatprep.mubr.msk.bf16.mxu0 %vm282_vm0, %v870_v17 }
  0xdc   : > { %v525_v21 = vpop.permute.xlu1 %524 }
  0xdd   : > { %v872_v22 = vpop.permute.xlu0 %871 }
  0xde   : > { %1368 = vmatmul.mubr.msk.bf16.vlgmr.msra.gmra.mrb[0].mxu0 %vm282_vm0, %v872_v22 }
  0xdf   : > { %1372 = vmatpush3.bf16.msra.mxu0 %v959_v16  ;;  %1379 = vmatprep.mubr.msk.bf16.mxu0 %vm282_vm0, %v1461_v20 }
  0xe0   : > { %v961_v23 = vpop.permute.xlu1 %960 }
  0xe1   : > { %v527_v24 = vpop.permute.xlu0 %526  ;;  %1373 = vmatprep.subr.bf16.mxu0 %v961_v23 }
  0xe2   : > { %v538_v19 = vsel %vm536_vm4, %v525_v21, %v527_v24 }
  0xe3   : > { %1313 = vmatprep.subr.bf16.mxu1 %v538_v19  ;;  %1374 = vmatpush3.bf16.msra.mxu0 %v961_v23 }
  0xe4   : > { %1314 = vmatpush3.bf16.msra.mxu1 %v538_v19  ;;  %v531_v25 = vpop.permute.xlu1 %530 }
  0xe5   : > { %v529_v26 = vpop.permute.xlu0 %528 }
  0xe6   : > { %v539_v27 = vsel %vm536_vm4, %v529_v26, %v531_v25 }
  0xe7   : > { %1315 = vmatprep.subr.bf16.mxu1 %v539_v27 }
  0xe8   : > { %1316 = vmatpush3.bf16.msra.mxu1 %v539_v27  ;;  %v533_v28 = vpop.permute.xlu1 %532 }
  0xe9   : > { %v963_v29 = vpop.permute.xlu0 %962 }
  0xea   : > { %1375 = vmatprep.subr.bf16.mxu0 %v963_v29 }
  0xeb   : > { %1376 = vmatpush3.bf16.msra.mxu0 %v963_v29 }
  0xec   : > { %v965_v30 = vpop.permute.xlu1 %964 }
  0xed   : > { %v535_v31 = vpop.permute.xlu0 %534  ;;  %1377 = vmatprep.subr.bf16.mxu0 %v965_v30 }
  0xee   : > { %v540_v32 = vsel %vm536_vm4, %v533_v28, %v535_v31 }
  0xef   : > { %1317 = vmatprep.subr.bf16.mxu1 %v540_v32  ;;  %1378 = vmatpush3.bf16.msra.mxu0 %v965_v30 }
  0xf0   : > { %1318 = vmatpush3.bf16.msra.mxu1 %v540_v32  ;;  %v519_v34 = vpop.permute.xlu1 %518 }
  0xf1   : > { %v517_v35 = vpop.permute.xlu0 %516 }
  0xf2   : > { %1319 = vmatprep.mubr.msk.bf16.mxu1 %vm282_vm0, %v517_v35  ;;  %1380 = vmatmul.mubr.msk.bf16.vlgmr.msra.gmra.mrb[0].mxu0 %vm282_vm0, %v1462_v33 }
  0xf3   : > { %1320 = vmatmul.mubr.msk.bf16.vlgmr.msra.gmra.mrb[0].mxu1 %vm282_vm0, %v519_v34 }
 0x101   : > { %v1041_v36 = vpop.permute.xlu1 %1040 }
 0x102   : > { %v1036_v37 = vpop.permute.xlu0 %1035 }
 0x105   : > { %v1046_v39 = vpop.permute.xlu1 %1045 }
 0x106   : > { %v1051_v52 = vpop.permute.xlu0 %1050 }
 0x1c5   : > { %v1381_v38 = vpop.f32.mrb[0].mxu0 }
 0x1c6   : > { %v1321_v40 = vpop.f32.mrb[0].mxu1  ;;  %v1010_v41 = vpop.f32.mrb[1].mxu0 }
 0x1c7   : > { %v1383_v42 = vadd.f32 %v1381_v38, %v1321_v40  ;;  %v585_v43 = vpop.f32.mrb[1].mxu1  ;;  %v1382_v44 = vpop.f32.mrb[2].mxu0 }
 0x1c8   : > { %v1384_v45 = vadd.f32 %v1010_v41, %v585_v43  ;;  %v1322_v46 = vpop.f32.mrb[2].mxu1  ;;  %v1013_v47 = vpop.f32.mrb[3].mxu0 }
 0x1c9   : > { %v1055_v48 = vadd.f32 %v1383_v42, %v1046_v39  ;;  %v1385_v49 = vadd.f32 %v1382_v44, %v1322_v46  ;;  %v588_v50 = vpop.f32.mrb[3].mxu1 }
 0x1ca   : > { %v1053_v51 = vadd.f32 %v1384_v45, %v1036_v37  ;;  %v1386_v53 = vadd.f32 %v1013_v47, %v588_v50 }
 0x1cb   : > { %v1059_v54 = vmul.f32 0.2, %v1055_v48  ;;  %v1056_v18 = vadd.f32 %v1385_v49, %v1051_v52 }
 0x1cc   : > { %v1057_v56 = vmul.f32 0.2, %v1053_v51  ;;  %v1054_v57 = vadd.f32 %v1386_v53, %v1041_v36 }
 0x1cd   : > { %v1063_v58 = vmax.f32 %v1055_v48, %v1059_v54  ;;  %v1060_v59 = vmul.f32 0.2, %v1056_v18 }
 0x1ce   : > { %v1061_v60 = vmax.f32 %v1053_v51, %v1057_v56  ;;  %v1058_v61 = vmul.f32 0.2, %v1054_v57 }
 0x1cf   : > { %v1074_v62 = vmul.f32 %v1210_v55, %v1063_v58  ;;  %v1064_v63 = vmax.f32 %v1056_v18, %v1060_v59 }
 0x1d0   : > { %v1072_v0 = vmul.f32 %v1210_v55, %v1061_v60  ;;  %v1062_v1 = vmax.f32 %v1054_v57, %v1058_v61 }
 0x1d1   : > { %v1219_v2 = vpack.c.bf16 %v1074_v62, %v1074_v62  ;;  %v1075_v3 = vmul.f32 %v1210_v55, %v1064_v63 }
 0x1d2   : > { %v1217_v4 = vpack.c.bf16 %v1072_v0, %v1072_v0  ;;  %v1073_v5 = vmul.f32 %v1210_v55, %v1062_v1 }
 0x1d3   : > { %1106 = vst.msk [vmem:[%s1714_s11 + $0x1c] sm:$0xf] %vm1103_vm8, %v1219_v2  ;;  %v1220_v6 = vpack.c.bf16 %v1075_v3, %v1075_v3 }
 0x1d4   : > { %1104 = vst.msk [vmem:[%s1714_s11 + $0x4] sm:$0xf] %vm1103_vm8, %v1217_v4  ;;  %v1218_v7 = vpack.c.bf16 %v1073_v5, %v1073_v5 }
 0x1d5   : > { %1107 = vst.msk [vmem:[%s1714_s11 + $0x28] sm:$0xf] %vm1103_vm8, %v1220_v6 }
 0x1d6   : > { %1105 = vst.msk [vmem:[%s1714_s11 + $0x10] sm:$0xf] %vm1103_vm8, %v1218_v7 }
 0x1d7 PF: > { %s14_s15 = sadd.s32 1, %s1469_s15  }
 0x1d8   : > { %p11_p4 = scmp.ge.s32.totalorder %s14_s15, 4  }
 0x1da   :  { %13 = sbr.rel (!%p11_p4) target bundleno = 1 (0x1), region = 66 }

// kernel: unet_core_forward.16
= control target key start
LH: loop header
LB: loop body
LE: loop exit
PB: predicated region body
PF: predicated region fallthrough
CT: control target
= control target key end

     0   :  { %s2462_s21 = smov 0   ;;  %s2889_s0 = inlined_call_operand.vmem [shape: bf16[2,48,356], index: 0, kind: input, shape index: {}]   ;;  %s2890_s1 = inlined_call_operand.vmem [shape: f32[1,100], index: 1, kind: input, shape index: {}]   ;;  %s2891_s2 = inlined_call_operand.vmem [shape: bf16[32,432], index: 2, kind: input, shape index: {}]   ;;  %s2892_s3 = inlined_call_operand.vmem [shape: f32[32,1], index: 3, kind: input, shape index: {}]   ;;  %s2893_s4 = inlined_call_operand.vmem [shape: bf16[32,288], index: 4, kind: input, shape index: {}]   ;;  %s2894_s5 = inlined_call_operand.vmem [shape: f32[32,1], index: 5, kind: input, shape index: {}]   ;;  %s2895_s6 = inlined_call_operand.vmem [shape: bf16[2,32,356], index: 6, kind: output, shape index: {}]  }
   0x1 LB: > { %s1944_s22 = sadd.s32 4294967295, %s2409_s21   ;;  %p1948_p0 = scmp.ge.s32.totalorder %s2409_s21, 1  ;;  %s2409_s21 = sphi %s2462_s21, %s16_s21  }
   0x2   : > { %p212_p1 = scmp.lt.s32.totalorder %s2409_s21, 3 }
   0x4   : > { %p213_p2 = pnand %p1948_p0, %p212_p1 }
   0x5   : > { %p242_p3 = scmp.lt.s32.totalorder (!%p213_p2), %s1944_s22, 1  ;;  %s2411_s27 = smov (!%p213_p2), 11   ;;  %v2511_v6 = vld [vmem:[%s2891_s2] ss:$16 sps:$4 sm:$0xff] (!%p213_p2)   ;;  %vm320_vm0 = vcmask (!%p213_p2), 392192   ;;  %v2425_v22 = vmov (!%p213_p2), 0  }
   0x6   : > { %216 = sbr.rel (%p213_p2) target bundleno = 919 (0x397), region = 44  ;;  %2127 = vmatprep.mubr.msk.bf16.mxu0 (!%p213_p2), %vm320_vm0, %v2511_v6  ;;  %s2412_s30 = smov (!%p213_p2), 9   ;;  %v2374_v7 = vld [vmem:[%s2891_s2 + $0x4] ss:$16 sps:$4 sm:$0xff] (!%p213_p2)   ;;  %v2376_v8 = vld [vmem:[%s2891_s2] ss:$16 sps:$4 sm:$0xff] (!%p213_p2)   ;;  %2364 = vset.pattern.permute.xlu1 (!%p213_p2), %v2425_v22 }
   0x7   : > { %s2413_s11 = smov (!%p213_p2), 32   ;;  %v2377_v9 = vld [vmem:[%s2891_s2 + $0x24] ss:$16 sps:$4 sm:$0xff] (!%p213_p2)   ;;  %v2379_v10 = vld [vmem:[%s2891_s2 + $0x20] ss:$16 sps:$4 sm:$0xff] (!%p213_p2)   ;;  %s2414_s16 = smov (!%p213_p2), 1   ;;  %2363 = vset.pattern.permute.xlu0 (!%p213_p2), %v2425_v22 }
   0x8   : > { %v2380_v11 = vld [vmem:[%s2891_s2 + $0x24] ss:$16 sps:$4 sm:$0xff] (!%p213_p2)   ;;  %s2416_s24 = smov (!%p213_p2), 64   ;;  %s2417_s25 = smov (!%p213_p2), 127   ;;  %v2389_v18 = vld [vmem:[%s2891_s2 + $0x8] ss:$16 sps:$4 sm:$0xff] (!%p213_p2)  }
   0x9   : > { %v2381_v12 = vld [vmem:[%s2891_s2 + $0x4] ss:$16 sps:$4 sm:$0xff] (!%p213_p2)   ;;  %s2418_s7 = smov (!%p213_p2), 16   ;;  %v2390_v19 = vld [vmem:[%s2891_s2 + $0x28] ss:$16 sps:$4 sm:$0xff] (!%p213_p2)   ;;  %s2420_s20 = smov (!%p213_p2), 96  }
   0xa   : > { %v2384_v15 = vld [vmem:[%s2891_s2 + $0x4] ss:$16 sps:$4 sm:$0xff] (!%p213_p2)   ;;  %v2391_v20 = vld [vmem:[%s2891_s2 + $0x28] ss:$16 sps:$4 sm:$0xff] (!%p213_p2)   ;;  %s2422_s28 = smov (!%p213_p2), 10   ;;  %s2423_s29 = smov (!%p213_p2), 48  }
   0xb   : > { %v2387_v17 = vld [vmem:[%s2891_s2 + $0x24] ss:$16 sps:$4 sm:$0xff] (!%p213_p2)   ;;  %v2392_v21 = vld [vmem:[%s2891_s2 + $0x8] ss:$16 sps:$4 sm:$0xff] (!%p213_p2)   ;;  %v2394_v23 = vld [vmem:[%s2891_s2 + $0x20] ss:$16 sps:$4 sm:$0xff] (!%p213_p2)  }
   0xc   : > { %s2426_s10 = smov (!%p213_p2), 80   ;;  %v1082_v24 = vld [vmem:[%s2892_s3 + $0x8] sm:$0xff] (!%p213_p2)  ;;  %v1081_v25 = vld [vmem:[%s2892_s3] sm:$0xff] (!%p213_p2)  ;;  %v1083_v26 = vld [vmem:[%s2892_s3 + $0x10] sm:$0xff] (!%p213_p2)  ;;  %vm388_vm1 = vcmask (!%p213_p2), 89088   ;;  %vm493_vm2 = vcmask (!%p213_p2), 72704  }
   0xd   : > { %s2897_s22 = smov (!%p242_p3, %s1944_s22), 1  ;;  %v1084_v27 = vld [vmem:[%s2892_s3 + $0x18] sm:$0xff]  ;;  %v2654_v33 = vld [vmem:[%s2893_s4] ss:$12 sps:$4 sm:$0xff]   ;;  %vm478_vm3 = vcmask 261120   ;;  %vm589_vm4 = vcmask 7168  }
   0xe   : > { %s2337_s23 = smul.u32 72, %s2897_s22  ;;  %vm770_vm5 = vcmask 130048   ;;  %vm313_vm6 = vcmask 80896   ;;  %vm1130_vm7 = vcmask 1048352   ;;  %vm1132_vm8 = vcmask 818176  }
   0xf   : > { %1131 = vst.msk [vmem:[#allocation2 + $0x8] sm:$0xff] %vm1130_vm7, %v2425_v22  ;;  %1134 = vst.msk [vmem:[#allocation2 + $0x20] sm:$0xff] %vm1130_vm7, %v2425_v22  ;;  %vm1861_vm9 = vcmask 1044256   ;;  %vm1862_vm10 = vcmask 818180   ;;  %vm1884_vm12 = vcmask 814080  }
  0x10   : > { %s2476_s26 = scalar_lea.vmem %s2889_s0, %s2337_s23  ;;  %s2415_s23 = smov 112   ;;  %vm1863_vm11 = vmor %vm1862_vm10, %vm1861_vm9 }
  0x11   : > { %v2479_v0 = vld [vmem:[%s2476_s26 + $0x18] ss:$12 sps:$4 sm:$0xff]   ;;  %v2482_v1 = vld [vmem:[%s2476_s26] ss:$12 sps:$4 sm:$0xff]   ;;  %v2487_v2 = vld [vmem:[%s2476_s26 + $0x1c] ss:$12 sps:$4 sm:$0xff]  }
  0x12   : > { %380 = vrot.lane.b32.xlu1 %v2479_v0, %s2411_s27  ;;  %376 = vrot.lane.b32.xlu0 %v2482_v1, %s2411_s27  ;;  %v2492_v3 = vld [vmem:[%s2476_s26 + $0x4] ss:$12 sps:$4 sm:$0xff]   ;;  %v2497_v4 = vld [vmem:[%s2476_s26 + $0x34] ss:$12 sps:$4 sm:$0xff]  }
  0x13   : > { %v2502_v5 = vld [vmem:[%s2476_s26 + $0x30] ss:$12 sps:$4 sm:$0xff]   ;;  %v2577_v16 = vld [vmem:[%s2476_s26 + $0x34] ss:$12 sps:$4 sm:$0xff]  }
  0x14   : > { %v2563_v13 = vld [vmem:[%s2476_s26 + $0x1c] ss:$12 sps:$4 sm:$0xff]   ;;  %v2567_v14 = vld [vmem:[%s2476_s26 + $0x4] ss:$12 sps:$4 sm:$0xff]   ;;  %s2419_s26 = smov 119  }
  0x16   : > { %382 = vrot.lane.b32.xlu1 %v2487_v2, %s2411_s27  ;;  %378 = vrot.lane.b32.xlu0 %v2492_v3, %s2411_s27 }
  0x1a   : > { %386 = vrot.lane.b32.xlu1 %v2497_v4, %s2411_s27  ;;  %384 = vrot.lane.b32.xlu0 %v2502_v5, %s2411_s27 }
  0x1e   : > { %483 = vrot.lane.b32.xlu1 %v2492_v3, %s2412_s30  ;;  %481 = vrot.lane.b32.xlu0 %v2482_v1, %s2412_s30 }
  0x22   : > { %487 = vrot.lane.b32.xlu1 %v2487_v2, %s2412_s30  ;;  %485 = vrot.lane.b32.xlu0 %v2479_v0, %s2412_s30 }
  0x26   : > { %491 = vrot.lane.b32.xlu1 %v2497_v4, %s2412_s30  ;;  %489 = vrot.lane.b32.xlu0 %v2502_v5, %s2412_s30 }
  0x2a   : > { %472 = vrot.lane.b32.xlu1 %v2374_v7, %s2413_s11  ;;  %470 = vrot.lane.b32.xlu0 %v2376_v8, %s2413_s11 }
  0x2e   : > { %476 = vrot.lane.b32.xlu1 %v2377_v9, %s2413_s11  ;;  %474 = vrot.lane.b32.xlu0 %v2379_v10, %s2413_s11 }
  0x32   : > { %579 = vrot.lane.b32.xlu1 %v2492_v3, %s2414_s16  ;;  %577 = vrot.lane.b32.xlu0 %v2482_v1, %s2414_s16 }
  0x36   : > { %583 = vrot.lane.b32.xlu1 %v2487_v2, %s2414_s16  ;;  %581 = vrot.lane.b32.xlu0 %v2479_v0, %s2414_s16 }
  0x3a   : > { %587 = vrot.lane.b32.xlu1 %v2497_v4, %s2414_s16  ;;  %585 = vrot.lane.b32.xlu0 %v2502_v5, %s2414_s16 }
  0x3e   : > { %575 = vrot.lane.b32.xlu1 %v2380_v11, %s2415_s23  ;;  %573 = vrot.lane.b32.xlu0 %v2381_v12, %s2415_s23  ;;  %s2421_s23 = smov 118  }
  0x42   : > { %663 = vrot.lane.b32.xlu1 %v2380_v11, %s2416_s24  ;;  %661 = vrot.lane.b32.xlu0 %v2381_v12, %s2416_s24 }
  0x46   : > { %775 = vrot.lane.b32.xlu1 %v2563_v13, %s2417_s25  ;;  %773 = vrot.lane.b32.xlu0 %v2567_v14, %s2417_s25 }
  0x4a   : > { %762 = vrot.lane.b32.xlu1 %v2384_v15, %s2418_s7  ;;  %777 = vrot.lane.b32.xlu0 %v2577_v16, %s2417_s25 }
  0x4e   : > { %766 = vrot.lane.b32.xlu1 %v2387_v17, %s2418_s7  ;;  %764 = vrot.lane.b32.xlu0 %v2389_v18, %s2418_s7 }
  0x52   : > { %859 = vrot.lane.b32.xlu1 %v2567_v14, %s2419_s26  ;;  %768 = vrot.lane.b32.xlu0 %v2390_v19, %s2418_s7  ;;  %s2424_s7 = smov 117  }
  0x56   : > { %863 = vrot.lane.b32.xlu1 %v2577_v16, %s2419_s26  ;;  %861 = vrot.lane.b32.xlu0 %v2563_v13, %s2419_s26 }
  0x5a   : > { %857 = vrot.lane.b32.xlu1 %v2391_v20, %s2420_s20  ;;  %855 = vrot.lane.b32.xlu0 %v2392_v21, %s2420_s20 }
  0x5e   : > { %933 = vrot.lane.b32.xlu1 %v2563_v13, %s2421_s23  ;;  %931 = vrot.lane.b32.xlu0 %v2567_v14, %s2421_s23 }
  0x62   : > { %301 = vrot.lane.b32.xlu1 %v2482_v1, %s2422_s28  ;;  %935 = vrot.lane.b32.xlu0 %v2577_v16, %s2421_s23 }
  0x66   : > { %927 = vrot.lane.b32.xlu1 %v2392_v21, %s2423_s29  ;;  %303 = vrot.lane.b32.xlu0 %v2492_v3, %s2422_s28 }
  0x6a   : > { %1013 = vrot.lane.b32.xlu1 %v2567_v14, %s2424_s7  ;;  %929 = vrot.lane.b32.xlu0 %v2391_v20, %s2423_s29 }
  0x6e   : > { %307 = vrot.lane.b32.xlu1 %v2487_v2, %s2422_s28  ;;  %305 = vrot.lane.b32.xlu0 %v2479_v0, %s2422_s28 }
  0x72   : > { %309 = vrot.lane.b32.xlu1 %v2502_v5, %s2422_s28  ;;  %1015 = vrot.lane.b32.xlu0 %v2563_v13, %s2424_s7 }
  0x76   : > { %1017 = vrot.lane.b32.xlu1 %v2577_v16, %s2424_s7  ;;  %311 = vrot.lane.b32.xlu0 %v2497_v4, %s2422_s28 }
  0x7a   : > { %275 = vrot.lane.b32.xlu1 %v2394_v23, %s2426_s10  ;;  %273 = vrot.lane.b32.xlu0 %v2511_v6, %s2426_s10 }
  0x7e   : > { %1092 = vperm.xlu1 %2364, %v1082_v24   ;;  %1087 = vperm.xlu0 %2363, %v1081_v25  }
  0x82   : > { %1097 = vperm.xlu1 %2364, %v1083_v26   ;;  %1102 = vperm.xlu0 %2363, %v1084_v27  }
  0x84   : > { %v381_v28 = vpop.permute.xlu1 %380  ;;  %v377_v29 = vpop.permute.xlu0 %376 }
  0x86   : > { %1166 = vrot.lane.b32.xlu1 %v2425_v22, %s2422_s28 }
  0x88   : > { %v383_v30 = vpop.permute.xlu1 %382  ;;  %v379_v31 = vpop.permute.xlu0 %378 }
  0x89   : > { %v389_v32 = vsel %vm388_vm1, %v377_v29, %v379_v31  ;;  %v390_v35 = vsel %vm388_vm1, %v381_v28, %v383_v30  ;;  %v2395_v28 = vld [vmem:[%s2891_s2 + $0xc] ss:$16 sps:$4 sm:$0xff]  }
  0x8a   : > { %1170 = vrot.lane.b32.xlu1 %v2425_v22, %s2422_s28  ;;  %2121 = vmatprep.subr.bf16.mxu0 %v389_v32 }
  0x8b   : > { %2122 = vmatpush3.bf16.msra.mxu0 %v389_v32 }
  0x8c   : > { %v387_v34 = vpop.permute.xlu1 %386  ;;  %2123 = vmatprep.subr.bf16.mxu0 %v390_v35  ;;  %v385_v36 = vpop.permute.xlu0 %384 }
  0x8d   : > { %v391_v38 = vsel %vm388_vm1, %v385_v36, %v387_v34  ;;  %v2396_v36 = vld [vmem:[%s2891_s2 + $0x2c] ss:$16 sps:$4 sm:$0xff]  }
  0x8e   : > { %1158 = vrot.lane.b32.xlu1 %v2654_v33, %s2420_s20 }
  0x8f   : > { %2124 = vmatpush3.bf16.msra.mxu0 %v390_v35 }
  0x90   : > { %v484_v37 = vpop.permute.xlu1 %483  ;;  %2125 = vmatprep.subr.bf16.mxu0 %v391_v38  ;;  %v482_v39 = vpop.permute.xlu0 %481 }
  0x91   : > { %v494_v41 = vsel %vm493_vm2, %v482_v39, %v484_v37 }
  0x92   : > { %1234 = vrot.lane.b32.xlu1 %v2425_v22, %s2411_s27 }
  0x93   : > { %2126 = vmatpush3.bf16.msra.mxu0 %v391_v38 }
  0x94   : > { %v488_v40 = vpop.permute.xlu1 %487  ;;  %2131 = vmatprep.subr.bf16.mxu0 %v494_v41  ;;  %v486_v42 = vpop.permute.xlu0 %485 }
  0x95   : > { %v495_v44 = vsel %vm493_vm2, %v486_v42, %v488_v40 }
  0x96   : > { %1238 = vrot.lane.b32.xlu1 %v2425_v22, %s2411_s27  ;;  %2128 = vmatmul.mubr.msk.bf16.vlgmr.msra.gmra.mrb[0].mxu0 %vm320_vm0, %v2394_v23 }
  0x97   : > { %2132 = vmatpush3.bf16.msra.mxu0 %v494_v41 }
  0x98   : > { %v492_v43 = vpop.permute.xlu1 %491  ;;  %2133 = vmatprep.subr.bf16.mxu0 %v495_v44  ;;  %v490_v45 = vpop.permute.xlu0 %489 }
  0x99   : > { %v496_v47 = vsel %vm493_vm2, %v490_v45, %v492_v43 }
  0x9a   : > { %1305 = vrot.lane.b32.xlu1 %v2425_v22, %s2412_s30 }
  0x9b   : > { %2134 = vmatpush3.bf16.msra.mxu0 %v495_v44 }
  0x9c   : > { %v473_v46 = vpop.permute.xlu1 %472  ;;  %2135 = vmatprep.subr.bf16.mxu0 %v496_v47  ;;  %v471_v48 = vpop.permute.xlu0 %470 }
  0x9d   : > { %v479_v49 = vsel %vm478_vm3, %v471_v48, %v473_v46 }
  0x9e   : > { %1309 = vrot.lane.b32.xlu1 %v2425_v22, %s2412_s30  ;;  %2137 = vmatprep.mubr.msk.bf16.mxu0 %vm320_vm0, %v479_v49 }
  0x9f   : > { %2136 = vmatpush3.bf16.msra.mxu0 %v496_v47 }
  0xa0   : > { %v477_v50 = vpop.permute.xlu1 %476  ;;  %v475_v51 = vpop.permute.xlu0 %474 }
  0xa1   : > { %v480_v52 = vsel %vm478_vm3, %v475_v51, %v477_v50 }
  0xa2   : > { %1301 = vrot.lane.b32.xlu1 %v2654_v33, %s2416_s24  ;;  %2138 = vmatmul.mubr.msk.bf16.vlgmr.msra.gmra.mrb[0].mxu0 %vm320_vm0, %v480_v52 }
  0xa4   : > { %v580_v53 = vpop.permute.xlu1 %579  ;;  %v578_v54 = vpop.permute.xlu0 %577 }
  0xa5   : > { %v590_v55 = vsel %vm589_vm4, %v578_v54, %v580_v53 }
  0xa6   : > { %1380 = vrot.lane.b32.xlu1 %v2425_v22, %s2414_s16  ;;  %2141 = vmatprep.subr.bf16.mxu0 %v590_v55 }
  0xa7   : > { %2142 = vmatpush3.bf16.msra.mxu0 %v590_v55 }
  0xa8   : > { %v584_v56 = vpop.permute.xlu1 %583  ;;  %v582_v57 = vpop.permute.xlu0 %581 }
  0xa9   : > { %v591_v58 = vsel %vm589_vm4, %v582_v57, %v584_v56 }
  0xaa   : > { %1384 = vrot.lane.b32.xlu1 %v2425_v22, %s2414_s16  ;;  %2143 = vmatprep.subr.bf16.mxu0 %v591_v58 }
  0xab   : > { %2144 = vmatpush3.bf16.msra.mxu0 %v591_v58 }
  0xac   : > { %v588_v59 = vpop.permute.xlu1 %587  ;;  %v586_v60 = vpop.permute.xlu0 %585 }
  0xad   : > { %v592_v61 = vsel %vm589_vm4, %v586_v60, %v588_v59 }
  0xae   : > { %1376 = vrot.lane.b32.xlu1 %v2654_v33, %s2413_s11  ;;  %2145 = vmatprep.subr.bf16.mxu0 %v592_v61 }
  0xaf   : > { %2146 = vmatpush3.bf16.msra.mxu0 %v592_v61 }
  0xb0   : > { %v576_v62 = vpop.permute.xlu1 %575  ;;  %v574_v63 = vpop.permute.xlu0 %573  ;;  %2151 = vmatprep.subr.bf16.mxu0 %v2567_v14 }
  0xb1   : > { %2147 = vmatprep.mubr.msk.bf16.mxu0 %vm320_vm0, %v574_v63 }
  0xb2   : > { %2148 = vmatmul.mubr.msk.bf16.vlgmr.msra.gmra.mrb[0].mxu0 %vm320_vm0, %v576_v62 }
  0xb3   : > { %2152 = vmatpush3.bf16.msra.mxu0 %v2567_v14 }
  0xb4   : > { %v664_v0 = vpop.permute.xlu1 %663  ;;  %v662_v1 = vpop.permute.xlu0 %661  ;;  %2153 = vmatprep.subr.bf16.mxu0 %v2563_v13 }
  0xb5   : > { %2157 = vmatprep.mubr.msk.bf16.mxu0 %vm320_vm0, %v662_v1 }
  0xb7   : > { %2154 = vmatpush3.bf16.msra.mxu0 %v2563_v13 }
  0xb8   : > { %v776_v2 = vpop.permute.xlu1 %775  ;;  %v774_v3 = vpop.permute.xlu0 %773  ;;  %2155 = vmatprep.subr.bf16.mxu0 %v2577_v16 }
  0xbb   : > { %2156 = vmatpush3.bf16.msra.mxu0 %v2577_v16 }
  0xbc   : > { %v763_v4 = vpop.permute.xlu1 %762  ;;  %2161 = vmatprep.subr.bf16.mxu0 %v774_v3  ;;  %v778_v5 = vpop.permute.xlu0 %777 }
  0xbe   : > { %2158 = vmatmul.mubr.msk.bf16.vlgmr.msra.gmra.mrb[0].mxu0 %vm320_vm0, %v664_v0 }
  0xbf   : > { %2162 = vmatpush3.bf16.msra.mxu0 %v774_v3  ;;  %v2726_v3 = vld [vmem:[%s2890_s1] ss:$0 sm:$0xff] }
  0xc0   : > { %v767_v6 = vpop.permute.xlu1 %766  ;;  %2163 = vmatprep.subr.bf16.mxu0 %v776_v2  ;;  %v765_v7 = vpop.permute.xlu0 %764 }
  0xc1   : > { %v771_v8 = vsel %vm770_vm5, %v763_v4, %v765_v7 }
  0xc2   : > { %2167 = vmatprep.mubr.msk.bf16.mxu0 %vm320_vm0, %v771_v8 }
  0xc3   : > { %2164 = vmatpush3.bf16.msra.mxu0 %v776_v2 }
  0xc4   : > { %v860_v9 = vpop.permute.xlu1 %859  ;;  %2165 = vmatprep.subr.bf16.mxu0 %v778_v5  ;;  %v769_v10 = vpop.permute.xlu0 %768 }
  0xc5   : > { %v772_v13 = vsel %vm770_vm5, %v767_v6, %v769_v10 }
  0xc7   : > { %2166 = vmatpush3.bf16.msra.mxu0 %v778_v5 }
  0xc8   : > { %v864_v11 = vpop.permute.xlu1 %863  ;;  %2171 = vmatprep.subr.bf16.mxu0 %v860_v9  ;;  %v862_v12 = vpop.permute.xlu0 %861 }
  0xca   : > { %2168 = vmatmul.mubr.msk.bf16.vlgmr.msra.gmra.mrb[0].mxu0 %vm320_vm0, %v772_v13 }
  0xcb   : > { %2172 = vmatpush3.bf16.msra.mxu0 %v860_v9 }
  0xcc   : > { %v858_v14 = vpop.permute.xlu1 %857  ;;  %2173 = vmatprep.subr.bf16.mxu0 %v862_v12  ;;  %v856_v15 = vpop.permute.xlu0 %855 }
  0xcd   : > { %2177 = vmatprep.mubr.msk.bf16.mxu0 %vm320_vm0, %v856_v15 }
  0xcf   : > { %2174 = vmatpush3.bf16.msra.mxu0 %v862_v12 }
  0xd0   : > { %v934_v16 = vpop.permute.xlu1 %933  ;;  %2175 = vmatprep.subr.bf16.mxu0 %v864_v11  ;;  %v932_v17 = vpop.permute.xlu0 %931 }
  0xd3   : > { %2176 = vmatpush3.bf16.msra.mxu0 %v864_v11 }
  0xd4   : > { %v302_v18 = vpop.permute.xlu1 %301  ;;  %2181 = vmatprep.subr.bf16.mxu0 %v932_v17  ;;  %v936_v19 = vpop.permute.xlu0 %935 }
  0xd6   : > { %2178 = vmatmul.mubr.msk.bf16.vlgmr.msra.gmra.mrb[0].mxu0 %vm320_vm0, %v858_v14  ;;  %v2743_v14 = vld [vmem:[%s2893_s4 + $0x4] ss:$12 sps:$4 sm:$0xff]  }
  0xd7   : > { %2182 = vmatpush3.bf16.msra.mxu0 %v932_v17  ;;  %v1810_v17 = vld [vmem:[%s2894_s5] sm:$0xff] }
  0xd8   : > { %v928_v20 = vpop.permute.xlu1 %927  ;;  %2183 = vmatprep.subr.bf16.mxu0 %v934_v16  ;;  %v304_v21 = vpop.permute.xlu0 %303 }
  0xd9   : > { %2187 = vmatprep.mubr.msk.bf16.mxu0 %vm320_vm0, %v928_v20  ;;  %v314_v23 = vsel %vm313_vm6, %v302_v18, %v304_v21  ;;  %v1812_v18 = vld [vmem:[%s2894_s5 + $0x10] sm:$0xff]  ;;  %v1811_v20 = vld [vmem:[%s2894_s5 + $0x8] sm:$0xff]  ;;  %v1813_v21 = vld [vmem:[%s2894_s5 + $0x18] sm:$0xff] }
  0xda   : > { %2111 = vmatprep.subr.bf16.mxu1 %v314_v23 }
  0xdb   : > { %2112 = vmatpush3.bf16.msra.mxu1 %v314_v23  ;;  %2184 = vmatpush3.bf16.msra.mxu0 %v934_v16  ;;  %v2754_v16 = vld [vmem:[%s2893_s4 + $0x18] ss:$12 sps:$4 sm:$0xff]  }
  0xdc   : > { %v1014_v24 = vpop.permute.xlu1 %1013  ;;  %2185 = vmatprep.subr.bf16.mxu0 %v936_v19  ;;  %v930_v25 = vpop.permute.xlu0 %929 }
  0xdf   : > { %2186 = vmatpush3.bf16.msra.mxu0 %v936_v19  ;;  %v2795_v19 = vld [vmem:[%s2893_s4 + $0x1c] ss:$12 sps:$4 sm:$0xff]  }
  0xe0   : > { %v308_v26 = vpop.permute.xlu1 %307  ;;  %2191 = vmatprep.subr.bf16.mxu0 %v1014_v24  ;;  %v306_v27 = vpop.permute.xlu0 %305 }
  0xe1   : > { %v315_v29 = vsel %vm313_vm6, %v306_v27, %v308_v26 }
  0xe2   : > { %2113 = vmatprep.subr.bf16.mxu1 %v315_v29  ;;  %2188 = vmatmul.mubr.msk.bf16.vlgmr.msra.gmra.mrb[0].mxu0 %vm320_vm0, %v930_v25 }
  0xe3   : > { %2114 = vmatpush3.bf16.msra.mxu1 %v315_v29  ;;  %2192 = vmatpush3.bf16.msra.mxu0 %v1014_v24 }
  0xe4   : > { %v310_v30 = vpop.permute.xlu1 %309  ;;  %v1016_v31 = vpop.permute.xlu0 %1015  ;;  %2197 = vmatprep.mubr.msk.bf16.mxu0 %vm320_vm0, %v2395_v28 }
  0xe5   : > { %2193 = vmatprep.subr.bf16.mxu0 %v1016_v31 }
  0xe7   : > { %2194 = vmatpush3.bf16.msra.mxu0 %v1016_v31 }
  0xe8   : > { %v1018_v32 = vpop.permute.xlu1 %1017  ;;  %v312_v34 = vpop.permute.xlu0 %311 }
  0xe9   : > { %2195 = vmatprep.subr.bf16.mxu0 %v1018_v32  ;;  %v316_v35 = vsel %vm313_vm6, %v310_v30, %v312_v34 }
  0xea   : > { %2115 = vmatprep.subr.bf16.mxu1 %v316_v35 }
  0xeb   : > { %2116 = vmatpush3.bf16.msra.mxu1 %v316_v35  ;;  %2196 = vmatpush3.bf16.msra.mxu0 %v1018_v32 }
  0xec   : > { %v276_v37 = vpop.permute.xlu1 %275  ;;  %v274_v38 = vpop.permute.xlu0 %273 }
  0xed   : > { %2117 = vmatprep.mubr.msk.bf16.mxu1 %vm320_vm0, %v274_v38 }
  0xee   : > { %2118 = vmatmul.mubr.msk.bf16.vlgmr.msra.gmra.mrb[0].mxu1 %vm320_vm0, %v276_v37  ;;  %2198 = vmatmul.mubr.msk.bf16.vlgmr.msra.gmra.mrb[0].mxu0 %vm320_vm0, %v2396_v36 }
  0xfd   : > { %v1093_v39 = vpop.permute.xlu1 %1092  ;;  %v1088_v44 = vpop.permute.xlu0 %1087 }
 0x101   : > { %v1098_v40 = vpop.permute.xlu1 %1097  ;;  %v1103_v45 = vpop.permute.xlu0 %1102 }
 0x105   : > { %v2718_v41 = vpop.permute.xlu1 %1166 }
 0x109   : > { %v2720_v42 = vpop.permute.xlu1 %1170 }
 0x10d   : > { %v1159_v43 = vpop.permute.xlu1 %1158 }
 0x10e   : > { %2205 = vmatprep.mubr.msk.bf16.mxu1 %vm478_vm3, %v1159_v43 }
 0x111   : > { %v1235_v23 = vpop.permute.xlu1 %1234 }
 0x115   : > { %v1239_v24 = vpop.permute.xlu1 %1238 }
 0x119   : > { %v1306_v27 = vpop.permute.xlu1 %1305 }
 0x11d   : > { %v1310_v31 = vpop.permute.xlu1 %1309 }
 0x121   : > { %v1302_v35 = vpop.permute.xlu1 %1301 }
 0x1c1   : > { %v2119_v46 = vpop.f32.mrb[0].mxu1  ;;  %v2199_v47 = vpop.f32.mrb[0].mxu0 }
 0x1c2   : > { %v2273_v48 = vadd.f32 %v2199_v47, %v2119_v46  ;;  %v361_v49 = vpop.f32.mrb[1].mxu1  ;;  %v1062_v50 = vpop.f32.mrb[1].mxu0 }
 0x1c3   : > { %v2274_v51 = vadd.f32 %v1062_v50, %v361_v49  ;;  %v2120_v52 = vpop.f32.mrb[2].mxu1  ;;  %v2200_v53 = vpop.f32.mrb[2].mxu0 }
 0x1c4   : > { %v1107_v54 = vadd.f32 %v2273_v48, %v1098_v40  ;;  %v2275_v55 = vadd.f32 %v2200_v53, %v2120_v52  ;;  %v364_v56 = vpop.f32.mrb[3].mxu1  ;;  %v1065_v57 = vpop.f32.mrb[3].mxu0 }
 0x1c5   : > { %v1105_v58 = vadd.f32 %v2274_v51, %v1088_v44  ;;  %v2276_v59 = vadd.f32 %v1065_v57, %v364_v56  ;;  %v1381_v40 = vpop.permute.xlu1 %1380 }
 0x1c6   : > { %v1111_v60 = vmul.f32 0.2, %v1107_v54  ;;  %v1108_v61 = vadd.f32 %v2275_v55, %v1103_v45 }
 0x1c7   : > { %v1109_v62 = vmul.f32 0.2, %v1105_v58  ;;  %v1106_v63 = vadd.f32 %v2276_v59, %v1093_v39 }
 0x1c8   : > { %v1115_v0 = vmax.f32 %v1107_v54, %v1111_v60  ;;  %v1112_v1 = vmul.f32 0.2, %v1108_v61 }
 0x1c9   : > { %v1113_v2 = vmax.f32 %v1105_v58, %v1109_v62  ;;  %v1110_v4 = vmul.f32 0.2, %v1106_v63 }
 0x1ca   : > { %v1116_v5 = vmax.f32 %v1108_v61, %v1112_v1  ;;  %v1126_v7 = vmul.f32 %v2726_v3, %v1115_v0  ;;  %v2402_v1 = vld [vmem:[%s2893_s4 + $0x20] ss:$12 sps:$4 sm:$0xff]  }
 0x1cb   : > { %v1114_v6 = vmax.f32 %v1106_v63, %v1110_v4  ;;  %v1124_v9 = vmul.f32 %v2726_v3, %v1113_v2  ;;  %v2401_v63 = vld [vmem:[%s2893_s4 + $0x8] ss:$12 sps:$4 sm:$0xff]  }
 0x1cc   : > { %v1127_v8 = vmul.f32 %v2726_v3, %v1116_v5 }
 0x1cd   : > { %v1125_v10 = vmul.f32 %v2726_v3, %v1114_v6 }
 0x1ce   : > { %v1137_v11 = vpack.c.bf16 %v1127_v8, %v1126_v7 }
 0x1cf   : > { %v1136_v12 = vpack.c.bf16 %v1125_v10, %v1124_v9 }
 0x1d0   : > { %1139 = vst.msk [vmem:[#allocation2 + $0x20] sm:$0xff] %vm1132_vm8, %v1137_v11 }
 0x1d1   : > { %1138 = vst.msk [vmem:[#allocation2 + $0x8] sm:$0xff] %vm1132_vm8, %v1136_v12 }
 0x1d7   : > { %v2745_v15 = vld [vmem:[#allocation2 + $0x20] sm:$0xff] }
 0x1d8   : > { %v2734_v13 = vld [vmem:[#allocation2 + $0x8] sm:$0xff] }
 0x1d9   : > { %1528 = vrot.lane.b32.xlu1 %v2734_v13, %s2417_s25  ;;  %1168 = vrot.lane.b32.xlu0 %v2734_v13, %s2422_s28 }
 0x1dd   : > { %1524 = vrot.lane.b32.xlu1 %v2743_v14, %s2420_s20  ;;  %1172 = vrot.lane.b32.xlu0 %v2745_v15, %s2422_s28 }
 0x1e1   : > { %1597 = vrot.lane.b32.xlu1 %v2734_v13, %s2419_s26  ;;  %1160 = vrot.lane.b32.xlu0 %v2754_v16, %s2420_s20 }
 0x1e5   : > { %1593 = vrot.lane.b32.xlu1 %v2743_v14, %s2416_s24  ;;  %1236 = vrot.lane.b32.xlu0 %v2734_v13, %s2411_s27 }
 0x1e9   : > { %1666 = vrot.lane.b32.xlu1 %v2734_v13, %s2421_s23  ;;  %1240 = vrot.lane.b32.xlu0 %v2745_v15, %s2411_s27 }
 0x1ed   : > { %1662 = vrot.lane.b32.xlu1 %v2743_v14, %s2413_s11  ;;  %1307 = vrot.lane.b32.xlu0 %v2734_v13, %s2412_s30 }
 0x1f1   : > { %1745 = vrot.lane.b32.xlu1 %v2734_v13, %s2424_s7  ;;  %1311 = vrot.lane.b32.xlu0 %v2745_v15, %s2412_s30 }
 0x1f5   : > { %1816 = vperm.xlu1 %2364, %v1810_v17   ;;  %1303 = vrot.lane.b32.xlu0 %v2754_v16, %s2416_s24 }
 0x1f9   : > { %1826 = vperm.xlu1 %2364, %v1812_v18   ;;  %1382 = vrot.lane.b32.xlu0 %v2734_v13, %s2414_s16 }
 0x1fd   : > { %1386 = vrot.lane.b32.xlu0 %v2745_v15, %s2414_s16 }
 0x201   : > { %1378 = vrot.lane.b32.xlu0 %v2754_v16, %s2413_s11 }
 0x205   : > { %1530 = vrot.lane.b32.xlu0 %v2745_v15, %s2417_s25 }
 0x209   : > { %1526 = vrot.lane.b32.xlu0 %v2795_v19, %s2420_s20 }
 0x20d   : > { %1599 = vrot.lane.b32.xlu0 %v2745_v15, %s2419_s26 }
 0x211   : > { %1595 = vrot.lane.b32.xlu0 %v2795_v19, %s2416_s24  ;;  %s2338_s24 = smul.u32 48, %s2897_s22 }
 0x215   : > { %1668 = vrot.lane.b32.xlu0 %v2745_v15, %s2421_s23  ;;  %s2819_s23 = scalar_lea.vmem %s2895_s6, %s2338_s24 }
 0x216   : > { %1857 = vst [vmem:[%s2819_s23] sm:$0xf] %v2425_v22  ;;  %1858 = vst [vmem:[%s2819_s23 + $0xc] sm:$0xf] %v2425_v22 }
 0x217   : > { %1859 = vst [vmem:[%s2819_s23 + $0x18] sm:$0xf] %v2425_v22  ;;  %1860 = vst [vmem:[%s2819_s23 + $0x24] sm:$0xf] %v2425_v22 }
 0x218   : > { %1866 = vst.msk [vmem:[%s2819_s23 + $0x1c] sm:$0xff] %vm1863_vm11, %v2425_v22  ;;  %1864 = vst.msk [vmem:[%s2819_s23 + $0x4] sm:$0xff] %vm1863_vm11, %v2425_v22 }
 0x219   : > { %1664 = vrot.lane.b32.xlu0 %v2795_v19, %s2413_s11  ;;  %1865 = vst.msk [vmem:[%s2819_s23 + $0x10] sm:$0xff] %vm1863_vm11, %v2425_v22  ;;  %1867 = vst.msk [vmem:[%s2819_s23 + $0x28] sm:$0xff] %vm1863_vm11, %v2425_v22 }
 0x21d   : > { %1747 = vrot.lane.b32.xlu0 %v2745_v15, %s2424_s7 }
 0x221   : > { %1821 = vperm.xlu0 %2363, %v1811_v20  }
 0x225   : > { %1831 = vperm.xlu0 %2363, %v1813_v21  }
 0x24b   : > { %v1169_v25 = vpop.permute.xlu0 %1168 }
 0x24c   : > { %v1174_v26 = vsel %vm313_vm6, %v2718_v41, %v1169_v25 }
 0x24d   : > { %2201 = vmatprep.subr.bf16.mxu1 %v1174_v26 }
 0x24e   : > { %2202 = vmatpush3.bf16.msra.mxu1 %v1174_v26 }
 0x24f   : > { %v1173_v28 = vpop.permute.xlu0 %1172 }
 0x250   : > { %v1175_v29 = vsel %vm313_vm6, %v2720_v42, %v1173_v28  ;;  %v1385_v42 = vpop.permute.xlu1 %1384 }
 0x251   : > { %2203 = vmatprep.subr.bf16.mxu1 %v1175_v29 }
 0x252   : > { %2204 = vmatpush3.bf16.msra.mxu1 %v1175_v29 }
 0x253   : > { %v1161_v30 = vpop.permute.xlu0 %1160 }
 0x254   : > { %v1377_v46 = vpop.permute.xlu1 %1376 }
 0x255   : > { %2206 = vmatmul.mubr.msk.bf16.vlgmr.msra.gmra.mrb[4].mxu1 %vm478_vm3, %v1161_v30 }
 0x256   : > { %2213 = vmatprep.mubr.msk.bf16.mxu1 %vm478_vm3, %v2654_v33 }
 0x257   : > { %v1237_v32 = vpop.permute.xlu0 %1236 }
 0x258   : > { %v1242_v34 = vsel %vm388_vm1, %v1235_v23, %v1237_v32  ;;  %v1529_v50 = vpop.permute.xlu1 %1528 }
 0x259   : > { %2209 = vmatprep.subr.bf16.mxu1 %v1242_v34 }
 0x25a   : > { %2210 = vmatpush3.bf16.msra.mxu1 %v1242_v34 }
 0x25b   : > { %v1241_v36 = vpop.permute.xlu0 %1240 }
 0x25c   : > { %v1243_v37 = vsel %vm388_vm1, %v1239_v24, %v1241_v36  ;;  %v1525_v51 = vpop.permute.xlu1 %1524 }
 0x25d   : > { %2211 = vmatprep.subr.bf16.mxu1 %v1243_v37 }
 0x25e   : > { %2212 = vmatpush3.bf16.msra.mxu1 %v1243_v37 }
 0x25f   : > { %v1308_v38 = vpop.permute.xlu0 %1307 }
 0x260   : > { %v1313_v39 = vsel %vm493_vm2, %v1306_v27, %v1308_v38  ;;  %v1598_v53 = vpop.permute.xlu1 %1597 }
 0x261   : > { %2214 = vmatmul.mubr.msk.bf16.vlgmr.msra.gmra.mrb[4].mxu1 %vm478_vm3, %v2754_v16  ;;  %2217 = vmatprep.subr.bf16.mxu1 %v1313_v39 }
 0x262   : > { %2218 = vmatpush3.bf16.msra.mxu1 %v1313_v39  ;;  %2221 = vmatprep.mubr.msk.bf16.mxu1 %vm478_vm3, %v1302_v35 }
 0x263   : > { %v1312_v33 = vpop.permute.xlu0 %1311 }
 0x264   : > { %v1314_v41 = vsel %vm493_vm2, %v1310_v31, %v1312_v33  ;;  %v1594_v55 = vpop.permute.xlu1 %1593 }
 0x265   : > { %2219 = vmatprep.subr.bf16.mxu1 %v1314_v41 }
 0x266   : > { %2220 = vmatpush3.bf16.msra.mxu1 %v1314_v41 }
 0x267   : > { %v1304_v43 = vpop.permute.xlu0 %1303 }
 0x268   : > { %v1667_v57 = vpop.permute.xlu1 %1666 }
 0x26b   : > { %v1383_v44 = vpop.permute.xlu0 %1382 }
 0x26c   : > { %v1388_v45 = vsel %vm589_vm4, %v1381_v40, %v1383_v44  ;;  %v1663_v59 = vpop.permute.xlu1 %1662 }
 0x26d   : > { %2222 = vmatmul.mubr.msk.bf16.vlgmr.msra.gmra.mrb[4].mxu1 %vm478_vm3, %v1304_v43  ;;  %2225 = vmatprep.subr.bf16.mxu1 %v1388_v45 }
 0x26e   : > { %2226 = vmatpush3.bf16.msra.mxu1 %v1388_v45  ;;  %2229 = vmatprep.mubr.msk.bf16.mxu1 %vm478_vm3, %v1377_v46 }
 0x26f   : > { %v1387_v47 = vpop.permute.xlu0 %1386 }
 0x270   : > { %v1389_v48 = vsel %vm589_vm4, %v1385_v42, %v1387_v47  ;;  %v1746_v61 = vpop.permute.xlu1 %1745 }
 0x271   : > { %2227 = vmatprep.subr.bf16.mxu1 %v1389_v48 }
 0x272   : > { %2228 = vmatpush3.bf16.msra.mxu1 %v1389_v48 }
 0x273   : > { %2233 = vmatprep.subr.bf16.mxu1 %v2734_v13  ;;  %v1379_v49 = vpop.permute.xlu0 %1378 }
 0x274   : > { %v1817_v2 = vpop.permute.xlu1 %1816 }
 0x277   : > { %v1531_v52 = vpop.permute.xlu0 %1530 }
 0x278   : > { %v1827_v5 = vpop.permute.xlu1 %1826 }
 0x279   : > { %2230 = vmatmul.mubr.msk.bf16.vlgmr.msra.gmra.mrb[4].mxu1 %vm478_vm3, %v1379_v49 }
 0x27a   : > { %2234 = vmatpush3.bf16.msra.mxu1 %v2734_v13  ;;  %2237 = vmatprep.mubr.msk.bf16.mxu1 %vm478_vm3, %v2743_v14 }
 0x27b   : > { %2235 = vmatprep.subr.bf16.mxu1 %v2745_v15  ;;  %v1527_v54 = vpop.permute.xlu0 %1526 }
 0x27e   : > { %2236 = vmatpush3.bf16.msra.mxu1 %v2745_v15 }
 0x27f   : > { %2241 = vmatprep.subr.bf16.mxu1 %v1529_v50  ;;  %v1600_v56 = vpop.permute.xlu0 %1599 }
 0x283   : > { %v1596_v58 = vpop.permute.xlu0 %1595 }
 0x285   : > { %2238 = vmatmul.mubr.msk.bf16.vlgmr.msra.gmra.mrb[4].mxu1 %vm478_vm3, %v2795_v19 }
 0x286   : > { %2242 = vmatpush3.bf16.msra.mxu1 %v1529_v50  ;;  %2245 = vmatprep.mubr.msk.bf16.mxu1 %vm478_vm3, %v1525_v51 }
 0x287   : > { %2243 = vmatprep.subr.bf16.mxu1 %v1531_v52  ;;  %v1669_v60 = vpop.permute.xlu0 %1668 }
 0x28a   : > { %2244 = vmatpush3.bf16.msra.mxu1 %v1531_v52 }
 0x28b   : > { %2249 = vmatprep.subr.bf16.mxu1 %v1598_v53  ;;  %v1665_v62 = vpop.permute.xlu0 %1664 }
 0x28f   : > { %v1748_v0 = vpop.permute.xlu0 %1747 }
 0x291   : > { %2246 = vmatmul.mubr.msk.bf16.vlgmr.msra.gmra.mrb[4].mxu1 %vm478_vm3, %v1527_v54 }
 0x292   : > { %2250 = vmatpush3.bf16.msra.mxu1 %v1598_v53  ;;  %2253 = vmatprep.mubr.msk.bf16.mxu1 %vm478_vm3, %v1594_v55 }
 0x293   : > { %2251 = vmatprep.subr.bf16.mxu1 %v1600_v56 }
 0x296   : > { %2252 = vmatpush3.bf16.msra.mxu1 %v1600_v56 }
 0x297   : > { %2257 = vmatprep.subr.bf16.mxu1 %v1667_v57 }
 0x29d   : > { %2254 = vmatmul.mubr.msk.bf16.vlgmr.msra.gmra.mrb[4].mxu1 %vm478_vm3, %v1596_v58 }
 0x29e   : > { %2258 = vmatpush3.bf16.msra.mxu1 %v1667_v57  ;;  %2261 = vmatprep.mubr.msk.bf16.mxu1 %vm478_vm3, %v1663_v59 }
 0x29f   : > { %2259 = vmatprep.subr.bf16.mxu1 %v1669_v60 }
 0x2a0   : > { %v1822_v4 = vpop.permute.xlu0 %1821 }
 0x2a2   : > { %2260 = vmatpush3.bf16.msra.mxu1 %v1669_v60 }
 0x2a3   : > { %2265 = vmatprep.subr.bf16.mxu1 %v1746_v61 }
 0x2a4   : > { %v1832_v9 = vpop.permute.xlu0 %1831 }
 0x2a9   : > { %2262 = vmatmul.mubr.msk.bf16.vlgmr.msra.gmra.mrb[4].mxu1 %vm478_vm3, %v1665_v62 }
 0x2aa   : > { %2266 = vmatpush3.bf16.msra.mxu1 %v1746_v61  ;;  %2269 = vmatprep.mubr.msk.bf16.mxu1 %vm478_vm3, %v2401_v63 }
 0x2ab   : > { %2267 = vmatprep.subr.bf16.mxu1 %v1748_v0 }
 0x2ae   : > { %2268 = vmatpush3.bf16.msra.mxu1 %v1748_v0 }
 0x2b5   : > { %2270 = vmatmul.mubr.msk.bf16.vlgmr.msra.gmra.mrb[4].mxu1 %vm478_vm3, %v2402_v1 }
 0x388   : > { %v2271_v6 = vpop.f32.mrb[4].mxu1 }
 0x389   : > { %v1836_v7 = vadd.f32 %v2271_v6, %v1827_v5  ;;  %v1791_v8 = vpop.f32.mrb[5].mxu1 }
 0x38a   : > { %v1834_v10 = vadd.f32 %v1817_v2, %v1791_v8  ;;  %v2272_v11 = vpop.f32.mrb[6].mxu1 }
 0x38b   : > { %v1840_v12 = vmul.f32 0.2, %v1836_v7  ;;  %v1837_v13 = vadd.f32 %v2272_v11, %v1832_v9  ;;  %v1794_v14 = vpop.f32.mrb[7].mxu1 }
 0x38c   : > { %v1838_v15 = vmul.f32 0.2, %v1834_v10  ;;  %v1835_v16 = vadd.f32 %v1822_v4, %v1794_v14 }
 0x38d   : > { %v1844_v17 = vmax.f32 %v1836_v7, %v1840_v12  ;;  %v1841_v18 = vmul.f32 0.2, %v1837_v13 }
 0x38e   : > { %v1842_v22 = vmax.f32 %v1834_v10, %v1838_v15  ;;  %v1839_v19 = vmul.f32 0.2, %v1835_v16 }
 0x38f   : > { %v1855_v20 = vmul.f32 %v2726_v3, %v1844_v17  ;;  %v1845_v21 = vmax.f32 %v1837_v13, %v1841_v18 }
 0x390   : > { %v1853_v23 = vmul.f32 %v2726_v3, %v1842_v22  ;;  %v1843_v24 = vmax.f32 %v1835_v16, %v1839_v19 }
 0x391   : > { %v2028_v25 = vpack.c.bf16 %v1855_v20, %v1855_v20  ;;  %v1856_v26 = vmul.f32 %v2726_v3, %v1845_v21 }
 0x392   : > { %v2026_v27 = vpack.c.bf16 %v1853_v23, %v1853_v23  ;;  %v1854_v28 = vmul.f32 %v2726_v3, %v1843_v24 }
 0x393   : > { %1887 = vst.msk [vmem:[%s2819_s23 + $0x1c] sm:$0xf] %vm1884_vm12, %v2028_v25  ;;  %v2029_v29 = vpack.c.bf16 %v1856_v26, %v1856_v26 }
 0x394   : > { %1885 = vst.msk [vmem:[%s2819_s23 + $0x4] sm:$0xf] %vm1884_vm12, %v2026_v27  ;;  %v2027_v30 = vpack.c.bf16 %v1854_v28, %v1854_v28 }
 0x395   : > { %1888 = vst.msk [vmem:[%s2819_s23 + $0x28] sm:$0xf] %vm1884_vm12, %v2029_v29 }
 0x396   : > { %1886 = vst.msk [vmem:[%s2819_s23 + $0x10] sm:$0xf] %vm1884_vm12, %v2027_v30 }
 0x397 PF: > { %s16_s21 = sadd.s32 1, %s2409_s21  }
 0x398   : > { %p13_p4 = scmp.ge.s32.totalorder %s16_s21, 4  }
 0x39a   :  { %15 = sbr.rel (!%p13_p4) target bundleno = 1 (0x1), region = 74 }

// kernel: unet_core_forward.17
= control target key start
LH: loop header
LB: loop body
LE: loop exit
PB: predicated region body
PF: predicated region fallthrough
CT: control target
= control target key end

     0   :  { %s3245_s21 = smov 0   ;;  %s3941_s0 = inlined_call_operand.vmem [shape: bf16[2,34,580], index: 0, kind: input, shape index: {}]   ;;  %s3942_s1 = inlined_call_operand.vmem [shape: f32[1,324], index: 1, kind: input, shape index: {}]   ;;  %s3943_s2 = inlined_call_operand.vmem [shape: bf16[16,306], index: 2, kind: input, shape index: {}]   ;;  %s3944_s3 = inlined_call_operand.vmem [shape: f32[16,1], index: 3, kind: input, shape index: {}]   ;;  %s3945_s4 = inlined_call_operand.vmem [shape: bf16[16,144], index: 4, kind: input, shape index: {}]   ;;  %s3946_s5 = inlined_call_operand.vmem [shape: f32[16,1], index: 5, kind: input, shape index: {}]   ;;  %s3947_s6 = inlined_call_operand.vmem [shape: f32[2,16,580], index: 6, kind: output, shape index: {}]  }
   0x1 LB: > { %s2757_s22 = sadd.s32 4294967295, %s3184_s21   ;;  %p2761_p0 = scmp.ge.s32.totalorder %s3184_s21, 1  ;;  %s3184_s21 = sphi %s3245_s21, %s16_s21  }
   0x2   : > { %p212_p1 = scmp.lt.s32.totalorder %s3184_s21, 3 }
   0x4   : > { %p213_p2 = pnand %p2761_p0, %p212_p1 }
   0x5   : > { %p242_p3 = scmp.lt.s32.totalorder (!%p213_p2), %s2757_s22, 1  ;;  %s3186_s27 = smov (!%p213_p2), 18   ;;  %v3187_v10 = vmov (!%p213_p2), 0   ;;  %v3286_v12 = vld [vmem:[%s3943_s2] ss:$12 sps:$4 sm:$0xff] (!%p213_p2)   ;;  %v3190_v13 = vmov (!%p213_p2), 0.0  }
   0x6   : > { %216 = sbr.rel (%p213_p2) target bundleno = 989 (0x3dd), region = 44  ;;  %400 = vmatprep.mubr.bf16.mxu0 (!%p213_p2), %v3187_v10  ;;  %1664 = vst [vmem:[#allocation2] sm:$0xff] (!%p213_p2), %v3187_v10  ;;  %3137 = vset.pattern.permute.xlu0 (!%p213_p2), %v3187_v10  ;;  %s3188_s28 = smov (!%p213_p2), 19   ;;  %vm3193_vm0 = vmmov (!%p213_p2), 0   ;;  %v3156_v17 = vld [vmem:[%s3943_s2] ss:$12 sps:$4 sm:$0xff] (!%p213_p2)  }
   0x7   : > { %3138 = vset.pattern.permute.xlu1 (!%p213_p2), %v3187_v10  ;;  %s3189_s7 = smov (!%p213_p2), 94   ;;  %2895 = vmatprep.subr.bf16.mxu1 (!%p213_p2), %v3190_v13  ;;  %s3191_s8 = smov (!%p213_p2), 17   ;;  %v3158_v18 = vld [vmem:[%s3943_s2 + $0x4] ss:$12 sps:$4 sm:$0xff] (!%p213_p2)   ;;  %vm338_vm1 = vcmask (!%p213_p2), 146432   ;;  %vm358_vm2 = vcmask (!%p213_p2), 1040384  }
   0x8   : > { %s3192_s9 = smov (!%p213_p2), 1   ;;  %2901 = vmatprep.mubr.msk.bf16.mxu1 (!%p213_p2), %vm3193_vm0, %v3190_v13  ;;  %s3194_s10 = smov (!%p213_p2), 60   ;;  %v3350_v21 = vld [vmem:[%s3943_s2 + $0x4] ss:$12 sps:$4 sm:$0xff] (!%p213_p2)   ;;  %vm476_vm3 = vcmask (!%p213_p2), 154624   ;;  %vm354_vm4 = vcmask (!%p213_p2), 277504  }
   0x9   : > { %s3195_s15 = smov (!%p213_p2), 26   ;;  %s3196_s16 = smov (!%p213_p2), 127   ;;  %vm614_vm5 = vcmask (!%p213_p2), 138240   ;;  %vm772_vm6 = vcmask (!%p213_p2), 7168   ;;  %vm746_vm7 = vcmask (!%p213_p2), 211968   ;;  %vm1071_vm8 = vcmask (!%p213_p2), 1039360  }
   0xa   : > { %s3197_s19 = smov (!%p213_p2), 120   ;;  %s3198_s20 = smov (!%p213_p2), 111   ;;  %vm1206_vm9 = vcmask (!%p213_p2), 908288   ;;  %vm1354_vm10 = vcmask (!%p213_p2), 900096   ;;  %vm1496_vm11 = vcmask (!%p213_p2), 891904   ;;  %vm1665_vm12 = vcmask (!%p213_p2), 1048096  }
   0xb   : > { %s3200_s24 = smov (!%p213_p2), 110   ;;  %s3201_s25 = smov (!%p213_p2), 52   ;;  %vm1667_vm13 = vcmask (!%p213_p2), 556032   ;;  %1666 = vst.msk [vmem:[#allocation2 + $0x18] sm:$0xff] (!%p213_p2), %vm1665_vm12, %v3187_v10  ;;  %vm1706_vm14 = vcmask (!%p213_p2), 130048  }
   0xc   : > { %s3203_s13 = smov (!%p213_p2), 112   ;;  %s3204_s11 = smov (!%p213_p2), 96  }
   0xd   : > { %s3949_s22 = smov (!%p242_p3, %s2757_s22), 1  ;;  %s3205_s12 = smov 80  }
   0xe   : > { %s3103_s23 = smul.u32 100, %s3949_s22 }
  0x10   : > { %s3259_s26 = scalar_lea.vmem %s3941_s0, %s3103_s23  ;;  %s3199_s23 = smov 86  }
  0x11   : > { %v3139_v0 = vld [vmem:[%s3259_s26 + $0x4] ss:$20 sps:$4 sm:$0xff]   ;;  %v3141_v1 = vld [vmem:[%s3259_s26] ss:$20 sps:$4 sm:$0xff]   ;;  %v3142_v2 = vld [vmem:[%s3259_s26 + $0x8] ss:$20 sps:$4 sm:$0xff]  }
  0x12   : > { %316 = vrot.lane.b32.xlu0 %v3139_v0, %s3186_s27  ;;  %314 = vrot.lane.b32.xlu1 %v3141_v1, %s3186_s27  ;;  %v3144_v3 = vld [vmem:[%s3259_s26 + $0x2c] ss:$20 sps:$4 sm:$0xff]   ;;  %v3146_v4 = vld [vmem:[%s3259_s26 + $0x30] ss:$20 sps:$4 sm:$0xff]  }
  0x13   : > { %v3148_v5 = vld [vmem:[%s3259_s26 + $0x28] ss:$20 sps:$4 sm:$0xff]   ;;  %v261_v6 = vld [vmem:[%s3259_s26 + $0x50] sm:$0x11]  ;;  %v3153_v14 = vld [vmem:[%s3259_s26 + $0xc] ss:$20 sps:$4 sm:$0xff]  }
  0x14   : > { %v2773_v7 = vcombine.low %v261_v6, %v261_v6  ;;  %v2774_v8 = vcombine.high %v261_v6, %v261_v6  ;;  %v262_v9 = vld [vmem:[%s3259_s26 + $0x58] sm:$0x11]  ;;  %v3154_v15 = vld [vmem:[%s3259_s26 + $0x34] ss:$20 sps:$4 sm:$0xff]   ;;  %v3343_v20 = vld [vmem:[%s3259_s26 + $0xc] ss:$20 sps:$4 sm:$0xff]  }
  0x15   : > { %v2775_v11 = vcombine.low %v262_v9, %v262_v9  ;;  %v3316_v16 = vcombine.high %v262_v9, %v262_v9  ;;  %v3339_v19 = vld [vmem:[%s3259_s26 + $0x8] ss:$20 sps:$4 sm:$0xff]   ;;  %v3355_v22 = vld [vmem:[%s3259_s26 + $0x4] ss:$20 sps:$4 sm:$0xff]   ;;  %v3371_v25 = vld [vmem:[%s3259_s26 + $0x2c] ss:$20 sps:$4 sm:$0xff]  }
  0x16   : > { %318 = vrot.lane.b32.xlu0 %v3142_v2, %s3186_s27  ;;  %324 = vrot.lane.b32.xlu1 %v3144_v3, %s3186_s27  ;;  %v3361_v23 = vld [vmem:[%s3259_s26 + $0x30] ss:$20 sps:$4 sm:$0xff]   ;;  %v3366_v24 = vld [vmem:[%s3259_s26 + $0x34] ss:$20 sps:$4 sm:$0xff]  }
  0x17   : > { %v898_v26 = vld [vmem:[%s3259_s26 + $0x54] sm:$0x11]  ;;  %v3386_v29 = vld [vmem:[%s3259_s26 + $0x5c] ss:$0 sps:$4 sm:$0x11]  }
  0x18   : > { %v3378_v27 = vcombine.low %v898_v26, %v898_v26  ;;  %v3381_v28 = vcombine.high %v898_v26, %v898_v26 }
  0x1a   : > { %326 = vrot.lane.b32.xlu0 %v3146_v4, %s3186_s27  ;;  %322 = vrot.lane.b32.xlu1 %v3148_v5, %s3186_s27 }
  0x1e   : > { %330 = vrot.lane.b32.xlu0 %v2773_v7, %s3186_s27  ;;  %332 = vrot.lane.b32.xlu1 %v2774_v8, %s3186_s27 }
  0x22   : > { %334 = vrot.lane.b32.xlu0 %v2775_v11, %s3186_s27  ;;  %454 = vrot.lane.b32.xlu1 %v3139_v0, %s3188_s28 }
  0x26   : > { %456 = vrot.lane.b32.xlu0 %v3142_v2, %s3188_s28  ;;  %270 = vrot.lane.b32.xlu1 %v3286_v12, %s3189_s7 }
  0x2a   : > { %452 = vrot.lane.b32.xlu0 %v3141_v1, %s3188_s28  ;;  %462 = vrot.lane.b32.xlu1 %v3144_v3, %s3188_s28 }
  0x2e   : > { %464 = vrot.lane.b32.xlu0 %v3146_v4, %s3188_s28  ;;  %460 = vrot.lane.b32.xlu1 %v3148_v5, %s3188_s28 }
  0x32   : > { %468 = vrot.lane.b32.xlu0 %v2773_v7, %s3188_s28  ;;  %470 = vrot.lane.b32.xlu1 %v2774_v8, %s3188_s28 }
  0x36   : > { %472 = vrot.lane.b32.xlu0 %v2775_v11, %s3188_s28  ;;  %592 = vrot.lane.b32.xlu1 %v3139_v0, %s3191_s8 }
  0x3a   : > { %594 = vrot.lane.b32.xlu0 %v3142_v2, %s3191_s8  ;;  %590 = vrot.lane.b32.xlu1 %v3141_v1, %s3191_s8 }
  0x3e   : > { %600 = vrot.lane.b32.xlu0 %v3144_v3, %s3191_s8  ;;  %602 = vrot.lane.b32.xlu1 %v3146_v4, %s3191_s8 }
  0x42   : > { %598 = vrot.lane.b32.xlu0 %v3148_v5, %s3191_s8  ;;  %320 = vrot.lane.b32.xlu1 %v3153_v14, %s3186_s27 }
  0x46   : > { %606 = vrot.lane.b32.xlu0 %v2773_v7, %s3191_s8  ;;  %608 = vrot.lane.b32.xlu1 %v2774_v8, %s3191_s8 }
  0x4a   : > { %610 = vrot.lane.b32.xlu0 %v2775_v11, %s3191_s8  ;;  %328 = vrot.lane.b32.xlu1 %v3154_v15, %s3186_s27 }
  0x4e   : > { %750 = vrot.lane.b32.xlu0 %v3139_v0, %s3192_s9  ;;  %752 = vrot.lane.b32.xlu1 %v3142_v2, %s3192_s9 }
  0x52   : > { %588 = vrot.lane.b32.xlu0 %v3286_v12, %s3194_s10  ;;  %748 = vrot.lane.b32.xlu1 %v3141_v1, %s3192_s9  ;;  %s3202_s10 = smov 109  }
  0x56   : > { %336 = vrot.lane.b32.xlu0 %v3316_v16, %s3186_s27  ;;  %758 = vrot.lane.b32.xlu1 %v3144_v3, %s3192_s9 }
  0x5a   : > { %760 = vrot.lane.b32.xlu0 %v3146_v4, %s3192_s9  ;;  %756 = vrot.lane.b32.xlu1 %v3148_v5, %s3192_s9 }
  0x5e   : > { %458 = vrot.lane.b32.xlu0 %v3153_v14, %s3188_s28  ;;  %764 = vrot.lane.b32.xlu1 %v2773_v7, %s3192_s9  ;;  %v3171_v7 = vld [vmem:[%s3943_s2 + $0x4] ss:$12 sps:$4 sm:$0xff]  }
  0x62   : > { %766 = vrot.lane.b32.xlu0 %v2774_v8, %s3192_s9  ;;  %768 = vrot.lane.b32.xlu1 %v2775_v11, %s3192_s9  ;;  %v3173_v8 = vld [vmem:[%s3943_s2 + $0x8] ss:$12 sps:$4 sm:$0xff]  }
  0x66   : > { %466 = vrot.lane.b32.xlu0 %v3154_v15, %s3188_s28  ;;  %742 = vrot.lane.b32.xlu1 %v3156_v17, %s3195_s15 }
  0x6a   : > { %744 = vrot.lane.b32.xlu0 %v3158_v18, %s3195_s15  ;;  %474 = vrot.lane.b32.xlu1 %v3316_v16, %s3188_s28 }
  0x6e   : > { %596 = vrot.lane.b32.xlu0 %v3153_v14, %s3191_s8  ;;  %604 = vrot.lane.b32.xlu1 %v3154_v15, %s3191_s8 }
  0x72   : > { %1055 = vrot.lane.b32.xlu0 %v3339_v19, %s3196_s16  ;;  %1057 = vrot.lane.b32.xlu1 %v3343_v20, %s3196_s16 }
  0x76   : > { %907 = vrot.lane.b32.xlu0 %v3350_v21, %s3197_s19  ;;  %1053 = vrot.lane.b32.xlu1 %v3355_v22, %s3196_s16  ;;  %s3104_s19 = smul.u32 80, %s3949_s22 }
  0x78   : > { %s3728_s26 = scalar_lea.vmem %s3947_s6, %s3104_s19 }
  0x79   : > { %2690 = vst [vmem:[%s3728_s26] sm:$0xff] %v3190_v13  ;;  %2691 = vst [vmem:[%s3728_s26 + $0x28] sm:$0xff] %v3190_v13 }
  0x7a   : > { %612 = vrot.lane.b32.xlu0 %v3316_v16, %s3191_s8  ;;  %1061 = vrot.lane.b32.xlu1 %v3361_v23, %s3196_s16  ;;  %2693 = vst.msk [vmem:[%s3728_s26 + $0x20] sm:$0xff] %vm1667_vm13, %v3190_v13  ;;  %2695 = vst.msk [vmem:[%s3728_s26 + $0x48] sm:$0xff] %vm1667_vm13, %v3190_v13 }
  0x7b   : > { %2692 = vst.msk [vmem:[%s3728_s26 + $0x18] sm:$0xff] %vm1665_vm12, %v3190_v13  ;;  %2694 = vst.msk [vmem:[%s3728_s26 + $0x40] sm:$0xff] %vm1665_vm12, %v3190_v13 }
  0x7e   : > { %1063 = vrot.lane.b32.xlu0 %v3366_v24, %s3196_s16  ;;  %1059 = vrot.lane.b32.xlu1 %v3371_v25, %s3196_s16 }
  0x82   : > { %754 = vrot.lane.b32.xlu0 %v3153_v14, %s3192_s9  ;;  %1065 = vrot.lane.b32.xlu1 %v3378_v27, %s3196_s16 }
  0x84   : > { %v317_v30 = vpop.permute.xlu0 %316  ;;  %v315_v31 = vpop.permute.xlu1 %314 }
  0x85   : > { %v339_v35 = vsel %vm338_vm1, %v315_v31, %v317_v30 }
  0x86   : > { %1067 = vrot.lane.b32.xlu0 %v3381_v28, %s3196_s16  ;;  %1069 = vrot.lane.b32.xlu1 %v3386_v29, %s3196_s16 }
  0x88   : > { %v3392_v32 = vpop.permute.xlu0 %318  ;;  %v325_v33 = vpop.permute.xlu1 %324 }
  0x89   : > { %v340_v34 = vsel %vm338_vm1, %v317_v30, %v3392_v32 }
  0x8a   : > { %368 = vmatprep.subr.bf16.mxu0 %v340_v34  ;;  %762 = vrot.lane.b32.xlu0 %v3154_v15, %s3192_s9 }
  0x8b   : > { %1190 = vrot.lane.b32.xlu1 %v3339_v19, %s3198_s20  ;;  %369 = vmatpush1.bf16.msra.mxu0 %v339_v35 }
  0x8c   : > { %v3400_v36 = vpop.permute.xlu0 %326  ;;  %v323_v37 = vpop.permute.xlu1 %322 }
  0x8d   : > { %v343_v38 = vsel %vm338_vm1, %v325_v33, %v3400_v36  ;;  %v342_v39 = vsel %vm338_vm1, %v323_v37, %v325_v33 }
  0x8e   : > { %1192 = vrot.lane.b32.xlu0 %v3343_v20, %s3198_s20  ;;  %370 = vmatprep.subr.bf16.mxu0 %v343_v38 }
  0x8f   : > { %1051 = vrot.lane.b32.xlu1 %v3350_v21, %s3199_s23  ;;  %371 = vmatpush1.bf16.msra.mxu0 %v342_v39  ;;  %v3174_v39 = vld [vmem:[%s3943_s2 + $0x8] ss:$12 sps:$4 sm:$0xff]  }
  0x90   : > { %v331_v40 = vpop.permute.xlu0 %330  ;;  %v333_v41 = vpop.permute.xlu1 %332 }
  0x91   : > { %v345_v42 = vsel %vm338_vm1, %v331_v40, %v333_v41 }
  0x92   : > { %1188 = vrot.lane.b32.xlu0 %v3355_v22, %s3198_s20  ;;  %v360_v46 = vsel %vm358_vm2, %v345_v42, 0 }
  0x93   : > { %770 = vrot.lane.b32.xlu1 %v3316_v16, %s3192_s9 }
  0x94   : > { %v3413_v43 = vpop.permute.xlu0 %334  ;;  %v455_v44 = vpop.permute.xlu1 %454 }
  0x95   : > { %v346_v45 = vsel %vm338_vm1, %v333_v41, %v3413_v43 }
  0x96   : > { %1196 = vrot.lane.b32.xlu0 %v3361_v23, %s3198_s20  ;;  %2777 = vmatprep.subr.msk.bf16.mxu0 %vm358_vm2, %v346_v45 }
  0x97   : > { %1198 = vrot.lane.b32.xlu1 %v3366_v24, %s3198_s20  ;;  %373 = vmatpush1.bf16.msra.mxu0 %v360_v46 }
  0x98   : > { %v3423_v47 = vpop.permute.xlu0 %456  ;;  %v3425_v48 = vpop.permute.xlu1 %270 }
  0x99   : > { %v478_v49 = vsel %vm476_vm3, %v455_v44, %v3423_v47 }
  0x9a   : > { %1194 = vrot.lane.b32.xlu0 %v3371_v25, %s3198_s20  ;;  %504 = vmatprep.subr.bf16.mxu0 %v478_v49 }
  0x9b   : > { %1200 = vrot.lane.b32.xlu1 %v3378_v27, %s3198_s20  ;;  %2778 = vmatmul.mubr.msk.bf16.vlgmr.msra.gmra.mrb[0].mxu0 %vm354_vm4, %v3425_v48 }
  0x9c   : > { %v453_v50 = vpop.permute.xlu0 %452  ;;  %536 = vmatprep.mubr.bf16.mxu0 %v3187_v10  ;;  %v463_v52 = vpop.permute.xlu1 %462 }
  0x9d   : > { %v477_v51 = vsel %vm476_vm3, %v453_v50, %v455_v44  ;;  %v1612_v50 = vld [vmem:[%s3944_s3 + $0x8] sm:$0xff] }
  0x9e   : > { %1202 = vrot.lane.b32.xlu0 %v3381_v28, %s3198_s20  ;;  %505 = vmatpush1.bf16.msra.mxu0 %v477_v51 }
  0x9f   : > { %1204 = vrot.lane.b32.xlu1 %v3386_v29, %s3198_s20 }
  0xa0   : > { %v3441_v53 = vpop.permute.xlu0 %464  ;;  %v461_v54 = vpop.permute.xlu1 %460 }
  0xa1   : > { %v481_v55 = vsel %vm476_vm3, %v463_v52, %v3441_v53  ;;  %v480_v56 = vsel %vm476_vm3, %v461_v54, %v463_v52 }
  0xa2   : > { %1338 = vrot.lane.b32.xlu0 %v3339_v19, %s3200_s24  ;;  %506 = vmatprep.subr.bf16.mxu0 %v481_v55 }
  0xa3   : > { %1340 = vrot.lane.b32.xlu1 %v3343_v20, %s3200_s24  ;;  %507 = vmatpush1.bf16.msra.mxu0 %v480_v56 }
  0xa4   : > { %v469_v57 = vpop.permute.xlu0 %468  ;;  %v471_v58 = vpop.permute.xlu1 %470 }
  0xa5   : > { %v483_v59 = vsel %vm476_vm3, %v469_v57, %v471_v58 }
  0xa6   : > { %1186 = vrot.lane.b32.xlu0 %v3350_v21, %s3201_s25  ;;  %v496_v63 = vsel %vm358_vm2, %v483_v59, 0 }
  0xa7   : > { %1336 = vrot.lane.b32.xlu1 %v3355_v22, %s3200_s24 }
  0xa8   : > { %v3454_v60 = vpop.permute.xlu0 %472  ;;  %v593_v61 = vpop.permute.xlu1 %592 }
  0xa9   : > { %v484_v62 = vsel %vm476_vm3, %v471_v58, %v3454_v60 }
  0xaa   : > { %1344 = vrot.lane.b32.xlu0 %v3361_v23, %s3200_s24  ;;  %2780 = vmatprep.subr.msk.bf16.mxu0 %vm358_vm2, %v484_v62 }
  0xab   : > { %1346 = vrot.lane.b32.xlu1 %v3366_v24, %s3200_s24  ;;  %509 = vmatpush1.bf16.msra.mxu0 %v496_v63 }
  0xac   : > { %v3464_v0 = vpop.permute.xlu0 %594  ;;  %v591_v1 = vpop.permute.xlu1 %590 }
  0xad   : > { %v616_v2 = vsel %vm614_vm5, %v593_v61, %v3464_v0  ;;  %v615_v3 = vsel %vm614_vm5, %v591_v1, %v593_v61 }
  0xae   : > { %1342 = vrot.lane.b32.xlu0 %v3371_v25, %s3200_s24  ;;  %642 = vmatprep.subr.bf16.mxu0 %v616_v2 }
  0xaf   : > { %1348 = vrot.lane.b32.xlu1 %v3378_v27, %s3200_s24  ;;  %2781 = vmatmul.mubr.msk.bf16.vlgmr.msra.gmra.mrb[0].mxu0 %vm354_vm4, %v3286_v12 }
  0xb0   : > { %643 = vmatpush1.bf16.msra.mxu0 %v615_v3  ;;  %v601_v4 = vpop.permute.xlu0 %600  ;;  %674 = vmatprep.mubr.bf16.mxu0 %v3187_v10  ;;  %v3476_v5 = vpop.permute.xlu1 %602 }
  0xb1   : > { %v619_v6 = vsel %vm614_vm5, %v601_v4, %v3476_v5 }
  0xb2   : > { %1350 = vrot.lane.b32.xlu0 %v3381_v28, %s3200_s24  ;;  %644 = vmatprep.subr.bf16.mxu0 %v619_v6 }
  0xb3   : > { %1352 = vrot.lane.b32.xlu1 %v3386_v29, %s3200_s24 }
  0xb4   : > { %v599_v9 = vpop.permute.xlu0 %598  ;;  %v321_v14 = vpop.permute.xlu1 %320 }
  0xb5   : > { %v618_v11 = vsel %vm614_vm5, %v599_v9, %v601_v4  ;;  %v341_v15 = vsel %vm338_vm1, %v3392_v32, %v321_v14 }
  0xb6   : > { %1331 = vrot.lane.b32.xlu0 %v3171_v7, %s3186_s27  ;;  %645 = vmatpush1.bf16.msra.mxu0 %v618_v11 }
  0xb7   : > { %1333 = vrot.lane.b32.xlu1 %v3173_v8, %s3186_s27  ;;  %2896 = vmatpush3.bf16.msra.mxu1 %v341_v15 }
  0xb8   : > { %v607_v16 = vpop.permute.xlu0 %606  ;;  %2897 = vmatprep.subr.bf16.mxu1 %v3190_v13  ;;  %v609_v17 = vpop.permute.xlu1 %608 }
  0xb9   : > { %v621_v18 = vsel %vm614_vm5, %v607_v16, %v609_v17 }
  0xba   : > { %1480 = vrot.lane.b32.xlu0 %v3339_v19, %s3202_s10  ;;  %v634_v32 = vsel %vm358_vm2, %v621_v18, 0 }
  0xbb   : > { %1482 = vrot.lane.b32.xlu1 %v3343_v20, %s3202_s10 }
  0xbc   : > { %v3501_v21 = vpop.permute.xlu0 %610  ;;  %v329_v26 = vpop.permute.xlu1 %328 }
  0xbd   : > { %v622_v30 = vsel %vm614_vm5, %v609_v17, %v3501_v21  ;;  %v344_v31 = vsel %vm338_vm1, %v3400_v36, %v329_v26 }
  0xbe   : > { %1478 = vrot.lane.b32.xlu0 %v3355_v22, %s3202_s10  ;;  %2783 = vmatprep.subr.msk.bf16.mxu0 %vm358_vm2, %v622_v30 }
  0xbf   : > { %1486 = vrot.lane.b32.xlu1 %v3361_v23, %s3202_s10  ;;  %2898 = vmatpush3.bf16.msra.mxu1 %v344_v31 }
  0xc0   : > { %647 = vmatpush1.bf16.msra.mxu0 %v634_v32  ;;  %v751_v33 = vpop.permute.xlu0 %750  ;;  %2899 = vmatprep.subr.bf16.mxu1 %v3190_v13  ;;  %v3514_v34 = vpop.permute.xlu1 %752 }
  0xc1   : > { %v774_v35 = vsel %vm772_vm6, %v751_v33, %v3514_v34 }
  0xc2   : > { %1488 = vrot.lane.b32.xlu0 %v3366_v24, %s3202_s10  ;;  %800 = vmatprep.subr.bf16.mxu0 %v774_v35 }
  0xc3   : > { %1484 = vrot.lane.b32.xlu1 %v3371_v25, %s3202_s10 }
  0xc4   : > { %v3522_v36 = vpop.permute.xlu0 %588  ;;  %v749_v37 = vpop.permute.xlu1 %748 }
  0xc5   : > { %2784 = vmatmul.mubr.msk.bf16.vlgmr.msra.gmra.mrb[0].mxu0 %vm354_vm4, %v3522_v36  ;;  %v773_v38 = vsel %vm772_vm6, %v749_v37, %v751_v33 }
  0xc6   : > { %1490 = vrot.lane.b32.xlu0 %v3378_v27, %s3202_s10  ;;  %832 = vmatprep.mubr.bf16.mxu0 %v3187_v10 }
  0xc7   : > { %1492 = vrot.lane.b32.xlu1 %v3381_v28, %s3202_s10  ;;  %801 = vmatpush1.bf16.msra.mxu0 %v773_v38 }
  0xc8   : > { %v337_v40 = vpop.permute.xlu0 %336  ;;  %v759_v42 = vpop.permute.xlu1 %758 }
  0xc9   : > { %v347_v41 = vsel %vm338_vm1, %v3413_v43, %v337_v40  ;;  %v1611_v43 = vld [vmem:[%s3944_s3] sm:$0xff] }
  0xca   : > { %1494 = vrot.lane.b32.xlu0 %v3386_v29, %s3202_s10  ;;  %v366_v44 = vsel %vm358_vm2, %v347_v41, 0 }
  0xcb   : > { %2900 = vmatpush3.bf16.msra.mxu1 %v366_v44  ;;  %1476 = vrot.lane.b32.xlu1 %v3174_v39, %s3203_s13 }
  0xcc   : > { %v3541_v45 = vpop.permute.xlu0 %760  ;;  %2905 = vmatprep.subr.bf16.mxu1 %v3190_v13  ;;  %v757_v46 = vpop.permute.xlu1 %756 }
  0xcd   : > { %v777_v49 = vsel %vm772_vm6, %v759_v42, %v3541_v45  ;;  %v776_v51 = vsel %vm772_vm6, %v757_v46, %v759_v42 }
  0xce   : > { %2902 = vmatmul.mubr.msk.bf16.vlgmr.msra.gmra.mrb[0].mxu1 %vm354_vm4, %v3425_v48  ;;  %802 = vmatprep.subr.bf16.mxu0 %v777_v49 }
  0xcf   : > { %803 = vmatpush1.bf16.msra.mxu0 %v776_v51  ;;  %2911 = vmatprep.mubr.msk.bf16.mxu1 %vm3193_vm0, %v3190_v13 }
  0xd0   : > { %v459_v52 = vpop.permute.xlu0 %458  ;;  %1615 = vperm.xlu0 %3137, %v1611_v43   ;;  %1620 = vperm.xlu1 %3138, %v1612_v50   ;;  %v765_v55 = vpop.permute.xlu1 %764 }
  0xd1   : > { %v479_v54 = vsel %vm476_vm3, %v3423_v47, %v459_v52 }
  0xd2   : > { %2906 = vmatpush3.bf16.msra.mxu1 %v479_v54 }
  0xd3   : > { %2907 = vmatprep.subr.bf16.mxu1 %v3190_v13 }
  0xd4   : > { %v767_v56 = vpop.permute.xlu0 %766  ;;  %v3561_v58 = vpop.permute.xlu1 %768 }
  0xd5   : > { %v779_v57 = vsel %vm772_vm6, %v765_v55, %v767_v56  ;;  %v780_v59 = vsel %vm772_vm6, %v767_v56, %v3561_v58 }
  0xd6   : > { %v792_v48 = vsel %vm358_vm2, %v779_v57, 0  ;;  %2788 = vmatprep.subr.msk.bf16.mxu0 %vm358_vm2, %v780_v59 }
  0xd7   : > { %805 = vmatpush1.bf16.msra.mxu0 %v792_v48 }
  0xd8   : > { %v467_v61 = vpop.permute.xlu0 %466  ;;  %v743_v62 = vpop.permute.xlu1 %742  ;;  %961 = vmatprep.subr.bf16.mxu0 %v3339_v19 }
  0xd9   : > { %v482_v47 = vsel %vm476_vm3, %v3441_v53, %v467_v61 }
  0xda   : > { %2908 = vmatpush3.bf16.msra.mxu1 %v482_v47 }
  0xdb   : > { %2909 = vmatprep.subr.bf16.mxu1 %v3190_v13 }
  0xdc   : > { %v745_v63 = vpop.permute.xlu0 %744  ;;  %v475_v2 = vpop.permute.xlu1 %474 }
  0xdd   : > { %v3571_v1 = vsel %vm746_vm7, %v743_v62, %v745_v63  ;;  %v485_v3 = vsel %vm476_vm3, %v3454_v60, %v475_v2 }
  0xde   : > { %2789 = vmatmul.mubr.msk.bf16.vlgmr.msra.gmra.mrb[0].mxu0 %vm354_vm4, %v3571_v1  ;;  %v502_v4 = vsel %vm358_vm2, %v485_v3, 0 }
  0xdf   : > { %962 = vmatpush1.bf16.msra.mxu0 %v3355_v22  ;;  %993 = vmatprep.mubr.bf16.mxu0 %v3187_v10 }
  0xe0   : > { %2910 = vmatpush3.bf16.msra.mxu1 %v502_v4  ;;  %v597_v19 = vpop.permute.xlu0 %596  ;;  %963 = vmatprep.subr.bf16.mxu0 %v3361_v23  ;;  %v605_v6 = vpop.permute.xlu1 %604  ;;  %v953_v23 = vsel %vm358_vm2, %v3378_v27, 0 }
  0xe1   : > { %v617_v53 = vsel %vm614_vm5, %v3464_v0, %v597_v19  ;;  %2915 = vmatprep.subr.bf16.mxu1 %v3190_v13 }
  0xe3   : > { %2912 = vmatmul.mubr.msk.bf16.vlgmr.msra.gmra.mrb[4].mxu1 %vm354_vm4, %v3286_v12  ;;  %964 = vmatpush1.bf16.msra.mxu0 %v3371_v25  ;;  %v620_v25 = vsel %vm614_vm5, %v3476_v5, %v605_v6 }
  0xe4   : > { %2916 = vmatpush3.bf16.msra.mxu1 %v617_v53  ;;  %v1056_v22 = vpop.permute.xlu0 %1055  ;;  %2801 = vmatprep.subr.msk.bf16.mxu0 %vm358_vm2, %v3381_v28  ;;  %v3591_v60 = vpop.permute.xlu1 %1057 }
  0xe5   : > { %2917 = vmatprep.subr.bf16.mxu1 %v3190_v13  ;;  %2921 = vmatprep.mubr.msk.bf16.mxu1 %vm3193_vm0, %v3190_v13  ;;  %v1073_v12 = vsel %vm1071_vm8, %v1056_v22, %v3591_v60 }
  0xe7   : > { %966 = vmatpush1.bf16.msra.mxu0 %v953_v23 }
  0xe8   : > { %2918 = vmatpush3.bf16.msra.mxu1 %v620_v25  ;;  %1096 = vmatprep.subr.bf16.mxu0 %v1073_v12  ;;  %v3600_v28 = vpop.permute.xlu0 %907  ;;  %v1054_v0 = vpop.permute.xlu1 %1053 }
  0xe9   : > { %2919 = vmatprep.subr.bf16.mxu1 %v3190_v13  ;;  %v1072_v27 = vsel %vm1071_vm8, %v1054_v0, %v1056_v22 }
  0xea   : > { %2802 = vmatmul.mubr.msk.bf16.vlgmr.msra.gmra.mrb[0].mxu0 %vm354_vm4, %v3600_v28 }
  0xeb   : > { %1097 = vmatpush1.bf16.msra.mxu0 %v1072_v27  ;;  %1128 = vmatprep.mubr.bf16.mxu0 %v3187_v10 }
  0xec   : > { %v613_v7 = vpop.permute.xlu0 %612  ;;  %v1062_v8 = vpop.permute.xlu1 %1061 }
  0xed   : > { %v623_v5 = vsel %vm614_vm5, %v3501_v21, %v613_v7 }
  0xee   : > { %v640_v9 = vsel %vm358_vm2, %v623_v5, 0 }
  0xef   : > { %2920 = vmatpush3.bf16.msra.mxu1 %v640_v9 }
  0xf0   : > { %v3610_v11 = vpop.permute.xlu0 %1063  ;;  %2925 = vmatprep.subr.bf16.mxu1 %v3190_v13  ;;  %v1060_v14 = vpop.permute.xlu1 %1059 }
  0xf1   : > { %v1075_v15 = vsel %vm1071_vm8, %v1062_v8, %v3610_v11  ;;  %v1074_v16 = vsel %vm1071_vm8, %v1060_v14, %v1062_v8 }
  0xf2   : > { %2922 = vmatmul.mubr.msk.bf16.vlgmr.msra.gmra.mrb[8].mxu1 %vm354_vm4, %v3522_v36  ;;  %1098 = vmatprep.subr.bf16.mxu0 %v1075_v15 }
  0xf3   : > { %1099 = vmatpush1.bf16.msra.mxu0 %v1074_v16  ;;  %2931 = vmatprep.mubr.msk.bf16.mxu1 %vm3193_vm0, %v3190_v13 }
  0xf4   : > { %v755_v17 = vpop.permute.xlu0 %754  ;;  %v1066_v21 = vpop.permute.xlu1 %1065 }
  0xf5   : > { %v775_v18 = vsel %vm772_vm6, %v3514_v34, %v755_v17 }
  0xf6   : > { %2926 = vmatpush3.bf16.msra.mxu1 %v775_v18 }
  0xf7   : > { %2927 = vmatprep.subr.bf16.mxu1 %v3190_v13 }
  0xf8   : > { %v1068_v26 = vpop.permute.xlu0 %1067  ;;  %v3624_v31 = vpop.permute.xlu1 %1069 }
  0xf9   : > { %v1076_v30 = vsel %vm1071_vm8, %v1066_v21, %v1068_v26  ;;  %v1077_v33 = vsel %vm1071_vm8, %v1068_v26, %v3624_v31  ;;  %v1094_v2 = vsel %vm358_vm2, %v3624_v31, 0 }
  0xfa   : > { %v1088_v32 = vsel %vm358_vm2, %v1076_v30, 0  ;;  %2804 = vmatprep.subr.msk.bf16.mxu0 %vm358_vm2, %v1077_v33 }
  0xfb   : > { %1101 = vmatpush1.bf16.msra.mxu0 %v1088_v32 }
  0xfc   : > { %v763_v35 = vpop.permute.xlu0 %762 }
  0xfd   : > { %v778_v34 = vsel %vm772_vm6, %v3541_v45, %v763_v35  ;;  %v1191_v36 = vpop.permute.xlu1 %1190 }
  0xfe   : > { %2928 = vmatpush3.bf16.msra.mxu1 %v778_v34 }
  0xff   : > { %2929 = vmatprep.subr.bf16.mxu1 %v3190_v13 }
 0x100   : > { %v3633_v37 = vpop.permute.xlu0 %1192 }
 0x101   : > { %v3635_v38 = vpop.permute.xlu1 %1051  ;;  %v1208_v39 = vsel %vm1206_vm9, %v1191_v36, %v3633_v37 }
 0x102   : > { %1231 = vmatprep.subr.bf16.mxu0 %v1208_v39  ;;  %2805 = vmatmul.mubr.msk.bf16.vlgmr.msra.gmra.mrb[0].mxu0 %vm354_vm4, %v3635_v38 }
 0x103   : > { %1263 = vmatprep.mubr.bf16.mxu0 %v3187_v10 }
 0x104   : > { %v1189_v40 = vpop.permute.xlu0 %1188 }
 0x105   : > { %v1207_v41 = vsel %vm1206_vm9, %v1189_v40, %v1191_v36  ;;  %v771_v42 = vpop.permute.xlu1 %770 }
 0x106   : > { %v781_v44 = vsel %vm772_vm6, %v3561_v58, %v771_v42  ;;  %1232 = vmatpush1.bf16.msra.mxu0 %v1207_v41 }
 0x107   : > { %v798_v45 = vsel %vm358_vm2, %v781_v44, 0 }
 0x108   : > { %2930 = vmatpush3.bf16.msra.mxu1 %v798_v45  ;;  %v1197_v46 = vpop.permute.xlu0 %1196 }
 0x109   : > { %v1199_v49 = vpop.permute.xlu1 %1198  ;;  %2935 = vmatprep.subr.bf16.mxu1 %v3190_v13 }
 0x10a   : > { %v1210_v43 = vsel %vm1206_vm9, %v1197_v46, %v1199_v49 }
 0x10b   : > { %2932 = vmatmul.mubr.msk.bf16.vlgmr.msra.gmra.mrb[12].mxu1 %vm354_vm4, %v3571_v1  ;;  %1233 = vmatprep.subr.bf16.mxu0 %v1210_v43 }
 0x10c   : > { %2936 = vmatpush3.bf16.msra.mxu1 %v3343_v20  ;;  %v1195_v50 = vpop.permute.xlu0 %1194  ;;  %2941 = vmatprep.mubr.msk.bf16.mxu1 %vm3193_vm0, %v3190_v13  ;;  %v959_v20 = vsel %vm358_vm2, %v3386_v29, 0 }
 0x10d   : > { %v1209_v51 = vsel %vm1206_vm9, %v1195_v50, %v1197_v46  ;;  %v1201_v52 = vpop.permute.xlu1 %1200  ;;  %2937 = vmatprep.subr.bf16.mxu1 %v3190_v13 }
 0x10e   : > { %1234 = vmatpush1.bf16.msra.mxu0 %v1209_v51 }
 0x110   : > { %2938 = vmatpush3.bf16.msra.mxu1 %v3366_v24  ;;  %v1203_v54 = vpop.permute.xlu0 %1202 }
 0x111   : > { %v1211_v55 = vsel %vm1206_vm9, %v1201_v52, %v1203_v54  ;;  %v1205_v56 = vpop.permute.xlu1 %1204  ;;  %2939 = vmatprep.subr.bf16.mxu1 %v3190_v13 }
 0x112   : > { %v1223_v57 = vsel %vm358_vm2, %v1211_v55, 0  ;;  %v1212_v58 = vsel %vm1206_vm9, %v1203_v54, %v1205_v56  ;;  %v1229_v0 = vsel %vm358_vm2, %v1205_v56, 0 }
 0x113   : > { %2807 = vmatprep.subr.msk.bf16.mxu0 %vm358_vm2, %v1212_v58 }
 0x114   : > { %2940 = vmatpush3.bf16.msra.mxu1 %v959_v20  ;;  %1236 = vmatpush1.bf16.msra.mxu0 %v1223_v57  ;;  %v1339_v48 = vpop.permute.xlu0 %1338 }
 0x115   : > { %v1341_v24 = vpop.permute.xlu1 %1340  ;;  %2945 = vmatprep.subr.bf16.mxu1 %v3190_v13 }
 0x116   : > { %v1356_v59 = vsel %vm1354_vm10, %v1339_v48, %v1341_v24 }
 0x117   : > { %2942 = vmatmul.mubr.msk.bf16.vlgmr.msra.gmra.mrb[16].mxu1 %vm354_vm4, %v3600_v28  ;;  %1379 = vmatprep.subr.bf16.mxu0 %v1356_v59 }
 0x118   : > { %2946 = vmatpush3.bf16.msra.mxu1 %v3591_v60  ;;  %v1187_v29 = vpop.permute.xlu0 %1186  ;;  %2951 = vmatprep.mubr.msk.bf16.mxu1 %vm3193_vm0, %v3190_v13 }
 0x119   : > { %v1337_v61 = vpop.permute.xlu1 %1336  ;;  %2808 = vmatmul.mubr.msk.bf16.vlgmr.msra.gmra.mrb[0].mxu0 %vm354_vm4, %v1187_v29  ;;  %2947 = vmatprep.subr.bf16.mxu1 %v3190_v13 }
 0x11a   : > { %v1355_v47 = vsel %vm1354_vm10, %v1337_v61, %v1339_v48  ;;  %1411 = vmatprep.mubr.bf16.mxu0 %v3187_v10 }
 0x11b   : > { %1380 = vmatpush1.bf16.msra.mxu0 %v1355_v47 }
 0x11c   : > { %2948 = vmatpush3.bf16.msra.mxu1 %v3610_v11  ;;  %v1345_v62 = vpop.permute.xlu0 %1344 }
 0x11d   : > { %v1347_v63 = vpop.permute.xlu1 %1346  ;;  %2949 = vmatprep.subr.bf16.mxu1 %v3190_v13 }
 0x11e   : > { %v1358_v1 = vsel %vm1354_vm10, %v1345_v62, %v1347_v63 }
 0x11f   : > { %1381 = vmatprep.subr.bf16.mxu0 %v1358_v1 }
 0x120   : > { %2950 = vmatpush3.bf16.msra.mxu1 %v1094_v2  ;;  %v1343_v3 = vpop.permute.xlu0 %1342 }
 0x121   : > { %v1357_v4 = vsel %vm1354_vm10, %v1343_v3, %v1345_v62  ;;  %v1349_v19 = vpop.permute.xlu1 %1348  ;;  %2955 = vmatprep.subr.bf16.mxu1 %v3190_v13 }
 0x122   : > { %1382 = vmatpush1.bf16.msra.mxu0 %v1357_v4 }
 0x123   : > { %2952 = vmatmul.mubr.msk.bf16.vlgmr.msra.gmra.mrb[20].mxu1 %vm354_vm4, %v3635_v38 }
 0x124   : > { %2956 = vmatpush3.bf16.msra.mxu1 %v3633_v37  ;;  %v1351_v53 = vpop.permute.xlu0 %1350  ;;  %2961 = vmatprep.mubr.msk.bf16.mxu1 %vm3193_vm0, %v3190_v13 }
 0x125   : > { %v1359_v6 = vsel %vm1354_vm10, %v1349_v19, %v1351_v53  ;;  %v1353_v22 = vpop.permute.xlu1 %1352  ;;  %2957 = vmatprep.subr.bf16.mxu1 %v3190_v13 }
 0x126   : > { %v1371_v23 = vsel %vm358_vm2, %v1359_v6, 0  ;;  %v1360_v60 = vsel %vm1354_vm10, %v1351_v53, %v1353_v22  ;;  %v1377_v18 = vsel %vm358_vm2, %v1353_v22, 0 }
 0x127   : > { %2812 = vmatprep.subr.msk.bf16.mxu0 %vm358_vm2, %v1360_v60 }
 0x128   : > { %2958 = vmatpush3.bf16.msra.mxu1 %v1199_v49  ;;  %1384 = vmatpush1.bf16.msra.mxu0 %v1371_v23  ;;  %v1332_v12 = vpop.permute.xlu0 %1331 }
 0x129   : > { %v1334_v25 = vpop.permute.xlu1 %1333  ;;  %2959 = vmatprep.subr.bf16.mxu1 %v3190_v13 }
 0x12a   : > { %v1335_v28 = vsel %vm338_vm1, %v1332_v12, %v1334_v25  ;;  %v1643_v25 = vlaneseq }
 0x12b   : > { %2813 = vmatmul.mubr.msk.bf16.vlgmr.msra.gmra.mrb[0].mxu0 %vm354_vm4, %v1335_v28 }
 0x12c   : > { %2960 = vmatpush3.bf16.msra.mxu1 %v1229_v0  ;;  %v1481_v27 = vpop.permute.xlu0 %1480  ;;  %1553 = vmatprep.mubr.bf16.mxu0 %v3187_v10 }
 0x12d   : > { %v1483_v7 = vpop.permute.xlu1 %1482  ;;  %2965 = vmatprep.subr.bf16.mxu1 %v3190_v13 }
 0x12e   : > { %v1498_v5 = vsel %vm1496_vm11, %v1481_v27, %v1483_v7 }
 0x12f   : > { %2962 = vmatmul.mubr.msk.bf16.vlgmr.msra.gmra.mrb[24].mxu1 %vm354_vm4, %v1187_v29  ;;  %1521 = vmatprep.subr.bf16.mxu0 %v1498_v5 }
 0x130   : > { %2966 = vmatpush3.bf16.msra.mxu1 %v1341_v24  ;;  %v1479_v8 = vpop.permute.xlu0 %1478  ;;  %2971 = vmatprep.mubr.msk.bf16.mxu1 %vm3193_vm0, %v3190_v13 }
 0x131   : > { %v1497_v9 = vsel %vm1496_vm11, %v1479_v8, %v1481_v27  ;;  %v1487_v11 = vpop.permute.xlu1 %1486  ;;  %2967 = vmatprep.subr.bf16.mxu1 %v3190_v13  ;;  %v3745_v8 = vshrl.u32 %v1643_v25, 7 }
 0x132   : > { %1522 = vmatpush1.bf16.msra.mxu0 %v1497_v9 }
 0x134   : > { %2968 = vmatpush3.bf16.msra.mxu1 %v1347_v63  ;;  %v1489_v14 = vpop.permute.xlu0 %1488 }
 0x135   : > { %v1485_v15 = vpop.permute.xlu1 %1484  ;;  %2969 = vmatprep.subr.bf16.mxu1 %v3190_v13  ;;  %v1500_v16 = vsel %vm1496_vm11, %v1487_v11, %v1489_v14 }
 0x136   : > { %v1499_v17 = vsel %vm1496_vm11, %v1485_v15, %v1487_v11  ;;  %1523 = vmatprep.subr.bf16.mxu0 %v1500_v16  ;;  %v1645_v16 = vsub.s32 0, %v3745_v8 }
 0x137   : > { %1524 = vmatpush1.bf16.msra.mxu0 %v1499_v17 }
 0x138   : > { %2970 = vmatpush3.bf16.msra.mxu1 %v1377_v18  ;;  %v1491_v21 = vpop.permute.xlu0 %1490  ;;  %v1641_v18 = vld [vmem:[%s3942_s1] sm:$0x7] }
 0x139   : > { %v1493_v26 = vpop.permute.xlu1 %1492  ;;  %2975 = vmatprep.subr.bf16.mxu1 %v3190_v13 }
 0x13a   : > { %v1501_v30 = vsel %vm1496_vm11, %v1491_v21, %v1493_v26 }
 0x13b   : > { %2972 = vmatmul.mubr.msk.bf16.vlgmr.msra.gmra.mrb[28].mxu1 %vm354_vm4, %v1335_v28  ;;  %v1513_v33 = vsel %vm358_vm2, %v1501_v30, 0 }
 0x13c   : > { %2976 = vmatpush3.bf16.msra.mxu1 %v1483_v7  ;;  %v1495_v31 = vpop.permute.xlu0 %1494  ;;  %2981 = vmatprep.mubr.msk.bf16.mxu1 %vm3193_vm0, %v3190_v13 }
 0x13d   : > { %v1502_v32 = vsel %vm1496_vm11, %v1493_v26, %v1495_v31  ;;  %2977 = vmatprep.subr.bf16.mxu1 %v3190_v13  ;;  %v1477_v35 = vpop.permute.xlu1 %1476  ;;  %v1519_v34 = vsel %vm358_vm2, %v1495_v31, 0  ;;  %v1649_v26 = vsub.s32 1, %v3745_v8 }
 0x13e   : > { %2816 = vmatprep.subr.msk.bf16.mxu0 %vm358_vm2, %v1502_v32 }
 0x13f   : > { %1526 = vmatpush1.bf16.msra.mxu0 %v1513_v33 }
 0x140   : > { %2978 = vmatpush3.bf16.msra.mxu1 %v1489_v14 }
 0x141   : > { %2979 = vmatprep.subr.bf16.mxu1 %v3190_v13 }
 0x142   : > { %2817 = vmatmul.mubr.msk.bf16.vlgmr.msra.gmra.mrb[0].mxu0 %vm354_vm4, %v1477_v35 }
 0x143   : > { %1742 = vmatprep.mubr.bf16.mxu0 %v3187_v10 }
 0x144   : > { %2980 = vmatpush3.bf16.msra.mxu1 %v1519_v34 }
 0x145   : > { %2985 = vmatprep.subr.bf16.mxu1 %v3190_v13 }
 0x147   : > { %2982 = vmatmul.mubr.msk.bf16.vlgmr.msra.gmra.mrb[32].mxu1 %vm354_vm4, %v1477_v35 }
 0x148   : > { %2987 = vmatprep.mubr.msk.bf16.mxu1 %vm3193_vm0, %v3190_v13 }
 0x14f   : > { %v1616_v9 = vpop.permute.xlu0 %1615  ;;  %v1621_v14 = vpop.permute.xlu1 %1620 }
 0x1a1   : > { %v445_v36 = vpop.f32.mrb[0].mxu1 }
 0x1a2   : > { %v2903_v37 = vpop.f32.mrb[1].mxu1 }
 0x1a3   : > { %v448_v38 = vpop.f32.mrb[2].mxu1  ;;  %v1646_v37 = vrot.slane %v1641_v18, %v1645_v16 }
 0x1a4   : > { %v2904_v39 = vpop.f32.mrb[3].mxu1 }
 0x1b6   : > { %v581_v40 = vpop.f32.mrb[4].mxu1 }
 0x1b7   : > { %v582_v41 = vadd.f32 %v581_v40, %v445_v36  ;;  %v2913_v42 = vpop.f32.mrb[5].mxu1 }
 0x1b8   : > { %v584_v44 = vpop.f32.mrb[6].mxu1 }
 0x1b9   : > { %v585_v45 = vadd.f32 %v584_v44, %v448_v38  ;;  %v2914_v10 = vpop.f32.mrb[7].mxu1 }
 0x1c5   : > { %v719_v46 = vpop.f32.mrb[8].mxu1 }
 0x1c6   : > { %v728_v49 = vadd.f32 %v719_v46, %v582_v41  ;;  %v2923_v43 = vpop.f32.mrb[9].mxu1  ;;  %v1650_v41 = vrot.slane %v1641_v18, %v1649_v26 }
 0x1c7   : > { %v722_v50 = vpop.f32.mrb[10].mxu1 }
 0x1c8   : > { %v731_v51 = vadd.f32 %v722_v50, %v585_v45  ;;  %v2924_v52 = vpop.f32.mrb[11].mxu1  ;;  %v1653_v50 = vsub.s32 2, %v3745_v8 }
 0x1de   : > { %v877_v54 = vpop.f32.mrb[12].mxu1 }
 0x1df   : > { %v886_v55 = vadd.f32 %v877_v54, %v728_v49  ;;  %v2933_v56 = vpop.f32.mrb[13].mxu1 }
 0x1e0   : > { %v880_v20 = vpop.f32.mrb[14].mxu1 }
 0x1e1   : > { %v889_v57 = vadd.f32 %v880_v20, %v731_v51  ;;  %v2934_v58 = vpop.f32.mrb[15].mxu1 }
 0x1ea   : > { %v1038_v48 = vpop.f32.mrb[16].mxu1 }
 0x1eb   : > { %v1047_v24 = vadd.f32 %v1038_v48, %v886_v55  ;;  %v2943_v59 = vpop.f32.mrb[17].mxu1 }
 0x1ec   : > { %v1041_v29 = vpop.f32.mrb[18].mxu1 }
 0x1ed   : > { %v1050_v61 = vadd.f32 %v1041_v29, %v889_v57  ;;  %v2944_v47 = vpop.f32.mrb[19].mxu1  ;;  %v1654_v29 = vrot.slane %v1641_v18, %v1653_v50 }
 0x1f6   : > { %v1173_v62 = vpop.f32.mrb[20].mxu1 }
 0x1f7   : > { %v1182_v63 = vadd.f32 %v1173_v62, %v1047_v24  ;;  %v2953_v1 = vpop.f32.mrb[21].mxu1  ;;  %v3770_v62 = vld [vmem:[%s3945_s4] ss:$8 sps:$4 sm:$0xff]  }
 0x1f8   : > { %v1176_v2 = vpop.f32.mrb[22].mxu1 }
 0x1f9   : > { %v1185_v3 = vadd.f32 %v1176_v2, %v1050_v61  ;;  %v2954_v4 = vpop.f32.mrb[23].mxu1  ;;  %v3772_v2 = vld [vmem:[#allocation2] sm:$0xff] }
 0x202   : > { %v1308_v19 = vpop.f32.mrb[24].mxu1 }
 0x203   : > { %v1317_v53 = vadd.f32 %v1308_v19, %v1182_v63  ;;  %v2963_v6 = vpop.f32.mrb[25].mxu1  ;;  %v2637_v19 = vld [vmem:[%s3946_s5] sm:$0xff] }
 0x204   : > { %v1311_v22 = vpop.f32.mrb[26].mxu1 }
 0x205   : > { %v1320_v23 = vadd.f32 %v1311_v22, %v1185_v3  ;;  %v2964_v60 = vpop.f32.mrb[27].mxu1 }
 0x20e   : > { %v1456_v12 = vpop.f32.mrb[28].mxu1 }
 0x20f   : > { %v1465_v28 = vadd.f32 %v1456_v12, %v1317_v53  ;;  %v2973_v0 = vpop.f32.mrb[29].mxu1  ;;  %v2638_v53 = vld [vmem:[%s3946_s5 + $0x8] sm:$0xff] }
 0x210   : > { %v1459_v27 = vpop.f32.mrb[30].mxu1 }
 0x211   : > { %v1468_v7 = vadd.f32 %v1459_v27, %v1320_v23  ;;  %v2974_v5 = vpop.f32.mrb[31].mxu1 }
 0x215   : > { %v1555_v11 = vpop.f32.mrb[0].mxu0 }
 0x216   : > { %v1623_v15 = vadd.f32 %v1616_v9, %v1555_v11  ;;  %v1557_v17 = vpop.f32.mrb[1].mxu0 }
 0x217   : > { %v1624_v21 = vadd.f32 %v1616_v9, %v1557_v17  ;;  %v1559_v30 = vpop.f32.mrb[2].mxu0 }
 0x218   : > { %v1629_v31 = vmul.f32 0.2, %v1623_v15  ;;  %v1626_v32 = vadd.f32 %v1621_v14, %v1559_v30  ;;  %v1561_v33 = vpop.f32.mrb[3].mxu0 }
 0x219   : > { %v1630_v35 = vmul.f32 0.2, %v1624_v21  ;;  %v1627_v34 = vadd.f32 %v1621_v14, %v1561_v33 }
 0x21a   : > { %v1635_v36 = vmax.f32 %v1623_v15, %v1629_v31  ;;  %v1632_v38 = vmul.f32 0.2, %v1626_v32  ;;  %v1598_v39 = vpop.f32.mrb[32].mxu1 }
 0x21b   : > { %v1636_v40 = vmax.f32 %v1624_v21, %v1630_v35  ;;  %v1633_v42 = vmul.f32 0.2, %v1627_v34  ;;  %v1607_v44 = vadd.f32 %v1598_v39, %v1465_v28  ;;  %v2983_v45 = vpop.f32.mrb[33].mxu1 }
 0x21c   : > { %v1638_v10 = vmax.f32 %v1626_v32, %v1632_v38  ;;  %v1601_v46 = vpop.f32.mrb[34].mxu1  ;;  %v1658_v54 = vmul.f32 %v1646_v37, %v1635_v36 }
 0x21d   : > { %v1639_v49 = vmax.f32 %v1627_v34, %v1633_v42  ;;  %v1625_v43 = vadd.f32 %v1616_v9, %v1607_v44  ;;  %v1610_v51 = vadd.f32 %v1601_v46, %v1468_v7  ;;  %v2984_v52 = vpop.f32.mrb[35].mxu1  ;;  %v1659_v56 = vmul.f32 %v1650_v41, %v1636_v40 }
 0x21e   : > { %v1661_v55 = vmul.f32 %v1646_v37, %v1638_v10 }
 0x21f   : > { %v1662_v20 = vmul.f32 %v1650_v41, %v1639_v49  ;;  %v1631_v57 = vmul.f32 0.2, %v1625_v43  ;;  %v1628_v58 = vadd.f32 %v1621_v14, %v1610_v51 }
 0x220   : > { %v3757_v48 = vpack.c.bf16 %v1661_v55, %v1658_v54 }
 0x221   : > { %v3759_v24 = vpack.c.bf16 %v1662_v20, %v1659_v56  ;;  %v1637_v59 = vmax.f32 %v1625_v43, %v1631_v57  ;;  %v1634_v61 = vmul.f32 0.2, %v1628_v58 }
 0x222   : > { %1694 = vrot.lane.b32.xlu1 %v3757_v48, %s3186_s27 }
 0x223   : > { %v1640_v47 = vmax.f32 %v1628_v58, %v1634_v61  ;;  %1696 = vrot.lane.b32.xlu0 %v3759_v24, %s3186_s27  ;;  %v1660_v63 = vmul.f32 %v1654_v29, %v1637_v59 }
 0x225   : > { %v1663_v1 = vmul.f32 %v1654_v29, %v1640_v47 }
 0x226   : > { %1692 = vrot.lane.b32.xlu1 %v3772_v2, %s3186_s27 }
 0x227   : > { %v1671_v3 = vpack.c.bf16 %v1663_v1, %v1660_v63  ;;  %1686 = vrot.lane.b32.xlu0 %v3770_v62, %s3203_s13  ;;  %s3206_s13 = smov 64   ;;  %v3176_v1 = vld [vmem:[%s3945_s4 + $0x4] ss:$8 sps:$4 sm:$0xff]  }
 0x229   : > { %1674 = vst.msk [vmem:[#allocation2 + $0x18] sm:$0xff] %vm1667_vm13, %v1671_v3 }
 0x22a   : > { %1796 = vrot.lane.b32.xlu1 %v3757_v48, %s3188_s28 }
 0x22b   : > { %1798 = vrot.lane.b32.xlu0 %v3759_v24, %s3188_s28 }
 0x22e   : > { %1794 = vrot.lane.b32.xlu1 %v3772_v2, %s3188_s28 }
 0x22f   : > { %1899 = vrot.lane.b32.xlu0 %v3757_v48, %s3191_s8 }
 0x230   : > { %v3792_v4 = vld [vmem:[#allocation2 + $0x18] sm:$0xff] }
 0x232   : > { %1901 = vrot.lane.b32.xlu1 %v3759_v24, %s3191_s8 }
 0x233   : > { %1897 = vrot.lane.b32.xlu0 %v3772_v2, %s3191_s8 }
 0x236   : > { %1895 = vrot.lane.b32.xlu1 %v3770_v62, %s3204_s11 }
 0x237   : > { %1698 = vrot.lane.b32.xlu0 %v3792_v4, %s3186_s27  ;;  %s3207_s27 = smov 48  }
 0x23a   : > { %2008 = vrot.lane.b32.xlu1 %v3757_v48, %s3192_s9 }
 0x23b   : > { %2010 = vrot.lane.b32.xlu0 %v3759_v24, %s3192_s9 }
 0x23e   : > { %2006 = vrot.lane.b32.xlu1 %v3772_v2, %s3192_s9 }
 0x23f   : > { %1800 = vrot.lane.b32.xlu0 %v3792_v4, %s3188_s28  ;;  %s3208_s28 = smov 32  }
 0x242   : > { %2004 = vrot.lane.b32.xlu1 %v3770_v62, %s3205_s12 }
 0x243   : > { %1903 = vrot.lane.b32.xlu0 %v3792_v4, %s3191_s8  ;;  %s3209_s8 = smov 16  }
 0x246   : > { %2113 = vrot.lane.b32.xlu1 %v3770_v62, %s3206_s13 }
 0x247   : > { %2012 = vrot.lane.b32.xlu0 %v3792_v4, %s3192_s9 }
 0x24a   : > { %2212 = vrot.lane.b32.xlu1 %v3759_v24, %s3196_s16 }
 0x24b   : > { %2214 = vrot.lane.b32.xlu0 %v3792_v4, %s3196_s16 }
 0x24e   : > { %2210 = vrot.lane.b32.xlu1 %v3757_v48, %s3196_s16 }
 0x24f   : > { %2208 = vrot.lane.b32.xlu0 %v3770_v62, %s3207_s27 }
 0x252   : > { %2318 = vrot.lane.b32.xlu1 %v3759_v24, %s3198_s20 }
 0x253   : > { %2320 = vrot.lane.b32.xlu0 %v3792_v4, %s3198_s20 }
 0x256   : > { %2316 = vrot.lane.b32.xlu1 %v3757_v48, %s3198_s20 }
 0x257   : > { %2314 = vrot.lane.b32.xlu0 %v3770_v62, %s3208_s28 }
 0x25a   : > { %2424 = vrot.lane.b32.xlu1 %v3759_v24, %s3200_s24 }
 0x25b   : > { %2426 = vrot.lane.b32.xlu0 %v3792_v4, %s3200_s24 }
 0x25e   : > { %2422 = vrot.lane.b32.xlu1 %v3757_v48, %s3200_s24 }
 0x25f   : > { %2420 = vrot.lane.b32.xlu0 %v3770_v62, %s3209_s8 }
 0x262   : > { %2535 = vrot.lane.b32.xlu1 %v3759_v24, %s3202_s10 }
 0x263   : > { %2537 = vrot.lane.b32.xlu0 %v3792_v4, %s3202_s10 }
 0x266   : > { %2533 = vrot.lane.b32.xlu1 %v3757_v48, %s3202_s10 }
 0x267   : > { %2641 = vperm.xlu0 %3137, %v2637_v19  }
 0x26a   : > { %2646 = vperm.xlu1 %3138, %v2638_v53  }
 0x294   : > { %v1695_v6 = vpop.permute.xlu1 %1694 }
 0x295   : > { %v1697_v22 = vpop.permute.xlu0 %1696 }
 0x296   : > { %v1701_v23 = vsel %vm338_vm1, %v1695_v6, %v1697_v22 }
 0x297   : > { %1710 = vmatprep.subr.bf16.mxu0 %v1701_v23 }
 0x298   : > { %v1693_v60 = vpop.permute.xlu1 %1692 }
 0x299   : > { %v1700_v12 = vsel %vm338_vm1, %v1693_v60, %v1695_v6  ;;  %v1687_v25 = vpop.permute.xlu0 %1686 }
 0x29a   : > { %1711 = vmatpush1.bf16.msra.mxu0 %v1700_v12 }
 0x29c   : > { %v1797_v28 = vpop.permute.xlu1 %1796 }
 0x29d   : > { %v1799_v0 = vpop.permute.xlu0 %1798  ;;  %2820 = vmatmul.mubr.msk.bf16.vlgmr.msra.gmra.mrb[4].mxu0 %vm1706_vm14, %v1687_v25 }
 0x29e   : > { %v1803_v27 = vsel %vm476_vm3, %v1797_v28, %v1799_v0  ;;  %1843 = vmatprep.mubr.bf16.mxu0 %v3772_v2 }
 0x29f   : > { %1811 = vmatprep.subr.bf16.mxu0 %v1803_v27 }
 0x2a0   : > { %v1795_v7 = vpop.permute.xlu1 %1794 }
 0x2a1   : > { %v1802_v5 = vsel %vm476_vm3, %v1795_v7, %v1797_v28  ;;  %v1900_v9 = vpop.permute.xlu0 %1899 }
 0x2a2   : > { %1812 = vmatpush1.bf16.msra.mxu0 %v1802_v5 }
 0x2a4   : > { %v1902_v11 = vpop.permute.xlu1 %1901 }
 0x2a5   : > { %v1898_v14 = vpop.permute.xlu0 %1897  ;;  %v1906_v15 = vsel %vm614_vm5, %v1900_v9, %v1902_v11 }
 0x2a6   : > { %1914 = vmatprep.subr.bf16.mxu0 %v1906_v15  ;;  %v1905_v18 = vsel %vm614_vm5, %v1898_v14, %v1900_v9 }
 0x2a8   : > { %v1896_v17 = vpop.permute.xlu1 %1895 }
 0x2a9   : > { %v1699_v21 = vpop.permute.xlu0 %1698  ;;  %2822 = vmatmul.mubr.msk.bf16.vlgmr.msra.gmra.mrb[4].mxu0 %vm1706_vm14, %v3770_v62 }
 0x2aa   : > { %v1702_v30 = vsel %vm338_vm1, %v1697_v22, %v1699_v21  ;;  %1915 = vmatpush1.bf16.msra.mxu0 %v1905_v18  ;;  %1946 = vmatprep.mubr.bf16.mxu0 %v3772_v2 }
 0x2ab   : > { %2986 = vmatpush3.bf16.msra.mxu1 %v1702_v30 }
 0x2ac   : > { %v2009_v31 = vpop.permute.xlu1 %2008  ;;  %2991 = vmatprep.subr.bf16.mxu1 %v3190_v13 }
 0x2ad   : > { %v2011_v32 = vpop.permute.xlu0 %2010 }
 0x2ae   : > { %2988 = vmatmul.mubr.msk.bf16.vlgmr.msra.gmra.mrb[36].mxu1 %vm1706_vm14, %v1687_v25  ;;  %v2015_v33 = vsel %vm772_vm6, %v2009_v31, %v2011_v32 }
 0x2af   : > { %2023 = vmatprep.subr.bf16.mxu0 %v2015_v33  ;;  %2993 = vmatprep.mubr.msk.bf16.mxu1 %vm3193_vm0, %v3190_v13 }
 0x2b0   : > { %v2007_v35 = vpop.permute.xlu1 %2006 }
 0x2b1   : > { %v1801_v34 = vpop.permute.xlu0 %1800  ;;  %v2014_v38 = vsel %vm772_vm6, %v2007_v35, %v2009_v31 }
 0x2b2   : > { %v1804_v36 = vsel %vm476_vm3, %v1799_v0, %v1801_v34 }
 0x2b3   : > { %2992 = vmatpush3.bf16.msra.mxu1 %v1804_v36 }
 0x2b4   : > { %v2005_v37 = vpop.permute.xlu1 %2004  ;;  %2997 = vmatprep.subr.bf16.mxu1 %v3190_v13 }
 0x2b5   : > { %v1904_v39 = vpop.permute.xlu0 %1903  ;;  %2824 = vmatmul.mubr.msk.bf16.vlgmr.msra.gmra.mrb[4].mxu0 %vm1706_vm14, %v1896_v17 }
 0x2b6   : > { %v1907_v40 = vsel %vm614_vm5, %v1902_v11, %v1904_v39  ;;  %2024 = vmatpush1.bf16.msra.mxu0 %v2014_v38  ;;  %2994 = vmatmul.mubr.msk.bf16.vlgmr.msra.gmra.mrb[40].mxu1 %vm1706_vm14, %v3770_v62 }
 0x2b7   : > { %2118 = vmatprep.subr.bf16.mxu0 %v3759_v24  ;;  %2998 = vmatpush3.bf16.msra.mxu1 %v1907_v40 }
 0x2b8   : > { %2999 = vmatprep.mubr.msk.bf16.mxu1 %vm3193_vm0, %v3190_v13  ;;  %3003 = vmatprep.subr.bf16.mxu1 %v3190_v13  ;;  %v2114_v41 = vpop.permute.xlu1 %2113 }
 0x2b9   : > { %v2013_v42 = vpop.permute.xlu0 %2012  ;;  %2055 = vmatprep.mubr.bf16.mxu0 %v3772_v2 }
 0x2ba   : > { %v2016_v44 = vsel %vm772_vm6, %v2011_v32, %v2013_v42 }
 0x2bc   : > { %v2213_v45 = vpop.permute.xlu1 %2212 }
 0x2bd   : > { %v2215_v10 = vpop.permute.xlu0 %2214 }
 0x2be   : > { %3000 = vmatmul.mubr.msk.bf16.vlgmr.msra.gmra.mrb[44].mxu1 %vm1706_vm14, %v1896_v17  ;;  %v2217_v46 = vsel %vm1071_vm8, %v2213_v45, %v2215_v10 }
 0x2bf   : > { %3004 = vmatpush3.bf16.msra.mxu1 %v2016_v44  ;;  %3005 = vmatprep.mubr.msk.bf16.mxu1 %vm3193_vm0, %v3190_v13 }
 0x2c0   : > { %3009 = vmatprep.subr.bf16.mxu1 %v3190_v13  ;;  %v2211_v49 = vpop.permute.xlu1 %2210 }
 0x2c1   : > { %2826 = vmatmul.mubr.msk.bf16.vlgmr.msra.gmra.mrb[4].mxu0 %vm1706_vm14, %v2005_v37  ;;  %v2209_v43 = vpop.permute.xlu0 %2208  ;;  %v2216_v54 = vsel %vm1071_vm8, %v2211_v49, %v2213_v45 }
 0x2c2   : > { %2119 = vmatpush1.bf16.msra.mxu0 %v3757_v48  ;;  %2150 = vmatprep.mubr.bf16.mxu0 %v3772_v2 }
 0x2c3   : > { %2224 = vmatprep.subr.bf16.mxu0 %v2217_v46 }
 0x2c4   : > { %v2319_v51 = vpop.permute.xlu1 %2318 }
 0x2c5   : > { %v2321_v52 = vpop.permute.xlu0 %2320 }
 0x2c6   : > { %3006 = vmatmul.mubr.msk.bf16.vlgmr.msra.gmra.mrb[48].mxu1 %vm1706_vm14, %v2005_v37  ;;  %v2323_v55 = vsel %vm1206_vm9, %v2319_v51, %v2321_v52 }
 0x2c7   : > { %3010 = vmatpush3.bf16.msra.mxu1 %v3792_v4  ;;  %3011 = vmatprep.mubr.msk.bf16.mxu1 %vm3193_vm0, %v3190_v13 }
 0x2c8   : > { %3015 = vmatprep.subr.bf16.mxu1 %v3190_v13  ;;  %v2317_v56 = vpop.permute.xlu1 %2316 }
 0x2c9   : > { %v2315_v20 = vpop.permute.xlu0 %2314  ;;  %v2322_v48 = vsel %vm1206_vm9, %v2317_v56, %v2319_v51 }
 0x2cc   : > { %v2425_v57 = vpop.permute.xlu1 %2424 }
 0x2cd   : > { %2828 = vmatmul.mubr.msk.bf16.vlgmr.msra.gmra.mrb[4].mxu0 %vm1706_vm14, %v2114_v41  ;;  %v2427_v58 = vpop.permute.xlu0 %2426 }
 0x2ce   : > { %2225 = vmatpush1.bf16.msra.mxu0 %v2216_v54  ;;  %3012 = vmatmul.mubr.msk.bf16.vlgmr.msra.gmra.mrb[52].mxu1 %vm1706_vm14, %v2114_v41  ;;  %v2429_v24 = vsel %vm1354_vm10, %v2425_v57, %v2427_v58 }
 0x2cf   : > { %3016 = vmatpush3.bf16.msra.mxu1 %v2215_v10  ;;  %2330 = vmatprep.subr.bf16.mxu0 %v2323_v55 }
 0x2d0   : > { %3017 = vmatprep.mubr.msk.bf16.mxu1 %vm3193_vm0, %v3190_v13  ;;  %3021 = vmatprep.subr.bf16.mxu1 %v3190_v13  ;;  %v2423_v59 = vpop.permute.xlu1 %2422 }
 0x2d1   : > { %2256 = vmatprep.mubr.bf16.mxu0 %v3772_v2  ;;  %v2421_v29 = vpop.permute.xlu0 %2420  ;;  %v2428_v62 = vsel %vm1354_vm10, %v2423_v59, %v2425_v57 }
 0x2d4   : > { %v2536_v61 = vpop.permute.xlu1 %2535 }
 0x2d5   : > { %v2538_v47 = vpop.permute.xlu0 %2537 }
 0x2d6   : > { %3018 = vmatmul.mubr.msk.bf16.vlgmr.msra.gmra.mrb[56].mxu1 %vm1706_vm14, %v2209_v43  ;;  %v2540_v63 = vsel %vm1496_vm11, %v2536_v61, %v2538_v47 }
 0x2d7   : > { %3022 = vmatpush3.bf16.msra.mxu1 %v2321_v52  ;;  %3023 = vmatprep.mubr.msk.bf16.mxu1 %vm3193_vm0, %v3190_v13 }
 0x2d8   : > { %3027 = vmatprep.subr.bf16.mxu1 %v3190_v13  ;;  %v2534_v3 = vpop.permute.xlu1 %2533 }
 0x2d9   : > { %2830 = vmatmul.mubr.msk.bf16.vlgmr.msra.gmra.mrb[4].mxu0 %vm1706_vm14, %v2209_v43  ;;  %v2539_v4 = vsel %vm1496_vm11, %v2534_v3, %v2536_v61 }
 0x2da   : > { %2331 = vmatpush1.bf16.msra.mxu0 %v2322_v48  ;;  %2362 = vmatprep.mubr.bf16.mxu0 %v3772_v2 }
 0x2db   : > { %2436 = vmatprep.subr.bf16.mxu0 %v2429_v24  ;;  %v2667_v24 = vld [vmem:[%s3942_s1] sm:$0x7] }
 0x2de   : > { %3024 = vmatmul.mubr.msk.bf16.vlgmr.msra.gmra.mrb[60].mxu1 %vm1706_vm14, %v2315_v20 }
 0x2df   : > { %3028 = vmatpush3.bf16.msra.mxu1 %v2427_v58  ;;  %3029 = vmatprep.mubr.msk.bf16.mxu1 %vm3193_vm0, %v3190_v13 }
 0x2e0   : > { %3033 = vmatprep.subr.bf16.mxu1 %v3190_v13 }
 0x2e5   : > { %2832 = vmatmul.mubr.msk.bf16.vlgmr.msra.gmra.mrb[4].mxu0 %vm1706_vm14, %v2315_v20 }
 0x2e6   : > { %2437 = vmatpush1.bf16.msra.mxu0 %v2428_v62  ;;  %3030 = vmatmul.mubr.msk.bf16.vlgmr.msra.gmra.mrb[64].mxu1 %vm1706_vm14, %v2421_v29  ;;  %v2642_v48 = vpop.permute.xlu0 %2641 }
 0x2e7   : > { %2547 = vmatprep.subr.bf16.mxu0 %v2540_v63  ;;  %3034 = vmatpush3.bf16.msra.mxu1 %v2538_v47 }
 0x2e8   : > { %3035 = vmatprep.mubr.msk.bf16.mxu1 %vm3193_vm0, %v3190_v13  ;;  %2468 = vmatprep.mubr.bf16.mxu0 %v3772_v2 }
 0x2e9   : > { %v2647_v62 = vpop.permute.xlu1 %2646 }
 0x2ee   : > { %3036 = vmatmul.mubr.msk.bf16.vlgmr.msra.gmra.mrb[68].mxu1 %vm1706_vm14, %v3176_v1 }
 0x2f1   : > { %2834 = vmatmul.mubr.msk.bf16.vlgmr.msra.gmra.mrb[4].mxu0 %vm1706_vm14, %v2421_v29 }
 0x2f2   : > { %2548 = vmatpush1.bf16.msra.mxu0 %v2539_v4  ;;  %2579 = vmatprep.mubr.bf16.mxu0 %v3772_v2 }
 0x2fd   : > { %2837 = vmatmul.mubr.msk.bf16.vlgmr.msra.gmra.mrb[4].mxu0 %vm1706_vm14, %v3176_v1  ;;  %v2680_v1 = vrot.slane %v2667_v24, %v1653_v50  ;;  %v2672_v50 = vrot.slane %v2667_v24, %v1645_v16 }
 0x381   : > { %v1787_v19 = vpop.f32.mrb[36].mxu1 }
 0x382   : > { %v2989_v13 = vpop.f32.mrb[37].mxu1 }
 0x383   : > { %v1790_v53 = vpop.f32.mrb[38].mxu1 }
 0x384   : > { %v2990_v6 = vpop.f32.mrb[39].mxu1 }
 0x389   : > { %v1888_v22 = vpop.f32.mrb[40].mxu1 }
 0x38a   : > { %v1889_v23 = vadd.f32 %v1888_v22, %v1787_v19  ;;  %v2995_v60 = vpop.f32.mrb[41].mxu1 }
 0x38b   : > { %v1891_v12 = vpop.f32.mrb[42].mxu1 }
 0x38c   : > { %v1892_v25 = vadd.f32 %v1891_v12, %v1790_v53  ;;  %v2996_v28 = vpop.f32.mrb[43].mxu1 }
 0x391   : > { %v1991_v0 = vpop.f32.mrb[44].mxu1 }
 0x392   : > { %v2000_v27 = vadd.f32 %v1991_v0, %v1889_v23  ;;  %v3001_v7 = vpop.f32.mrb[45].mxu1 }
 0x393   : > { %v1994_v5 = vpop.f32.mrb[46].mxu1 }
 0x394   : > { %v2003_v9 = vadd.f32 %v1994_v5, %v1892_v25  ;;  %v3002_v11 = vpop.f32.mrb[47].mxu1  ;;  %v2676_v5 = vrot.slane %v2667_v24, %v1649_v26 }
 0x399   : > { %v2100_v14 = vpop.f32.mrb[48].mxu1 }
 0x39a   : > { %v2109_v2 = vadd.f32 %v2100_v14, %v2000_v27  ;;  %v3007_v15 = vpop.f32.mrb[49].mxu1 }
 0x39b   : > { %v2103_v17 = vpop.f32.mrb[50].mxu1 }
 0x39c   : > { %v2112_v18 = vadd.f32 %v2103_v17, %v2003_v9  ;;  %v3008_v21 = vpop.f32.mrb[51].mxu1 }
 0x3a1   : > { %v2195_v30 = vpop.f32.mrb[52].mxu1 }
 0x3a2   : > { %v2204_v31 = vadd.f32 %v2195_v30, %v2109_v2  ;;  %v3013_v32 = vpop.f32.mrb[53].mxu1 }
 0x3a3   : > { %v2198_v33 = vpop.f32.mrb[54].mxu1 }
 0x3a4   : > { %v2207_v35 = vadd.f32 %v2198_v33, %v2112_v18  ;;  %v3014_v34 = vpop.f32.mrb[55].mxu1 }
 0x3a9   : > { %v2301_v36 = vpop.f32.mrb[56].mxu1 }
 0x3aa   : > { %v2310_v37 = vadd.f32 %v2301_v36, %v2204_v31  ;;  %v3019_v38 = vpop.f32.mrb[57].mxu1 }
 0x3ab   : > { %v2304_v39 = vpop.f32.mrb[58].mxu1 }
 0x3ac   : > { %v2313_v40 = vadd.f32 %v2304_v39, %v2207_v35  ;;  %v3020_v41 = vpop.f32.mrb[59].mxu1 }
 0x3b1   : > { %v2407_v42 = vpop.f32.mrb[60].mxu1 }
 0x3b2   : > { %v2416_v44 = vadd.f32 %v2407_v42, %v2310_v37  ;;  %v3025_v45 = vpop.f32.mrb[61].mxu1 }
 0x3b3   : > { %v2410_v10 = vpop.f32.mrb[62].mxu1 }
 0x3b4   : > { %v2419_v46 = vadd.f32 %v2410_v10, %v2313_v40  ;;  %v3026_v49 = vpop.f32.mrb[63].mxu1 }
 0x3b9   : > { %v2513_v43 = vpop.f32.mrb[64].mxu1 }
 0x3ba   : > { %v2522_v51 = vadd.f32 %v2513_v43, %v2416_v44  ;;  %v3031_v52 = vpop.f32.mrb[65].mxu1 }
 0x3bb   : > { %v2516_v54 = vpop.f32.mrb[66].mxu1 }
 0x3bc   : > { %v2525_v55 = vadd.f32 %v2516_v54, %v2419_v46  ;;  %v3032_v56 = vpop.f32.mrb[67].mxu1 }
 0x3c1   : > { %v2624_v20 = vpop.f32.mrb[68].mxu1 }
 0x3c2   : > { %v2633_v57 = vadd.f32 %v2624_v20, %v2522_v51  ;;  %v3037_v58 = vpop.f32.mrb[69].mxu1 }
 0x3c3   : > { %v2627_v59 = vpop.f32.mrb[70].mxu1 }
 0x3c4   : > { %v2651_v29 = vadd.f32 %v2642_v48, %v2633_v57  ;;  %v2636_v61 = vadd.f32 %v2627_v59, %v2525_v55  ;;  %v3038_v47 = vpop.f32.mrb[71].mxu1 }
 0x3c6   : > { %v2657_v63 = vmul.f32 0.2, %v2651_v29  ;;  %v2654_v3 = vadd.f32 %v2647_v62, %v2636_v61 }
 0x3c8   : > { %v2663_v4 = vmax.f32 %v2651_v29, %v2657_v63  ;;  %v2660_v19 = vmul.f32 0.2, %v2654_v3 }
 0x3ca   : > { %v2686_v13 = vmul.f32 %v2680_v1, %v2663_v4  ;;  %v2666_v53 = vmax.f32 %v2654_v3, %v2660_v19 }
 0x3cc   : > { %2698 = vst.msk [vmem:[%s3728_s26 + $0x18] sm:$0xff] %vm1667_vm13, %v2686_v13  ;;  %v2689_v6 = vmul.f32 %v2680_v1, %v2666_v53 }
 0x3ce   : > { %2701 = vst.msk [vmem:[%s3728_s26 + $0x40] sm:$0xff] %vm1667_vm13, %v2689_v6 }
 0x3d0   : > { %v2581_v22 = vpop.f32.mrb[4].mxu0 }
 0x3d1   : > { %v2649_v23 = vadd.f32 %v2642_v48, %v2581_v22  ;;  %v2583_v60 = vpop.f32.mrb[5].mxu0 }
 0x3d2   : > { %v2650_v12 = vadd.f32 %v2642_v48, %v2583_v60  ;;  %v2585_v25 = vpop.f32.mrb[6].mxu0 }
 0x3d3   : > { %v2655_v28 = vmul.f32 0.2, %v2649_v23  ;;  %v2652_v0 = vadd.f32 %v2647_v62, %v2585_v25  ;;  %v2587_v27 = vpop.f32.mrb[7].mxu0 }
 0x3d4   : > { %v2656_v7 = vmul.f32 0.2, %v2650_v12  ;;  %v2653_v9 = vadd.f32 %v2647_v62, %v2587_v27 }
 0x3d5   : > { %v2661_v11 = vmax.f32 %v2649_v23, %v2655_v28  ;;  %v2658_v14 = vmul.f32 0.2, %v2652_v0 }
 0x3d6   : > { %v2662_v2 = vmax.f32 %v2650_v12, %v2656_v7  ;;  %v2659_v15 = vmul.f32 0.2, %v2653_v9 }
 0x3d7   : > { %v2684_v17 = vmul.f32 %v2672_v50, %v2661_v11  ;;  %v2664_v18 = vmax.f32 %v2652_v0, %v2658_v14 }
 0x3d8   : > { %v2685_v21 = vmul.f32 %v2676_v5, %v2662_v2  ;;  %v2665_v30 = vmax.f32 %v2653_v9, %v2659_v15 }
 0x3d9   : > { %2696 = vst [vmem:[%s3728_s26 + $0x8] sm:$0xff] %v2684_v17  ;;  %v2687_v16 = vmul.f32 %v2672_v50, %v2664_v18 }
 0x3da   : > { %2697 = vst [vmem:[%s3728_s26 + $0x10] sm:$0xff] %v2685_v21  ;;  %v2688_v31 = vmul.f32 %v2676_v5, %v2665_v30 }
 0x3db   : > { %2699 = vst [vmem:[%s3728_s26 + $0x30] sm:$0xff] %v2687_v16 }
 0x3dc   : > { %2700 = vst [vmem:[%s3728_s26 + $0x38] sm:$0xff] %v2688_v31 }
 0x3dd PF: > { %s16_s21 = sadd.s32 1, %s3184_s21  }
 0x3de   : > { %p13_p4 = scmp.ge.s32.totalorder %s16_s21, 4  }
 0x3e0   :  { %15 = sbr.rel (!%p13_p4) target bundleno = 1 (0x1), region = 74 }

</bundles_post_ra>
